<compile_context>
chip_gen: v7x
topology: tpu7x:2x2x1
jax: 0.10.0
libtpu: 0.0.40
codegen_flags: <defaults>
</compile_context>

<pallas_src>
import functools
import math

import jax
import jax.numpy as jnp
from jax.experimental import pallas as pl
from jax.experimental.pallas import tpu as pltpu  # noqa: F401  (TPU Pallas backend)

# ----------------------------- model hyper-parameters ------------------------------
HIDDEN = 32           # hidden_size
NUM_HEADS = 4         # num_attention_head
NUM_LAYERS = 2        # num_hidden_layers (encoder and decoder)
INTERMEDIATE = 64     # intermediate_size
VOCAB = 50            # text_vocab_size
MAX_SEQ_LEN = 64      # max_seq_len (positional-encoding table length)
LATENT_DIM = 16       # vae.latent_dim
JOINT_DIM = 12        # joint feature dim produced by vae.generate
LN_EPS = 1e-5
NEG_INF = -1e30       # additive mask value (exp underflows to exactly 0, like -inf)


# ========================= in-kernel helpers (pure jnp values) ======================

def _ln(x, gb, eps=LN_EPS):
    """LayerNorm.  x: (M, D); gb: (1, 2D) with gamma in [:, :D] and beta in [:, D:]."""
    d = x.shape[-1]
    g = gb[:, :d]
    b = gb[:, d:]
    mu = jnp.mean(x, axis=-1, keepdims=True)
    var = jnp.mean(jnp.square(x - mu), axis=-1, keepdims=True)
    return (x - mu) * jax.lax.rsqrt(var + eps) * g + b


def _attention(q, k, v, bias, wo, bo, num_heads):
    """Multi-head attention + output projection, fully in registers.

    q: (Mq, D), k/v: (Mk, D) already projected.  bias: (Mq, Mk) additive mask that
    encodes both the block-diagonal batch structure and any key padding.  Heads are
    static lane slices of width D//H; concat(head outputs) @ wo is computed as
    sum_h(o_h @ wo[h*Dh:(h+1)*Dh, :]) so no concatenation is materialized.
    """
    d = q.shape[-1]
    dh = d // num_heads
    scale = 1.0 / math.sqrt(dh)
    proj = None
    for h in range(num_heads):
        sl = slice(h * dh, (h + 1) * dh)
        qh = q[:, sl]
        kh = k[:, sl]
        vh = v[:, sl]
        s = jax.lax.dot_general(qh, kh, (((1,), (1,)), ((), ())),
                                preferred_element_type=jnp.float32) * scale + bias
        m = jnp.max(s, axis=-1, keepdims=True)
        p = jnp.exp(s - m)
        denom = jnp.sum(p, axis=-1, keepdims=True)
        oh = jnp.dot(p, vh, preferred_element_type=jnp.float32)
        oh = oh * pl.reciprocal(denom, approx=True)      # EUP slot, off the VPU path
        contrib = jnp.dot(oh, wo[sl, :], preferred_element_type=jnp.float32)
        proj = contrib if proj is None else proj + contrib
    return proj + bo


def _ffn(x, w1, b1, w2, b2):
    h = jnp.maximum(jnp.dot(x, w1, preferred_element_type=jnp.float32) + b1, 0.0)
    return jnp.dot(h, w2, preferred_element_type=jnp.float32) + b2


# ================================= Pallas kernels ==================================

def _encoder_kernel(src_ref, bias_ref,
                    wqkv_ref, bqkv_ref, wo_ref, bo_ref, ln1_ref,
                    ffw1_ref, ffb1_ref, ffw2_ref, ffb2_ref, ln2_ref,
                    norm_ref, out_ref, *, num_layers, num_heads):
    """All encoder layers (post-norm, ReLU FFN) + final encoder LayerNorm, one call."""
    d = src_ref.shape[-1]
    x = src_ref[...]                       # (B*Tt, D)
    bias = bias_ref[...]                   # (B*Tt, B*Tt) additive (batch-block + pad)
    for l in range(num_layers):
        qkv = jnp.dot(x, wqkv_ref[l], preferred_element_type=jnp.float32) + bqkv_ref[l]
        a = _attention(qkv[:, :d], qkv[:, d:2 * d], qkv[:, 2 * d:], bias,
                       wo_ref[l], bo_ref[l], num_heads)
        x = _ln(x + a, ln1_ref[l])
        x = _ln(x + _ffn(x, ffw1_ref[l], ffb1_ref[l], ffw2_ref[l], ffb2_ref[l]),
                ln2_ref[l])
    out_ref[...] = _ln(x, norm_ref[...])


def _decoder_tail_kernel(tgt_ref, mem_ref, sbias_ref, xbias_ref, joint_ref, jmask_ref,
                         sa_wqkv_ref, sa_bqkv_ref, sa_wo_ref, sa_bo_ref, ln1_ref,
                         ca_wq_ref, ca_bq_ref, ca_wkv_ref, ca_bkv_ref, ca_wo_ref,
                         ca_bo_ref, ln2_ref,
                         ffw1_ref, ffb1_ref, ffw2_ref, ffb2_ref, ln3_ref,
                         norm_ref, tlln_ref, tlw_ref, tlb_ref,
                         vw1_ref, vb1_ref, vw2_ref, vb2_ref,
                         out_ref, *, num_layers, num_heads, emit_outs, inv_count):
    """All decoder layers + final LayerNorm + to_latent + VAE stub + masked MSE."""
    d = tgt_ref.shape[-1]
    x = tgt_ref[...]                       # (B*Tf, D) time queries
    mem = mem_ref[...]                     # (B*Tt, D) encoder memory
    sbias = sbias_ref[...]                 # (B*Tf, B*Tf)
    xbias = xbias_ref[...]                 # (B*Tf, B*Tt)
    for l in range(num_layers):
        # self-attention (tgt key padding is baked into sbias)
        qkv = jnp.dot(x, sa_wqkv_ref[l], preferred_element_type=jnp.float32) + sa_bqkv_ref[l]
        a = _attention(qkv[:, :d], qkv[:, d:2 * d], qkv[:, 2 * d:], sbias,
                       sa_wo_ref[l], sa_bo_ref[l], num_heads)
        x = _ln(x + a, ln1_ref[l])
        # cross-attention (memory_key_padding_mask=None in the reference forward)
        q = jnp.dot(x, ca_wq_ref[l], preferred_element_type=jnp.float32) + ca_bq_ref[l]
        kv = jnp.dot(mem, ca_wkv_ref[l], preferred_element_type=jnp.float32) + ca_bkv_ref[l]
        c = _attention(q, kv[:, :d], kv[:, d:], xbias,
                       ca_wo_ref[l], ca_bo_ref[l], num_heads)
        x = _ln(x + c, ln2_ref[l])
        x = _ln(x + _ffn(x, ffw1_ref[l], ffb1_ref[l], ffw2_ref[l], ffb2_ref[l]),
                ln3_ref[l])
    x = _ln(x, norm_ref[...])                               # final decoder LayerNorm

    # to_latent: ReLU -> LayerNorm -> Linear (stays in VMEM, never hits HBM)
    z = _ln(jnp.maximum(x, 0.0), tlln_ref[...])
    z = jnp.dot(z, tlw_ref[...], preferred_element_type=jnp.float32) + tlb_ref[...]

    # TODO(synk): the real VAE decoder comes from an external checkpoint; a 2-layer MLP
    # (latent -> 2*latent -> joint_dim) stands in for vae.generate(z).
    h = jnp.maximum(jnp.dot(z, vw1_ref[...], preferred_element_type=jnp.float32)
                    + vb1_ref[...], 0.0)
    outs = jnp.dot(h, vw2_ref[...], preferred_element_type=jnp.float32) + vb2_ref[...]

    if emit_outs:
        out_ref[...] = outs                                  # (B*Tf, JOINT_DIM)
    else:
        # masked MSE: sum over joint dim, zero padded frames, mean over all B*Tf frames
        diff = outs - joint_ref[...]
        per = jnp.sum(diff * diff, axis=-1, keepdims=True) * (1.0 - jmask_ref[...])
        out_ref[...] = jnp.sum(per, axis=0, keepdims=True) * inv_count   # (1, 1)


# ================================ pallas_call wrappers ==============================

def _encode(params, src_flat, src_bias):
    m, d = src_flat.shape
    p = params["enc"]
    return pl.pallas_call(
        functools.partial(_encoder_kernel, num_layers=NUM_LAYERS, num_heads=NUM_HEADS),
        out_shape=jax.ShapeDtypeStruct((m, d), jnp.float32),
    )(src_flat, src_bias, p["wqkv"], p["bqkv"], p["wo"], p["bo"], p["ln1"],
      p["ffw1"], p["ffb1"], p["ffw2"], p["ffb2"], p["ln2"], p["norm"])


def _decode_tail(params, tgt_flat, mem_flat, self_bias, cross_bias,
                 joint_flat, jmask_flat, inv_count, return_outs):
    m, _ = tgt_flat.shape
    p = params["dec"]
    t = params["tail"]
    out_shape = (jax.ShapeDtypeStruct((m, JOINT_DIM), jnp.float32) if return_outs
                 else jax.ShapeDtypeStruct((1, 1), jnp.float32))
    return pl.pallas_call(
        functools.partial(_decoder_tail_kernel, num_layers=NUM_LAYERS,
                          num_heads=NUM_HEADS, emit_outs=return_outs,
                          inv_count=inv_count),
        out_shape=out_shape,
    )(tgt_flat, mem_flat, self_bias, cross_bias, joint_flat, jmask_flat,
      p["sa_wqkv"], p["sa_bqkv"], p["sa_wo"], p["sa_bo"], p["ln1"],
      p["ca_wq"], p["ca_bq"], p["ca_wkv"], p["ca_bkv"], p["ca_wo"], p["ca_bo"], p["ln2"],
      p["ffw1"], p["ffb1"], p["ffw2"], p["ffb2"], p["ln3"],
      p["norm"], t["tl_ln"], t["tl_w"], t["tl_b"],
      t["vw1"], t["vb1"], t["vw2"], t["vb2"])


# ================================== glue (XLA, tiny) ================================

def positional_encoding(max_len, d):
    pos = jnp.arange(max_len, dtype=jnp.float32)[:, None]
    div = jnp.exp(jnp.arange(0, d, 2, dtype=jnp.float32) * (-math.log(10000.0) / d))
    pe = jnp.zeros((max_len, d), jnp.float32)
    pe = pe.at[:, 0::2].set(jnp.sin(pos * div))
    pe = pe.at[:, 1::2].set(jnp.cos(pos * div))
    return pe


def _attn_bias(batch, t_q, t_k, key_pad_mask=None):
    """(B*Tq, B*Tk) additive bias: 0 where attention is allowed, NEG_INF otherwise.

    Encodes the block-diagonal batch structure (so batched attention runs as one flat
    score matrix inside the kernel) plus optional key padding (True = padded)."""
    qb = jnp.repeat(jnp.arange(batch), t_q)
    kb = jnp.repeat(jnp.arange(batch), t_k)
    allowed = qb[:, None] == kb[None, :]
    if key_pad_mask is not None:
        allowed = jnp.logical_and(
            allowed, jnp.logical_not(key_pad_mask.reshape(batch * t_k))[None, :])
    return jnp.where(allowed, 0.0, NEG_INF).astype(jnp.float32)


@functools.partial(jax.jit, static_argnames=("return_outs",))
def forward(params, text_input_ids, text_pad_mask, joint_inputs, joint_pad_mask,
            return_outs=False):
    b, t_text = text_input_ids.shape
    _, n_frame, _ = joint_inputs.shape
    d = HIDDEN
    pe = params["pe"]

    # text embedding + positional encoding; time queries = zeros + positional encoding
    embed_text = jnp.take(params["text_emb"], text_input_ids, axis=0) + pe[:t_text][None]
    src_flat = embed_text.reshape(b * t_text, d)
    tgt_flat = jnp.broadcast_to(pe[:n_frame][None], (b, n_frame, d)).reshape(b * n_frame, d)

    # additive attention biases, built once outside the kernels
    src_bias = _attn_bias(b, t_text, t_text, text_pad_mask)
    tgt_self_bias = _attn_bias(b, n_frame, n_frame, joint_pad_mask)
    cross_bias = _attn_bias(b, n_frame, t_text, None)   # memory_key_padding_mask=None

    mem_flat = _encode(params, src_flat, src_bias)

    out = _decode_tail(params, tgt_flat, mem_flat, tgt_self_bias, cross_bias,
                       joint_inputs.reshape(b * n_frame, JOINT_DIM),
                       joint_pad_mask.astype(jnp.float32).reshape(b * n_frame, 1),
                       1.0 / (b * n_frame), return_outs)
    if return_outs:
        return out.reshape(b, n_frame, JOINT_DIM)
    return out[0, 0]


# ================================== parameter init ==================================

def init_params(key):
    keys = iter(jax.random.split(key, 64))

    def w(shape, scale=0.02):
        return jax.random.normal(next(keys), shape, jnp.float32) * scale

    l, d, it = NUM_LAYERS, HIDDEN, INTERMEDIATE

    def ln_pair():      # gamma | beta packed along the lane axis -> (1, 2D)
        return jnp.concatenate([jnp.ones((1, d), jnp.float32),
                                jnp.zeros((1, d), jnp.float32)], axis=-1)

    def ln_stack():     # (L, 1, 2D)
        return jnp.tile(ln_pair()[None], (l, 1, 1))

    enc = {
        "wqkv": w((l, d, 3 * d)), "bqkv": w((l, 1, 3 * d)),
        "wo": w((l, d, d)), "bo": w((l, 1, d)),
        "ln1": ln_stack(),
        "ffw1": w((l, d, it)), "ffb1": w((l, 1, it)),
        "ffw2": w((l, it, d)), "ffb2": w((l, 1, d)),
        "ln2": ln_stack(),
        "norm": ln_pair(),
    }
    dec = {
        "sa_wqkv": w((l, d, 3 * d)), "sa_bqkv": w((l, 1, 3 * d)),
        "sa_wo": w((l, d, d)), "sa_bo": w((l, 1, d)),
        "ln1": ln_stack(),
        "ca_wq": w((l, d, d)), "ca_bq": w((l, 1, d)),
        "ca_wkv": w((l, d, 2 * d)), "ca_bkv": w((l, 1, 2 * d)),
        "ca_wo": w((l, d, d)), "ca_bo": w((l, 1, d)),
        "ln2": ln_stack(),
        "ffw1": w((l, d, it)), "ffb1": w((l, 1, it)),
        "ffw2": w((l, it, d)), "ffb2": w((l, 1, d)),
        "ln3": ln_stack(),
        "norm": ln_pair(),
    }
    tail = {
        "tl_ln": ln_pair(),
        "tl_w": w((d, LATENT_DIM)), "tl_b": jnp.zeros((1, LATENT_DIM), jnp.float32),
        "vw1": w((LATENT_DIM, 2 * LATENT_DIM)),
        "vb1": jnp.zeros((1, 2 * LATENT_DIM), jnp.float32),
        "vw2": w((2 * LATENT_DIM, JOINT_DIM)),
        "vb2": jnp.zeros((1, JOINT_DIM), jnp.float32),
    }
    return {
        "text_emb": w((VOCAB, d), 1.0),
        "pe": positional_encoding(MAX_SEQ_LEN, d),
        "enc": enc,
        "dec": dec,
        "tail": tail,
    }


# ======================================= main ======================================

if __name__ == "__main__":
    root = jax.random.PRNGKey(0)
    k_param, k_ids, k_joint = jax.random.split(root, 3)

    params = init_params(k_param)

    B, T_TEXT, N_FRAME = 2, 8, 8
    text_input_ids = jax.random.randint(k_ids, (B, T_TEXT), 0, VOCAB)
    text_pad_mask = jnp.zeros((B, T_TEXT), jnp.bool_).at[:, 6:].set(True)
    joint_inputs = jax.random.normal(k_joint, (B, N_FRAME, JOINT_DIM), jnp.float32)
    joint_pad_mask = jnp.zeros((B, N_FRAME), jnp.bool_).at[1, 5:].set(True)

    loss = forward(params, text_input_ids, text_pad_mask, joint_inputs, joint_pad_mask)
    loss = jax.block_until_ready(loss)
    assert loss.shape == () and bool(jnp.isfinite(loss))

    outs = forward(params, text_input_ids, text_pad_mask, joint_inputs, joint_pad_mask,
                   return_outs=True)
    outs = jax.block_until_ready(outs)
    assert outs.shape == (B, N_FRAME, JOINT_DIM) and bool(jnp.all(jnp.isfinite(outs)))

    print("KERNEL_OK")
</pallas_src>

<mosaic_0001>
module attributes {stable_mosaic.version = 11 : i64} {
  func.func @_encoder_kernel(%arg0: memref<16x32xf32, #tpu.memory_space<vmem>>, %arg1: memref<16x16xf32, #tpu.memory_space<vmem>>, %arg2: memref<2x32x96xf32, #tpu.memory_space<vmem>>, %arg3: memref<2x1x96xf32, #tpu.memory_space<vmem>>, %arg4: memref<2x32x32xf32, #tpu.memory_space<vmem>>, %arg5: memref<2x1x32xf32, #tpu.memory_space<vmem>>, %arg6: memref<2x1x64xf32, #tpu.memory_space<vmem>>, %arg7: memref<2x32x64xf32, #tpu.memory_space<vmem>>, %arg8: memref<2x1x64xf32, #tpu.memory_space<vmem>>, %arg9: memref<2x64x32xf32, #tpu.memory_space<vmem>>, %arg10: memref<2x1x32xf32, #tpu.memory_space<vmem>>, %arg11: memref<2x1x64xf32, #tpu.memory_space<vmem>>, %arg12: memref<1x64xf32, #tpu.memory_space<vmem>>, %arg13: memref<16x32xf32, #tpu.memory_space<vmem>>) attributes {dimension_semantics = [], scalar_prefetch = 0 : i64, scratch_operands = 0 : i64, tpu.core_type = #tpu.core_type<tc>} {
    %c0 = arith.constant 0 : index
    %c0_0 = arith.constant 0 : index
    %0 = vector.load %arg0[%c0, %c0_0] : memref<16x32xf32, #tpu.memory_space<vmem>>, vector<16x32xf32>
    %c0_1 = arith.constant 0 : index
    %c0_2 = arith.constant 0 : index
    %1 = vector.load %arg1[%c0_1, %c0_2] : memref<16x16xf32, #tpu.memory_space<vmem>>, vector<16x16xf32>
    %c0_3 = arith.constant 0 : index
    %c0_4 = arith.constant 0 : index
    %c0_5 = arith.constant 0 : index
    %2 = vector.load %arg2[%c0_3, %c0_4, %c0_5] : memref<2x32x96xf32, #tpu.memory_space<vmem>>, vector<1x32x96xf32>
    %3 = vector.shape_cast %2 : vector<1x32x96xf32> to vector<32x96xf32>
    %cst = arith.constant dense<0.000000e+00> : vector<16x96xf32>
    %4 = tpu.matmul %0, %3, %cst {dimension_numbers = #tpu.dot_dimension_numbers<[1], [0], [0], [1], [0, 0, 1, 1], [], []>} : vector<16x32xf32>, vector<32x96xf32>, vector<16x96xf32> -> vector<16x96xf32>
    %c0_6 = arith.constant 0 : index
    %c0_7 = arith.constant 0 : index
    %c0_8 = arith.constant 0 : index
    %5 = vector.load %arg3[%c0_6, %c0_7, %c0_8] : memref<2x1x96xf32, #tpu.memory_space<vmem>>, vector<1x1x96xf32>
    %6 = vector.shape_cast %5 : vector<1x1x96xf32> to vector<1x96xf32>
    %7 = vector.broadcast %6 : vector<1x96xf32> to vector<16x96xf32>
    %8 = arith.addf %4, %7 : vector<16x96xf32>
    %9 = vector.extract_strided_slice %8 {offsets = [0, 0], sizes = [16, 32], strides = [1, 1]} : vector<16x96xf32> to vector<16x32xf32>
    %10 = vector.extract_strided_slice %8 {offsets = [0, 32], sizes = [16, 32], strides = [1, 1]} : vector<16x96xf32> to vector<16x32xf32>
    %11 = vector.extract_strided_slice %8 {offsets = [0, 64], sizes = [16, 32], strides = [1, 1]} : vector<16x96xf32> to vector<16x32xf32>
    %c0_9 = arith.constant 0 : index
    %c0_10 = arith.constant 0 : index
    %c0_11 = arith.constant 0 : index
    %12 = vector.load %arg4[%c0_9, %c0_10, %c0_11] : memref<2x32x32xf32, #tpu.memory_space<vmem>>, vector<1x32x32xf32>
    %13 = vector.shape_cast %12 : vector<1x32x32xf32> to vector<32x32xf32>
    %c0_12 = arith.constant 0 : index
    %c0_13 = arith.constant 0 : index
    %c0_14 = arith.constant 0 : index
    %14 = vector.load %arg5[%c0_12, %c0_13, %c0_14] : memref<2x1x32xf32, #tpu.memory_space<vmem>>, vector<1x1x32xf32>
    %15 = vector.shape_cast %14 : vector<1x1x32xf32> to vector<1x32xf32>
    %16 = vector.extract_strided_slice %9 {offsets = [0, 0], sizes = [16, 8], strides = [1, 1]} : vector<16x32xf32> to vector<16x8xf32>
    %17 = vector.extract_strided_slice %10 {offsets = [0, 0], sizes = [16, 8], strides = [1, 1]} : vector<16x32xf32> to vector<16x8xf32>
    %18 = vector.extract_strided_slice %11 {offsets = [0, 0], sizes = [16, 8], strides = [1, 1]} : vector<16x32xf32> to vector<16x8xf32>
    %cst_15 = arith.constant dense<0.000000e+00> : vector<16x16xf32>
    %19 = tpu.matmul %16, %17, %cst_15 {dimension_numbers = #tpu.dot_dimension_numbers<[1], [1], [0], [0], [0, 0, 1, 0], [], []>} : vector<16x8xf32>, vector<16x8xf32>, vector<16x16xf32> -> vector<16x16xf32>
    %cst_16 = arith.constant 0.353553385 : f32
    %20 = vector.broadcast %cst_16 : f32 to vector<16x16xf32>
    %21 = arith.mulf %19, %20 : vector<16x16xf32>
    %22 = arith.addf %21, %1 : vector<16x16xf32>
    %cst_17 = arith.constant dense<0xFF800000> : vector<16xf32>
    %23 = vector.multi_reduction <maximumf>, %22, %cst_17 [1] : vector<16x16xf32> to vector<16xf32>
    %24 = vector.shape_cast %23 : vector<16xf32> to vector<16x1xf32>
    %25 = vector.broadcast %24 : vector<16x1xf32> to vector<16x16xf32>
    %26 = arith.subf %22, %25 : vector<16x16xf32>
    %27 = math.exp %26 : vector<16x16xf32>
    %cst_18 = arith.constant dense<0.000000e+00> : vector<16xf32>
    %28 = vector.multi_reduction <add>, %27, %cst_18 [1] : vector<16x16xf32> to vector<16xf32>
    %29 = vector.shape_cast %28 : vector<16xf32> to vector<16x1xf32>
    %cst_19 = arith.constant dense<0.000000e+00> : vector<16x8xf32>
    %30 = tpu.matmul %27, %18, %cst_19 {dimension_numbers = #tpu.dot_dimension_numbers<[1], [0], [0], [1], [0, 0, 1, 1], [], []>} : vector<16x16xf32>, vector<16x8xf32>, vector<16x8xf32> -> vector<16x8xf32>
    %31 = tpu.reciprocal %29 {approx = true} : vector<16x1xf32> -> vector<16x1xf32>
    %32 = vector.broadcast %31 : vector<16x1xf32> to vector<16x8xf32>
    %33 = arith.mulf %30, %32 : vector<16x8xf32>
    %34 = vector.extract_strided_slice %13 {offsets = [0, 0], sizes = [8, 32], strides = [1, 1]} : vector<32x32xf32> to vector<8x32xf32>
    %cst_20 = arith.constant dense<0.000000e+00> : vector<16x32xf32>
    %35 = tpu.matmul %33, %34, %cst_20 {dimension_numbers = #tpu.dot_dimension_numbers<[1], [0], [0], [1], [0, 0, 1, 1], [], []>} : vector<16x8xf32>, vector<8x32xf32>, vector<16x32xf32> -> vector<16x32xf32>
    %36 = vector.extract_strided_slice %9 {offsets = [0, 8], sizes = [16, 8], strides = [1, 1]} : vector<16x32xf32> to vector<16x8xf32>
    %37 = vector.extract_strided_slice %10 {offsets = [0, 8], sizes = [16, 8], strides = [1, 1]} : vector<16x32xf32> to vector<16x8xf32>
    %38 = vector.extract_strided_slice %11 {offsets = [0, 8], sizes = [16, 8], strides = [1, 1]} : vector<16x32xf32> to vector<16x8xf32>
    %cst_21 = arith.constant dense<0.000000e+00> : vector<16x16xf32>
    %39 = tpu.matmul %36, %37, %cst_21 {dimension_numbers = #tpu.dot_dimension_numbers<[1], [1], [0], [0], [0, 0, 1, 0], [], []>} : vector<16x8xf32>, vector<16x8xf32>, vector<16x16xf32> -> vector<16x16xf32>
    %cst_22 = arith.constant 0.353553385 : f32
    %40 = vector.broadcast %cst_22 : f32 to vector<16x16xf32>
    %41 = arith.mulf %39, %40 : vector<16x16xf32>
    %42 = arith.addf %41, %1 : vector<16x16xf32>
    %cst_23 = arith.constant dense<0xFF800000> : vector<16xf32>
    %43 = vector.multi_reduction <maximumf>, %42, %cst_23 [1] : vector<16x16xf32> to vector<16xf32>
    %44 = vector.shape_cast %43 : vector<16xf32> to vector<16x1xf32>
    %45 = vector.broadcast %44 : vector<16x1xf32> to vector<16x16xf32>
    %46 = arith.subf %42, %45 : vector<16x16xf32>
    %47 = math.exp %46 : vector<16x16xf32>
    %cst_24 = arith.constant dense<0.000000e+00> : vector<16xf32>
    %48 = vector.multi_reduction <add>, %47, %cst_24 [1] : vector<16x16xf32> to vector<16xf32>
    %49 = vector.shape_cast %48 : vector<16xf32> to vector<16x1xf32>
    %cst_25 = arith.constant dense<0.000000e+00> : vector<16x8xf32>
    %50 = tpu.matmul %47, %38, %cst_25 {dimension_numbers = #tpu.dot_dimension_numbers<[1], [0], [0], [1], [0, 0, 1, 1], [], []>} : vector<16x16xf32>, vector<16x8xf32>, vector<16x8xf32> -> vector<16x8xf32>
    %51 = tpu.reciprocal %49 {approx = true} : vector<16x1xf32> -> vector<16x1xf32>
    %52 = vector.broadcast %51 : vector<16x1xf32> to vector<16x8xf32>
    %53 = arith.mulf %50, %52 : vector<16x8xf32>
    %54 = vector.extract_strided_slice %13 {offsets = [8, 0], sizes = [8, 32], strides = [1, 1]} : vector<32x32xf32> to vector<8x32xf32>
    %cst_26 = arith.constant dense<0.000000e+00> : vector<16x32xf32>
    %55 = tpu.matmul %53, %54, %cst_26 {dimension_numbers = #tpu.dot_dimension_numbers<[1], [0], [0], [1], [0, 0, 1, 1], [], []>} : vector<16x8xf32>, vector<8x32xf32>, vector<16x32xf32> -> vector<16x32xf32>
    %56 = arith.addf %35, %55 : vector<16x32xf32>
    %57 = vector.extract_strided_slice %9 {offsets = [0, 16], sizes = [16, 8], strides = [1, 1]} : vector<16x32xf32> to vector<16x8xf32>
    %58 = vector.extract_strided_slice %10 {offsets = [0, 16], sizes = [16, 8], strides = [1, 1]} : vector<16x32xf32> to vector<16x8xf32>
    %59 = vector.extract_strided_slice %11 {offsets = [0, 16], sizes = [16, 8], strides = [1, 1]} : vector<16x32xf32> to vector<16x8xf32>
    %cst_27 = arith.constant dense<0.000000e+00> : vector<16x16xf32>
    %60 = tpu.matmul %57, %58, %cst_27 {dimension_numbers = #tpu.dot_dimension_numbers<[1], [1], [0], [0], [0, 0, 1, 0], [], []>} : vector<16x8xf32>, vector<16x8xf32>, vector<16x16xf32> -> vector<16x16xf32>
    %cst_28 = arith.constant 0.353553385 : f32
    %61 = vector.broadcast %cst_28 : f32 to vector<16x16xf32>
    %62 = arith.mulf %60, %61 : vector<16x16xf32>
    %63 = arith.addf %62, %1 : vector<16x16xf32>
    %cst_29 = arith.constant dense<0xFF800000> : vector<16xf32>
    %64 = vector.multi_reduction <maximumf>, %63, %cst_29 [1] : vector<16x16xf32> to vector<16xf32>
    %65 = vector.shape_cast %64 : vector<16xf32> to vector<16x1xf32>
    %66 = vector.broadcast %65 : vector<16x1xf32> to vector<16x16xf32>
    %67 = arith.subf %63, %66 : vector<16x16xf32>
    %68 = math.exp %67 : vector<16x16xf32>
    %cst_30 = arith.constant dense<0.000000e+00> : vector<16xf32>
    %69 = vector.multi_reduction <add>, %68, %cst_30 [1] : vector<16x16xf32> to vector<16xf32>
    %70 = vector.shape_cast %69 : vector<16xf32> to vector<16x1xf32>
    %cst_31 = arith.constant dense<0.000000e+00> : vector<16x8xf32>
    %71 = tpu.matmul %68, %59, %cst_31 {dimension_numbers = #tpu.dot_dimension_numbers<[1], [0], [0], [1], [0, 0, 1, 1], [], []>} : vector<16x16xf32>, vector<16x8xf32>, vector<16x8xf32> -> vector<16x8xf32>
    %72 = tpu.reciprocal %70 {approx = true} : vector<16x1xf32> -> vector<16x1xf32>
    %73 = vector.broadcast %72 : vector<16x1xf32> to vector<16x8xf32>
    %74 = arith.mulf %71, %73 : vector<16x8xf32>
    %75 = vector.extract_strided_slice %13 {offsets = [16, 0], sizes = [8, 32], strides = [1, 1]} : vector<32x32xf32> to vector<8x32xf32>
    %cst_32 = arith.constant dense<0.000000e+00> : vector<16x32xf32>
    %76 = tpu.matmul %74, %75, %cst_32 {dimension_numbers = #tpu.dot_dimension_numbers<[1], [0], [0], [1], [0, 0, 1, 1], [], []>} : vector<16x8xf32>, vector<8x32xf32>, vector<16x32xf32> -> vector<16x32xf32>
    %77 = arith.addf %56, %76 : vector<16x32xf32>
    %78 = vector.extract_strided_slice %9 {offsets = [0, 24], sizes = [16, 8], strides = [1, 1]} : vector<16x32xf32> to vector<16x8xf32>
    %79 = vector.extract_strided_slice %10 {offsets = [0, 24], sizes = [16, 8], strides = [1, 1]} : vector<16x32xf32> to vector<16x8xf32>
    %80 = vector.extract_strided_slice %11 {offsets = [0, 24], sizes = [16, 8], strides = [1, 1]} : vector<16x32xf32> to vector<16x8xf32>
    %cst_33 = arith.constant dense<0.000000e+00> : vector<16x16xf32>
    %81 = tpu.matmul %78, %79, %cst_33 {dimension_numbers = #tpu.dot_dimension_numbers<[1], [1], [0], [0], [0, 0, 1, 0], [], []>} : vector<16x8xf32>, vector<16x8xf32>, vector<16x16xf32> -> vector<16x16xf32>
    %cst_34 = arith.constant 0.353553385 : f32
    %82 = vector.broadcast %cst_34 : f32 to vector<16x16xf32>
    %83 = arith.mulf %81, %82 : vector<16x16xf32>
    %84 = arith.addf %83, %1 : vector<16x16xf32>
    %cst_35 = arith.constant dense<0xFF800000> : vector<16xf32>
    %85 = vector.multi_reduction <maximumf>, %84, %cst_35 [1] : vector<16x16xf32> to vector<16xf32>
    %86 = vector.shape_cast %85 : vector<16xf32> to vector<16x1xf32>
    %87 = vector.broadcast %86 : vector<16x1xf32> to vector<16x16xf32>
    %88 = arith.subf %84, %87 : vector<16x16xf32>
    %89 = math.exp %88 : vector<16x16xf32>
    %cst_36 = arith.constant dense<0.000000e+00> : vector<16xf32>
    %90 = vector.multi_reduction <add>, %89, %cst_36 [1] : vector<16x16xf32> to vector<16xf32>
    %91 = vector.shape_cast %90 : vector<16xf32> to vector<16x1xf32>
    %cst_37 = arith.constant dense<0.000000e+00> : vector<16x8xf32>
    %92 = tpu.matmul %89, %80, %cst_37 {dimension_numbers = #tpu.dot_dimension_numbers<[1], [0], [0], [1], [0, 0, 1, 1], [], []>} : vector<16x16xf32>, vector<16x8xf32>, vector<16x8xf32> -> vector<16x8xf32>
    %93 = tpu.reciprocal %91 {approx = true} : vector<16x1xf32> -> vector<16x1xf32>
    %94 = vector.broadcast %93 : vector<16x1xf32> to vector<16x8xf32>
    %95 = arith.mulf %92, %94 : vector<16x8xf32>
    %96 = vector.extract_strided_slice %13 {offsets = [24, 0], sizes = [8, 32], strides = [1, 1]} : vector<32x32xf32> to vector<8x32xf32>
    %cst_38 = arith.constant dense<0.000000e+00> : vector<16x32xf32>
    %97 = tpu.matmul %95, %96, %cst_38 {dimension_numbers = #tpu.dot_dimension_numbers<[1], [0], [0], [1], [0, 0, 1, 1], [], []>} : vector<16x8xf32>, vector<8x32xf32>, vector<16x32xf32> -> vector<16x32xf32>
    %98 = arith.addf %77, %97 : vector<16x32xf32>
    %99 = vector.broadcast %15 : vector<1x32xf32> to vector<16x32xf32>
    %100 = arith.addf %98, %99 : vector<16x32xf32>
    %101 = arith.addf %0, %100 : vector<16x32xf32>
    %c0_39 = arith.constant 0 : index
    %c0_40 = arith.constant 0 : index
    %c0_41 = arith.constant 0 : index
    %102 = vector.load %arg6[%c0_39, %c0_40, %c0_41] : memref<2x1x64xf32, #tpu.memory_space<vmem>>, vector<1x1x64xf32>
    %103 = vector.shape_cast %102 : vector<1x1x64xf32> to vector<1x64xf32>
    %104 = vector.extract_strided_slice %103 {offsets = [0, 0], sizes = [1, 32], strides = [1, 1]} : vector<1x64xf32> to vector<1x32xf32>
    %105 = vector.extract_strided_slice %103 {offsets = [0, 32], sizes = [1, 32], strides = [1, 1]} : vector<1x64xf32> to vector<1x32xf32>
    %cst_42 = arith.constant dense<0.000000e+00> : vector<16xf32>
    %106 = vector.multi_reduction <add>, %101, %cst_42 [1] : vector<16x32xf32> to vector<16xf32>
    %107 = vector.shape_cast %106 : vector<16xf32> to vector<16x1xf32>
    %cst_43 = arith.constant 3.200000e+01 : f32
    %108 = vector.broadcast %cst_43 : f32 to vector<16x1xf32>
    %109 = arith.divf %107, %108 : vector<16x1xf32>
    %110 = vector.broadcast %109 : vector<16x1xf32> to vector<16x32xf32>
    %111 = arith.subf %101, %110 : vector<16x32xf32>
    %112 = arith.mulf %111, %111 : vector<16x32xf32>
    %cst_44 = arith.constant dense<0.000000e+00> : vector<16xf32>
    %113 = vector.multi_reduction <add>, %112, %cst_44 [1] : vector<16x32xf32> to vector<16xf32>
    %114 = vector.shape_cast %113 : vector<16xf32> to vector<16x1xf32>
    %cst_45 = arith.constant 3.200000e+01 : f32
    %115 = vector.broadcast %cst_45 : f32 to vector<16x1xf32>
    %116 = arith.divf %114, %115 : vector<16x1xf32>
    %117 = vector.broadcast %109 : vector<16x1xf32> to vector<16x32xf32>
    %118 = arith.subf %101, %117 : vector<16x32xf32>
    %cst_46 = arith.constant 9.99999974E-6 : f32
    %119 = vector.broadcast %cst_46 : f32 to vector<16x1xf32>
    %120 = arith.addf %116, %119 : vector<16x1xf32>
    %121 = math.rsqrt %120 : vector<16x1xf32>
    %122 = vector.broadcast %121 : vector<16x1xf32> to vector<16x32xf32>
    %123 = arith.mulf %118, %122 : vector<16x32xf32>
    %124 = vector.broadcast %104 : vector<1x32xf32> to vector<16x32xf32>
    %125 = arith.mulf %123, %124 : vector<16x32xf32>
    %126 = vector.broadcast %105 : vector<1x32xf32> to vector<16x32xf32>
    %127 = arith.addf %125, %126 : vector<16x32xf32>
    %c0_47 = arith.constant 0 : index
    %c0_48 = arith.constant 0 : index
    %c0_49 = arith.constant 0 : index
    %128 = vector.load %arg7[%c0_47, %c0_48, %c0_49] : memref<2x32x64xf32, #tpu.memory_space<vmem>>, vector<1x32x64xf32>
    %129 = vector.shape_cast %128 : vector<1x32x64xf32> to vector<32x64xf32>
    %c0_50 = arith.constant 0 : index
    %c0_51 = arith.constant 0 : index
    %c0_52 = arith.constant 0 : index
    %130 = vector.load %arg8[%c0_50, %c0_51, %c0_52] : memref<2x1x64xf32, #tpu.memory_space<vmem>>, vector<1x1x64xf32>
    %131 = vector.shape_cast %130 : vector<1x1x64xf32> to vector<1x64xf32>
    %c0_53 = arith.constant 0 : index
    %c0_54 = arith.constant 0 : index
    %c0_55 = arith.constant 0 : index
    %132 = vector.load %arg9[%c0_53, %c0_54, %c0_55] : memref<2x64x32xf32, #tpu.memory_space<vmem>>, vector<1x64x32xf32>
    %133 = vector.shape_cast %132 : vector<1x64x32xf32> to vector<64x32xf32>
    %c0_56 = arith.constant 0 : index
    %c0_57 = arith.constant 0 : index
    %c0_58 = arith.constant 0 : index
    %134 = vector.load %arg10[%c0_56, %c0_57, %c0_58] : memref<2x1x32xf32, #tpu.memory_space<vmem>>, vector<1x1x32xf32>
    %135 = vector.shape_cast %134 : vector<1x1x32xf32> to vector<1x32xf32>
    %cst_59 = arith.constant dense<0.000000e+00> : vector<16x64xf32>
    %136 = tpu.matmul %127, %129, %cst_59 {dimension_numbers = #tpu.dot_dimension_numbers<[1], [0], [0], [1], [0, 0, 1, 1], [], []>} : vector<16x32xf32>, vector<32x64xf32>, vector<16x64xf32> -> vector<16x64xf32>
    %137 = vector.broadcast %131 : vector<1x64xf32> to vector<16x64xf32>
    %138 = arith.addf %136, %137 : vector<16x64xf32>
    %cst_60 = arith.constant 0.000000e+00 : f32
    %139 = vector.broadcast %cst_60 : f32 to vector<16x64xf32>
    %140 = arith.maximumf %138, %139 : vector<16x64xf32>
    %cst_61 = arith.constant dense<0.000000e+00> : vector<16x32xf32>
    %141 = tpu.matmul %140, %133, %cst_61 {dimension_numbers = #tpu.dot_dimension_numbers<[1], [0], [0], [1], [0, 0, 1, 1], [], []>} : vector<16x64xf32>, vector<64x32xf32>, vector<16x32xf32> -> vector<16x32xf32>
    %142 = vector.broadcast %135 : vector<1x32xf32> to vector<16x32xf32>
    %143 = arith.addf %141, %142 : vector<16x32xf32>
    %144 = arith.addf %127, %143 : vector<16x32xf32>
    %c0_62 = arith.constant 0 : index
    %c0_63 = arith.constant 0 : index
    %c0_64 = arith.constant 0 : index
    %145 = vector.load %arg11[%c0_62, %c0_63, %c0_64] : memref<2x1x64xf32, #tpu.memory_space<vmem>>, vector<1x1x64xf32>
    %146 = vector.shape_cast %145 : vector<1x1x64xf32> to vector<1x64xf32>
    %147 = vector.extract_strided_slice %146 {offsets = [0, 0], sizes = [1, 32], strides = [1, 1]} : vector<1x64xf32> to vector<1x32xf32>
    %148 = vector.extract_strided_slice %146 {offsets = [0, 32], sizes = [1, 32], strides = [1, 1]} : vector<1x64xf32> to vector<1x32xf32>
    %cst_65 = arith.constant dense<0.000000e+00> : vector<16xf32>
    %149 = vector.multi_reduction <add>, %144, %cst_65 [1] : vector<16x32xf32> to vector<16xf32>
    %150 = vector.shape_cast %149 : vector<16xf32> to vector<16x1xf32>
    %cst_66 = arith.constant 3.200000e+01 : f32
    %151 = vector.broadcast %cst_66 : f32 to vector<16x1xf32>
    %152 = arith.divf %150, %151 : vector<16x1xf32>
    %153 = vector.broadcast %152 : vector<16x1xf32> to vector<16x32xf32>
    %154 = arith.subf %144, %153 : vector<16x32xf32>
    %155 = arith.mulf %154, %154 : vector<16x32xf32>
    %cst_67 = arith.constant dense<0.000000e+00> : vector<16xf32>
    %156 = vector.multi_reduction <add>, %155, %cst_67 [1] : vector<16x32xf32> to vector<16xf32>
    %157 = vector.shape_cast %156 : vector<16xf32> to vector<16x1xf32>
    %cst_68 = arith.constant 3.200000e+01 : f32
    %158 = vector.broadcast %cst_68 : f32 to vector<16x1xf32>
    %159 = arith.divf %157, %158 : vector<16x1xf32>
    %160 = vector.broadcast %152 : vector<16x1xf32> to vector<16x32xf32>
    %161 = arith.subf %144, %160 : vector<16x32xf32>
    %cst_69 = arith.constant 9.99999974E-6 : f32
    %162 = vector.broadcast %cst_69 : f32 to vector<16x1xf32>
    %163 = arith.addf %159, %162 : vector<16x1xf32>
    %164 = math.rsqrt %163 : vector<16x1xf32>
    %165 = vector.broadcast %164 : vector<16x1xf32> to vector<16x32xf32>
    %166 = arith.mulf %161, %165 : vector<16x32xf32>
    %167 = vector.broadcast %147 : vector<1x32xf32> to vector<16x32xf32>
    %168 = arith.mulf %166, %167 : vector<16x32xf32>
    %169 = vector.broadcast %148 : vector<1x32xf32> to vector<16x32xf32>
    %170 = arith.addf %168, %169 : vector<16x32xf32>
    %c1 = arith.constant 1 : index
    %c0_70 = arith.constant 0 : index
    %c0_71 = arith.constant 0 : index
    %171 = vector.load %arg2[%c1, %c0_70, %c0_71] : memref<2x32x96xf32, #tpu.memory_space<vmem>>, vector<1x32x96xf32>
    %172 = vector.shape_cast %171 : vector<1x32x96xf32> to vector<32x96xf32>
    %cst_72 = arith.constant dense<0.000000e+00> : vector<16x96xf32>
    %173 = tpu.matmul %170, %172, %cst_72 {dimension_numbers = #tpu.dot_dimension_numbers<[1], [0], [0], [1], [0, 0, 1, 1], [], []>} : vector<16x32xf32>, vector<32x96xf32>, vector<16x96xf32> -> vector<16x96xf32>
    %c1_73 = arith.constant 1 : index
    %c0_74 = arith.constant 0 : index
    %c0_75 = arith.constant 0 : index
    %174 = vector.load %arg3[%c1_73, %c0_74, %c0_75] : memref<2x1x96xf32, #tpu.memory_space<vmem>>, vector<1x1x96xf32>
    %175 = vector.shape_cast %174 : vector<1x1x96xf32> to vector<1x96xf32>
    %176 = vector.broadcast %175 : vector<1x96xf32> to vector<16x96xf32>
    %177 = arith.addf %173, %176 : vector<16x96xf32>
    %178 = vector.extract_strided_slice %177 {offsets = [0, 0], sizes = [16, 32], strides = [1, 1]} : vector<16x96xf32> to vector<16x32xf32>
    %179 = vector.extract_strided_slice %177 {offsets = [0, 32], sizes = [16, 32], strides = [1, 1]} : vector<16x96xf32> to vector<16x32xf32>
    %180 = vector.extract_strided_slice %177 {offsets = [0, 64], sizes = [16, 32], strides = [1, 1]} : vector<16x96xf32> to vector<16x32xf32>
    %c1_76 = arith.constant 1 : index
    %c0_77 = arith.constant 0 : index
    %c0_78 = arith.constant 0 : index
    %181 = vector.load %arg4[%c1_76, %c0_77, %c0_78] : memref<2x32x32xf32, #tpu.memory_space<vmem>>, vector<1x32x32xf32>
    %182 = vector.shape_cast %181 : vector<1x32x32xf32> to vector<32x32xf32>
    %c1_79 = arith.constant 1 : index
    %c0_80 = arith.constant 0 : index
    %c0_81 = arith.constant 0 : index
    %183 = vector.load %arg5[%c1_79, %c0_80, %c0_81] : memref<2x1x32xf32, #tpu.memory_space<vmem>>, vector<1x1x32xf32>
    %184 = vector.shape_cast %183 : vector<1x1x32xf32> to vector<1x32xf32>
    %185 = vector.extract_strided_slice %178 {offsets = [0, 0], sizes = [16, 8], strides = [1, 1]} : vector<16x32xf32> to vector<16x8xf32>
    %186 = vector.extract_strided_slice %179 {offsets = [0, 0], sizes = [16, 8], strides = [1, 1]} : vector<16x32xf32> to vector<16x8xf32>
    %187 = vector.extract_strided_slice %180 {offsets = [0, 0], sizes = [16, 8], strides = [1, 1]} : vector<16x32xf32> to vector<16x8xf32>
    %cst_82 = arith.constant dense<0.000000e+00> : vector<16x16xf32>
    %188 = tpu.matmul %185, %186, %cst_82 {dimension_numbers = #tpu.dot_dimension_numbers<[1], [1], [0], [0], [0, 0, 1, 0], [], []>} : vector<16x8xf32>, vector<16x8xf32>, vector<16x16xf32> -> vector<16x16xf32>
    %cst_83 = arith.constant 0.353553385 : f32
    %189 = vector.broadcast %cst_83 : f32 to vector<16x16xf32>
    %190 = arith.mulf %188, %189 : vector<16x16xf32>
    %191 = arith.addf %190, %1 : vector<16x16xf32>
    %cst_84 = arith.constant dense<0xFF800000> : vector<16xf32>
    %192 = vector.multi_reduction <maximumf>, %191, %cst_84 [1] : vector<16x16xf32> to vector<16xf32>
    %193 = vector.shape_cast %192 : vector<16xf32> to vector<16x1xf32>
    %194 = vector.broadcast %193 : vector<16x1xf32> to vector<16x16xf32>
    %195 = arith.subf %191, %194 : vector<16x16xf32>
    %196 = math.exp %195 : vector<16x16xf32>
    %cst_85 = arith.constant dense<0.000000e+00> : vector<16xf32>
    %197 = vector.multi_reduction <add>, %196, %cst_85 [1] : vector<16x16xf32> to vector<16xf32>
    %198 = vector.shape_cast %197 : vector<16xf32> to vector<16x1xf32>
    %cst_86 = arith.constant dense<0.000000e+00> : vector<16x8xf32>
    %199 = tpu.matmul %196, %187, %cst_86 {dimension_numbers = #tpu.dot_dimension_numbers<[1], [0], [0], [1], [0, 0, 1, 1], [], []>} : vector<16x16xf32>, vector<16x8xf32>, vector<16x8xf32> -> vector<16x8xf32>
    %200 = tpu.reciprocal %198 {approx = true} : vector<16x1xf32> -> vector<16x1xf32>
    %201 = vector.broadcast %200 : vector<16x1xf32> to vector<16x8xf32>
    %202 = arith.mulf %199, %201 : vector<16x8xf32>
    %203 = vector.extract_strided_slice %182 {offsets = [0, 0], sizes = [8, 32], strides = [1, 1]} : vector<32x32xf32> to vector<8x32xf32>
    %cst_87 = arith.constant dense<0.000000e+00> : vector<16x32xf32>
    %204 = tpu.matmul %202, %203, %cst_87 {dimension_numbers = #tpu.dot_dimension_numbers<[1], [0], [0], [1], [0, 0, 1, 1], [], []>} : vector<16x8xf32>, vector<8x32xf32>, vector<16x32xf32> -> vector<16x32xf32>
    %205 = vector.extract_strided_slice %178 {offsets = [0, 8], sizes = [16, 8], strides = [1, 1]} : vector<16x32xf32> to vector<16x8xf32>
    %206 = vector.extract_strided_slice %179 {offsets = [0, 8], sizes = [16, 8], strides = [1, 1]} : vector<16x32xf32> to vector<16x8xf32>
    %207 = vector.extract_strided_slice %180 {offsets = [0, 8], sizes = [16, 8], strides = [1, 1]} : vector<16x32xf32> to vector<16x8xf32>
    %cst_88 = arith.constant dense<0.000000e+00> : vector<16x16xf32>
    %208 = tpu.matmul %205, %206, %cst_88 {dimension_numbers = #tpu.dot_dimension_numbers<[1], [1], [0], [0], [0, 0, 1, 0], [], []>} : vector<16x8xf32>, vector<16x8xf32>, vector<16x16xf32> -> vector<16x16xf32>
    %cst_89 = arith.constant 0.353553385 : f32
    %209 = vector.broadcast %cst_89 : f32 to vector<16x16xf32>
    %210 = arith.mulf %208, %209 : vector<16x16xf32>
    %211 = arith.addf %210, %1 : vector<16x16xf32>
    %cst_90 = arith.constant dense<0xFF800000> : vector<16xf32>
    %212 = vector.multi_reduction <maximumf>, %211, %cst_90 [1] : vector<16x16xf32> to vector<16xf32>
    %213 = vector.shape_cast %212 : vector<16xf32> to vector<16x1xf32>
    %214 = vector.broadcast %213 : vector<16x1xf32> to vector<16x16xf32>
    %215 = arith.subf %211, %214 : vector<16x16xf32>
    %216 = math.exp %215 : vector<16x16xf32>
    %cst_91 = arith.constant dense<0.000000e+00> : vector<16xf32>
    %217 = vector.multi_reduction <add>, %216, %cst_91 [1] : vector<16x16xf32> to vector<16xf32>
    %218 = vector.shape_cast %217 : vector<16xf32> to vector<16x1xf32>
    %cst_92 = arith.constant dense<0.000000e+00> : vector<16x8xf32>
    %219 = tpu.matmul %216, %207, %cst_92 {dimension_numbers = #tpu.dot_dimension_numbers<[1], [0], [0], [1], [0, 0, 1, 1], [], []>} : vector<16x16xf32>, vector<16x8xf32>, vector<16x8xf32> -> vector<16x8xf32>
    %220 = tpu.reciprocal %218 {approx = true} : vector<16x1xf32> -> vector<16x1xf32>
    %221 = vector.broadcast %220 : vector<16x1xf32> to vector<16x8xf32>
    %222 = arith.mulf %219, %221 : vector<16x8xf32>
    %223 = vector.extract_strided_slice %182 {offsets = [8, 0], sizes = [8, 32], strides = [1, 1]} : vector<32x32xf32> to vector<8x32xf32>
    %cst_93 = arith.constant dense<0.000000e+00> : vector<16x32xf32>
    %224 = tpu.matmul %222, %223, %cst_93 {dimension_numbers = #tpu.dot_dimension_numbers<[1], [0], [0], [1], [0, 0, 1, 1], [], []>} : vector<16x8xf32>, vector<8x32xf32>, vector<16x32xf32> -> vector<16x32xf32>
    %225 = arith.addf %204, %224 : vector<16x32xf32>
    %226 = vector.extract_strided_slice %178 {offsets = [0, 16], sizes = [16, 8], strides = [1, 1]} : vector<16x32xf32> to vector<16x8xf32>
    %227 = vector.extract_strided_slice %179 {offsets = [0, 16], sizes = [16, 8], strides = [1, 1]} : vector<16x32xf32> to vector<16x8xf32>
    %228 = vector.extract_strided_slice %180 {offsets = [0, 16], sizes = [16, 8], strides = [1, 1]} : vector<16x32xf32> to vector<16x8xf32>
    %cst_94 = arith.constant dense<0.000000e+00> : vector<16x16xf32>
    %229 = tpu.matmul %226, %227, %cst_94 {dimension_numbers = #tpu.dot_dimension_numbers<[1], [1], [0], [0], [0, 0, 1, 0], [], []>} : vector<16x8xf32>, vector<16x8xf32>, vector<16x16xf32> -> vector<16x16xf32>
    %cst_95 = arith.constant 0.353553385 : f32
    %230 = vector.broadcast %cst_95 : f32 to vector<16x16xf32>
    %231 = arith.mulf %229, %230 : vector<16x16xf32>
    %232 = arith.addf %231, %1 : vector<16x16xf32>
    %cst_96 = arith.constant dense<0xFF800000> : vector<16xf32>
    %233 = vector.multi_reduction <maximumf>, %232, %cst_96 [1] : vector<16x16xf32> to vector<16xf32>
    %234 = vector.shape_cast %233 : vector<16xf32> to vector<16x1xf32>
    %235 = vector.broadcast %234 : vector<16x1xf32> to vector<16x16xf32>
    %236 = arith.subf %232, %235 : vector<16x16xf32>
    %237 = math.exp %236 : vector<16x16xf32>
    %cst_97 = arith.constant dense<0.000000e+00> : vector<16xf32>
    %238 = vector.multi_reduction <add>, %237, %cst_97 [1] : vector<16x16xf32> to vector<16xf32>
    %239 = vector.shape_cast %238 : vector<16xf32> to vector<16x1xf32>
    %cst_98 = arith.constant dense<0.000000e+00> : vector<16x8xf32>
    %240 = tpu.matmul %237, %228, %cst_98 {dimension_numbers = #tpu.dot_dimension_numbers<[1], [0], [0], [1], [0, 0, 1, 1], [], []>} : vector<16x16xf32>, vector<16x8xf32>, vector<16x8xf32> -> vector<16x8xf32>
    %241 = tpu.reciprocal %239 {approx = true} : vector<16x1xf32> -> vector<16x1xf32>
    %242 = vector.broadcast %241 : vector<16x1xf32> to vector<16x8xf32>
    %243 = arith.mulf %240, %242 : vector<16x8xf32>
    %244 = vector.extract_strided_slice %182 {offsets = [16, 0], sizes = [8, 32], strides = [1, 1]} : vector<32x32xf32> to vector<8x32xf32>
    %cst_99 = arith.constant dense<0.000000e+00> : vector<16x32xf32>
    %245 = tpu.matmul %243, %244, %cst_99 {dimension_numbers = #tpu.dot_dimension_numbers<[1], [0], [0], [1], [0, 0, 1, 1], [], []>} : vector<16x8xf32>, vector<8x32xf32>, vector<16x32xf32> -> vector<16x32xf32>
    %246 = arith.addf %225, %245 : vector<16x32xf32>
    %247 = vector.extract_strided_slice %178 {offsets = [0, 24], sizes = [16, 8], strides = [1, 1]} : vector<16x32xf32> to vector<16x8xf32>
    %248 = vector.extract_strided_slice %179 {offsets = [0, 24], sizes = [16, 8], strides = [1, 1]} : vector<16x32xf32> to vector<16x8xf32>
    %249 = vector.extract_strided_slice %180 {offsets = [0, 24], sizes = [16, 8], strides = [1, 1]} : vector<16x32xf32> to vector<16x8xf32>
    %cst_100 = arith.constant dense<0.000000e+00> : vector<16x16xf32>
    %250 = tpu.matmul %247, %248, %cst_100 {dimension_numbers = #tpu.dot_dimension_numbers<[1], [1], [0], [0], [0, 0, 1, 0], [], []>} : vector<16x8xf32>, vector<16x8xf32>, vector<16x16xf32> -> vector<16x16xf32>
    %cst_101 = arith.constant 0.353553385 : f32
    %251 = vector.broadcast %cst_101 : f32 to vector<16x16xf32>
    %252 = arith.mulf %250, %251 : vector<16x16xf32>
    %253 = arith.addf %252, %1 : vector<16x16xf32>
    %cst_102 = arith.constant dense<0xFF800000> : vector<16xf32>
    %254 = vector.multi_reduction <maximumf>, %253, %cst_102 [1] : vector<16x16xf32> to vector<16xf32>
    %255 = vector.shape_cast %254 : vector<16xf32> to vector<16x1xf32>
    %256 = vector.broadcast %255 : vector<16x1xf32> to vector<16x16xf32>
    %257 = arith.subf %253, %256 : vector<16x16xf32>
    %258 = math.exp %257 : vector<16x16xf32>
    %cst_103 = arith.constant dense<0.000000e+00> : vector<16xf32>
    %259 = vector.multi_reduction <add>, %258, %cst_103 [1] : vector<16x16xf32> to vector<16xf32>
    %260 = vector.shape_cast %259 : vector<16xf32> to vector<16x1xf32>
    %cst_104 = arith.constant dense<0.000000e+00> : vector<16x8xf32>
    %261 = tpu.matmul %258, %249, %cst_104 {dimension_numbers = #tpu.dot_dimension_numbers<[1], [0], [0], [1], [0, 0, 1, 1], [], []>} : vector<16x16xf32>, vector<16x8xf32>, vector<16x8xf32> -> vector<16x8xf32>
    %262 = tpu.reciprocal %260 {approx = true} : vector<16x1xf32> -> vector<16x1xf32>
    %263 = vector.broadcast %262 : vector<16x1xf32> to vector<16x8xf32>
    %264 = arith.mulf %261, %263 : vector<16x8xf32>
    %265 = vector.extract_strided_slice %182 {offsets = [24, 0], sizes = [8, 32], strides = [1, 1]} : vector<32x32xf32> to vector<8x32xf32>
    %cst_105 = arith.constant dense<0.000000e+00> : vector<16x32xf32>
    %266 = tpu.matmul %264, %265, %cst_105 {dimension_numbers = #tpu.dot_dimension_numbers<[1], [0], [0], [1], [0, 0, 1, 1], [], []>} : vector<16x8xf32>, vector<8x32xf32>, vector<16x32xf32> -> vector<16x32xf32>
    %267 = arith.addf %246, %266 : vector<16x32xf32>
    %268 = vector.broadcast %184 : vector<1x32xf32> to vector<16x32xf32>
    %269 = arith.addf %267, %268 : vector<16x32xf32>
    %270 = arith.addf %170, %269 : vector<16x32xf32>
    %c1_106 = arith.constant 1 : index
    %c0_107 = arith.constant 0 : index
    %c0_108 = arith.constant 0 : index
    %271 = vector.load %arg6[%c1_106, %c0_107, %c0_108] : memref<2x1x64xf32, #tpu.memory_space<vmem>>, vector<1x1x64xf32>
    %272 = vector.shape_cast %271 : vector<1x1x64xf32> to vector<1x64xf32>
    %273 = vector.extract_strided_slice %272 {offsets = [0, 0], sizes = [1, 32], strides = [1, 1]} : vector<1x64xf32> to vector<1x32xf32>
    %274 = vector.extract_strided_slice %272 {offsets = [0, 32], sizes = [1, 32], strides = [1, 1]} : vector<1x64xf32> to vector<1x32xf32>
    %cst_109 = arith.constant dense<0.000000e+00> : vector<16xf32>
    %275 = vector.multi_reduction <add>, %270, %cst_109 [1] : vector<16x32xf32> to vector<16xf32>
    %276 = vector.shape_cast %275 : vector<16xf32> to vector<16x1xf32>
    %cst_110 = arith.constant 3.200000e+01 : f32
    %277 = vector.broadcast %cst_110 : f32 to vector<16x1xf32>
    %278 = arith.divf %276, %277 : vector<16x1xf32>
    %279 = vector.broadcast %278 : vector<16x1xf32> to vector<16x32xf32>
    %280 = arith.subf %270, %279 : vector<16x32xf32>
    %281 = arith.mulf %280, %280 : vector<16x32xf32>
    %cst_111 = arith.constant dense<0.000000e+00> : vector<16xf32>
    %282 = vector.multi_reduction <add>, %281, %cst_111 [1] : vector<16x32xf32> to vector<16xf32>
    %283 = vector.shape_cast %282 : vector<16xf32> to vector<16x1xf32>
    %cst_112 = arith.constant 3.200000e+01 : f32
    %284 = vector.broadcast %cst_112 : f32 to vector<16x1xf32>
    %285 = arith.divf %283, %284 : vector<16x1xf32>
    %286 = vector.broadcast %278 : vector<16x1xf32> to vector<16x32xf32>
    %287 = arith.subf %270, %286 : vector<16x32xf32>
    %cst_113 = arith.constant 9.99999974E-6 : f32
    %288 = vector.broadcast %cst_113 : f32 to vector<16x1xf32>
    %289 = arith.addf %285, %288 : vector<16x1xf32>
    %290 = math.rsqrt %289 : vector<16x1xf32>
    %291 = vector.broadcast %290 : vector<16x1xf32> to vector<16x32xf32>
    %292 = arith.mulf %287, %291 : vector<16x32xf32>
    %293 = vector.broadcast %273 : vector<1x32xf32> to vector<16x32xf32>
    %294 = arith.mulf %292, %293 : vector<16x32xf32>
    %295 = vector.broadcast %274 : vector<1x32xf32> to vector<16x32xf32>
    %296 = arith.addf %294, %295 : vector<16x32xf32>
    %c1_114 = arith.constant 1 : index
    %c0_115 = arith.constant 0 : index
    %c0_116 = arith.constant 0 : index
    %297 = vector.load %arg7[%c1_114, %c0_115, %c0_116] : memref<2x32x64xf32, #tpu.memory_space<vmem>>, vector<1x32x64xf32>
    %298 = vector.shape_cast %297 : vector<1x32x64xf32> to vector<32x64xf32>
    %c1_117 = arith.constant 1 : index
    %c0_118 = arith.constant 0 : index
    %c0_119 = arith.constant 0 : index
    %299 = vector.load %arg8[%c1_117, %c0_118, %c0_119] : memref<2x1x64xf32, #tpu.memory_space<vmem>>, vector<1x1x64xf32>
    %300 = vector.shape_cast %299 : vector<1x1x64xf32> to vector<1x64xf32>
    %c1_120 = arith.constant 1 : index
    %c0_121 = arith.constant 0 : index
    %c0_122 = arith.constant 0 : index
    %301 = vector.load %arg9[%c1_120, %c0_121, %c0_122] : memref<2x64x32xf32, #tpu.memory_space<vmem>>, vector<1x64x32xf32>
    %302 = vector.shape_cast %301 : vector<1x64x32xf32> to vector<64x32xf32>
    %c1_123 = arith.constant 1 : index
    %c0_124 = arith.constant 0 : index
    %c0_125 = arith.constant 0 : index
    %303 = vector.load %arg10[%c1_123, %c0_124, %c0_125] : memref<2x1x32xf32, #tpu.memory_space<vmem>>, vector<1x1x32xf32>
    %304 = vector.shape_cast %303 : vector<1x1x32xf32> to vector<1x32xf32>
    %cst_126 = arith.constant dense<0.000000e+00> : vector<16x64xf32>
    %305 = tpu.matmul %296, %298, %cst_126 {dimension_numbers = #tpu.dot_dimension_numbers<[1], [0], [0], [1], [0, 0, 1, 1], [], []>} : vector<16x32xf32>, vector<32x64xf32>, vector<16x64xf32> -> vector<16x64xf32>
    %306 = vector.broadcast %300 : vector<1x64xf32> to vector<16x64xf32>
    %307 = arith.addf %305, %306 : vector<16x64xf32>
    %cst_127 = arith.constant 0.000000e+00 : f32
    %308 = vector.broadcast %cst_127 : f32 to vector<16x64xf32>
    %309 = arith.maximumf %307, %308 : vector<16x64xf32>
    %cst_128 = arith.constant dense<0.000000e+00> : vector<16x32xf32>
    %310 = tpu.matmul %309, %302, %cst_128 {dimension_numbers = #tpu.dot_dimension_numbers<[1], [0], [0], [1], [0, 0, 1, 1], [], []>} : vector<16x64xf32>, vector<64x32xf32>, vector<16x32xf32> -> vector<16x32xf32>
    %311 = vector.broadcast %304 : vector<1x32xf32> to vector<16x32xf32>
    %312 = arith.addf %310, %311 : vector<16x32xf32>
    %313 = arith.addf %296, %312 : vector<16x32xf32>
    %c1_129 = arith.constant 1 : index
    %c0_130 = arith.constant 0 : index
    %c0_131 = arith.constant 0 : index
    %314 = vector.load %arg11[%c1_129, %c0_130, %c0_131] : memref<2x1x64xf32, #tpu.memory_space<vmem>>, vector<1x1x64xf32>
    %315 = vector.shape_cast %314 : vector<1x1x64xf32> to vector<1x64xf32>
    %316 = vector.extract_strided_slice %315 {offsets = [0, 0], sizes = [1, 32], strides = [1, 1]} : vector<1x64xf32> to vector<1x32xf32>
    %317 = vector.extract_strided_slice %315 {offsets = [0, 32], sizes = [1, 32], strides = [1, 1]} : vector<1x64xf32> to vector<1x32xf32>
    %cst_132 = arith.constant dense<0.000000e+00> : vector<16xf32>
    %318 = vector.multi_reduction <add>, %313, %cst_132 [1] : vector<16x32xf32> to vector<16xf32>
    %319 = vector.shape_cast %318 : vector<16xf32> to vector<16x1xf32>
    %cst_133 = arith.constant 3.200000e+01 : f32
    %320 = vector.broadcast %cst_133 : f32 to vector<16x1xf32>
    %321 = arith.divf %319, %320 : vector<16x1xf32>
    %322 = vector.broadcast %321 : vector<16x1xf32> to vector<16x32xf32>
    %323 = arith.subf %313, %322 : vector<16x32xf32>
    %324 = arith.mulf %323, %323 : vector<16x32xf32>
    %cst_134 = arith.constant dense<0.000000e+00> : vector<16xf32>
    %325 = vector.multi_reduction <add>, %324, %cst_134 [1] : vector<16x32xf32> to vector<16xf32>
    %326 = vector.shape_cast %325 : vector<16xf32> to vector<16x1xf32>
    %cst_135 = arith.constant 3.200000e+01 : f32
    %327 = vector.broadcast %cst_135 : f32 to vector<16x1xf32>
    %328 = arith.divf %326, %327 : vector<16x1xf32>
    %329 = vector.broadcast %321 : vector<16x1xf32> to vector<16x32xf32>
    %330 = arith.subf %313, %329 : vector<16x32xf32>
    %cst_136 = arith.constant 9.99999974E-6 : f32
    %331 = vector.broadcast %cst_136 : f32 to vector<16x1xf32>
    %332 = arith.addf %328, %331 : vector<16x1xf32>
    %333 = math.rsqrt %332 : vector<16x1xf32>
    %334 = vector.broadcast %333 : vector<16x1xf32> to vector<16x32xf32>
    %335 = arith.mulf %330, %334 : vector<16x32xf32>
    %336 = vector.broadcast %316 : vector<1x32xf32> to vector<16x32xf32>
    %337 = arith.mulf %335, %336 : vector<16x32xf32>
    %338 = vector.broadcast %317 : vector<1x32xf32> to vector<16x32xf32>
    %339 = arith.addf %337, %338 : vector<16x32xf32>
    %c0_137 = arith.constant 0 : index
    %c0_138 = arith.constant 0 : index
    %340 = vector.load %arg12[%c0_137, %c0_138] : memref<1x64xf32, #tpu.memory_space<vmem>>, vector<1x64xf32>
    %341 = vector.extract_strided_slice %340 {offsets = [0, 0], sizes = [1, 32], strides = [1, 1]} : vector<1x64xf32> to vector<1x32xf32>
    %342 = vector.extract_strided_slice %340 {offsets = [0, 32], sizes = [1, 32], strides = [1, 1]} : vector<1x64xf32> to vector<1x32xf32>
    %cst_139 = arith.constant dense<0.000000e+00> : vector<16xf32>
    %343 = vector.multi_reduction <add>, %339, %cst_139 [1] : vector<16x32xf32> to vector<16xf32>
    %344 = vector.shape_cast %343 : vector<16xf32> to vector<16x1xf32>
    %cst_140 = arith.constant 3.200000e+01 : f32
    %345 = vector.broadcast %cst_140 : f32 to vector<16x1xf32>
    %346 = arith.divf %344, %345 : vector<16x1xf32>
    %347 = vector.broadcast %346 : vector<16x1xf32> to vector<16x32xf32>
    %348 = arith.subf %339, %347 : vector<16x32xf32>
    %349 = arith.mulf %348, %348 : vector<16x32xf32>
    %cst_141 = arith.constant dense<0.000000e+00> : vector<16xf32>
    %350 = vector.multi_reduction <add>, %349, %cst_141 [1] : vector<16x32xf32> to vector<16xf32>
    %351 = vector.shape_cast %350 : vector<16xf32> to vector<16x1xf32>
    %cst_142 = arith.constant 3.200000e+01 : f32
    %352 = vector.broadcast %cst_142 : f32 to vector<16x1xf32>
    %353 = arith.divf %351, %352 : vector<16x1xf32>
    %354 = vector.broadcast %346 : vector<16x1xf32> to vector<16x32xf32>
    %355 = arith.subf %339, %354 : vector<16x32xf32>
    %cst_143 = arith.constant 9.99999974E-6 : f32
    %356 = vector.broadcast %cst_143 : f32 to vector<16x1xf32>
    %357 = arith.addf %353, %356 : vector<16x1xf32>
    %358 = math.rsqrt %357 : vector<16x1xf32>
    %359 = vector.broadcast %358 : vector<16x1xf32> to vector<16x32xf32>
    %360 = arith.mulf %355, %359 : vector<16x32xf32>
    %361 = vector.broadcast %341 : vector<1x32xf32> to vector<16x32xf32>
    %362 = arith.mulf %360, %361 : vector<16x32xf32>
    %363 = vector.broadcast %342 : vector<1x32xf32> to vector<16x32xf32>
    %364 = arith.addf %362, %363 : vector<16x32xf32>
    %c0_144 = arith.constant 0 : index
    %c0_145 = arith.constant 0 : index
    %365 = vector.load %arg13[%c0_144, %c0_145] : memref<16x32xf32, #tpu.memory_space<vmem>>, vector<16x32xf32>
    tpu.vector_store %arg13[%c0_144, %c0_145], %364 {strides = array<i32>} : memref<16x32xf32, #tpu.memory_space<vmem>>, vector<16x32xf32>,
    return
  }
}

module attributes {stable_mosaic.version = 11 : i64} {
  func.func @_decoder_tail_kernel(%arg0: memref<16x32xf32, #tpu.memory_space<vmem>>, %arg1: memref<16x32xf32, #tpu.memory_space<vmem>>, %arg2: memref<16x16xf32, #tpu.memory_space<vmem>>, %arg3: memref<16x16xf32, #tpu.memory_space<vmem>>, %arg4: memref<16x12xf32, #tpu.memory_space<vmem>>, %arg5: memref<16x1xf32, #tpu.memory_space<vmem>>, %arg6: memref<2x32x96xf32, #tpu.memory_space<vmem>>, %arg7: memref<2x1x96xf32, #tpu.memory_space<vmem>>, %arg8: memref<2x32x32xf32, #tpu.memory_space<vmem>>, %arg9: memref<2x1x32xf32, #tpu.memory_space<vmem>>, %arg10: memref<2x1x64xf32, #tpu.memory_space<vmem>>, %arg11: memref<2x32x32xf32, #tpu.memory_space<vmem>>, %arg12: memref<2x1x32xf32, #tpu.memory_space<vmem>>, %arg13: memref<2x32x64xf32, #tpu.memory_space<vmem>>, %arg14: memref<2x1x64xf32, #tpu.memory_space<vmem>>, %arg15: memref<2x32x32xf32, #tpu.memory_space<vmem>>, %arg16: memref<2x1x32xf32, #tpu.memory_space<vmem>>, %arg17: memref<2x1x64xf32, #tpu.memory_space<vmem>>, %arg18: memref<2x32x64xf32, #tpu.memory_space<vmem>>, %arg19: memref<2x1x64xf32, #tpu.memory_space<vmem>>, %arg20: memref<2x64x32xf32, #tpu.memory_space<vmem>>, %arg21: memref<2x1x32xf32, #tpu.memory_space<vmem>>, %arg22: memref<2x1x64xf32, #tpu.memory_space<vmem>>, %arg23: memref<1x64xf32, #tpu.memory_space<vmem>>, %arg24: memref<1x64xf32, #tpu.memory_space<vmem>>, %arg25: memref<32x16xf32, #tpu.memory_space<vmem>>, %arg26: memref<1x16xf32, #tpu.memory_space<vmem>>, %arg27: memref<16x32xf32, #tpu.memory_space<vmem>>, %arg28: memref<1x32xf32, #tpu.memory_space<vmem>>, %arg29: memref<32x12xf32, #tpu.memory_space<vmem>>, %arg30: memref<1x12xf32, #tpu.memory_space<vmem>>, %arg31: memref<1x1xf32, #tpu.memory_space<vmem>>) attributes {dimension_semantics = [], scalar_prefetch = 0 : i64, scratch_operands = 0 : i64, tpu.core_type = #tpu.core_type<tc>} {
    %c0 = arith.constant 0 : index
    %c0_0 = arith.constant 0 : index
    %0 = vector.load %arg0[%c0, %c0_0] : memref<16x32xf32, #tpu.memory_space<vmem>>, vector<16x32xf32>
    %c0_1 = arith.constant 0 : index
    %c0_2 = arith.constant 0 : index
    %1 = vector.load %arg1[%c0_1, %c0_2] : memref<16x32xf32, #tpu.memory_space<vmem>>, vector<16x32xf32>
    %c0_3 = arith.constant 0 : index
    %c0_4 = arith.constant 0 : index
    %2 = vector.load %arg2[%c0_3, %c0_4] : memref<16x16xf32, #tpu.memory_space<vmem>>, vector<16x16xf32>
    %c0_5 = arith.constant 0 : index
    %c0_6 = arith.constant 0 : index
    %3 = vector.load %arg3[%c0_5, %c0_6] : memref<16x16xf32, #tpu.memory_space<vmem>>, vector<16x16xf32>
    %c0_7 = arith.constant 0 : index
    %c0_8 = arith.constant 0 : index
    %c0_9 = arith.constant 0 : index
    %4 = vector.load %arg6[%c0_7, %c0_8, %c0_9] : memref<2x32x96xf32, #tpu.memory_space<vmem>>, vector<1x32x96xf32>
    %5 = vector.shape_cast %4 : vector<1x32x96xf32> to vector<32x96xf32>
    %cst = arith.constant dense<0.000000e+00> : vector<16x96xf32>
    %6 = tpu.matmul %0, %5, %cst {dimension_numbers = #tpu.dot_dimension_numbers<[1], [0], [0], [1], [0, 0, 1, 1], [], []>} : vector<16x32xf32>, vector<32x96xf32>, vector<16x96xf32> -> vector<16x96xf32>
    %c0_10 = arith.constant 0 : index
    %c0_11 = arith.constant 0 : index
    %c0_12 = arith.constant 0 : index
    %7 = vector.load %arg7[%c0_10, %c0_11, %c0_12] : memref<2x1x96xf32, #tpu.memory_space<vmem>>, vector<1x1x96xf32>
    %8 = vector.shape_cast %7 : vector<1x1x96xf32> to vector<1x96xf32>
    %9 = vector.broadcast %8 : vector<1x96xf32> to vector<16x96xf32>
    %10 = arith.addf %6, %9 : vector<16x96xf32>
    %11 = vector.extract_strided_slice %10 {offsets = [0, 0], sizes = [16, 32], strides = [1, 1]} : vector<16x96xf32> to vector<16x32xf32>
    %12 = vector.extract_strided_slice %10 {offsets = [0, 32], sizes = [16, 32], strides = [1, 1]} : vector<16x96xf32> to vector<16x32xf32>
    %13 = vector.extract_strided_slice %10 {offsets = [0, 64], sizes = [16, 32], strides = [1, 1]} : vector<16x96xf32> to vector<16x32xf32>
    %c0_13 = arith.constant 0 : index
    %c0_14 = arith.constant 0 : index
    %c0_15 = arith.constant 0 : index
    %14 = vector.load %arg8[%c0_13, %c0_14, %c0_15] : memref<2x32x32xf32, #tpu.memory_space<vmem>>, vector<1x32x32xf32>
    %15 = vector.shape_cast %14 : vector<1x32x32xf32> to vector<32x32xf32>
    %c0_16 = arith.constant 0 : index
    %c0_17 = arith.constant 0 : index
    %c0_18 = arith.constant 0 : index
    %16 = vector.load %arg9[%c0_16, %c0_17, %c0_18] : memref<2x1x32xf32, #tpu.memory_space<vmem>>, vector<1x1x32xf32>
    %17 = vector.shape_cast %16 : vector<1x1x32xf32> to vector<1x32xf32>
    %18 = vector.extract_strided_slice %11 {offsets = [0, 0], sizes = [16, 8], strides = [1, 1]} : vector<16x32xf32> to vector<16x8xf32>
    %19 = vector.extract_strided_slice %12 {offsets = [0, 0], sizes = [16, 8], strides = [1, 1]} : vector<16x32xf32> to vector<16x8xf32>
    %20 = vector.extract_strided_slice %13 {offsets = [0, 0], sizes = [16, 8], strides = [1, 1]} : vector<16x32xf32> to vector<16x8xf32>
    %cst_19 = arith.constant dense<0.000000e+00> : vector<16x16xf32>
    %21 = tpu.matmul %18, %19, %cst_19 {dimension_numbers = #tpu.dot_dimension_numbers<[1], [1], [0], [0], [0, 0, 1, 0], [], []>} : vector<16x8xf32>, vector<16x8xf32>, vector<16x16xf32> -> vector<16x16xf32>
    %cst_20 = arith.constant 0.353553385 : f32
    %22 = vector.broadcast %cst_20 : f32 to vector<16x16xf32>
    %23 = arith.mulf %21, %22 : vector<16x16xf32>
    %24 = arith.addf %23, %2 : vector<16x16xf32>
    %cst_21 = arith.constant dense<0xFF800000> : vector<16xf32>
    %25 = vector.multi_reduction <maximumf>, %24, %cst_21 [1] : vector<16x16xf32> to vector<16xf32>
    %26 = vector.shape_cast %25 : vector<16xf32> to vector<16x1xf32>
    %27 = vector.broadcast %26 : vector<16x1xf32> to vector<16x16xf32>
    %28 = arith.subf %24, %27 : vector<16x16xf32>
    %29 = math.exp %28 : vector<16x16xf32>
    %cst_22 = arith.constant dense<0.000000e+00> : vector<16xf32>
    %30 = vector.multi_reduction <add>, %29, %cst_22 [1] : vector<16x16xf32> to vector<16xf32>
    %31 = vector.shape_cast %30 : vector<16xf32> to vector<16x1xf32>
    %cst_23 = arith.constant dense<0.000000e+00> : vector<16x8xf32>
    %32 = tpu.matmul %29, %20, %cst_23 {dimension_numbers = #tpu.dot_dimension_numbers<[1], [0], [0], [1], [0, 0, 1, 1], [], []>} : vector<16x16xf32>, vector<16x8xf32>, vector<16x8xf32> -> vector<16x8xf32>
    %33 = tpu.reciprocal %31 {approx = true} : vector<16x1xf32> -> vector<16x1xf32>
    %34 = vector.broadcast %33 : vector<16x1xf32> to vector<16x8xf32>
    %35 = arith.mulf %32, %34 : vector<16x8xf32>
    %36 = vector.extract_strided_slice %15 {offsets = [0, 0], sizes = [8, 32], strides = [1, 1]} : vector<32x32xf32> to vector<8x32xf32>
    %cst_24 = arith.constant dense<0.000000e+00> : vector<16x32xf32>
    %37 = tpu.matmul %35, %36, %cst_24 {dimension_numbers = #tpu.dot_dimension_numbers<[1], [0], [0], [1], [0, 0, 1, 1], [], []>} : vector<16x8xf32>, vector<8x32xf32>, vector<16x32xf32> -> vector<16x32xf32>
    %38 = vector.extract_strided_slice %11 {offsets = [0, 8], sizes = [16, 8], strides = [1, 1]} : vector<16x32xf32> to vector<16x8xf32>
    %39 = vector.extract_strided_slice %12 {offsets = [0, 8], sizes = [16, 8], strides = [1, 1]} : vector<16x32xf32> to vector<16x8xf32>
    %40 = vector.extract_strided_slice %13 {offsets = [0, 8], sizes = [16, 8], strides = [1, 1]} : vector<16x32xf32> to vector<16x8xf32>
    %cst_25 = arith.constant dense<0.000000e+00> : vector<16x16xf32>
    %41 = tpu.matmul %38, %39, %cst_25 {dimension_numbers = #tpu.dot_dimension_numbers<[1], [1], [0], [0], [0, 0, 1, 0], [], []>} : vector<16x8xf32>, vector<16x8xf32>, vector<16x16xf32> -> vector<16x16xf32>
    %cst_26 = arith.constant 0.353553385 : f32
    %42 = vector.broadcast %cst_26 : f32 to vector<16x16xf32>
    %43 = arith.mulf %41, %42 : vector<16x16xf32>
    %44 = arith.addf %43, %2 : vector<16x16xf32>
    %cst_27 = arith.constant dense<0xFF800000> : vector<16xf32>
    %45 = vector.multi_reduction <maximumf>, %44, %cst_27 [1] : vector<16x16xf32> to vector<16xf32>
    %46 = vector.shape_cast %45 : vector<16xf32> to vector<16x1xf32>
    %47 = vector.broadcast %46 : vector<16x1xf32> to vector<16x16xf32>
    %48 = arith.subf %44, %47 : vector<16x16xf32>
    %49 = math.exp %48 : vector<16x16xf32>
    %cst_28 = arith.constant dense<0.000000e+00> : vector<16xf32>
    %50 = vector.multi_reduction <add>, %49, %cst_28 [1] : vector<16x16xf32> to vector<16xf32>
    %51 = vector.shape_cast %50 : vector<16xf32> to vector<16x1xf32>
    %cst_29 = arith.constant dense<0.000000e+00> : vector<16x8xf32>
    %52 = tpu.matmul %49, %40, %cst_29 {dimension_numbers = #tpu.dot_dimension_numbers<[1], [0], [0], [1], [0, 0, 1, 1], [], []>} : vector<16x16xf32>, vector<16x8xf32>, vector<16x8xf32> -> vector<16x8xf32>
    %53 = tpu.reciprocal %51 {approx = true} : vector<16x1xf32> -> vector<16x1xf32>
    %54 = vector.broadcast %53 : vector<16x1xf32> to vector<16x8xf32>
    %55 = arith.mulf %52, %54 : vector<16x8xf32>
    %56 = vector.extract_strided_slice %15 {offsets = [8, 0], sizes = [8, 32], strides = [1, 1]} : vector<32x32xf32> to vector<8x32xf32>
    %cst_30 = arith.constant dense<0.000000e+00> : vector<16x32xf32>
    %57 = tpu.matmul %55, %56, %cst_30 {dimension_numbers = #tpu.dot_dimension_numbers<[1], [0], [0], [1], [0, 0, 1, 1], [], []>} : vector<16x8xf32>, vector<8x32xf32>, vector<16x32xf32> -> vector<16x32xf32>
    %58 = arith.addf %37, %57 : vector<16x32xf32>
    %59 = vector.extract_strided_slice %11 {offsets = [0, 16], sizes = [16, 8], strides = [1, 1]} : vector<16x32xf32> to vector<16x8xf32>
    %60 = vector.extract_strided_slice %12 {offsets = [0, 16], sizes = [16, 8], strides = [1, 1]} : vector<16x32xf32> to vector<16x8xf32>
    %61 = vector.extract_strided_slice %13 {offsets = [0, 16], sizes = [16, 8], strides = [1, 1]} : vector<16x32xf32> to vector<16x8xf32>
    %cst_31 = arith.constant dense<0.000000e+00> : vector<16x16xf32>
    %62 = tpu.matmul %59, %60, %cst_31 {dimension_numbers = #tpu.dot_dimension_numbers<[1], [1], [0], [0], [0, 0, 1, 0], [], []>} : vector<16x8xf32>, vector<16x8xf32>, vector<16x16xf32> -> vector<16x16xf32>
    %cst_32 = arith.constant 0.353553385 : f32
    %63 = vector.broadcast %cst_32 : f32 to vector<16x16xf32>
    %64 = arith.mulf %62, %63 : vector<16x16xf32>
    %65 = arith.addf %64, %2 : vector<16x16xf32>
    %cst_33 = arith.constant dense<0xFF800000> : vector<16xf32>
    %66 = vector.multi_reduction <maximumf>, %65, %cst_33 [1] : vector<16x16xf32> to vector<16xf32>
    %67 = vector.shape_cast %66 : vector<16xf32> to vector<16x1xf32>
    %68 = vector.broadcast %67 : vector<16x1xf32> to vector<16x16xf32>
    %69 = arith.subf %65, %68 : vector<16x16xf32>
    %70 = math.exp %69 : vector<16x16xf32>
    %cst_34 = arith.constant dense<0.000000e+00> : vector<16xf32>
    %71 = vector.multi_reduction <add>, %70, %cst_34 [1] : vector<16x16xf32> to vector<16xf32>
    %72 = vector.shape_cast %71 : vector<16xf32> to vector<16x1xf32>
    %cst_35 = arith.constant dense<0.000000e+00> : vector<16x8xf32>
    %73 = tpu.matmul %70, %61, %cst_35 {dimension_numbers = #tpu.dot_dimension_numbers<[1], [0], [0], [1], [0, 0, 1, 1], [], []>} : vector<16x16xf32>, vector<16x8xf32>, vector<16x8xf32> -> vector<16x8xf32>
    %74 = tpu.reciprocal %72 {approx = true} : vector<16x1xf32> -> vector<16x1xf32>
    %75 = vector.broadcast %74 : vector<16x1xf32> to vector<16x8xf32>
    %76 = arith.mulf %73, %75 : vector<16x8xf32>
    %77 = vector.extract_strided_slice %15 {offsets = [16, 0], sizes = [8, 32], strides = [1, 1]} : vector<32x32xf32> to vector<8x32xf32>
    %cst_36 = arith.constant dense<0.000000e+00> : vector<16x32xf32>
    %78 = tpu.matmul %76, %77, %cst_36 {dimension_numbers = #tpu.dot_dimension_numbers<[1], [0], [0], [1], [0, 0, 1, 1], [], []>} : vector<16x8xf32>, vector<8x32xf32>, vector<16x32xf32> -> vector<16x32xf32>
    %79 = arith.addf %58, %78 : vector<16x32xf32>
    %80 = vector.extract_strided_slice %11 {offsets = [0, 24], sizes = [16, 8], strides = [1, 1]} : vector<16x32xf32> to vector<16x8xf32>
    %81 = vector.extract_strided_slice %12 {offsets = [0, 24], sizes = [16, 8], strides = [1, 1]} : vector<16x32xf32> to vector<16x8xf32>
    %82 = vector.extract_strided_slice %13 {offsets = [0, 24], sizes = [16, 8], strides = [1, 1]} : vector<16x32xf32> to vector<16x8xf32>
    %cst_37 = arith.constant dense<0.000000e+00> : vector<16x16xf32>
    %83 = tpu.matmul %80, %81, %cst_37 {dimension_numbers = #tpu.dot_dimension_numbers<[1], [1], [0], [0], [0, 0, 1, 0], [], []>} : vector<16x8xf32>, vector<16x8xf32>, vector<16x16xf32> -> vector<16x16xf32>
    %cst_38 = arith.constant 0.353553385 : f32
    %84 = vector.broadcast %cst_38 : f32 to vector<16x16xf32>
    %85 = arith.mulf %83, %84 : vector<16x16xf32>
    %86 = arith.addf %85, %2 : vector<16x16xf32>
    %cst_39 = arith.constant dense<0xFF800000> : vector<16xf32>
    %87 = vector.multi_reduction <maximumf>, %86, %cst_39 [1] : vector<16x16xf32> to vector<16xf32>
    %88 = vector.shape_cast %87 : vector<16xf32> to vector<16x1xf32>
    %89 = vector.broadcast %88 : vector<16x1xf32> to vector<16x16xf32>
    %90 = arith.subf %86, %89 : vector<16x16xf32>
    %91 = math.exp %90 : vector<16x16xf32>
    %cst_40 = arith.constant dense<0.000000e+00> : vector<16xf32>
    %92 = vector.multi_reduction <add>, %91, %cst_40 [1] : vector<16x16xf32> to vector<16xf32>
    %93 = vector.shape_cast %92 : vector<16xf32> to vector<16x1xf32>
    %cst_41 = arith.constant dense<0.000000e+00> : vector<16x8xf32>
    %94 = tpu.matmul %91, %82, %cst_41 {dimension_numbers = #tpu.dot_dimension_numbers<[1], [0], [0], [1], [0, 0, 1, 1], [], []>} : vector<16x16xf32>, vector<16x8xf32>, vector<16x8xf32> -> vector<16x8xf32>
    %95 = tpu.reciprocal %93 {approx = true} : vector<16x1xf32> -> vector<16x1xf32>
    %96 = vector.broadcast %95 : vector<16x1xf32> to vector<16x8xf32>
    %97 = arith.mulf %94, %96 : vector<16x8xf32>
    %98 = vector.extract_strided_slice %15 {offsets = [24, 0], sizes = [8, 32], strides = [1, 1]} : vector<32x32xf32> to vector<8x32xf32>
    %cst_42 = arith.constant dense<0.000000e+00> : vector<16x32xf32>
    %99 = tpu.matmul %97, %98, %cst_42 {dimension_numbers = #tpu.dot_dimension_numbers<[1], [0], [0], [1], [0, 0, 1, 1], [], []>} : vector<16x8xf32>, vector<8x32xf32>, vector<16x32xf32> -> vector<16x32xf32>
    %100 = arith.addf %79, %99 : vector<16x32xf32>
    %101 = vector.broadcast %17 : vector<1x32xf32> to vector<16x32xf32>
    %102 = arith.addf %100, %101 : vector<16x32xf32>
    %103 = arith.addf %0, %102 : vector<16x32xf32>
    %c0_43 = arith.constant 0 : index
    %c0_44 = arith.constant 0 : index
    %c0_45 = arith.constant 0 : index
    %104 = vector.load %arg10[%c0_43, %c0_44, %c0_45] : memref<2x1x64xf32, #tpu.memory_space<vmem>>, vector<1x1x64xf32>
    %105 = vector.shape_cast %104 : vector<1x1x64xf32> to vector<1x64xf32>
    %106 = vector.extract_strided_slice %105 {offsets = [0, 0], sizes = [1, 32], strides = [1, 1]} : vector<1x64xf32> to vector<1x32xf32>
    %107 = vector.extract_strided_slice %105 {offsets = [0, 32], sizes = [1, 32], strides = [1, 1]} : vector<1x64xf32> to vector<1x32xf32>
    %cst_46 = arith.constant dense<0.000000e+00> : vector<16xf32>
    %108 = vector.multi_reduction <add>, %103, %cst_46 [1] : vector<16x32xf32> to vector<16xf32>
    %109 = vector.shape_cast %108 : vector<16xf32> to vector<16x1xf32>
    %cst_47 = arith.constant 3.200000e+01 : f32
    %110 = vector.broadcast %cst_47 : f32 to vector<16x1xf32>
    %111 = arith.divf %109, %110 : vector<16x1xf32>
    %112 = vector.broadcast %111 : vector<16x1xf32> to vector<16x32xf32>
    %113 = arith.subf %103, %112 : vector<16x32xf32>
    %114 = arith.mulf %113, %113 : vector<16x32xf32>
    %cst_48 = arith.constant dense<0.000000e+00> : vector<16xf32>
    %115 = vector.multi_reduction <add>, %114, %cst_48 [1] : vector<16x32xf32> to vector<16xf32>
    %116 = vector.shape_cast %115 : vector<16xf32> to vector<16x1xf32>
    %cst_49 = arith.constant 3.200000e+01 : f32
    %117 = vector.broadcast %cst_49 : f32 to vector<16x1xf32>
    %118 = arith.divf %116, %117 : vector<16x1xf32>
    %119 = vector.broadcast %111 : vector<16x1xf32> to vector<16x32xf32>
    %120 = arith.subf %103, %119 : vector<16x32xf32>
    %cst_50 = arith.constant 9.99999974E-6 : f32
    %121 = vector.broadcast %cst_50 : f32 to vector<16x1xf32>
    %122 = arith.addf %118, %121 : vector<16x1xf32>
    %123 = math.rsqrt %122 : vector<16x1xf32>
    %124 = vector.broadcast %123 : vector<16x1xf32> to vector<16x32xf32>
    %125 = arith.mulf %120, %124 : vector<16x32xf32>
    %126 = vector.broadcast %106 : vector<1x32xf32> to vector<16x32xf32>
    %127 = arith.mulf %125, %126 : vector<16x32xf32>
    %128 = vector.broadcast %107 : vector<1x32xf32> to vector<16x32xf32>
    %129 = arith.addf %127, %128 : vector<16x32xf32>
    %c0_51 = arith.constant 0 : index
    %c0_52 = arith.constant 0 : index
    %c0_53 = arith.constant 0 : index
    %130 = vector.load %arg11[%c0_51, %c0_52, %c0_53] : memref<2x32x32xf32, #tpu.memory_space<vmem>>, vector<1x32x32xf32>
    %131 = vector.shape_cast %130 : vector<1x32x32xf32> to vector<32x32xf32>
    %cst_54 = arith.constant dense<0.000000e+00> : vector<16x32xf32>
    %132 = tpu.matmul %129, %131, %cst_54 {dimension_numbers = #tpu.dot_dimension_numbers<[1], [0], [0], [1], [0, 0, 1, 1], [], []>} : vector<16x32xf32>, vector<32x32xf32>, vector<16x32xf32> -> vector<16x32xf32>
    %c0_55 = arith.constant 0 : index
    %c0_56 = arith.constant 0 : index
    %c0_57 = arith.constant 0 : index
    %133 = vector.load %arg12[%c0_55, %c0_56, %c0_57] : memref<2x1x32xf32, #tpu.memory_space<vmem>>, vector<1x1x32xf32>
    %134 = vector.shape_cast %133 : vector<1x1x32xf32> to vector<1x32xf32>
    %135 = vector.broadcast %134 : vector<1x32xf32> to vector<16x32xf32>
    %136 = arith.addf %132, %135 : vector<16x32xf32>
    %c0_58 = arith.constant 0 : index
    %c0_59 = arith.constant 0 : index
    %c0_60 = arith.constant 0 : index
    %137 = vector.load %arg13[%c0_58, %c0_59, %c0_60] : memref<2x32x64xf32, #tpu.memory_space<vmem>>, vector<1x32x64xf32>
    %138 = vector.shape_cast %137 : vector<1x32x64xf32> to vector<32x64xf32>
    %cst_61 = arith.constant dense<0.000000e+00> : vector<16x64xf32>
    %139 = tpu.matmul %1, %138, %cst_61 {dimension_numbers = #tpu.dot_dimension_numbers<[1], [0], [0], [1], [0, 0, 1, 1], [], []>} : vector<16x32xf32>, vector<32x64xf32>, vector<16x64xf32> -> vector<16x64xf32>
    %c0_62 = arith.constant 0 : index
    %c0_63 = arith.constant 0 : index
    %c0_64 = arith.constant 0 : index
    %140 = vector.load %arg14[%c0_62, %c0_63, %c0_64] : memref<2x1x64xf32, #tpu.memory_space<vmem>>, vector<1x1x64xf32>
    %141 = vector.shape_cast %140 : vector<1x1x64xf32> to vector<1x64xf32>
    %142 = vector.broadcast %141 : vector<1x64xf32> to vector<16x64xf32>
    %143 = arith.addf %139, %142 : vector<16x64xf32>
    %144 = vector.extract_strided_slice %143 {offsets = [0, 0], sizes = [16, 32], strides = [1, 1]} : vector<16x64xf32> to vector<16x32xf32>
    %145 = vector.extract_strided_slice %143 {offsets = [0, 32], sizes = [16, 32], strides = [1, 1]} : vector<16x64xf32> to vector<16x32xf32>
    %c0_65 = arith.constant 0 : index
    %c0_66 = arith.constant 0 : index
    %c0_67 = arith.constant 0 : index
    %146 = vector.load %arg15[%c0_65, %c0_66, %c0_67] : memref<2x32x32xf32, #tpu.memory_space<vmem>>, vector<1x32x32xf32>
    %147 = vector.shape_cast %146 : vector<1x32x32xf32> to vector<32x32xf32>
    %c0_68 = arith.constant 0 : index
    %c0_69 = arith.constant 0 : index
    %c0_70 = arith.constant 0 : index
    %148 = vector.load %arg16[%c0_68, %c0_69, %c0_70] : memref<2x1x32xf32, #tpu.memory_space<vmem>>, vector<1x1x32xf32>
    %149 = vector.shape_cast %148 : vector<1x1x32xf32> to vector<1x32xf32>
    %150 = vector.extract_strided_slice %136 {offsets = [0, 0], sizes = [16, 8], strides = [1, 1]} : vector<16x32xf32> to vector<16x8xf32>
    %151 = vector.extract_strided_slice %144 {offsets = [0, 0], sizes = [16, 8], strides = [1, 1]} : vector<16x32xf32> to vector<16x8xf32>
    %152 = vector.extract_strided_slice %145 {offsets = [0, 0], sizes = [16, 8], strides = [1, 1]} : vector<16x32xf32> to vector<16x8xf32>
    %cst_71 = arith.constant dense<0.000000e+00> : vector<16x16xf32>
    %153 = tpu.matmul %150, %151, %cst_71 {dimension_numbers = #tpu.dot_dimension_numbers<[1], [1], [0], [0], [0, 0, 1, 0], [], []>} : vector<16x8xf32>, vector<16x8xf32>, vector<16x16xf32> -> vector<16x16xf32>
    %cst_72 = arith.constant 0.353553385 : f32
    %154 = vector.broadcast %cst_72 : f32 to vector<16x16xf32>
    %155 = arith.mulf %153, %154 : vector<16x16xf32>
    %156 = arith.addf %155, %3 : vector<16x16xf32>
    %cst_73 = arith.constant dense<0xFF800000> : vector<16xf32>
    %157 = vector.multi_reduction <maximumf>, %156, %cst_73 [1] : vector<16x16xf32> to vector<16xf32>
    %158 = vector.shape_cast %157 : vector<16xf32> to vector<16x1xf32>
    %159 = vector.broadcast %158 : vector<16x1xf32> to vector<16x16xf32>
    %160 = arith.subf %156, %159 : vector<16x16xf32>
    %161 = math.exp %160 : vector<16x16xf32>
    %cst_74 = arith.constant dense<0.000000e+00> : vector<16xf32>
    %162 = vector.multi_reduction <add>, %161, %cst_74 [1] : vector<16x16xf32> to vector<16xf32>
    %163 = vector.shape_cast %162 : vector<16xf32> to vector<16x1xf32>
    %cst_75 = arith.constant dense<0.000000e+00> : vector<16x8xf32>
    %164 = tpu.matmul %161, %152, %cst_75 {dimension_numbers = #tpu.dot_dimension_numbers<[1], [0], [0], [1], [0, 0, 1, 1], [], []>} : vector<16x16xf32>, vector<16x8xf32>, vector<16x8xf32> -> vector<16x8xf32>
    %165 = tpu.reciprocal %163 {approx = true} : vector<16x1xf32> -> vector<16x1xf32>
    %166 = vector.broadcast %165 : vector<16x1xf32> to vector<16x8xf32>
    %167 = arith.mulf %164, %166 : vector<16x8xf32>
    %168 = vector.extract_strided_slice %147 {offsets = [0, 0], sizes = [8, 32], strides = [1, 1]} : vector<32x32xf32> to vector<8x32xf32>
    %cst_76 = arith.constant dense<0.000000e+00> : vector<16x32xf32>
    %169 = tpu.matmul %167, %168, %cst_76 {dimension_numbers = #tpu.dot_dimension_numbers<[1], [0], [0], [1], [0, 0, 1, 1], [], []>} : vector<16x8xf32>, vector<8x32xf32>, vector<16x32xf32> -> vector<16x32xf32>
    %170 = vector.extract_strided_slice %136 {offsets = [0, 8], sizes = [16, 8], strides = [1, 1]} : vector<16x32xf32> to vector<16x8xf32>
    %171 = vector.extract_strided_slice %144 {offsets = [0, 8], sizes = [16, 8], strides = [1, 1]} : vector<16x32xf32> to vector<16x8xf32>
    %172 = vector.extract_strided_slice %145 {offsets = [0, 8], sizes = [16, 8], strides = [1, 1]} : vector<16x32xf32> to vector<16x8xf32>
    %cst_77 = arith.constant dense<0.000000e+00> : vector<16x16xf32>
    %173 = tpu.matmul %170, %171, %cst_77 {dimension_numbers = #tpu.dot_dimension_numbers<[1], [1], [0], [0], [0, 0, 1, 0], [], []>} : vector<16x8xf32>, vector<16x8xf32>, vector<16x16xf32> -> vector<16x16xf32>
    %cst_78 = arith.constant 0.353553385 : f32
    %174 = vector.broadcast %cst_78 : f32 to vector<16x16xf32>
    %175 = arith.mulf %173, %174 : vector<16x16xf32>
    %176 = arith.addf %175, %3 : vector<16x16xf32>
    %cst_79 = arith.constant dense<0xFF800000> : vector<16xf32>
    %177 = vector.multi_reduction <maximumf>, %176, %cst_79 [1] : vector<16x16xf32> to vector<16xf32>
    %178 = vector.shape_cast %177 : vector<16xf32> to vector<16x1xf32>
    %179 = vector.broadcast %178 : vector<16x1xf32> to vector<16x16xf32>
    %180 = arith.subf %176, %179 : vector<16x16xf32>
    %181 = math.exp %180 : vector<16x16xf32>
    %cst_80 = arith.constant dense<0.000000e+00> : vector<16xf32>
    %182 = vector.multi_reduction <add>, %181, %cst_80 [1] : vector<16x16xf32> to vector<16xf32>
    %183 = vector.shape_cast %182 : vector<16xf32> to vector<16x1xf32>
    %cst_81 = arith.constant dense<0.000000e+00> : vector<16x8xf32>
    %184 = tpu.matmul %181, %172, %cst_81 {dimension_numbers = #tpu.dot_dimension_numbers<[1], [0], [0], [1], [0, 0, 1, 1], [], []>} : vector<16x16xf32>, vector<16x8xf32>, vector<16x8xf32> -> vector<16x8xf32>
    %185 = tpu.reciprocal %183 {approx = true} : vector<16x1xf32> -> vector<16x1xf32>
    %186 = vector.broadcast %185 : vector<16x1xf32> to vector<16x8xf32>
    %187 = arith.mulf %184, %186 : vector<16x8xf32>
    %188 = vector.extract_strided_slice %147 {offsets = [8, 0], sizes = [8, 32], strides = [1, 1]} : vector<32x32xf32> to vector<8x32xf32>
    %cst_82 = arith.constant dense<0.000000e+00> : vector<16x32xf32>
    %189 = tpu.matmul %187, %188, %cst_82 {dimension_numbers = #tpu.dot_dimension_numbers<[1], [0], [0], [1], [0, 0, 1, 1], [], []>} : vector<16x8xf32>, vector<8x32xf32>, vector<16x32xf32> -> vector<16x32xf32>
    %190 = arith.addf %169, %189 : vector<16x32xf32>
    %191 = vector.extract_strided_slice %136 {offsets = [0, 16], sizes = [16, 8], strides = [1, 1]} : vector<16x32xf32> to vector<16x8xf32>
    %192 = vector.extract_strided_slice %144 {offsets = [0, 16], sizes = [16, 8], strides = [1, 1]} : vector<16x32xf32> to vector<16x8xf32>
    %193 = vector.extract_strided_slice %145 {offsets = [0, 16], sizes = [16, 8], strides = [1, 1]} : vector<16x32xf32> to vector<16x8xf32>
    %cst_83 = arith.constant dense<0.000000e+00> : vector<16x16xf32>
    %194 = tpu.matmul %191, %192, %cst_83 {dimension_numbers = #tpu.dot_dimension_numbers<[1], [1], [0], [0], [0, 0, 1, 0], [], []>} : vector<16x8xf32>, vector<16x8xf32>, vector<16x16xf32> -> vector<16x16xf32>
    %cst_84 = arith.constant 0.353553385 : f32
    %195 = vector.broadcast %cst_84 : f32 to vector<16x16xf32>
    %196 = arith.mulf %194, %195 : vector<16x16xf32>
    %197 = arith.addf %196, %3 : vector<16x16xf32>
    %cst_85 = arith.constant dense<0xFF800000> : vector<16xf32>
    %198 = vector.multi_reduction <maximumf>, %197, %cst_85 [1] : vector<16x16xf32> to vector<16xf32>
    %199 = vector.shape_cast %198 : vector<16xf32> to vector<16x1xf32>
    %200 = vector.broadcast %199 : vector<16x1xf32> to vector<16x16xf32>
    %201 = arith.subf %197, %200 : vector<16x16xf32>
    %202 = math.exp %201 : vector<16x16xf32>
    %cst_86 = arith.constant dense<0.000000e+00> : vector<16xf32>
    %203 = vector.multi_reduction <add>, %202, %cst_86 [1] : vector<16x16xf32> to vector<16xf32>
    %204 = vector.shape_cast %203 : vector<16xf32> to vector<16x1xf32>
    %cst_87 = arith.constant dense<0.000000e+00> : vector<16x8xf32>
    %205 = tpu.matmul %202, %193, %cst_87 {dimension_numbers = #tpu.dot_dimension_numbers<[1], [0], [0], [1], [0, 0, 1, 1], [], []>} : vector<16x16xf32>, vector<16x8xf32>, vector<16x8xf32> -> vector<16x8xf32>
    %206 = tpu.reciprocal %204 {approx = true} : vector<16x1xf32> -> vector<16x1xf32>
    %207 = vector.broadcast %206 : vector<16x1xf32> to vector<16x8xf32>
    %208 = arith.mulf %205, %207 : vector<16x8xf32>
    %209 = vector.extract_strided_slice %147 {offsets = [16, 0], sizes = [8, 32], strides = [1, 1]} : vector<32x32xf32> to vector<8x32xf32>
    %cst_88 = arith.constant dense<0.000000e+00> : vector<16x32xf32>
    %210 = tpu.matmul %208, %209, %cst_88 {dimension_numbers = #tpu.dot_dimension_numbers<[1], [0], [0], [1], [0, 0, 1, 1], [], []>} : vector<16x8xf32>, vector<8x32xf32>, vector<16x32xf32> -> vector<16x32xf32>
    %211 = arith.addf %190, %210 : vector<16x32xf32>
    %212 = vector.extract_strided_slice %136 {offsets = [0, 24], sizes = [16, 8], strides = [1, 1]} : vector<16x32xf32> to vector<16x8xf32>
    %213 = vector.extract_strided_slice %144 {offsets = [0, 24], sizes = [16, 8], strides = [1, 1]} : vector<16x32xf32> to vector<16x8xf32>
    %214 = vector.extract_strided_slice %145 {offsets = [0, 24], sizes = [16, 8], strides = [1, 1]} : vector<16x32xf32> to vector<16x8xf32>
    %cst_89 = arith.constant dense<0.000000e+00> : vector<16x16xf32>
    %215 = tpu.matmul %212, %213, %cst_89 {dimension_numbers = #tpu.dot_dimension_numbers<[1], [1], [0], [0], [0, 0, 1, 0], [], []>} : vector<16x8xf32>, vector<16x8xf32>, vector<16x16xf32> -> vector<16x16xf32>
    %cst_90 = arith.constant 0.353553385 : f32
    %216 = vector.broadcast %cst_90 : f32 to vector<16x16xf32>
    %217 = arith.mulf %215, %216 : vector<16x16xf32>
    %218 = arith.addf %217, %3 : vector<16x16xf32>
    %cst_91 = arith.constant dense<0xFF800000> : vector<16xf32>
    %219 = vector.multi_reduction <maximumf>, %218, %cst_91 [1] : vector<16x16xf32> to vector<16xf32>
    %220 = vector.shape_cast %219 : vector<16xf32> to vector<16x1xf32>
    %221 = vector.broadcast %220 : vector<16x1xf32> to vector<16x16xf32>
    %222 = arith.subf %218, %221 : vector<16x16xf32>
    %223 = math.exp %222 : vector<16x16xf32>
    %cst_92 = arith.constant dense<0.000000e+00> : vector<16xf32>
    %224 = vector.multi_reduction <add>, %223, %cst_92 [1] : vector<16x16xf32> to vector<16xf32>
    %225 = vector.shape_cast %224 : vector<16xf32> to vector<16x1xf32>
    %cst_93 = arith.constant dense<0.000000e+00> : vector<16x8xf32>
    %226 = tpu.matmul %223, %214, %cst_93 {dimension_numbers = #tpu.dot_dimension_numbers<[1], [0], [0], [1], [0, 0, 1, 1], [], []>} : vector<16x16xf32>, vector<16x8xf32>, vector<16x8xf32> -> vector<16x8xf32>
    %227 = tpu.reciprocal %225 {approx = true} : vector<16x1xf32> -> vector<16x1xf32>
    %228 = vector.broadcast %227 : vector<16x1xf32> to vector<16x8xf32>
    %229 = arith.mulf %226, %228 : vector<16x8xf32>
    %230 = vector.extract_strided_slice %147 {offsets = [24, 0], sizes = [8, 32], strides = [1, 1]} : vector<32x32xf32> to vector<8x32xf32>
    %cst_94 = arith.constant dense<0.000000e+00> : vector<16x32xf32>
    %231 = tpu.matmul %229, %230, %cst_94 {dimension_numbers = #tpu.dot_dimension_numbers<[1], [0], [0], [1], [0, 0, 1, 1], [], []>} : vector<16x8xf32>, vector<8x32xf32>, vector<16x32xf32> -> vector<16x32xf32>
    %232 = arith.addf %211, %231 : vector<16x32xf32>
    %233 = vector.broadcast %149 : vector<1x32xf32> to vector<16x32xf32>
    %234 = arith.addf %232, %233 : vector<16x32xf32>
    %235 = arith.addf %129, %234 : vector<16x32xf32>
    %c0_95 = arith.constant 0 : index
    %c0_96 = arith.constant 0 : index
    %c0_97 = arith.constant 0 : index
    %236 = vector.load %arg17[%c0_95, %c0_96, %c0_97] : memref<2x1x64xf32, #tpu.memory_space<vmem>>, vector<1x1x64xf32>
    %237 = vector.shape_cast %236 : vector<1x1x64xf32> to vector<1x64xf32>
    %238 = vector.extract_strided_slice %237 {offsets = [0, 0], sizes = [1, 32], strides = [1, 1]} : vector<1x64xf32> to vector<1x32xf32>
    %239 = vector.extract_strided_slice %237 {offsets = [0, 32], sizes = [1, 32], strides = [1, 1]} : vector<1x64xf32> to vector<1x32xf32>
    %cst_98 = arith.constant dense<0.000000e+00> : vector<16xf32>
    %240 = vector.multi_reduction <add>, %235, %cst_98 [1] : vector<16x32xf32> to vector<16xf32>
    %241 = vector.shape_cast %240 : vector<16xf32> to vector<16x1xf32>
    %cst_99 = arith.constant 3.200000e+01 : f32
    %242 = vector.broadcast %cst_99 : f32 to vector<16x1xf32>
    %243 = arith.divf %241, %242 : vector<16x1xf32>
    %244 = vector.broadcast %243 : vector<16x1xf32> to vector<16x32xf32>
    %245 = arith.subf %235, %244 : vector<16x32xf32>
    %246 = arith.mulf %245, %245 : vector<16x32xf32>
    %cst_100 = arith.constant dense<0.000000e+00> : vector<16xf32>
    %247 = vector.multi_reduction <add>, %246, %cst_100 [1] : vector<16x32xf32> to vector<16xf32>
    %248 = vector.shape_cast %247 : vector<16xf32> to vector<16x1xf32>
    %cst_101 = arith.constant 3.200000e+01 : f32
    %249 = vector.broadcast %cst_101 : f32 to vector<16x1xf32>
    %250 = arith.divf %248, %249 : vector<16x1xf32>
    %251 = vector.broadcast %243 : vector<16x1xf32> to vector<16x32xf32>
    %252 = arith.subf %235, %251 : vector<16x32xf32>
    %cst_102 = arith.constant 9.99999974E-6 : f32
    %253 = vector.broadcast %cst_102 : f32 to vector<16x1xf32>
    %254 = arith.addf %250, %253 : vector<16x1xf32>
    %255 = math.rsqrt %254 : vector<16x1xf32>
    %256 = vector.broadcast %255 : vector<16x1xf32> to vector<16x32xf32>
    %257 = arith.mulf %252, %256 : vector<16x32xf32>
    %258 = vector.broadcast %238 : vector<1x32xf32> to vector<16x32xf32>
    %259 = arith.mulf %257, %258 : vector<16x32xf32>
    %260 = vector.broadcast %239 : vector<1x32xf32> to vector<16x32xf32>
    %261 = arith.addf %259, %260 : vector<16x32xf32>
    %c0_103 = arith.constant 0 : index
    %c0_104 = arith.constant 0 : index
    %c0_105 = arith.constant 0 : index
    %262 = vector.load %arg18[%c0_103, %c0_104, %c0_105] : memref<2x32x64xf32, #tpu.memory_space<vmem>>, vector<1x32x64xf32>
    %263 = vector.shape_cast %262 : vector<1x32x64xf32> to vector<32x64xf32>
    %c0_106 = arith.constant 0 : index
    %c0_107 = arith.constant 0 : index
    %c0_108 = arith.constant 0 : index
    %264 = vector.load %arg19[%c0_106, %c0_107, %c0_108] : memref<2x1x64xf32, #tpu.memory_space<vmem>>, vector<1x1x64xf32>
    %265 = vector.shape_cast %264 : vector<1x1x64xf32> to vector<1x64xf32>
    %c0_109 = arith.constant 0 : index
    %c0_110 = arith.constant 0 : index
    %c0_111 = arith.constant 0 : index
    %266 = vector.load %arg20[%c0_109, %c0_110, %c0_111] : memref<2x64x32xf32, #tpu.memory_space<vmem>>, vector<1x64x32xf32>
    %267 = vector.shape_cast %266 : vector<1x64x32xf32> to vector<64x32xf32>
    %c0_112 = arith.constant 0 : index
    %c0_113 = arith.constant 0 : index
    %c0_114 = arith.constant 0 : index
    %268 = vector.load %arg21[%c0_112, %c0_113, %c0_114] : memref<2x1x32xf32, #tpu.memory_space<vmem>>, vector<1x1x32xf32>
    %269 = vector.shape_cast %268 : vector<1x1x32xf32> to vector<1x32xf32>
    %cst_115 = arith.constant dense<0.000000e+00> : vector<16x64xf32>
    %270 = tpu.matmul %261, %263, %cst_115 {dimension_numbers = #tpu.dot_dimension_numbers<[1], [0], [0], [1], [0, 0, 1, 1], [], []>} : vector<16x32xf32>, vector<32x64xf32>, vector<16x64xf32> -> vector<16x64xf32>
    %271 = vector.broadcast %265 : vector<1x64xf32> to vector<16x64xf32>
    %272 = arith.addf %270, %271 : vector<16x64xf32>
    %cst_116 = arith.constant 0.000000e+00 : f32
    %273 = vector.broadcast %cst_116 : f32 to vector<16x64xf32>
    %274 = arith.maximumf %272, %273 : vector<16x64xf32>
    %cst_117 = arith.constant dense<0.000000e+00> : vector<16x32xf32>
    %275 = tpu.matmul %274, %267, %cst_117 {dimension_numbers = #tpu.dot_dimension_numbers<[1], [0], [0], [1], [0, 0, 1, 1], [], []>} : vector<16x64xf32>, vector<64x32xf32>, vector<16x32xf32> -> vector<16x32xf32>
    %276 = vector.broadcast %269 : vector<1x32xf32> to vector<16x32xf32>
    %277 = arith.addf %275, %276 : vector<16x32xf32>
    %278 = arith.addf %261, %277 : vector<16x32xf32>
    %c0_118 = arith.constant 0 : index
    %c0_119 = arith.constant 0 : index
    %c0_120 = arith.constant 0 : index
    %279 = vector.load %arg22[%c0_118, %c0_119, %c0_120] : memref<2x1x64xf32, #tpu.memory_space<vmem>>, vector<1x1x64xf32>
    %280 = vector.shape_cast %279 : vector<1x1x64xf32> to vector<1x64xf32>
    %281 = vector.extract_strided_slice %280 {offsets = [0, 0], sizes = [1, 32], strides = [1, 1]} : vector<1x64xf32> to vector<1x32xf32>
    %282 = vector.extract_strided_slice %280 {offsets = [0, 32], sizes = [1, 32], strides = [1, 1]} : vector<1x64xf32> to vector<1x32xf32>
    %cst_121 = arith.constant dense<0.000000e+00> : vector<16xf32>
    %283 = vector.multi_reduction <add>, %278, %cst_121 [1] : vector<16x32xf32> to vector<16xf32>
    %284 = vector.shape_cast %283 : vector<16xf32> to vector<16x1xf32>
    %cst_122 = arith.constant 3.200000e+01 : f32
    %285 = vector.broadcast %cst_122 : f32 to vector<16x1xf32>
    %286 = arith.divf %284, %285 : vector<16x1xf32>
    %287 = vector.broadcast %286 : vector<16x1xf32> to vector<16x32xf32>
    %288 = arith.subf %278, %287 : vector<16x32xf32>
    %289 = arith.mulf %288, %288 : vector<16x32xf32>
    %cst_123 = arith.constant dense<0.000000e+00> : vector<16xf32>
    %290 = vector.multi_reduction <add>, %289, %cst_123 [1] : vector<16x32xf32> to vector<16xf32>
    %291 = vector.shape_cast %290 : vector<16xf32> to vector<16x1xf32>
    %cst_124 = arith.constant 3.200000e+01 : f32
    %292 = vector.broadcast %cst_124 : f32 to vector<16x1xf32>
    %293 = arith.divf %291, %292 : vector<16x1xf32>
    %294 = vector.broadcast %286 : vector<16x1xf32> to vector<16x32xf32>
    %295 = arith.subf %278, %294 : vector<16x32xf32>
    %cst_125 = arith.constant 9.99999974E-6 : f32
    %296 = vector.broadcast %cst_125 : f32 to vector<16x1xf32>
    %297 = arith.addf %293, %296 : vector<16x1xf32>
    %298 = math.rsqrt %297 : vector<16x1xf32>
    %299 = vector.broadcast %298 : vector<16x1xf32> to vector<16x32xf32>
    %300 = arith.mulf %295, %299 : vector<16x32xf32>
    %301 = vector.broadcast %281 : vector<1x32xf32> to vector<16x32xf32>
    %302 = arith.mulf %300, %301 : vector<16x32xf32>
    %303 = vector.broadcast %282 : vector<1x32xf32> to vector<16x32xf32>
    %304 = arith.addf %302, %303 : vector<16x32xf32>
    %c1 = arith.constant 1 : index
    %c0_126 = arith.constant 0 : index
    %c0_127 = arith.constant 0 : index
    %305 = vector.load %arg6[%c1, %c0_126, %c0_127] : memref<2x32x96xf32, #tpu.memory_space<vmem>>, vector<1x32x96xf32>
    %306 = vector.shape_cast %305 : vector<1x32x96xf32> to vector<32x96xf32>
    %cst_128 = arith.constant dense<0.000000e+00> : vector<16x96xf32>
    %307 = tpu.matmul %304, %306, %cst_128 {dimension_numbers = #tpu.dot_dimension_numbers<[1], [0], [0], [1], [0, 0, 1, 1], [], []>} : vector<16x32xf32>, vector<32x96xf32>, vector<16x96xf32> -> vector<16x96xf32>
    %c1_129 = arith.constant 1 : index
    %c0_130 = arith.constant 0 : index
    %c0_131 = arith.constant 0 : index
    %308 = vector.load %arg7[%c1_129, %c0_130, %c0_131] : memref<2x1x96xf32, #tpu.memory_space<vmem>>, vector<1x1x96xf32>
    %309 = vector.shape_cast %308 : vector<1x1x96xf32> to vector<1x96xf32>
    %310 = vector.broadcast %309 : vector<1x96xf32> to vector<16x96xf32>
    %311 = arith.addf %307, %310 : vector<16x96xf32>
    %312 = vector.extract_strided_slice %311 {offsets = [0, 0], sizes = [16, 32], strides = [1, 1]} : vector<16x96xf32> to vector<16x32xf32>
    %313 = vector.extract_strided_slice %311 {offsets = [0, 32], sizes = [16, 32], strides = [1, 1]} : vector<16x96xf32> to vector<16x32xf32>
    %314 = vector.extract_strided_slice %311 {offsets = [0, 64], sizes = [16, 32], strides = [1, 1]} : vector<16x96xf32> to vector<16x32xf32>
    %c1_132 = arith.constant 1 : index
    %c0_133 = arith.constant 0 : index
    %c0_134 = arith.constant 0 : index
    %315 = vector.load %arg8[%c1_132, %c0_133, %c0_134] : memref<2x32x32xf32, #tpu.memory_space<vmem>>, vector<1x32x32xf32>
    %316 = vector.shape_cast %315 : vector<1x32x32xf32> to vector<32x32xf32>
    %c1_135 = arith.constant 1 : index
    %c0_136 = arith.constant 0 : index
    %c0_137 = arith.constant 0 : index
    %317 = vector.load %arg9[%c1_135, %c0_136, %c0_137] : memref<2x1x32xf32, #tpu.memory_space<vmem>>, vector<1x1x32xf32>
    %318 = vector.shape_cast %317 : vector<1x1x32xf32> to vector<1x32xf32>
    %319 = vector.extract_strided_slice %312 {offsets = [0, 0], sizes = [16, 8], strides = [1, 1]} : vector<16x32xf32> to vector<16x8xf32>
    %320 = vector.extract_strided_slice %313 {offsets = [0, 0], sizes = [16, 8], strides = [1, 1]} : vector<16x32xf32> to vector<16x8xf32>
    %321 = vector.extract_strided_slice %314 {offsets = [0, 0], sizes = [16, 8], strides = [1, 1]} : vector<16x32xf32> to vector<16x8xf32>
    %cst_138 = arith.constant dense<0.000000e+00> : vector<16x16xf32>
    %322 = tpu.matmul %319, %320, %cst_138 {dimension_numbers = #tpu.dot_dimension_numbers<[1], [1], [0], [0], [0, 0, 1, 0], [], []>} : vector<16x8xf32>, vector<16x8xf32>, vector<16x16xf32> -> vector<16x16xf32>
    %cst_139 = arith.constant 0.353553385 : f32
    %323 = vector.broadcast %cst_139 : f32 to vector<16x16xf32>
    %324 = arith.mulf %322, %323 : vector<16x16xf32>
    %325 = arith.addf %324, %2 : vector<16x16xf32>
    %cst_140 = arith.constant dense<0xFF800000> : vector<16xf32>
    %326 = vector.multi_reduction <maximumf>, %325, %cst_140 [1] : vector<16x16xf32> to vector<16xf32>
    %327 = vector.shape_cast %326 : vector<16xf32> to vector<16x1xf32>
    %328 = vector.broadcast %327 : vector<16x1xf32> to vector<16x16xf32>
    %329 = arith.subf %325, %328 : vector<16x16xf32>
    %330 = math.exp %329 : vector<16x16xf32>
    %cst_141 = arith.constant dense<0.000000e+00> : vector<16xf32>
    %331 = vector.multi_reduction <add>, %330, %cst_141 [1] : vector<16x16xf32> to vector<16xf32>
    %332 = vector.shape_cast %331 : vector<16xf32> to vector<16x1xf32>
    %cst_142 = arith.constant dense<0.000000e+00> : vector<16x8xf32>
    %333 = tpu.matmul %330, %321, %cst_142 {dimension_numbers = #tpu.dot_dimension_numbers<[1], [0], [0], [1], [0, 0, 1, 1], [], []>} : vector<16x16xf32>, vector<16x8xf32>, vector<16x8xf32> -> vector<16x8xf32>
    %334 = tpu.reciprocal %332 {approx = true} : vector<16x1xf32> -> vector<16x1xf32>
    %335 = vector.broadcast %334 : vector<16x1xf32> to vector<16x8xf32>
    %336 = arith.mulf %333, %335 : vector<16x8xf32>
    %337 = vector.extract_strided_slice %316 {offsets = [0, 0], sizes = [8, 32], strides = [1, 1]} : vector<32x32xf32> to vector<8x32xf32>
    %cst_143 = arith.constant dense<0.000000e+00> : vector<16x32xf32>
    %338 = tpu.matmul %336, %337, %cst_143 {dimension_numbers = #tpu.dot_dimension_numbers<[1], [0], [0], [1], [0, 0, 1, 1], [], []>} : vector<16x8xf32>, vector<8x32xf32>, vector<16x32xf32> -> vector<16x32xf32>
    %339 = vector.extract_strided_slice %312 {offsets = [0, 8], sizes = [16, 8], strides = [1, 1]} : vector<16x32xf32> to vector<16x8xf32>
    %340 = vector.extract_strided_slice %313 {offsets = [0, 8], sizes = [16, 8], strides = [1, 1]} : vector<16x32xf32> to vector<16x8xf32>
    %341 = vector.extract_strided_slice %314 {offsets = [0, 8], sizes = [16, 8], strides = [1, 1]} : vector<16x32xf32> to vector<16x8xf32>
    %cst_144 = arith.constant dense<0.000000e+00> : vector<16x16xf32>
    %342 = tpu.matmul %339, %340, %cst_144 {dimension_numbers = #tpu.dot_dimension_numbers<[1], [1], [0], [0], [0, 0, 1, 0], [], []>} : vector<16x8xf32>, vector<16x8xf32>, vector<16x16xf32> -> vector<16x16xf32>
    %cst_145 = arith.constant 0.353553385 : f32
    %343 = vector.broadcast %cst_145 : f32 to vector<16x16xf32>
    %344 = arith.mulf %342, %343 : vector<16x16xf32>
    %345 = arith.addf %344, %2 : vector<16x16xf32>
    %cst_146 = arith.constant dense<0xFF800000> : vector<16xf32>
    %346 = vector.multi_reduction <maximumf>, %345, %cst_146 [1] : vector<16x16xf32> to vector<16xf32>
    %347 = vector.shape_cast %346 : vector<16xf32> to vector<16x1xf32>
    %348 = vector.broadcast %347 : vector<16x1xf32> to vector<16x16xf32>
    %349 = arith.subf %345, %348 : vector<16x16xf32>
    %350 = math.exp %349 : vector<16x16xf32>
    %cst_147 = arith.constant dense<0.000000e+00> : vector<16xf32>
    %351 = vector.multi_reduction <add>, %350, %cst_147 [1] : vector<16x16xf32> to vector<16xf32>
    %352 = vector.shape_cast %351 : vector<16xf32> to vector<16x1xf32>
    %cst_148 = arith.constant dense<0.000000e+00> : vector<16x8xf32>
    %353 = tpu.matmul %350, %341, %cst_148 {dimension_numbers = #tpu.dot_dimension_numbers<[1], [0], [0], [1], [0, 0, 1, 1], [], []>} : vector<16x16xf32>, vector<16x8xf32>, vector<16x8xf32> -> vector<16x8xf32>
    %354 = tpu.reciprocal %352 {approx = true} : vector<16x1xf32> -> vector<16x1xf32>
    %355 = vector.broadcast %354 : vector<16x1xf32> to vector<16x8xf32>
    %356 = arith.mulf %353, %355 : vector<16x8xf32>
    %357 = vector.extract_strided_slice %316 {offsets = [8, 0], sizes = [8, 32], strides = [1, 1]} : vector<32x32xf32> to vector<8x32xf32>
    %cst_149 = arith.constant dense<0.000000e+00> : vector<16x32xf32>
    %358 = tpu.matmul %356, %357, %cst_149 {dimension_numbers = #tpu.dot_dimension_numbers<[1], [0], [0], [1], [0, 0, 1, 1], [], []>} : vector<16x8xf32>, vector<8x32xf32>, vector<16x32xf32> -> vector<16x32xf32>
    %359 = arith.addf %338, %358 : vector<16x32xf32>
    %360 = vector.extract_strided_slice %312 {offsets = [0, 16], sizes = [16, 8], strides = [1, 1]} : vector<16x32xf32> to vector<16x8xf32>
    %361 = vector.extract_strided_slice %313 {offsets = [0, 16], sizes = [16, 8], strides = [1, 1]} : vector<16x32xf32> to vector<16x8xf32>
    %362 = vector.extract_strided_slice %314 {offsets = [0, 16], sizes = [16, 8], strides = [1, 1]} : vector<16x32xf32> to vector<16x8xf32>
    %cst_150 = arith.constant dense<0.000000e+00> : vector<16x16xf32>
    %363 = tpu.matmul %360, %361, %cst_150 {dimension_numbers = #tpu.dot_dimension_numbers<[1], [1], [0], [0], [0, 0, 1, 0], [], []>} : vector<16x8xf32>, vector<16x8xf32>, vector<16x16xf32> -> vector<16x16xf32>
    %cst_151 = arith.constant 0.353553385 : f32
    %364 = vector.broadcast %cst_151 : f32 to vector<16x16xf32>
    %365 = arith.mulf %363, %364 : vector<16x16xf32>
    %366 = arith.addf %365, %2 : vector<16x16xf32>
    %cst_152 = arith.constant dense<0xFF800000> : vector<16xf32>
    %367 = vector.multi_reduction <maximumf>, %366, %cst_152 [1] : vector<16x16xf32> to vector<16xf32>
    %368 = vector.shape_cast %367 : vector<16xf32> to vector<16x1xf32>
    %369 = vector.broadcast %368 : vector<16x1xf32> to vector<16x16xf32>
    %370 = arith.subf %366, %369 : vector<16x16xf32>
    %371 = math.exp %370 : vector<16x16xf32>
    %cst_153 = arith.constant dense<0.000000e+00> : vector<16xf32>
    %372 = vector.multi_reduction <add>, %371, %cst_153 [1] : vector<16x16xf32> to vector<16xf32>
    %373 = vector.shape_cast %372 : vector<16xf32> to vector<16x1xf32>
    %cst_154 = arith.constant dense<0.000000e+00> : vector<16x8xf32>
    %374 = tpu.matmul %371, %362, %cst_154 {dimension_numbers = #tpu.dot_dimension_numbers<[1], [0], [0], [1], [0, 0, 1, 1], [], []>} : vector<16x16xf32>, vector<16x8xf32>, vector<16x8xf32> -> vector<16x8xf32>
    %375 = tpu.reciprocal %373 {approx = true} : vector<16x1xf32> -> vector<16x1xf32>
    %376 = vector.broadcast %375 : vector<16x1xf32> to vector<16x8xf32>
    %377 = arith.mulf %374, %376 : vector<16x8xf32>
    %378 = vector.extract_strided_slice %316 {offsets = [16, 0], sizes = [8, 32], strides = [1, 1]} : vector<32x32xf32> to vector<8x32xf32>
    %cst_155 = arith.constant dense<0.000000e+00> : vector<16x32xf32>
    %379 = tpu.matmul %377, %378, %cst_155 {dimension_numbers = #tpu.dot_dimension_numbers<[1], [0], [0], [1], [0, 0, 1, 1], [], []>} : vector<16x8xf32>, vector<8x32xf32>, vector<16x32xf32> -> vector<16x32xf32>
    %380 = arith.addf %359, %379 : vector<16x32xf32>
    %381 = vector.extract_strided_slice %312 {offsets = [0, 24], sizes = [16, 8], strides = [1, 1]} : vector<16x32xf32> to vector<16x8xf32>
    %382 = vector.extract_strided_slice %313 {offsets = [0, 24], sizes = [16, 8], strides = [1, 1]} : vector<16x32xf32> to vector<16x8xf32>
    %383 = vector.extract_strided_slice %314 {offsets = [0, 24], sizes = [16, 8], strides = [1, 1]} : vector<16x32xf32> to vector<16x8xf32>
    %cst_156 = arith.constant dense<0.000000e+00> : vector<16x16xf32>
    %384 = tpu.matmul %381, %382, %cst_156 {dimension_numbers = #tpu.dot_dimension_numbers<[1], [1], [0], [0], [0, 0, 1, 0], [], []>} : vector<16x8xf32>, vector<16x8xf32>, vector<16x16xf32> -> vector<16x16xf32>
    %cst_157 = arith.constant 0.353553385 : f32
    %385 = vector.broadcast %cst_157 : f32 to vector<16x16xf32>
    %386 = arith.mulf %384, %385 : vector<16x16xf32>
    %387 = arith.addf %386, %2 : vector<16x16xf32>
    %cst_158 = arith.constant dense<0xFF800000> : vector<16xf32>
    %388 = vector.multi_reduction <maximumf>, %387, %cst_158 [1] : vector<16x16xf32> to vector<16xf32>
    %389 = vector.shape_cast %388 : vector<16xf32> to vector<16x1xf32>
    %390 = vector.broadcast %389 : vector<16x1xf32> to vector<16x16xf32>
    %391 = arith.subf %387, %390 : vector<16x16xf32>
    %392 = math.exp %391 : vector<16x16xf32>
    %cst_159 = arith.constant dense<0.000000e+00> : vector<16xf32>
    %393 = vector.multi_reduction <add>, %392, %cst_159 [1] : vector<16x16xf32> to vector<16xf32>
    %394 = vector.shape_cast %393 : vector<16xf32> to vector<16x1xf32>
    %cst_160 = arith.constant dense<0.000000e+00> : vector<16x8xf32>
    %395 = tpu.matmul %392, %383, %cst_160 {dimension_numbers = #tpu.dot_dimension_numbers<[1], [0], [0], [1], [0, 0, 1, 1], [], []>} : vector<16x16xf32>, vector<16x8xf32>, vector<16x8xf32> -> vector<16x8xf32>
    %396 = tpu.reciprocal %394 {approx = true} : vector<16x1xf32> -> vector<16x1xf32>
    %397 = vector.broadcast %396 : vector<16x1xf32> to vector<16x8xf32>
    %398 = arith.mulf %395, %397 : vector<16x8xf32>
    %399 = vector.extract_strided_slice %316 {offsets = [24, 0], sizes = [8, 32], strides = [1, 1]} : vector<32x32xf32> to vector<8x32xf32>
    %cst_161 = arith.constant dense<0.000000e+00> : vector<16x32xf32>
    %400 = tpu.matmul %398, %399, %cst_161 {dimension_numbers = #tpu.dot_dimension_numbers<[1], [0], [0], [1], [0, 0, 1, 1], [], []>} : vector<16x8xf32>, vector<8x32xf32>, vector<16x32xf32> -> vector<16x32xf32>
    %401 = arith.addf %380, %400 : vector<16x32xf32>
    %402 = vector.broadcast %318 : vector<1x32xf32> to vector<16x32xf32>
    %403 = arith.addf %401, %402 : vector<16x32xf32>
    %404 = arith.addf %304, %403 : vector<16x32xf32>
    %c1_162 = arith.constant 1 : index
    %c0_163 = arith.constant 0 : index
    %c0_164 = arith.constant 0 : index
    %405 = vector.load %arg10[%c1_162, %c0_163, %c0_164] : memref<2x1x64xf32, #tpu.memory_space<vmem>>, vector<1x1x64xf32>
    %406 = vector.shape_cast %405 : vector<1x1x64xf32> to vector<1x64xf32>
    %407 = vector.extract_strided_slice %406 {offsets = [0, 0], sizes = [1, 32], strides = [1, 1]} : vector<1x64xf32> to vector<1x32xf32>
    %408 = vector.extract_strided_slice %406 {offsets = [0, 32], sizes = [1, 32], strides = [1, 1]} : vector<1x64xf32> to vector<1x32xf32>
    %cst_165 = arith.constant dense<0.000000e+00> : vector<16xf32>
    %409 = vector.multi_reduction <add>, %404, %cst_165 [1] : vector<16x32xf32> to vector<16xf32>
    %410 = vector.shape_cast %409 : vector<16xf32> to vector<16x1xf32>
    %cst_166 = arith.constant 3.200000e+01 : f32
    %411 = vector.broadcast %cst_166 : f32 to vector<16x1xf32>
    %412 = arith.divf %410, %411 : vector<16x1xf32>
    %413 = vector.broadcast %412 : vector<16x1xf32> to vector<16x32xf32>
    %414 = arith.subf %404, %413 : vector<16x32xf32>
    %415 = arith.mulf %414, %414 : vector<16x32xf32>
    %cst_167 = arith.constant dense<0.000000e+00> : vector<16xf32>
    %416 = vector.multi_reduction <add>, %415, %cst_167 [1] : vector<16x32xf32> to vector<16xf32>
    %417 = vector.shape_cast %416 : vector<16xf32> to vector<16x1xf32>
    %cst_168 = arith.constant 3.200000e+01 : f32
    %418 = vector.broadcast %cst_168 : f32 to vector<16x1xf32>
    %419 = arith.divf %417, %418 : vector<16x1xf32>
    %420 = vector.broadcast %412 : vector<16x1xf32> to vector<16x32xf32>
    %421 = arith.subf %404, %420 : vector<16x32xf32>
    %cst_169 = arith.constant 9.99999974E-6 : f32
    %422 = vector.broadcast %cst_169 : f32 to vector<16x1xf32>
    %423 = arith.addf %419, %422 : vector<16x1xf32>
    %424 = math.rsqrt %423 : vector<16x1xf32>
    %425 = vector.broadcast %424 : vector<16x1xf32> to vector<16x32xf32>
    %426 = arith.mulf %421, %425 : vector<16x32xf32>
    %427 = vector.broadcast %407 : vector<1x32xf32> to vector<16x32xf32>
    %428 = arith.mulf %426, %427 : vector<16x32xf32>
    %429 = vector.broadcast %408 : vector<1x32xf32> to vector<16x32xf32>
    %430 = arith.addf %428, %429 : vector<16x32xf32>
    %c1_170 = arith.constant 1 : index
    %c0_171 = arith.constant 0 : index
    %c0_172 = arith.constant 0 : index
    %431 = vector.load %arg11[%c1_170, %c0_171, %c0_172] : memref<2x32x32xf32, #tpu.memory_space<vmem>>, vector<1x32x32xf32>
    %432 = vector.shape_cast %431 : vector<1x32x32xf32> to vector<32x32xf32>
    %cst_173 = arith.constant dense<0.000000e+00> : vector<16x32xf32>
    %433 = tpu.matmul %430, %432, %cst_173 {dimension_numbers = #tpu.dot_dimension_numbers<[1], [0], [0], [1], [0, 0, 1, 1], [], []>} : vector<16x32xf32>, vector<32x32xf32>, vector<16x32xf32> -> vector<16x32xf32>
    %c1_174 = arith.constant 1 : index
    %c0_175 = arith.constant 0 : index
    %c0_176 = arith.constant 0 : index
    %434 = vector.load %arg12[%c1_174, %c0_175, %c0_176] : memref<2x1x32xf32, #tpu.memory_space<vmem>>, vector<1x1x32xf32>
    %435 = vector.shape_cast %434 : vector<1x1x32xf32> to vector<1x32xf32>
    %436 = vector.broadcast %435 : vector<1x32xf32> to vector<16x32xf32>
    %437 = arith.addf %433, %436 : vector<16x32xf32>
    %c1_177 = arith.constant 1 : index
    %c0_178 = arith.constant 0 : index
    %c0_179 = arith.constant 0 : index
    %438 = vector.load %arg13[%c1_177, %c0_178, %c0_179] : memref<2x32x64xf32, #tpu.memory_space<vmem>>, vector<1x32x64xf32>
    %439 = vector.shape_cast %438 : vector<1x32x64xf32> to vector<32x64xf32>
    %cst_180 = arith.constant dense<0.000000e+00> : vector<16x64xf32>
    %440 = tpu.matmul %1, %439, %cst_180 {dimension_numbers = #tpu.dot_dimension_numbers<[1], [0], [0], [1], [0, 0, 1, 1], [], []>} : vector<16x32xf32>, vector<32x64xf32>, vector<16x64xf32> -> vector<16x64xf32>
    %c1_181 = arith.constant 1 : index
    %c0_182 = arith.constant 0 : index
    %c0_183 = arith.constant 0 : index
    %441 = vector.load %arg14[%c1_181, %c0_182, %c0_183] : memref<2x1x64xf32, #tpu.memory_space<vmem>>, vector<1x1x64xf32>
    %442 = vector.shape_cast %441 : vector<1x1x64xf32> to vector<1x64xf32>
    %443 = vector.broadcast %442 : vector<1x64xf32> to vector<16x64xf32>
    %444 = arith.addf %440, %443 : vector<16x64xf32>
    %445 = vector.extract_strided_slice %444 {offsets = [0, 0], sizes = [16, 32], strides = [1, 1]} : vector<16x64xf32> to vector<16x32xf32>
    %446 = vector.extract_strided_slice %444 {offsets = [0, 32], sizes = [16, 32], strides = [1, 1]} : vector<16x64xf32> to vector<16x32xf32>
    %c1_184 = arith.constant 1 : index
    %c0_185 = arith.constant 0 : index
    %c0_186 = arith.constant 0 : index
    %447 = vector.load %arg15[%c1_184, %c0_185, %c0_186] : memref<2x32x32xf32, #tpu.memory_space<vmem>>, vector<1x32x32xf32>
    %448 = vector.shape_cast %447 : vector<1x32x32xf32> to vector<32x32xf32>
    %c1_187 = arith.constant 1 : index
    %c0_188 = arith.constant 0 : index
    %c0_189 = arith.constant 0 : index
    %449 = vector.load %arg16[%c1_187, %c0_188, %c0_189] : memref<2x1x32xf32, #tpu.memory_space<vmem>>, vector<1x1x32xf32>
    %450 = vector.shape_cast %449 : vector<1x1x32xf32> to vector<1x32xf32>
    %451 = vector.extract_strided_slice %437 {offsets = [0, 0], sizes = [16, 8], strides = [1, 1]} : vector<16x32xf32> to vector<16x8xf32>
    %452 = vector.extract_strided_slice %445 {offsets = [0, 0], sizes = [16, 8], strides = [1, 1]} : vector<16x32xf32> to vector<16x8xf32>
    %453 = vector.extract_strided_slice %446 {offsets = [0, 0], sizes = [16, 8], strides = [1, 1]} : vector<16x32xf32> to vector<16x8xf32>
    %cst_190 = arith.constant dense<0.000000e+00> : vector<16x16xf32>
    %454 = tpu.matmul %451, %452, %cst_190 {dimension_numbers = #tpu.dot_dimension_numbers<[1], [1], [0], [0], [0, 0, 1, 0], [], []>} : vector<16x8xf32>, vector<16x8xf32>, vector<16x16xf32> -> vector<16x16xf32>
    %cst_191 = arith.constant 0.353553385 : f32
    %455 = vector.broadcast %cst_191 : f32 to vector<16x16xf32>
    %456 = arith.mulf %454, %455 : vector<16x16xf32>
    %457 = arith.addf %456, %3 : vector<16x16xf32>
    %cst_192 = arith.constant dense<0xFF800000> : vector<16xf32>
    %458 = vector.multi_reduction <maximumf>, %457, %cst_192 [1] : vector<16x16xf32> to vector<16xf32>
    %459 = vector.shape_cast %458 : vector<16xf32> to vector<16x1xf32>
    %460 = vector.broadcast %459 : vector<16x1xf32> to vector<16x16xf32>
    %461 = arith.subf %457, %460 : vector<16x16xf32>
    %462 = math.exp %461 : vector<16x16xf32>
    %cst_193 = arith.constant dense<0.000000e+00> : vector<16xf32>
    %463 = vector.multi_reduction <add>, %462, %cst_193 [1] : vector<16x16xf32> to vector<16xf32>
    %464 = vector.shape_cast %463 : vector<16xf32> to vector<16x1xf32>
    %cst_194 = arith.constant dense<0.000000e+00> : vector<16x8xf32>
    %465 = tpu.matmul %462, %453, %cst_194 {dimension_numbers = #tpu.dot_dimension_numbers<[1], [0], [0], [1], [0, 0, 1, 1], [], []>} : vector<16x16xf32>, vector<16x8xf32>, vector<16x8xf32> -> vector<16x8xf32>
    %466 = tpu.reciprocal %464 {approx = true} : vector<16x1xf32> -> vector<16x1xf32>
    %467 = vector.broadcast %466 : vector<16x1xf32> to vector<16x8xf32>
    %468 = arith.mulf %465, %467 : vector<16x8xf32>
    %469 = vector.extract_strided_slice %448 {offsets = [0, 0], sizes = [8, 32], strides = [1, 1]} : vector<32x32xf32> to vector<8x32xf32>
    %cst_195 = arith.constant dense<0.000000e+00> : vector<16x32xf32>
    %470 = tpu.matmul %468, %469, %cst_195 {dimension_numbers = #tpu.dot_dimension_numbers<[1], [0], [0], [1], [0, 0, 1, 1], [], []>} : vector<16x8xf32>, vector<8x32xf32>, vector<16x32xf32> -> vector<16x32xf32>
    %471 = vector.extract_strided_slice %437 {offsets = [0, 8], sizes = [16, 8], strides = [1, 1]} : vector<16x32xf32> to vector<16x8xf32>
    %472 = vector.extract_strided_slice %445 {offsets = [0, 8], sizes = [16, 8], strides = [1, 1]} : vector<16x32xf32> to vector<16x8xf32>
    %473 = vector.extract_strided_slice %446 {offsets = [0, 8], sizes = [16, 8], strides = [1, 1]} : vector<16x32xf32> to vector<16x8xf32>
    %cst_196 = arith.constant dense<0.000000e+00> : vector<16x16xf32>
    %474 = tpu.matmul %471, %472, %cst_196 {dimension_numbers = #tpu.dot_dimension_numbers<[1], [1], [0], [0], [0, 0, 1, 0], [], []>} : vector<16x8xf32>, vector<16x8xf32>, vector<16x16xf32> -> vector<16x16xf32>
    %cst_197 = arith.constant 0.353553385 : f32
    %475 = vector.broadcast %cst_197 : f32 to vector<16x16xf32>
    %476 = arith.mulf %474, %475 : vector<16x16xf32>
    %477 = arith.addf %476, %3 : vector<16x16xf32>
    %cst_198 = arith.constant dense<0xFF800000> : vector<16xf32>
    %478 = vector.multi_reduction <maximumf>, %477, %cst_198 [1] : vector<16x16xf32> to vector<16xf32>
    %479 = vector.shape_cast %478 : vector<16xf32> to vector<16x1xf32>
    %480 = vector.broadcast %479 : vector<16x1xf32> to vector<16x16xf32>
    %481 = arith.subf %477, %480 : vector<16x16xf32>
    %482 = math.exp %481 : vector<16x16xf32>
    %cst_199 = arith.constant dense<0.000000e+00> : vector<16xf32>
    %483 = vector.multi_reduction <add>, %482, %cst_199 [1] : vector<16x16xf32> to vector<16xf32>
    %484 = vector.shape_cast %483 : vector<16xf32> to vector<16x1xf32>
    %cst_200 = arith.constant dense<0.000000e+00> : vector<16x8xf32>
    %485 = tpu.matmul %482, %473, %cst_200 {dimension_numbers = #tpu.dot_dimension_numbers<[1], [0], [0], [1], [0, 0, 1, 1], [], []>} : vector<16x16xf32>, vector<16x8xf32>, vector<16x8xf32> -> vector<16x8xf32>
    %486 = tpu.reciprocal %484 {approx = true} : vector<16x1xf32> -> vector<16x1xf32>
    %487 = vector.broadcast %486 : vector<16x1xf32> to vector<16x8xf32>
    %488 = arith.mulf %485, %487 : vector<16x8xf32>
    %489 = vector.extract_strided_slice %448 {offsets = [8, 0], sizes = [8, 32], strides = [1, 1]} : vector<32x32xf32> to vector<8x32xf32>
    %cst_201 = arith.constant dense<0.000000e+00> : vector<16x32xf32>
    %490 = tpu.matmul %488, %489, %cst_201 {dimension_numbers = #tpu.dot_dimension_numbers<[1], [0], [0], [1], [0, 0, 1, 1], [], []>} : vector<16x8xf32>, vector<8x32xf32>, vector<16x32xf32> -> vector<16x32xf32>
    %491 = arith.addf %470, %490 : vector<16x32xf32>
    %492 = vector.extract_strided_slice %437 {offsets = [0, 16], sizes = [16, 8], strides = [1, 1]} : vector<16x32xf32> to vector<16x8xf32>
    %493 = vector.extract_strided_slice %445 {offsets = [0, 16], sizes = [16, 8], strides = [1, 1]} : vector<16x32xf32> to vector<16x8xf32>
    %494 = vector.extract_strided_slice %446 {offsets = [0, 16], sizes = [16, 8], strides = [1, 1]} : vector<16x32xf32> to vector<16x8xf32>
    %cst_202 = arith.constant dense<0.000000e+00> : vector<16x16xf32>
    %495 = tpu.matmul %492, %493, %cst_202 {dimension_numbers = #tpu.dot_dimension_numbers<[1], [1], [0], [0], [0, 0, 1, 0], [], []>} : vector<16x8xf32>, vector<16x8xf32>, vector<16x16xf32> -> vector<16x16xf32>
    %cst_203 = arith.constant 0.353553385 : f32
    %496 = vector.broadcast %cst_203 : f32 to vector<16x16xf32>
    %497 = arith.mulf %495, %496 : vector<16x16xf32>
    %498 = arith.addf %497, %3 : vector<16x16xf32>
    %cst_204 = arith.constant dense<0xFF800000> : vector<16xf32>
    %499 = vector.multi_reduction <maximumf>, %498, %cst_204 [1] : vector<16x16xf32> to vector<16xf32>
    %500 = vector.shape_cast %499 : vector<16xf32> to vector<16x1xf32>
    %501 = vector.broadcast %500 : vector<16x1xf32> to vector<16x16xf32>
    %502 = arith.subf %498, %501 : vector<16x16xf32>
    %503 = math.exp %502 : vector<16x16xf32>
    %cst_205 = arith.constant dense<0.000000e+00> : vector<16xf32>
    %504 = vector.multi_reduction <add>, %503, %cst_205 [1] : vector<16x16xf32> to vector<16xf32>
    %505 = vector.shape_cast %504 : vector<16xf32> to vector<16x1xf32>
    %cst_206 = arith.constant dense<0.000000e+00> : vector<16x8xf32>
    %506 = tpu.matmul %503, %494, %cst_206 {dimension_numbers = #tpu.dot_dimension_numbers<[1], [0], [0], [1], [0, 0, 1, 1], [], []>} : vector<16x16xf32>, vector<16x8xf32>, vector<16x8xf32> -> vector<16x8xf32>
    %507 = tpu.reciprocal %505 {approx = true} : vector<16x1xf32> -> vector<16x1xf32>
    %508 = vector.broadcast %507 : vector<16x1xf32> to vector<16x8xf32>
    %509 = arith.mulf %506, %508 : vector<16x8xf32>
    %510 = vector.extract_strided_slice %448 {offsets = [16, 0], sizes = [8, 32], strides = [1, 1]} : vector<32x32xf32> to vector<8x32xf32>
    %cst_207 = arith.constant dense<0.000000e+00> : vector<16x32xf32>
    %511 = tpu.matmul %509, %510, %cst_207 {dimension_numbers = #tpu.dot_dimension_numbers<[1], [0], [0], [1], [0, 0, 1, 1], [], []>} : vector<16x8xf32>, vector<8x32xf32>, vector<16x32xf32> -> vector<16x32xf32>
    %512 = arith.addf %491, %511 : vector<16x32xf32>
    %513 = vector.extract_strided_slice %437 {offsets = [0, 24], sizes = [16, 8], strides = [1, 1]} : vector<16x32xf32> to vector<16x8xf32>
    %514 = vector.extract_strided_slice %445 {offsets = [0, 24], sizes = [16, 8], strides = [1, 1]} : vector<16x32xf32> to vector<16x8xf32>
    %515 = vector.extract_strided_slice %446 {offsets = [0, 24], sizes = [16, 8], strides = [1, 1]} : vector<16x32xf32> to vector<16x8xf32>
    %cst_208 = arith.constant dense<0.000000e+00> : vector<16x16xf32>
    %516 = tpu.matmul %513, %514, %cst_208 {dimension_numbers = #tpu.dot_dimension_numbers<[1], [1], [0], [0], [0, 0, 1, 0], [], []>} : vector<16x8xf32>, vector<16x8xf32>, vector<16x16xf32> -> vector<16x16xf32>
    %cst_209 = arith.constant 0.353553385 : f32
    %517 = vector.broadcast %cst_209 : f32 to vector<16x16xf32>
    %518 = arith.mulf %516, %517 : vector<16x16xf32>
    %519 = arith.addf %518, %3 : vector<16x16xf32>
    %cst_210 = arith.constant dense<0xFF800000> : vector<16xf32>
    %520 = vector.multi_reduction <maximumf>, %519, %cst_210 [1] : vector<16x16xf32> to vector<16xf32>
    %521 = vector.shape_cast %520 : vector<16xf32> to vector<16x1xf32>
    %522 = vector.broadcast %521 : vector<16x1xf32> to vector<16x16xf32>
    %523 = arith.subf %519, %522 : vector<16x16xf32>
    %524 = math.exp %523 : vector<16x16xf32>
    %cst_211 = arith.constant dense<0.000000e+00> : vector<16xf32>
    %525 = vector.multi_reduction <add>, %524, %cst_211 [1] : vector<16x16xf32> to vector<16xf32>
    %526 = vector.shape_cast %525 : vector<16xf32> to vector<16x1xf32>
    %cst_212 = arith.constant dense<0.000000e+00> : vector<16x8xf32>
    %527 = tpu.matmul %524, %515, %cst_212 {dimension_numbers = #tpu.dot_dimension_numbers<[1], [0], [0], [1], [0, 0, 1, 1], [], []>} : vector<16x16xf32>, vector<16x8xf32>, vector<16x8xf32> -> vector<16x8xf32>
    %528 = tpu.reciprocal %526 {approx = true} : vector<16x1xf32> -> vector<16x1xf32>
    %529 = vector.broadcast %528 : vector<16x1xf32> to vector<16x8xf32>
    %530 = arith.mulf %527, %529 : vector<16x8xf32>
    %531 = vector.extract_strided_slice %448 {offsets = [24, 0], sizes = [8, 32], strides = [1, 1]} : vector<32x32xf32> to vector<8x32xf32>
    %cst_213 = arith.constant dense<0.000000e+00> : vector<16x32xf32>
    %532 = tpu.matmul %530, %531, %cst_213 {dimension_numbers = #tpu.dot_dimension_numbers<[1], [0], [0], [1], [0, 0, 1, 1], [], []>} : vector<16x8xf32>, vector<8x32xf32>, vector<16x32xf32> -> vector<16x32xf32>
    %533 = arith.addf %512, %532 : vector<16x32xf32>
    %534 = vector.broadcast %450 : vector<1x32xf32> to vector<16x32xf32>
    %535 = arith.addf %533, %534 : vector<16x32xf32>
    %536 = arith.addf %430, %535 : vector<16x32xf32>
    %c1_214 = arith.constant 1 : index
    %c0_215 = arith.constant 0 : index
    %c0_216 = arith.constant 0 : index
    %537 = vector.load %arg17[%c1_214, %c0_215, %c0_216] : memref<2x1x64xf32, #tpu.memory_space<vmem>>, vector<1x1x64xf32>
    %538 = vector.shape_cast %537 : vector<1x1x64xf32> to vector<1x64xf32>
    %539 = vector.extract_strided_slice %538 {offsets = [0, 0], sizes = [1, 32], strides = [1, 1]} : vector<1x64xf32> to vector<1x32xf32>
    %540 = vector.extract_strided_slice %538 {offsets = [0, 32], sizes = [1, 32], strides = [1, 1]} : vector<1x64xf32> to vector<1x32xf32>
    %cst_217 = arith.constant dense<0.000000e+00> : vector<16xf32>
    %541 = vector.multi_reduction <add>, %536, %cst_217 [1] : vector<16x32xf32> to vector<16xf32>
    %542 = vector.shape_cast %541 : vector<16xf32> to vector<16x1xf32>
    %cst_218 = arith.constant 3.200000e+01 : f32
    %543 = vector.broadcast %cst_218 : f32 to vector<16x1xf32>
    %544 = arith.divf %542, %543 : vector<16x1xf32>
    %545 = vector.broadcast %544 : vector<16x1xf32> to vector<16x32xf32>
    %546 = arith.subf %536, %545 : vector<16x32xf32>
    %547 = arith.mulf %546, %546 : vector<16x32xf32>
    %cst_219 = arith.constant dense<0.000000e+00> : vector<16xf32>
    %548 = vector.multi_reduction <add>, %547, %cst_219 [1] : vector<16x32xf32> to vector<16xf32>
    %549 = vector.shape_cast %548 : vector<16xf32> to vector<16x1xf32>
    %cst_220 = arith.constant 3.200000e+01 : f32
    %550 = vector.broadcast %cst_220 : f32 to vector<16x1xf32>
    %551 = arith.divf %549, %550 : vector<16x1xf32>
    %552 = vector.broadcast %544 : vector<16x1xf32> to vector<16x32xf32>
    %553 = arith.subf %536, %552 : vector<16x32xf32>
    %cst_221 = arith.constant 9.99999974E-6 : f32
    %554 = vector.broadcast %cst_221 : f32 to vector<16x1xf32>
    %555 = arith.addf %551, %554 : vector<16x1xf32>
    %556 = math.rsqrt %555 : vector<16x1xf32>
    %557 = vector.broadcast %556 : vector<16x1xf32> to vector<16x32xf32>
    %558 = arith.mulf %553, %557 : vector<16x32xf32>
    %559 = vector.broadcast %539 : vector<1x32xf32> to vector<16x32xf32>
    %560 = arith.mulf %558, %559 : vector<16x32xf32>
    %561 = vector.broadcast %540 : vector<1x32xf32> to vector<16x32xf32>
    %562 = arith.addf %560, %561 : vector<16x32xf32>
    %c1_222 = arith.constant 1 : index
    %c0_223 = arith.constant 0 : index
    %c0_224 = arith.constant 0 : index
    %563 = vector.load %arg18[%c1_222, %c0_223, %c0_224] : memref<2x32x64xf32, #tpu.memory_space<vmem>>, vector<1x32x64xf32>
    %564 = vector.shape_cast %563 : vector<1x32x64xf32> to vector<32x64xf32>
    %c1_225 = arith.constant 1 : index
    %c0_226 = arith.constant 0 : index
    %c0_227 = arith.constant 0 : index
    %565 = vector.load %arg19[%c1_225, %c0_226, %c0_227] : memref<2x1x64xf32, #tpu.memory_space<vmem>>, vector<1x1x64xf32>
    %566 = vector.shape_cast %565 : vector<1x1x64xf32> to vector<1x64xf32>
    %c1_228 = arith.constant 1 : index
    %c0_229 = arith.constant 0 : index
    %c0_230 = arith.constant 0 : index
    %567 = vector.load %arg20[%c1_228, %c0_229, %c0_230] : memref<2x64x32xf32, #tpu.memory_space<vmem>>, vector<1x64x32xf32>
    %568 = vector.shape_cast %567 : vector<1x64x32xf32> to vector<64x32xf32>
    %c1_231 = arith.constant 1 : index
    %c0_232 = arith.constant 0 : index
    %c0_233 = arith.constant 0 : index
    %569 = vector.load %arg21[%c1_231, %c0_232, %c0_233] : memref<2x1x32xf32, #tpu.memory_space<vmem>>, vector<1x1x32xf32>
    %570 = vector.shape_cast %569 : vector<1x1x32xf32> to vector<1x32xf32>
    %cst_234 = arith.constant dense<0.000000e+00> : vector<16x64xf32>
    %571 = tpu.matmul %562, %564, %cst_234 {dimension_numbers = #tpu.dot_dimension_numbers<[1], [0], [0], [1], [0, 0, 1, 1], [], []>} : vector<16x32xf32>, vector<32x64xf32>, vector<16x64xf32> -> vector<16x64xf32>
    %572 = vector.broadcast %566 : vector<1x64xf32> to vector<16x64xf32>
    %573 = arith.addf %571, %572 : vector<16x64xf32>
    %cst_235 = arith.constant 0.000000e+00 : f32
    %574 = vector.broadcast %cst_235 : f32 to vector<16x64xf32>
    %575 = arith.maximumf %573, %574 : vector<16x64xf32>
    %cst_236 = arith.constant dense<0.000000e+00> : vector<16x32xf32>
    %576 = tpu.matmul %575, %568, %cst_236 {dimension_numbers = #tpu.dot_dimension_numbers<[1], [0], [0], [1], [0, 0, 1, 1], [], []>} : vector<16x64xf32>, vector<64x32xf32>, vector<16x32xf32> -> vector<16x32xf32>
    %577 = vector.broadcast %570 : vector<1x32xf32> to vector<16x32xf32>
    %578 = arith.addf %576, %577 : vector<16x32xf32>
    %579 = arith.addf %562, %578 : vector<16x32xf32>
    %c1_237 = arith.constant 1 : index
    %c0_238 = arith.constant 0 : index
    %c0_239 = arith.constant 0 : index
    %580 = vector.load %arg22[%c1_237, %c0_238, %c0_239] : memref<2x1x64xf32, #tpu.memory_space<vmem>>, vector<1x1x64xf32>
    %581 = vector.shape_cast %580 : vector<1x1x64xf32> to vector<1x64xf32>
    %582 = vector.extract_strided_slice %581 {offsets = [0, 0], sizes = [1, 32], strides = [1, 1]} : vector<1x64xf32> to vector<1x32xf32>
    %583 = vector.extract_strided_slice %581 {offsets = [0, 32], sizes = [1, 32], strides = [1, 1]} : vector<1x64xf32> to vector<1x32xf32>
    %cst_240 = arith.constant dense<0.000000e+00> : vector<16xf32>
    %584 = vector.multi_reduction <add>, %579, %cst_240 [1] : vector<16x32xf32> to vector<16xf32>
    %585 = vector.shape_cast %584 : vector<16xf32> to vector<16x1xf32>
    %cst_241 = arith.constant 3.200000e+01 : f32
    %586 = vector.broadcast %cst_241 : f32 to vector<16x1xf32>
    %587 = arith.divf %585, %586 : vector<16x1xf32>
    %588 = vector.broadcast %587 : vector<16x1xf32> to vector<16x32xf32>
    %589 = arith.subf %579, %588 : vector<16x32xf32>
    %590 = arith.mulf %589, %589 : vector<16x32xf32>
    %cst_242 = arith.constant dense<0.000000e+00> : vector<16xf32>
    %591 = vector.multi_reduction <add>, %590, %cst_242 [1] : vector<16x32xf32> to vector<16xf32>
    %592 = vector.shape_cast %591 : vector<16xf32> to vector<16x1xf32>
    %cst_243 = arith.constant 3.200000e+01 : f32
    %593 = vector.broadcast %cst_243 : f32 to vector<16x1xf32>
    %594 = arith.divf %592, %593 : vector<16x1xf32>
    %595 = vector.broadcast %587 : vector<16x1xf32> to vector<16x32xf32>
    %596 = arith.subf %579, %595 : vector<16x32xf32>
    %cst_244 = arith.constant 9.99999974E-6 : f32
    %597 = vector.broadcast %cst_244 : f32 to vector<16x1xf32>
    %598 = arith.addf %594, %597 : vector<16x1xf32>
    %599 = math.rsqrt %598 : vector<16x1xf32>
    %600 = vector.broadcast %599 : vector<16x1xf32> to vector<16x32xf32>
    %601 = arith.mulf %596, %600 : vector<16x32xf32>
    %602 = vector.broadcast %582 : vector<1x32xf32> to vector<16x32xf32>
    %603 = arith.mulf %601, %602 : vector<16x32xf32>
    %604 = vector.broadcast %583 : vector<1x32xf32> to vector<16x32xf32>
    %605 = arith.addf %603, %604 : vector<16x32xf32>
    %c0_245 = arith.constant 0 : index
    %c0_246 = arith.constant 0 : index
    %606 = vector.load %arg23[%c0_245, %c0_246] : memref<1x64xf32, #tpu.memory_space<vmem>>, vector<1x64xf32>
    %607 = vector.extract_strided_slice %606 {offsets = [0, 0], sizes = [1, 32], strides = [1, 1]} : vector<1x64xf32> to vector<1x32xf32>
    %608 = vector.extract_strided_slice %606 {offsets = [0, 32], sizes = [1, 32], strides = [1, 1]} : vector<1x64xf32> to vector<1x32xf32>
    %cst_247 = arith.constant dense<0.000000e+00> : vector<16xf32>
    %609 = vector.multi_reduction <add>, %605, %cst_247 [1] : vector<16x32xf32> to vector<16xf32>
    %610 = vector.shape_cast %609 : vector<16xf32> to vector<16x1xf32>
    %cst_248 = arith.constant 3.200000e+01 : f32
    %611 = vector.broadcast %cst_248 : f32 to vector<16x1xf32>
    %612 = arith.divf %610, %611 : vector<16x1xf32>
    %613 = vector.broadcast %612 : vector<16x1xf32> to vector<16x32xf32>
    %614 = arith.subf %605, %613 : vector<16x32xf32>
    %615 = arith.mulf %614, %614 : vector<16x32xf32>
    %cst_249 = arith.constant dense<0.000000e+00> : vector<16xf32>
    %616 = vector.multi_reduction <add>, %615, %cst_249 [1] : vector<16x32xf32> to vector<16xf32>
    %617 = vector.shape_cast %616 : vector<16xf32> to vector<16x1xf32>
    %cst_250 = arith.constant 3.200000e+01 : f32
    %618 = vector.broadcast %cst_250 : f32 to vector<16x1xf32>
    %619 = arith.divf %617, %618 : vector<16x1xf32>
    %620 = vector.broadcast %612 : vector<16x1xf32> to vector<16x32xf32>
    %621 = arith.subf %605, %620 : vector<16x32xf32>
    %cst_251 = arith.constant 9.99999974E-6 : f32
    %622 = vector.broadcast %cst_251 : f32 to vector<16x1xf32>
    %623 = arith.addf %619, %622 : vector<16x1xf32>
    %624 = math.rsqrt %623 : vector<16x1xf32>
    %625 = vector.broadcast %624 : vector<16x1xf32> to vector<16x32xf32>
    %626 = arith.mulf %621, %625 : vector<16x32xf32>
    %627 = vector.broadcast %607 : vector<1x32xf32> to vector<16x32xf32>
    %628 = arith.mulf %626, %627 : vector<16x32xf32>
    %629 = vector.broadcast %608 : vector<1x32xf32> to vector<16x32xf32>
    %630 = arith.addf %628, %629 : vector<16x32xf32>
    %cst_252 = arith.constant 0.000000e+00 : f32
    %631 = vector.broadcast %cst_252 : f32 to vector<16x32xf32>
    %632 = arith.maximumf %630, %631 : vector<16x32xf32>
    %c0_253 = arith.constant 0 : index
    %c0_254 = arith.constant 0 : index
    %633 = vector.load %arg24[%c0_253, %c0_254] : memref<1x64xf32, #tpu.memory_space<vmem>>, vector<1x64xf32>
    %634 = vector.extract_strided_slice %633 {offsets = [0, 0], sizes = [1, 32], strides = [1, 1]} : vector<1x64xf32> to vector<1x32xf32>
    %635 = vector.extract_strided_slice %633 {offsets = [0, 32], sizes = [1, 32], strides = [1, 1]} : vector<1x64xf32> to vector<1x32xf32>
    %cst_255 = arith.constant dense<0.000000e+00> : vector<16xf32>
    %636 = vector.multi_reduction <add>, %632, %cst_255 [1] : vector<16x32xf32> to vector<16xf32>
    %637 = vector.shape_cast %636 : vector<16xf32> to vector<16x1xf32>
    %cst_256 = arith.constant 3.200000e+01 : f32
    %638 = vector.broadcast %cst_256 : f32 to vector<16x1xf32>
    %639 = arith.divf %637, %638 : vector<16x1xf32>
    %640 = vector.broadcast %639 : vector<16x1xf32> to vector<16x32xf32>
    %641 = arith.subf %632, %640 : vector<16x32xf32>
    %642 = arith.mulf %641, %641 : vector<16x32xf32>
    %cst_257 = arith.constant dense<0.000000e+00> : vector<16xf32>
    %643 = vector.multi_reduction <add>, %642, %cst_257 [1] : vector<16x32xf32> to vector<16xf32>
    %644 = vector.shape_cast %643 : vector<16xf32> to vector<16x1xf32>
    %cst_258 = arith.constant 3.200000e+01 : f32
    %645 = vector.broadcast %cst_258 : f32 to vector<16x1xf32>
    %646 = arith.divf %644, %645 : vector<16x1xf32>
    %647 = vector.broadcast %639 : vector<16x1xf32> to vector<16x32xf32>
    %648 = arith.subf %632, %647 : vector<16x32xf32>
    %cst_259 = arith.constant 9.99999974E-6 : f32
    %649 = vector.broadcast %cst_259 : f32 to vector<16x1xf32>
    %650 = arith.addf %646, %649 : vector<16x1xf32>
    %651 = math.rsqrt %650 : vector<16x1xf32>
    %652 = vector.broadcast %651 : vector<16x1xf32> to vector<16x32xf32>
    %653 = arith.mulf %648, %652 : vector<16x32xf32>
    %654 = vector.broadcast %634 : vector<1x32xf32> to vector<16x32xf32>
    %655 = arith.mulf %653, %654 : vector<16x32xf32>
    %656 = vector.broadcast %635 : vector<1x32xf32> to vector<16x32xf32>
    %657 = arith.addf %655, %656 : vector<16x32xf32>
    %c0_260 = arith.constant 0 : index
    %c0_261 = arith.constant 0 : index
    %658 = vector.load %arg25[%c0_260, %c0_261] : memref<32x16xf32, #tpu.memory_space<vmem>>, vector<32x16xf32>
    %cst_262 = arith.constant dense<0.000000e+00> : vector<16x16xf32>
    %659 = tpu.matmul %657, %658, %cst_262 {dimension_numbers = #tpu.dot_dimension_numbers<[1], [0], [0], [1], [0, 0, 1, 1], [], []>} : vector<16x32xf32>, vector<32x16xf32>, vector<16x16xf32> -> vector<16x16xf32>
    %c0_263 = arith.constant 0 : index
    %c0_264 = arith.constant 0 : index
    %660 = vector.load %arg26[%c0_263, %c0_264] : memref<1x16xf32, #tpu.memory_space<vmem>>, vector<1x16xf32>
    %661 = vector.broadcast %660 : vector<1x16xf32> to vector<16x16xf32>
    %662 = arith.addf %659, %661 : vector<16x16xf32>
    %c0_265 = arith.constant 0 : index
    %c0_266 = arith.constant 0 : index
    %663 = vector.load %arg27[%c0_265, %c0_266] : memref<16x32xf32, #tpu.memory_space<vmem>>, vector<16x32xf32>
    %cst_267 = arith.constant dense<0.000000e+00> : vector<16x32xf32>
    %664 = tpu.matmul %662, %663, %cst_267 {dimension_numbers = #tpu.dot_dimension_numbers<[1], [0], [0], [1], [0, 0, 1, 1], [], []>} : vector<16x16xf32>, vector<16x32xf32>, vector<16x32xf32> -> vector<16x32xf32>
    %c0_268 = arith.constant 0 : index
    %c0_269 = arith.constant 0 : index
    %665 = vector.load %arg28[%c0_268, %c0_269] : memref<1x32xf32, #tpu.memory_space<vmem>>, vector<1x32xf32>
    %666 = vector.broadcast %665 : vector<1x32xf32> to vector<16x32xf32>
    %667 = arith.addf %664, %666 : vector<16x32xf32>
    %cst_270 = arith.constant 0.000000e+00 : f32
    %668 = vector.broadcast %cst_270 : f32 to vector<16x32xf32>
    %669 = arith.maximumf %667, %668 : vector<16x32xf32>
    %c0_271 = arith.constant 0 : index
    %c0_272 = arith.constant 0 : index
    %670 = vector.load %arg29[%c0_271, %c0_272] : memref<32x12xf32, #tpu.memory_space<vmem>>, vector<32x12xf32>
    %cst_273 = arith.constant dense<0.000000e+00> : vector<16x12xf32>
    %671 = tpu.matmul %669, %670, %cst_273 {dimension_numbers = #tpu.dot_dimension_numbers<[1], [0], [0], [1], [0, 0, 1, 1], [], []>} : vector<16x32xf32>, vector<32x12xf32>, vector<16x12xf32> -> vector<16x12xf32>
    %c0_274 = arith.constant 0 : index
    %c0_275 = arith.constant 0 : index
    %672 = vector.load %arg30[%c0_274, %c0_275] : memref<1x12xf32, #tpu.memory_space<vmem>>, vector<1x12xf32>
    %673 = vector.broadcast %672 : vector<1x12xf32> to vector<16x12xf32>
    %674 = arith.addf %671, %673 : vector<16x12xf32>
    %c0_276 = arith.constant 0 : index
    %c0_277 = arith.constant 0 : index
    %675 = vector.load %arg4[%c0_276, %c0_277] : memref<16x12xf32, #tpu.memory_space<vmem>>, vector<16x12xf32>
    %676 = arith.subf %674, %675 : vector<16x12xf32>
    %677 = arith.mulf %676, %676 : vector<16x12xf32>
    %cst_278 = arith.constant dense<0.000000e+00> : vector<16xf32>
    %678 = vector.multi_reduction <add>, %677, %cst_278 [1] : vector<16x12xf32> to vector<16xf32>
    %679 = vector.shape_cast %678 : vector<16xf32> to vector<16x1xf32>
    %c0_279 = arith.constant 0 : index
    %c0_280 = arith.constant 0 : index
    %680 = vector.load %arg5[%c0_279, %c0_280] : memref<16x1xf32, #tpu.memory_space<vmem>>, vector<16x1xf32>
    %cst_281 = arith.constant 1.000000e+00 : f32
    %681 = vector.broadcast %cst_281 : f32 to vector<16x1xf32>
    %682 = arith.subf %681, %680 : vector<16x1xf32>
    %683 = arith.mulf %679, %682 : vector<16x1xf32>
    %cst_282 = arith.constant dense<0.000000e+00> : vector<1xf32>
    %684 = vector.multi_reduction <add>, %683, %cst_282 [0] : vector<16x1xf32> to vector<1xf32>
    %685 = vector.shape_cast %684 : vector<1xf32> to vector<1x1xf32>
    %cst_283 = arith.constant 6.250000e-02 : f32
    %686 = vector.broadcast %cst_283 : f32 to vector<1x1xf32>
    %687 = arith.mulf %685, %686 : vector<1x1xf32>
    %c0_284 = arith.constant 0 : index
    %c0_285 = arith.constant 0 : index
    %688 = vector.load %arg31[%c0_284, %c0_285] : memref<1x1xf32, #tpu.memory_space<vmem>>, vector<1x1xf32>
    tpu.vector_store %arg31[%c0_284, %c0_285], %687 {strides = array<i32>} : memref<1x1xf32, #tpu.memory_space<vmem>>, vector<1x1xf32>,
    return
  }
}

</mosaic_0001>

<bundles_post_ra>
// kernel: eq.22
= control target key start
LH: loop header
LB: loop body
LE: loop exit
PB: predicated region body
PF: predicated region fallthrough
CT: control target
= control target key end

     0   :  { %vm7_vm0 = vcmask 64512   ;;  %vm13_vm1 = vcmask 130112   ;;  %s39_s0 = inlined_call_operand.vmem [shape: s32[2,8], index: 0, kind: input, shape index: {}]   ;;  %s40_s1 = inlined_call_operand.vmem [shape: s32[16], index: 1, kind: output, shape index: {}]  }
   0x1   :  { %v4_v0 = vld [vmem:[%s39_s0] sm:$0x3]  ;;  %s22_s0 = smov 8  }
   0x2   :  { %5 = vst [vmem:[#allocation1] sm:$0x3] %v4_v0 }
   0x9   :  { %v10_v1 = vld [vmem:[#allocation1 + $0x1] sm:$0x1]   ;;  %v6_v2 = vld [vmem:[#allocation1] sm:$0x1]  }
   0xa   :  { %11 = vrot.lane.b32.xlu0 %v10_v1, %s22_s0  ;;  %8 = vst.msk [vmem:[#allocation0] sm:$0x1] %vm7_vm0, %v6_v2  }
  0x7c   :  { %v12_v3 = vpop.permute.xlu0 %11  }
  0x7d   :  { %14 = vst.msk [vmem:[#allocation0] sm:$0x1] %vm13_vm1, %v12_v3  }
  0x84   :  { %v18_v4 = vld [vmem:[#allocation0] sm:$0x1] }
  0x85   :  { %20 = vst [vmem:[%s40_s1] sm:$0x1] %v18_v4 }

// kernel: forward.2
= control target key start
LH: loop header
LB: loop body
LE: loop exit
PB: predicated region body
PF: predicated region fallthrough
CT: control target
= control target key end

     0   :  { %vm59_vm0 = vcmask 261120   ;;  %vm152_vm1 = vcmask 64512   ;;  %s3965_s22 = smov 120   ;;  %s3967_s23 = smov 88   ;;  %vm240_vm3 = vcmask 130048   ;;  %vm1450_vm4 = vcmask 523264   ;;  %s4492_s2 = inlined_call_operand.vmem [shape: f32[2,32,96], index: 2, kind: input, shape index: {}]   ;;  %s4493_s0 = inlined_call_operand.vmem [shape: f32[16,32], index: 0, kind: input, shape index: {}]   ;;  %s4494_s3 = inlined_call_operand.vmem [shape: f32[2,1,96], index: 3, kind: input, shape index: {}]   ;;  %s4495_s1 = inlined_call_operand.vmem [shape: f32[16,16], index: 1, kind: input, shape index: {}]   ;;  %s4496_s4 = inlined_call_operand.vmem [shape: f32[2,32,32], index: 4, kind: input, shape index: {}]   ;;  %s4497_s5 = inlined_call_operand.vmem [shape: f32[2,1,32], index: 5, kind: input, shape index: {}]   ;;  %s4498_s6 = inlined_call_operand.vmem [shape: f32[2,1,64], index: 6, kind: input, shape index: {}]   ;;  %s4499_s7 = inlined_call_operand.vmem [shape: f32[2,32,64], index: 7, kind: input, shape index: {}]   ;;  %s4500_s9 = inlined_call_operand.vmem [shape: f32[2,64,32], index: 9, kind: input, shape index: {}]   ;;  %s4501_s8 = inlined_call_operand.vmem [shape: f32[2,1,64], index: 8, kind: input, shape index: {}]   ;;  %s4502_s10 = inlined_call_operand.vmem [shape: f32[2,1,32], index: 10, kind: input, shape index: {}]   ;;  %s4503_s11 = inlined_call_operand.vmem [shape: f32[2,1,64], index: 11, kind: input, shape index: {}]   ;;  %s4504_s12 = inlined_call_operand.vmem [shape: f32[1,64], index: 12, kind: input, shape index: {}]   ;;  %s4505_s13 = inlined_call_operand.vmem [shape: f32[16,32], index: 13, kind: output, shape index: {}]  }
   0x1   :  { %v48_v0 = vld [vmem:[%s4492_s2] sm:$0xff]  ;;  %v49_v1 = vld [vmem:[%s4492_s2 + $0x8] sm:$0xff]  ;;  %v50_v2 = vld [vmem:[%s4492_s2 + $0x10] sm:$0xff]  ;;  %s3968_s24 = smov 112   ;;  %s3969_s25 = smov 80  }
   0x2   :  { %v3632_v3 = vpack.c.bf16 %v49_v1, %v48_v0  ;;  %v51_v4 = vld [vmem:[%s4492_s2 + $0x18] sm:$0xff]  ;;  %v4061_v5 = vld [vmem:[%s4493_s0] sm:$0xff]  ;;  %v4068_v7 = vld [vmem:[%s4493_s0 + $0x8] sm:$0xff]  ;;  %s3966_s0 = smov 96   ;;  %s3970_s30 = smov 56  }
   0x3   :  { %v3636_v6 = vpack.c.bf16 %v51_v4, %v50_v2  ;;  %3406 = vmatprep.mubr.msk.f32.mxu1 %vm59_vm0, %v4061_v5  ;;  %v3151_v8 = vld [vmem:[%s4494_s3] ss:$0 sm:$0xff]  ;;  %vm4101_vm2 = vmpackc.low %vm152_vm1, %vm152_vm1  ;;  %v4126_v32 = vld [vmem:[%s4495_s1 + $0x8] sm:$0xff]  ;;  %s3971_s14 = smov 72   ;;  %s3972_s15 = smov 64  }
   0x4   :  { %3633 = vmatprep.subr.bf16.mxu1 %v3632_v3  ;;  %v4131_v35 = vld [vmem:[%s4495_s1] sm:$0xff]  ;;  %s4508_s16 = smov 104   ;;  %s4507_s17 = smov 48  }
   0x5   :  { %3635 = vmatpush3.bf16.msra.mxu1 %v3632_v3  ;;  %s4506_s18 = smov 40  }
   0x6   :  { %3637 = vmatprep.subr.bf16.mxu1 %v3636_v6 }
   0x9   :  { %3639 = vmatpush3.bf16.msra.mxu1 %v3636_v6 }
   0xc   :  { %3407 = vmatmul.mubr.msk.f32.vlgmr.msra.gmra.mrb[0].mxu1 %vm59_vm0, %v4068_v7 }
  0xdf   :  { %v3408_v9 = vpop.f32.mrb[0].mxu1 }
  0xe0   :  { %v4075_v10 = vadd.f32 %v3408_v9, %v3151_v8  ;;  %v132_v11 = vpop.f32.mrb[1].mxu1 }
  0xe1   :  { %v4077_v12 = vadd.f32 %v3151_v8, %v132_v11 }
  0xe3   :  { %350 = vrot.lane.b32.xlu1 %v4077_v12, %s3965_s22  ;;  %3413 = vmatprep.mubr.msk.f32.mxu1 %vm152_vm1, %v4077_v12  ;;  %v4085_v13 = vpack.i.bf16 %v4075_v10, %v4077_v12 }
  0xe5   :  { %3800 = vrot.lane.b32.xlu0 %v4085_v13, %s3966_s0 }
  0xe7   :  { %352 = vrot.lane.b32.xlu1 %v4075_v10, %s3965_s22 }
  0xe9   :  { %3805 = vrot.lane.b32.xlu0 %v4085_v13, %s3967_s23 }
  0xeb   :  { %716 = vrot.lane.b32.xlu1 %v4077_v12, %s3968_s24 }
  0xed   :  { %3810 = vrot.lane.b32.xlu0 %v4085_v13, %s3969_s25 }
  0xf1   :  { %718 = vrot.lane.b32.xlu0 %v4075_v10, %s3968_s24 }
 0x155   :  { %v351_v24 = vpop.permute.xlu1 %350 }
 0x157   :  { %v3801_v14 = vpop.permute.xlu0 %3800 }
 0x158   :  { %v3803_v15 = vunpack.i.h.bf16 %v3801_v14  ;;  %v3802_v16 = vunpack.i.l.bf16 %v3801_v14 }
 0x159   :  { %v353_v28 = vpop.permute.xlu1 %352 }
 0x15a   :  { %v3640_v18 = vpack.c.bf16 %v3803_v15, %v3802_v16 }
 0x15b   :  { %v3806_v19 = vpop.permute.xlu0 %3805 }
 0x15c   :  { %v3808_v20 = vunpack.i.h.bf16 %v3806_v19  ;;  %v3807_v21 = vunpack.i.l.bf16 %v3806_v19  ;;  %3642 = vmatprep.subr.msk.bf16.mxu1 %vm4101_vm2, %v3640_v18 }
 0x15d   :  { %3645 = vmatpush3.bf16.xpose.msk.msra.mxu1 %vm4101_vm2, %v3640_v18  ;;  %v717_v29 = vpop.permute.xlu1 %716 }
 0x15e   :  { %v3650_v22 = vpack.c.bf16 %v3808_v20, %v3807_v21 }
 0x15f   :  { %v3811_v23 = vpop.permute.xlu0 %3810 }
 0x160   :  { %v3813_v25 = vunpack.i.h.bf16 %v3811_v23  ;;  %v3812_v26 = vunpack.i.l.bf16 %v3811_v23  ;;  %3652 = vmatprep.subr.msk.bf16.mxu1 %vm4101_vm2, %v3650_v22 }
 0x162   :  { %v3660_v27 = vpack.c.bf16 %v3813_v25, %v3812_v26 }
 0x163   :  { %v719_v30 = vpop.permute.xlu0 %718 }
 0x164   :  { %3414 = vmatmul.mubr.msk.f32.vlgmr.msra.gmra.mrb[2].mxu1 %vm152_vm1, %v4075_v10 }
 0x165   :  { %3655 = vmatpush3.bf16.xpose.msk.msra.mxu1 %vm4101_vm2, %v3650_v22  ;;  %3427 = vmatprep.mubr.msk.f32.mxu1 %vm152_vm1, %v351_v24 }
 0x166   :  { %3662 = vmatprep.subr.msk.bf16.mxu1 %vm4101_vm2, %v3660_v27 }
 0x16c   :  { %3428 = vmatmul.mubr.msk.f32.vlgmr.msra.gmra.mrb[4].mxu1 %vm152_vm1, %v353_v28 }
 0x16d   :  { %3665 = vmatpush3.bf16.xpose.msk.msra.mxu1 %vm4101_vm2, %v3660_v27  ;;  %3451 = vmatprep.mubr.msk.f32.mxu1 %vm152_vm1, %v717_v29 }
 0x174   :  { %3452 = vmatmul.mubr.msk.f32.vlgmr.msra.gmra.mrb[6].mxu1 %vm152_vm1, %v719_v30 }
 0x237   :  { %v3415_v31 = vpop.f32.mrb[2].mxu1 }
 0x238   :  { %v237_v33 = vmul.f32 0.35355338, %v3415_v31  ;;  %v227_v34 = vpop.f32.mrb[3].mxu1  ;;  %v142_v31 = vld [vmem:[%s4496_s4 + $0x8] sm:$0xff] }
 0x239   :  { %v236_v36 = vmul.f32 0.35355338, %v227_v34 }
 0x23a   :  { %v239_v37 = vadd.f32 %v237_v33, %v4126_v32  ;;  %v141_v33 = vld [vmem:[%s4496_s4] sm:$0xff] }
 0x23b   :  { %v238_v38 = vadd.f32 %v236_v36, %v4131_v35 }
 0x23c   :  { %v244_v39 = vsel %vm240_vm3, %v239_v37, -inf }
 0x23d   :  { %245 = vmax.xlane.f32.xlu0 %v244_v39  ;;  %v241_v40 = vsel %vm240_vm3, %v238_v38, -inf }
 0x23e   :  { %242 = vmax.xlane.f32.xlu1 %v241_v40 }
 0x23f   :  { %v3429_v41 = vpop.f32.mrb[4].mxu1 }
 0x240   :  { %v442_v42 = vmul.f32 0.35355338, %v3429_v41  ;;  %v432_v43 = vpop.f32.mrb[5].mxu1 }
 0x241   :  { %v441_v44 = vmul.f32 0.35355338, %v432_v43 }
 0x242   :  { %v444_v45 = vadd.f32 %v442_v42, %v4126_v32 }
 0x243   :  { %v443_v46 = vadd.f32 %v441_v44, %v4131_v35 }
 0x244   :  { %v448_v47 = vsel %vm240_vm3, %v444_v45, -inf }
 0x245   :  { %449 = vmax.xlane.f32.xlu1 %v448_v47  ;;  %v445_v48 = vsel %vm240_vm3, %v443_v46, -inf }
 0x246   :  { %446 = vmax.xlane.f32.xlu0 %v445_v48 }
 0x247   :  { %v4141_v49 = vpop.f32.mrb[6].mxu1 }
 0x248   :  { %v798_v50 = vpop.f32.mrb[7].mxu1  ;;  %v808_v26 = vmul.f32 0.35355338, %v4141_v49 }
 0x249   :  { %v807_v16 = vmul.f32 0.35355338, %v798_v50 }
 0x24a   :  { %v810_v29 = vadd.f32 %v808_v26, %v4126_v32 }
 0x24b   :  { %v809_v22 = vadd.f32 %v807_v16, %v4131_v35 }
 0x24c   :  { %v814_v30 = vsel %vm240_vm3, %v810_v29, -inf }
 0x24d   :  { %v811_v25 = vsel %vm240_vm3, %v809_v22, -inf }
 0x256   :  { %3820 = vrot.lane.b32.xlu1 %v4085_v13, %s3970_s30 }
 0x25a   :  { %3825 = vrot.lane.b32.xlu1 %v4085_v13, %s3971_s14 }
 0x25c   :  { %3815 = vrot.lane.b32.xlu0 %v4085_v13, %s3972_s15 }
 0x25e   :  { %1005 = vrot.lane.b32.xlu1 %v4075_v10, %s4508_s16 }
 0x260   :  { %1003 = vrot.lane.b32.xlu0 %v4077_v12, %s4508_s16 }
 0x2ca   :  { %v246_v51 = vpop.xlane.xlu0 %245 }
 0x2cb   :  { %v243_v52 = vpop.xlane.xlu1 %242  ;;  %v248_v54 = vsub.f32 %v239_v37, %v246_v51 }
 0x2cc   :  { %v247_v53 = vsub.f32 %v238_v38, %v243_v52 }
 0x2cd   :  { %v251_v56 = vmul.f32 1.442695, %v248_v54 }
 0x2ce   :  { %v249_v55 = vmul.f32 1.442695, %v247_v53 }
 0x2d0   :  { %3879 = vpow2.f32 %v249_v55 }
 0x2d1   :  { %3881 = vpow2.f32 %v251_v56 }
 0x2d2   :  { %v450_v57 = vpop.xlane.xlu1 %449 }
 0x2d3   :  { %v452_v58 = vsub.f32 %v444_v45, %v450_v57  ;;  %v447_v59 = vpop.xlane.xlu0 %446 }
 0x2d4   :  { %v451_v60 = vsub.f32 %v443_v46, %v447_v59 }
 0x2d5   :  { %v455_v61 = vmul.f32 1.442695, %v452_v58 }
 0x2d6   :  { %v453_v62 = vmul.f32 1.442695, %v451_v60  ;;  %v3821_v63 = vpop.permute.xlu1 %3820 }
 0x2d7   :  { %3883 = vpow2.f32 %v455_v61  ;;  %v3823_v0 = vunpack.i.h.bf16 %v3821_v63  ;;  %v3816_v1 = vpop.permute.xlu0 %3815  ;;  %v3822_v2 = vunpack.i.l.bf16 %v3821_v63 }
 0x2d8   :  { %3885 = vpow2.f32 %v453_v62  ;;  %v3818_v3 = vunpack.i.h.bf16 %v3816_v1  ;;  %v3817_v4 = vunpack.i.l.bf16 %v3816_v1 }
 0x2d9   :  { %v3656_v14 = vpack.c.bf16 %v3823_v0, %v3822_v2 }
 0x2da   :  { %v3880_v6 = vpop.eup %3879  ;;  %v3826_v8 = vpop.permute.xlu1 %3825  ;;  %v3646_v9 = vpack.c.bf16 %v3818_v3, %v3817_v4  ;;  %v143_v3 = vld [vmem:[%s4496_s4 + $0x10] sm:$0xff] }
 0x2db   :  { %v3828_v10 = vunpack.i.h.bf16 %v3826_v8  ;;  %v3827_v11 = vunpack.i.l.bf16 %v3826_v8  ;;  %v1004_v12 = vpop.permute.xlu0 %1003  ;;  %3420 = vmatprep.mubr.msk.f32.mxu0 %vm240_vm3, %v3880_v6  ;;  %v3882_v18 = vpop.eup %3881  ;;  %v253_v27 = vsel %vm240_vm3, %v3880_v6, 0.0 }
 0x2dc   :  { %3647 = vmatprep.subr.bf16.mxu0 %v3646_v9  ;;  %3470 = vmatprep.mubr.msk.f32.mxu1 %vm152_vm1, %v1004_v12  ;;  %v256_v28 = vsel %vm240_vm3, %v3882_v18, 0.0 }
 0x2dd   :  { %v3670_v15 = vpack.c.bf16 %v3828_v10, %v3827_v11  ;;  %3649 = vmatpush3.bf16.msra.mxu0 %v3646_v9 }
 0x2de   :  { %3657 = vmatprep.subr.bf16.mxu0 %v3656_v14  ;;  %v1006_v24 = vpop.permute.xlu1 %1005 }
 0x2df   :  { %3672 = vmatprep.subr.msk.bf16.mxu1 %vm4101_vm2, %v3670_v15 }
 0x2e0   :  { %3421 = vmatmul.mubr.msk.f32.vlgmr.msra.gmra.mrb[0].mxu0 %vm240_vm3, %v3882_v18  ;;  %3675 = vmatpush3.bf16.xpose.msk.msra.mxu1 %vm4101_vm2, %v3670_v15 }
 0x2e1   :  { %v3884_v19 = vpop.eup %3883  ;;  %3659 = vmatpush3.bf16.msra.mxu0 %v3656_v14 }
 0x2e2   :  { %v3886_v20 = vpop.eup %3885  ;;  %v460_v21 = vsel %vm240_vm3, %v3884_v19, 0.0  ;;  %3437 = vmatprep.subr.mxu0 %v142_v31 }
 0x2e3   :  { %3434 = vmatprep.mubr.msk.f32.mxu0 %vm240_vm3, %v3886_v20  ;;  %461 = vadd.xlane.f32.xlu1 %v460_v21  ;;  %v457_v23 = vsel %vm240_vm3, %v3886_v20, 0.0 }
 0x2e4   :  { %458 = vadd.xlane.f32.xlu0 %v457_v23  ;;  %3435 = vmatmul.mubr.msk.f32.vlgmr.msra.gmra.mrb[2].mxu0 %vm240_vm3, %v3884_v19 }
 0x2e5   :  { %3438 = vmatpush3.msra.mxu0 %v142_v31 }
 0x2e6   :  { %3442 = vmatprep.subr.mxu0 %v141_v33 }
 0x2e7   :  { %812 = vmax.xlane.f32.xlu1 %v811_v25  ;;  %3471 = vmatmul.mubr.msk.f32.vlgmr.msra.gmra.mrb[8].mxu1 %vm152_vm1, %v1006_v24 }
 0x2e8   :  { %254 = vadd.xlane.f32.xlu0 %v253_v27 }
 0x2ec   :  { %257 = vadd.xlane.f32.xlu0 %v256_v28 }
 0x2f0   :  { %815 = vmax.xlane.f32.xlu0 %v814_v30 }
 0x2f8   :  { %3830 = vrot.lane.b32.xlu1 %v4085_v13, %s4507_s17 }
 0x2fc   :  { %3835 = vrot.lane.b32.xlu1 %v4085_v13, %s4506_s18 }
 0x370   :  { %v462_v38 = vpop.xlane.xlu1 %461 }
 0x371   :  { %v459_v34 = vpop.xlane.xlu0 %458 }
 0x372   :  { %3887 = vrcp.f32 %v459_v34 }
 0x373   :  { %3889 = vrcp.f32 %v462_v38 }
 0x374   :  { %v813_v40 = vpop.xlane.xlu1 %812 }
 0x375   :  { %v255_v36 = vpop.xlane.xlu0 %254  ;;  %v817_v41 = vsub.f32 %v809_v22, %v813_v40 }
 0x376   :  { %3891 = vrcp.f32 %v255_v36 }
 0x377   :  { %v819_v46 = vmul.f32 1.442695, %v817_v41 }
 0x378   :  { %v3831_v45 = vpop.permute.xlu1 %3830 }
 0x379   :  { %v258_v37 = vpop.xlane.xlu0 %257  ;;  %v3833_v49 = vunpack.i.h.bf16 %v3831_v45  ;;  %v3832_v50 = vunpack.i.l.bf16 %v3831_v45  ;;  %v3186_v45 = vld [vmem:[%s4497_s5] ss:$0 sm:$0xff] }
 0x37a   :  { %3893 = vrcp.f32 %v258_v37  ;;  %v144_v37 = vld [vmem:[%s4496_s4 + $0x18] sm:$0xff] }
 0x37b   :  { %v3666_v59 = vpack.c.bf16 %v3833_v49, %v3832_v50 }
 0x37c   :  { %v3888_v48 = vpop.eup %3887  ;;  %v3836_v1 = vpop.permute.xlu1 %3835 }
 0x37d   :  { %v816_v39 = vpop.xlane.xlu0 %815  ;;  %v3890_v52 = vpop.eup %3889  ;;  %v3838_v4 = vunpack.i.h.bf16 %v3836_v1  ;;  %v3837_v6 = vunpack.i.l.bf16 %v3836_v1 }
 0x37e   :  { %v818_v13 = vsub.f32 %v810_v29, %v816_v39 }
 0x37f   :  { %v3676_v11 = vpack.c.bf16 %v3838_v4, %v3837_v6  ;;  %v1346_v6 = vld [vmem:[%s4500_s9] sm:$0xff] }
 0x380   :  { %v821_v42 = vmul.f32 1.442695, %v818_v13  ;;  %v3892_v54 = vpop.eup %3891 }
 0x382   :  { %3895 = vpow2.f32 %v821_v42 }
 0x383   :  { %3897 = vpow2.f32 %v819_v46 }
 0x384   :  { %v3894_v62 = vpop.eup %3893 }
 0x38c   :  { %v3896_v0 = vpop.eup %3895 }
 0x38d   :  { %v826_v9 = vsel %vm240_vm3, %v3896_v0, 0.0  ;;  %v3898_v10 = vpop.eup %3897 }
 0x38e   :  { %v823_v12 = vsel %vm240_vm3, %v3898_v10, 0.0 }
 0x3b3   :  { %v3422_v43 = vpop.f32.mrb[0].mxu0 }
 0x3b4   :  { %v337_v44 = vpop.f32.mrb[1].mxu0  ;;  %v349_v2 = vmul.f32 %v3894_v62, %v3422_v43 }
 0x3b5   :  { %v348_v57 = vmul.f32 %v3892_v54, %v337_v44 }
 0x3b7   :  { %v3436_v47 = vpop.f32.mrb[2].mxu0 }
 0x3b8   :  { %v541_v51 = vpop.f32.mrb[3].mxu0  ;;  %v553_v55 = vmul.f32 %v3890_v52, %v3436_v47 }
 0x3b9   :  { %v552_v53 = vmul.f32 %v3888_v48, %v541_v51 }
 0x3ba   :  { %v3472_v56 = vpop.f32.mrb[8].mxu1 }
 0x3bb   :  { %3439 = vmatprep.mubr.msk.f32.mxu0 %vm152_vm1, %v552_v53  ;;  %v1085_v58 = vpop.f32.mrb[9].mxu1  ;;  %v1095_v8 = vmul.f32 0.35355338, %v3472_v56 }
 0x3bc   :  { %v1094_v60 = vmul.f32 0.35355338, %v1085_v58  ;;  %3440 = vmatmul.mubr.msk.f32.vlgmr.msra.gmra.mrb[4].mxu0 %vm152_vm1, %v553_v55 }
 0x3bd   :  { %3443 = vmatpush3.msra.mxu0 %v141_v33  ;;  %3444 = vmatprep.mubr.msk.f32.mxu0 %vm152_vm1, %v348_v57  ;;  %v1097_v14 = vadd.f32 %v1095_v8, %v4126_v32  ;;  %v1347_v8 = vld [vmem:[%s4500_s9 + $0x8] sm:$0xff] }
 0x3be   :  { %3667 = vmatprep.subr.bf16.mxu0 %v3666_v59  ;;  %v1096_v61 = vadd.f32 %v1094_v60, %v4131_v35 }
 0x3bf   :  { %v1101_v15 = vsel %vm240_vm3, %v1097_v14, -inf }
 0x3c0   :  { %v1098_v63 = vsel %vm240_vm3, %v1096_v61, -inf }
 0x3c1   :  { %1099 = vmax.xlane.f32.xlu0 %v1098_v63  ;;  %v1341_v63 = vld [vmem:[%s4499_s7] sm:$0xff] }
 0x3c4   :  { %3445 = vmatmul.mubr.msk.f32.vlgmr.msra.gmra.mrb[4].mxu0 %vm152_vm1, %v349_v2  ;;  %v1343_v2 = vld [vmem:[%s4499_s7 + $0x10] sm:$0xff] }
 0x3c5   :  { %3669 = vmatpush3.bf16.msra.mxu0 %v3666_v59  ;;  %827 = vadd.xlane.f32.xlu0 %v826_v9  ;;  %v1348_v9 = vld [vmem:[%s4500_s9 + $0x10] sm:$0xff] }
 0x3c6   :  { %3458 = vmatprep.mubr.msk.f32.mxu0 %vm240_vm3, %v3898_v10  ;;  %3461 = vmatprep.subr.mxu0 %v143_v3  ;;  %v3688_v10 = vpack.c.bf16 %v1347_v8, %v1346_v6 }
 0x3c8   :  { %3459 = vmatmul.mubr.msk.f32.vlgmr.msra.gmra.mrb[6].mxu0 %vm240_vm3, %v3896_v0  ;;  %v1342_v0 = vld [vmem:[%s4499_s7 + $0x8] sm:$0xff] }
 0x3c9   :  { %3462 = vmatpush3.msra.mxu0 %v143_v3  ;;  %824 = vadd.xlane.f32.xlu0 %v823_v12  ;;  %v3680_v1 = vpack.c.bf16 %v1342_v0, %v1341_v63  ;;  %v1344_v3 = vld [vmem:[%s4499_s7 + $0x18] sm:$0xff]  ;;  %v3196_v63 = vld [vmem:[%s4492_s2 + $0x28] sm:$0xff] }
 0x3ca   :  { %3677 = vmatprep.subr.bf16.mxu0 %v3676_v11  ;;  %v3684_v4 = vpack.c.bf16 %v1344_v3, %v1343_v2  ;;  %v3198_v2 = vld [vmem:[%s4492_s2 + $0x38] sm:$0xff] }
 0x3cb   :  { %3681 = vmatprep.subr.bf16.mxu1 %v3680_v1 }
 0x3cc   :  { %3683 = vmatpush3.bf16.msra.mxu1 %v3680_v1  ;;  %v3197_v1 = vld [vmem:[%s4492_s2 + $0x30] sm:$0xff] }
 0x3cd   :  { %1102 = vmax.xlane.f32.xlu0 %v1101_v15  ;;  %3685 = vmatprep.subr.bf16.mxu1 %v3684_v4  ;;  %v1351_v15 = vld [vmem:[%s4500_s9 + $0x28] sm:$0xff]  ;;  %v3708_v3 = vpack.c.bf16 %v3198_v2, %v3197_v1 }
 0x3d0   :  { %3687 = vmatpush3.bf16.msra.mxu1 %v3684_v4 }
 0x44e   :  { %v1100_v16 = vpop.xlane.xlu0 %1099 }
 0x44f   :  { %v1104_v18 = vsub.f32 %v1096_v61, %v1100_v16 }
 0x451   :  { %v1106_v19 = vmul.f32 1.442695, %v1104_v18 }
 0x452   :  { %v828_v20 = vpop.xlane.xlu0 %827 }
 0x453   :  { %3899 = vpow2.f32 %v1106_v19 }
 0x456   :  { %v825_v21 = vpop.xlane.xlu0 %824 }
 0x45a   :  { %v1103_v22 = vpop.xlane.xlu0 %1102 }
 0x45b   :  { %v1105_v23 = vsub.f32 %v1097_v14, %v1103_v22  ;;  %v1350_v14 = vld [vmem:[%s4500_s9 + $0x20] sm:$0xff] }
 0x45c   :  { %v3696_v16 = vpack.c.bf16 %v1351_v15, %v1350_v14 }
 0x45d   :  { %v3900_v24 = vpop.eup %3899  ;;  %v1108_v25 = vmul.f32 1.442695, %v1105_v23 }
 0x45e   :  { %v1110_v26 = vsel %vm240_vm3, %v3900_v24, 0.0 }
 0x45f   :  { %3901 = vpow2.f32 %v1108_v25  ;;  %1111 = vadd.xlane.f32.xlu0 %v1110_v26 }
 0x460   :  { %3903 = vrcp.f32 %v828_v20 }
 0x461   :  { %3905 = vrcp.f32 %v825_v21 }
 0x469   :  { %v3902_v27 = vpop.eup %3901 }
 0x46a   :  { %v1113_v28 = vsel %vm240_vm3, %v3902_v27, 0.0  ;;  %v3904_v29 = vpop.eup %3903 }
 0x46b   :  { %1114 = vadd.xlane.f32.xlu1 %v1113_v28  ;;  %v3906_v31 = vpop.eup %3905 }
 0x49b   :  { %v3460_v30 = vpop.f32.mrb[6].mxu0 }
 0x49c   :  { %v919_v33 = vmul.f32 %v3904_v29, %v3460_v30  ;;  %v907_v34 = vpop.f32.mrb[7].mxu0 }
 0x49d   :  { %v918_v36 = vmul.f32 %v3906_v31, %v907_v34  ;;  %v1352_v34 = vld [vmem:[%s4500_s9 + $0x30] sm:$0xff] }
 0x49f   :  { %3463 = vmatprep.mubr.msk.f32.mxu0 %vm152_vm1, %v918_v36  ;;  %v1353_v36 = vld [vmem:[%s4500_s9 + $0x38] sm:$0xff] }
 0x4a0   :  { %3464 = vmatmul.mubr.msk.f32.vlgmr.msra.gmra.mrb[4].mxu0 %vm152_vm1, %v919_v33 }
 0x4a1   :  { %3679 = vmatpush3.bf16.msra.mxu0 %v3676_v11  ;;  %3477 = vmatprep.mubr.msk.f32.mxu0 %vm240_vm3, %v3900_v24  ;;  %v1349_v11 = vld [vmem:[%s4500_s9 + $0x18] sm:$0xff] }
 0x4a2   :  { %3480 = vmatprep.subr.mxu0 %v144_v37  ;;  %v3692_v12 = vpack.c.bf16 %v1349_v11, %v1348_v9 }
 0x4a4   :  { %3478 = vmatmul.mubr.msk.f32.vlgmr.msra.gmra.mrb[8].mxu0 %vm240_vm3, %v3902_v27 }
 0x4a5   :  { %3481 = vmatpush3.msra.mxu0 %v144_v37  ;;  %v3700_v37 = vpack.c.bf16 %v1353_v36, %v1352_v34 }
 0x4a6   :  { %3689 = vmatprep.subr.bf16.mxu0 %v3688_v10 }
 0x4ec   :  { %v1112_v38 = vpop.xlane.xlu0 %1111 }
 0x4ed   :  { %3907 = vrcp.f32 %v1112_v38  ;;  %v3188_v38 = vld [vmem:[%s4501_s8] ss:$0 sm:$0xff] }
 0x4f7   :  { %v3908_v13 = vpop.eup %3907 }
 0x4f8   :  { %v1115_v39 = vpop.xlane.xlu1 %1114 }
 0x4f9   :  { %3909 = vrcp.f32 %v1115_v39 }
 0x503   :  { %v3910_v42 = vpop.eup %3909 }
 0x577   :  { %v3479_v40 = vpop.f32.mrb[8].mxu0 }
 0x578   :  { %v1194_v41 = vpop.f32.mrb[9].mxu0  ;;  %v1206_v44 = vmul.f32 %v3910_v42, %v3479_v40 }
 0x579   :  { %v1205_v43 = vmul.f32 %v3908_v13, %v1194_v41 }
 0x57b   :  { %3482 = vmatprep.mubr.msk.f32.mxu0 %vm152_vm1, %v1205_v43 }
 0x57c   :  { %3483 = vmatmul.mubr.msk.f32.vlgmr.msra.gmra.mrb[4].mxu0 %vm152_vm1, %v1206_v44  ;;  %v3191_v44 = vld [vmem:[%s4502_s10] ss:$0 sm:$0xff] }
 0x57d   :  { %3691 = vmatpush3.bf16.msra.mxu0 %v3688_v10 }
 0x57e   :  { %3693 = vmatprep.subr.bf16.mxu0 %v3692_v12 }
 0x581   :  { %3695 = vmatpush3.bf16.msra.mxu0 %v3692_v12 }
 0x582   :  { %3697 = vmatprep.subr.bf16.mxu0 %v3696_v16 }
 0x585   :  { %3699 = vmatpush3.bf16.msra.mxu0 %v3696_v16 }
 0x586   :  { %3701 = vmatprep.subr.bf16.mxu0 %v3700_v37 }
 0x589   :  { %3703 = vmatpush3.bf16.msra.mxu0 %v3700_v37 }
 0x64f   :  { %v3484_v46 = vpop.f32.mrb[4].mxu0 }
 0x650   :  { %v1279_v47 = vpop.f32.mrb[5].mxu0  ;;  %v1297_v48 = vadd.f32 %v3484_v46, %v3186_v45 }
 0x651   :  { %v1296_v49 = vadd.f32 %v3186_v45, %v1279_v47 }
 0x652   :  { %v1299_v52 = vadd.f32 %v1297_v48, %v4068_v7  ;;  %v3187_v7 = vld [vmem:[%s4498_s6] ss:$0 sm:$0xff] }
 0x653   :  { %v1298_v50 = vadd.f32 %v1296_v49, %v4061_v5 }
 0x654   :  { %v1304_v53 = vsel %vm59_vm0, %v1299_v52, 0.0 }
 0x655   :  { %v1301_v51 = vsel %vm59_vm0, %v1298_v50, 0.0 }
 0x656   :  { %1302 = vadd.xlane.f32.xlu0 %v1301_v51 }
 0x65a   :  { %1305 = vadd.xlane.f32.xlu0 %v1304_v53 }
 0x6e3   :  { %v1303_v54 = vpop.xlane.xlu0 %1302 }
 0x6e4   :  { %v1308_v55 = vmul.f32 0.03125, %v1303_v54 }
 0x6e6   :  { %v1310_v56 = vsub.f32 %v1298_v50, %v1308_v55 }
 0x6e7   :  { %v1306_v57 = vpop.xlane.xlu0 %1305 }
 0x6e8   :  { %v1309_v58 = vmul.f32 0.03125, %v1306_v57  ;;  %v1312_v59 = vmul.f32 %v1310_v56, %v1310_v56 }
 0x6ea   :  { %v1311_v60 = vsub.f32 %v1299_v52, %v1309_v58  ;;  %v1314_v61 = vsel %vm59_vm0, %v1312_v59, 0.0 }
 0x6eb   :  { %1315 = vadd.xlane.f32.xlu0 %v1314_v61 }
 0x6ec   :  { %v1313_v62 = vmul.f32 %v1311_v60, %v1311_v60 }
 0x6ee   :  { %v1317_v5 = vsel %vm59_vm0, %v1313_v62, 0.0 }
 0x6ef   :  { %1318 = vadd.xlane.f32.xlu0 %v1317_v5  ;;  %v3194_v5 = vld [vmem:[%s4503_s11] ss:$0 sm:$0xff] }
 0x705   :  { %1336 = vrot.lane.b32.xlu0 %v3187_v7, %s3966_s0 }
 0x778   :  { %v1316_v18 = vpop.xlane.xlu0 %1315 }
 0x779   :  { %v1320_v19 = vmul.f32 0.03125, %v1316_v18 }
 0x77b   :  { %v1322_v20 = vadd.f32 1e-05, %v1320_v19 }
 0x77c   :  { %v1319_v21 = vpop.xlane.xlu0 %1318 }
 0x77d   :  { %3911 = vrsqrt.f32 %v1322_v20  ;;  %v1321_v22 = vmul.f32 0.03125, %v1319_v21 }
 0x77f   :  { %v1323_v23 = vadd.f32 1e-05, %v1321_v22 }
 0x780   :  { %v1337_v26 = vpop.permute.xlu0 %1336 }
 0x781   :  { %3913 = vrsqrt.f32 %v1323_v23  ;;  %v3200_v23 = vld [vmem:[%s4494_s3 + $0x1] ss:$0 sm:$0xff]  ;;  %s4512_s3 = smov 104  }
 0x787   :  { %v3912_v24 = vpop.eup %3911 }
 0x788   :  { %v1326_v25 = vmul.f32 %v3912_v24, %v1310_v56 }
 0x78a   :  { %v1334_v27 = vmul.f32 %v3187_v7, %v1326_v25 }
 0x78b   :  { %v3914_v28 = vpop.eup %3913 }
 0x78c   :  { %v1327_v29 = vmul.f32 %v3914_v28, %v1311_v60  ;;  %v1339_v30 = vadd.f32 %v1337_v26, %v1334_v27 }
 0x78e   :  { %v1335_v31 = vmul.f32 %v3187_v7, %v1327_v29  ;;  %3493 = vmatprep.mubr.msk.f32.mxu1 %vm59_vm0, %v1339_v30  ;;  %v3195_v7 = vld [vmem:[%s4492_s2 + $0x20] sm:$0xff] }
 0x78f   :  { %v3704_v0 = vpack.c.bf16 %v3196_v63, %v3195_v7 }
 0x790   :  { %v1340_v33 = vadd.f32 %v1337_v26, %v1335_v31 }
 0x791   :  { %3705 = vmatprep.subr.bf16.mxu1 %v3704_v0 }
 0x792   :  { %3494 = vmatmul.mubr.msk.f32.vlgmr.msra.gmra.mrb[10].mxu1 %vm59_vm0, %v1340_v33 }
 0x793   :  { %3707 = vmatpush3.bf16.msra.mxu1 %v3704_v0 }
 0x794   :  { %3709 = vmatprep.subr.bf16.mxu1 %v3708_v3 }
 0x797   :  { %3711 = vmatpush3.bf16.msra.mxu1 %v3708_v3 }
 0x865   :  { %v3495_v39 = vpop.f32.mrb[10].mxu1 }
 0x866   :  { %v1439_v40 = vadd.f32 %v3495_v39, %v3188_v38  ;;  %v1433_v13 = vpop.f32.mrb[11].mxu1 }
 0x867   :  { %v1434_v41 = vadd.f32 %v3188_v38, %v1433_v13 }
 0x868   :  { %v1443_v43 = vmax.f32 %v1439_v40, 0.0 }
 0x869   :  { %v1442_v42 = vmax.f32 %v1434_v41, 0.0 }
 0x86b   :  { %3512 = vmatprep.mubr.msk.f32.mxu0 %vm1450_vm4, %v1442_v42 }
 0x86c   :  { %3513 = vmatmul.mubr.msk.f32.vlgmr.msra.gmra.mrb[10].mxu0 %vm1450_vm4, %v1443_v43 }
 0x93f   :  { %v3514_v45 = vpop.f32.mrb[10].mxu0 }
 0x940   :  { %v1529_v46 = vadd.f32 %v3514_v45, %v3191_v44  ;;  %v1523_v47 = vpop.f32.mrb[11].mxu0 }
 0x941   :  { %v1524_v48 = vadd.f32 %v3191_v44, %v1523_v47 }
 0x942   :  { %v1533_v49 = vadd.f32 %v1529_v46, %v1340_v33 }
 0x943   :  { %v1532_v50 = vadd.f32 %v1524_v48, %v1339_v30 }
 0x944   :  { %v1538_v51 = vsel %vm59_vm0, %v1533_v49, 0.0 }
 0x945   :  { %1539 = vadd.xlane.f32.xlu0 %v1538_v51  ;;  %v1535_v52 = vsel %vm59_vm0, %v1532_v50, 0.0 }
 0x946   :  { %1536 = vadd.xlane.f32.xlu1 %v1535_v52 }
 0x9d2   :  { %v1540_v53 = vpop.xlane.xlu0 %1539 }
 0x9d3   :  { %v1542_v54 = vmul.f32 0.03125, %v1540_v53  ;;  %v1537_v55 = vpop.xlane.xlu1 %1536 }
 0x9d4   :  { %v1541_v56 = vmul.f32 0.03125, %v1537_v55 }
 0x9d5   :  { %v1544_v57 = vsub.f32 %v1533_v49, %v1542_v54 }
 0x9d6   :  { %v1543_v58 = vsub.f32 %v1532_v50, %v1541_v56 }
 0x9d7   :  { %v1546_v59 = vmul.f32 %v1544_v57, %v1544_v57 }
 0x9d8   :  { %v1545_v61 = vmul.f32 %v1543_v58, %v1543_v58 }
 0x9d9   :  { %v1550_v60 = vsel %vm59_vm0, %v1546_v59, 0.0 }
 0x9da   :  { %1551 = vadd.xlane.f32.xlu1 %v1550_v60  ;;  %v1547_v62 = vsel %vm59_vm0, %v1545_v61, 0.0 }
 0x9de   :  { %1548 = vadd.xlane.f32.xlu1 %v1547_v62 }
 0x9ef   :  { %1569 = vrot.lane.b32.xlu1 %v3194_v5, %s3966_s0 }
 0xa67   :  { %v1552_v4 = vpop.xlane.xlu1 %1551 }
 0xa68   :  { %v1554_v6 = vmul.f32 0.03125, %v1552_v4 }
 0xa6a   :  { %v1556_v8 = vadd.f32 1e-05, %v1554_v6 }
 0xa6b   :  { %v1549_v9 = vpop.xlane.xlu1 %1548 }
 0xa6c   :  { %3915 = vrsqrt.f32 %v1556_v8  ;;  %v1553_v10 = vmul.f32 0.03125, %v1549_v9 }
 0xa6e   :  { %v1555_v11 = vadd.f32 1e-05, %v1553_v10 }
 0xa6f   :  { %v1570_v20 = vpop.permute.xlu1 %1569 }
 0xa70   :  { %3917 = vrsqrt.f32 %v1555_v11 }
 0xa76   :  { %v3916_v12 = vpop.eup %3915 }
 0xa77   :  { %v1560_v14 = vmul.f32 %v3916_v12, %v1544_v57 }
 0xa79   :  { %v1568_v18 = vmul.f32 %v3194_v5, %v1560_v14 }
 0xa7a   :  { %v3918_v15 = vpop.eup %3917 }
 0xa7b   :  { %v1559_v16 = vmul.f32 %v3918_v15, %v1543_v58  ;;  %v4289_v22 = vadd.f32 %v1570_v20, %v1568_v18 }
 0xa7d   :  { %v1567_v19 = vmul.f32 %v3194_v5, %v1559_v16 }
 0xa7f   :  { %v4287_v21 = vadd.f32 %v1570_v20, %v1567_v19 }
 0xa81   :  { %3523 = vmatprep.mubr.msk.f32.mxu1 %vm59_vm0, %v4287_v21 }
 0xa82   :  { %3524 = vmatmul.mubr.msk.f32.vlgmr.msra.gmra.mrb[12].mxu1 %vm59_vm0, %v4289_v22 }
 0xb55   :  { %v3525_v24 = vpop.f32.mrb[12].mxu1 }
 0xb56   :  { %v4298_v25 = vadd.f32 %v3525_v24, %v3200_v23  ;;  %v1659_v26 = vpop.f32.mrb[13].mxu1 }
 0xb57   :  { %v1660_v27 = vadd.f32 %v3200_v23, %v1659_v26 }
 0xb59   :  { %1877 = vrot.lane.b32.xlu0 %v1660_v27, %s3965_s22  ;;  %3530 = vmatprep.mubr.msk.f32.mxu1 %vm152_vm1, %v1660_v27  ;;  %v4303_v28 = vpack.i.bf16 %v4298_v25, %v1660_v27 }
 0xb5b   :  { %3840 = vrot.lane.b32.xlu1 %v4303_v28, %s3966_s0 }
 0xb5f   :  { %3845 = vrot.lane.b32.xlu1 %v4303_v28, %s3967_s23  ;;  %s4514_s23 = smov 40  }
 0xb63   :  { %1879 = vrot.lane.b32.xlu1 %v4298_v25, %s3965_s22  ;;  %s4513_s22 = smov 48  }
 0xb67   :  { %3850 = vrot.lane.b32.xlu1 %v4303_v28, %s3969_s25 }
 0xb6b   :  { %2243 = vrot.lane.b32.xlu1 %v1660_v27, %s3968_s24 }
 0xb6f   :  { %2245 = vrot.lane.b32.xlu1 %v4298_v25, %s3968_s24 }
 0xbcb   :  { %v1878_v13 = vpop.permute.xlu0 %1877 }
 0xbcd   :  { %v3841_v29 = vpop.permute.xlu1 %3840 }
 0xbce   :  { %v3843_v30 = vunpack.i.h.bf16 %v3841_v29  ;;  %v3842_v31 = vunpack.i.l.bf16 %v3841_v29 }
 0xbd0   :  { %v3712_v33 = vpack.c.bf16 %v3843_v30, %v3842_v31 }
 0xbd1   :  { %v3846_v34 = vpop.permute.xlu1 %3845 }
 0xbd2   :  { %v3848_v36 = vunpack.i.h.bf16 %v3846_v34  ;;  %v3847_v37 = vunpack.i.l.bf16 %v3846_v34  ;;  %3714 = vmatprep.subr.msk.bf16.mxu1 %vm4101_vm2, %v3712_v33 }
 0xbd3   :  { %3717 = vmatpush3.bf16.xpose.msk.msra.mxu1 %vm4101_vm2, %v3712_v33 }
 0xbd4   :  { %v3722_v38 = vpack.c.bf16 %v3848_v36, %v3847_v37 }
 0xbd5   :  { %v1880_v39 = vpop.permute.xlu1 %1879 }
 0xbd6   :  { %3724 = vmatprep.subr.msk.bf16.mxu1 %vm4101_vm2, %v3722_v38 }
 0xbd9   :  { %v3851_v40 = vpop.permute.xlu1 %3850 }
 0xbda   :  { %v3853_v41 = vunpack.i.h.bf16 %v3851_v40  ;;  %v3852_v42 = vunpack.i.l.bf16 %v3851_v40  ;;  %3531 = vmatmul.mubr.msk.f32.vlgmr.msra.gmra.mrb[14].mxu1 %vm152_vm1, %v4298_v25 }
 0xbdb   :  { %3727 = vmatpush3.bf16.xpose.msk.msra.mxu1 %vm4101_vm2, %v3722_v38  ;;  %3544 = vmatprep.mubr.msk.f32.mxu1 %vm152_vm1, %v1878_v13 }
 0xbdc   :  { %v3732_v43 = vpack.c.bf16 %v3853_v41, %v3852_v42 }
 0xbdd   :  { %v2244_v44 = vpop.permute.xlu1 %2243 }
 0xbde   :  { %3734 = vmatprep.subr.msk.bf16.mxu1 %vm4101_vm2, %v3732_v43 }
 0xbe1   :  { %v2246_v45 = vpop.permute.xlu1 %2245 }
 0xbe2   :  { %3545 = vmatmul.mubr.msk.f32.vlgmr.msra.gmra.mrb[16].mxu1 %vm152_vm1, %v1880_v39 }
 0xbe3   :  { %3737 = vmatpush3.bf16.xpose.msk.msra.mxu1 %vm4101_vm2, %v3732_v43  ;;  %3568 = vmatprep.mubr.msk.f32.mxu1 %vm152_vm1, %v2244_v44  ;;  %v3204_v44 = vld [vmem:[%s4496_s4 + $0x28] sm:$0xff] }
 0xbea   :  { %3569 = vmatmul.mubr.msk.f32.vlgmr.msra.gmra.mrb[18].mxu1 %vm152_vm1, %v2246_v45 }
 0xcad   :  { %v3532_v46 = vpop.f32.mrb[14].mxu1 }
 0xcae   :  { %v1765_v47 = vmul.f32 0.35355338, %v3532_v46  ;;  %v1755_v48 = vpop.f32.mrb[15].mxu1 }
 0xcaf   :  { %v1764_v49 = vmul.f32 0.35355338, %v1755_v48 }
 0xcb0   :  { %v1767_v50 = vadd.f32 %v1765_v47, %v4126_v32 }
 0xcb1   :  { %v1766_v51 = vadd.f32 %v1764_v49, %v4131_v35 }
 0xcb2   :  { %v1771_v52 = vsel %vm240_vm3, %v1767_v50, -inf }
 0xcb3   :  { %1772 = vmax.xlane.f32.xlu0 %v1771_v52  ;;  %v1768_v53 = vsel %vm240_vm3, %v1766_v51, -inf }
 0xcb4   :  { %1769 = vmax.xlane.f32.xlu1 %v1768_v53 }
 0xcb5   :  { %v3546_v54 = vpop.f32.mrb[16].mxu1 }
 0xcb6   :  { %v1969_v55 = vmul.f32 0.35355338, %v3546_v54  ;;  %v1959_v56 = vpop.f32.mrb[17].mxu1 }
 0xcb7   :  { %v1968_v57 = vmul.f32 0.35355338, %v1959_v56 }
 0xcb8   :  { %v1971_v58 = vadd.f32 %v1969_v55, %v4126_v32 }
 0xcb9   :  { %v1970_v59 = vadd.f32 %v1968_v57, %v4131_v35 }
 0xcba   :  { %v1975_v60 = vsel %vm240_vm3, %v1971_v58, -inf }
 0xcbb   :  { %1976 = vmax.xlane.f32.xlu1 %v1975_v60  ;;  %v1972_v61 = vsel %vm240_vm3, %v1970_v59, -inf }
 0xcbc   :  { %1973 = vmax.xlane.f32.xlu0 %v1972_v61 }
 0xcbd   :  { %v3570_v62 = vpop.f32.mrb[18].mxu1 }
 0xcbe   :  { %v2325_v5 = vpop.f32.mrb[19].mxu1  ;;  %v2335_v17 = vmul.f32 0.35355338, %v3570_v62 }
 0xcbf   :  { %v2334_v31 = vmul.f32 0.35355338, %v2325_v5 }
 0xcc0   :  { %v2337_v42 = vadd.f32 %v2335_v17, %v4126_v32  ;;  %v3203_v32 = vld [vmem:[%s4496_s4 + $0x20] sm:$0xff] }
 0xcc1   :  { %v2336_v38 = vadd.f32 %v2334_v31, %v4131_v35 }
 0xcc2   :  { %v2341_v43 = vsel %vm240_vm3, %v2337_v42, -inf }
 0xcc3   :  { %v2338_v13 = vsel %vm240_vm3, %v2336_v38, -inf }
 0xccc   :  { %3860 = vrot.lane.b32.xlu1 %v4303_v28, %s3970_s30 }
 0xcd0   :  { %3865 = vrot.lane.b32.xlu1 %v4303_v28, %s3971_s14 }
 0xcd2   :  { %3855 = vrot.lane.b32.xlu0 %v4303_v28, %s3972_s15 }
 0xcd4   :  { %2532 = vrot.lane.b32.xlu1 %v4298_v25, %s4512_s3 }
 0xcd6   :  { %2530 = vrot.lane.b32.xlu0 %v1660_v27, %s4512_s3 }
 0xd40   :  { %v1773_v7 = vpop.xlane.xlu0 %1772 }
 0xd41   :  { %v1770_v63 = vpop.xlane.xlu1 %1769  ;;  %v1775_v1 = vsub.f32 %v1767_v50, %v1773_v7 }
 0xd42   :  { %v1774_v0 = vsub.f32 %v1766_v51, %v1770_v63 }
 0xd43   :  { %v1778_v3 = vmul.f32 1.442695, %v1775_v1 }
 0xd44   :  { %v1776_v2 = vmul.f32 1.442695, %v1774_v0 }
 0xd46   :  { %3919 = vpow2.f32 %v1776_v2 }
 0xd47   :  { %3921 = vpow2.f32 %v1778_v3 }
 0xd48   :  { %v1977_v4 = vpop.xlane.xlu1 %1976 }
 0xd49   :  { %v1979_v6 = vsub.f32 %v1971_v58, %v1977_v4  ;;  %v1974_v8 = vpop.xlane.xlu0 %1973 }
 0xd4a   :  { %v1978_v9 = vsub.f32 %v1970_v59, %v1974_v8 }
 0xd4b   :  { %v1982_v10 = vmul.f32 1.442695, %v1979_v6  ;;  %v3963_v6 = vld [vmem:[%s4495_s1] sm:$0xff] }
 0xd4c   :  { %v1980_v11 = vmul.f32 1.442695, %v1978_v9  ;;  %v3861_v12 = vpop.permute.xlu1 %3860 }
 0xd4d   :  { %3923 = vpow2.f32 %v1982_v10  ;;  %v3863_v14 = vunpack.i.h.bf16 %v3861_v12  ;;  %v3856_v15 = vpop.permute.xlu0 %3855  ;;  %v3862_v16 = vunpack.i.l.bf16 %v3861_v12 }
 0xd4e   :  { %3925 = vpow2.f32 %v1980_v11  ;;  %v3858_v18 = vunpack.i.h.bf16 %v3856_v15  ;;  %v3857_v19 = vunpack.i.l.bf16 %v3856_v15  ;;  %v3205_v15 = vld [vmem:[%s4496_s4 + $0x30] sm:$0xff] }
 0xd4f   :  { %v3728_v29 = vpack.c.bf16 %v3863_v14, %v3862_v16 }
 0xd50   :  { %v3920_v20 = vpop.eup %3919  ;;  %v3718_v23 = vpack.c.bf16 %v3858_v18, %v3857_v19  ;;  %v3866_v24 = vpop.permute.xlu1 %3865 }
 0xd51   :  { %v3868_v25 = vunpack.i.h.bf16 %v3866_v24  ;;  %v3867_v26 = vunpack.i.l.bf16 %v3866_v24  ;;  %v2531_v27 = vpop.permute.xlu0 %2530  ;;  %3537 = vmatprep.mubr.msk.f32.mxu0 %vm240_vm3, %v3920_v20  ;;  %v3922_v33 = vpop.eup %3921  ;;  %v1780_v41 = vsel %vm240_vm3, %v3920_v20, 0.0 }
 0xd52   :  { %3719 = vmatprep.subr.bf16.mxu0 %v3718_v23  ;;  %3587 = vmatprep.mubr.msk.f32.mxu1 %vm152_vm1, %v2531_v27  ;;  %v1783_v35 = vsel %vm240_vm3, %v3922_v33, 0.0 }
 0xd53   :  { %v3742_v30 = vpack.c.bf16 %v3868_v25, %v3867_v26  ;;  %3721 = vmatpush3.bf16.msra.mxu0 %v3718_v23  ;;  %v3964_v26 = vld [vmem:[%s4495_s1 + $0x8] sm:$0xff] }
 0xd54   :  { %3729 = vmatprep.subr.bf16.mxu0 %v3728_v29  ;;  %v2533_v40 = vpop.permute.xlu1 %2532 }
 0xd55   :  { %3744 = vmatprep.subr.msk.bf16.mxu1 %vm4101_vm2, %v3742_v30 }
 0xd56   :  { %3538 = vmatmul.mubr.msk.f32.vlgmr.msra.gmra.mrb[12].mxu0 %vm240_vm3, %v3922_v33  ;;  %3747 = vmatpush3.bf16.xpose.msk.msra.mxu1 %vm4101_vm2, %v3742_v30 }
 0xd57   :  { %v3924_v34 = vpop.eup %3923  ;;  %3731 = vmatpush3.bf16.msra.mxu0 %v3728_v29 }
 0xd58   :  { %v3926_v36 = vpop.eup %3925  ;;  %v1987_v37 = vsel %vm240_vm3, %v3924_v34, 0.0  ;;  %3554 = vmatprep.subr.mxu0 %v3204_v44 }
 0xd59   :  { %3551 = vmatprep.mubr.msk.f32.mxu0 %vm240_vm3, %v3926_v36  ;;  %1988 = vadd.xlane.f32.xlu1 %v1987_v37  ;;  %v1984_v39 = vsel %vm240_vm3, %v3926_v36, 0.0 }
 0xd5a   :  { %1985 = vadd.xlane.f32.xlu0 %v1984_v39  ;;  %3552 = vmatmul.mubr.msk.f32.vlgmr.msra.gmra.mrb[14].mxu0 %vm240_vm3, %v3924_v34 }
 0xd5b   :  { %3555 = vmatpush3.msra.mxu0 %v3204_v44 }
 0xd5c   :  { %3559 = vmatprep.subr.mxu0 %v3203_v32 }
 0xd5d   :  { %2339 = vmax.xlane.f32.xlu1 %v2338_v13  ;;  %3588 = vmatmul.mubr.msk.f32.vlgmr.msra.gmra.mrb[20].mxu1 %vm152_vm1, %v2533_v40 }
 0xd5e   :  { %1781 = vadd.xlane.f32.xlu0 %v1780_v41 }
 0xd62   :  { %1784 = vadd.xlane.f32.xlu0 %v1783_v35 }
 0xd66   :  { %2342 = vmax.xlane.f32.xlu0 %v2341_v43 }
 0xd6e   :  { %3870 = vrot.lane.b32.xlu1 %v4303_v28, %s4513_s22 }
 0xd72   :  { %3875 = vrot.lane.b32.xlu1 %v4303_v28, %s4514_s23 }
 0xde6   :  { %v1989_v48 = vpop.xlane.xlu1 %1988 }
 0xde7   :  { %v1986_v45 = vpop.xlane.xlu0 %1985 }
 0xde8   :  { %3927 = vrcp.f32 %v1986_v45 }
 0xde9   :  { %3929 = vrcp.f32 %v1989_v48 }
 0xdea   :  { %v2340_v50 = vpop.xlane.xlu1 %2339 }
 0xdeb   :  { %v1782_v46 = vpop.xlane.xlu0 %1781  ;;  %v2344_v51 = vsub.f32 %v2336_v38, %v2340_v50 }
 0xdec   :  { %3931 = vrcp.f32 %v1782_v46  ;;  %v3206_v46 = vld [vmem:[%s4496_s4 + $0x38] sm:$0xff] }
 0xded   :  { %v2346_v56 = vmul.f32 1.442695, %v2344_v51 }
 0xdee   :  { %v3871_v55 = vpop.permute.xlu1 %3870 }
 0xdef   :  { %v1785_v47 = vpop.xlane.xlu0 %1784  ;;  %v3873_v59 = vunpack.i.h.bf16 %v3871_v55  ;;  %v3872_v60 = vunpack.i.l.bf16 %v3871_v55 }
 0xdf0   :  { %3933 = vrcp.f32 %v1785_v47 }
 0xdf1   :  { %v3738_v3 = vpack.c.bf16 %v3873_v59, %v3872_v60 }
 0xdf2   :  { %v3928_v58 = vpop.eup %3927  ;;  %v3876_v12 = vpop.permute.xlu1 %3875 }
 0xdf3   :  { %v2343_v49 = vpop.xlane.xlu0 %2342  ;;  %v3930_v62 = vpop.eup %3929  ;;  %v3878_v16 = vunpack.i.h.bf16 %v3876_v12  ;;  %v3877_v18 = vunpack.i.l.bf16 %v3876_v12  ;;  %v3246_v12 = vld [vmem:[%s4499_s7 + $0x38] sm:$0xff] }
 0xdf4   :  { %v2345_v28 = vsub.f32 %v2337_v42, %v2343_v49 }
 0xdf5   :  { %v3748_v24 = vpack.c.bf16 %v3878_v16, %v3877_v18  ;;  %v3249_v16 = vld [vmem:[%s4500_s9 + $0x48] sm:$0xff]  ;;  %v3250_v18 = vld [vmem:[%s4500_s9 + $0x50] sm:$0xff] }
 0xdf6   :  { %v2348_v52 = vmul.f32 1.442695, %v2345_v28  ;;  %v3932_v7 = vpop.eup %3931 }
 0xdf8   :  { %3935 = vpow2.f32 %v2348_v52 }
 0xdf9   :  { %3937 = vpow2.f32 %v2346_v56 }
 0xdfa   :  { %v3934_v9 = vpop.eup %3933 }
 0xe02   :  { %v3936_v11 = vpop.eup %3935 }
 0xe03   :  { %v2353_v20 = vsel %vm240_vm3, %v3936_v11, 0.0  ;;  %v3938_v23 = vpop.eup %3937 }
 0xe04   :  { %v2350_v25 = vsel %vm240_vm3, %v3938_v23, 0.0 }
 0xe29   :  { %v3539_v53 = vpop.f32.mrb[12].mxu0 }
 0xe2a   :  { %v1864_v54 = vpop.f32.mrb[13].mxu0  ;;  %v1876_v14 = vmul.f32 %v3934_v9, %v3539_v53  ;;  %v3242_v9 = vld [vmem:[%s4498_s6 + $0x1] ss:$0 sm:$0xff] }
 0xe2b   :  { %v1875_v1 = vmul.f32 %v3932_v7, %v1864_v54  ;;  %v3240_v54 = vld [vmem:[%s4497_s5 + $0x1] ss:$0 sm:$0xff] }
 0xe2d   :  { %v3553_v57 = vpop.f32.mrb[14].mxu0 }
 0xe2e   :  { %v2068_v61 = vpop.f32.mrb[15].mxu0  ;;  %v2080_v63 = vmul.f32 %v3930_v62, %v3553_v57 }
 0xe2f   :  { %v2079_v5 = vmul.f32 %v3928_v58, %v2068_v61 }
 0xe30   :  { %v3589_v0 = vpop.f32.mrb[20].mxu1 }
 0xe31   :  { %3556 = vmatprep.mubr.msk.f32.mxu0 %vm152_vm1, %v2079_v5  ;;  %v2612_v2 = vpop.f32.mrb[21].mxu1  ;;  %v2622_v19 = vmul.f32 0.35355338, %v3589_v0 }
 0xe32   :  { %v2621_v4 = vmul.f32 0.35355338, %v2612_v2  ;;  %3557 = vmatmul.mubr.msk.f32.vlgmr.msra.gmra.mrb[16].mxu0 %vm152_vm1, %v2080_v63 }
 0xe33   :  { %3560 = vmatpush3.msra.mxu0 %v3203_v32  ;;  %3561 = vmatprep.mubr.msk.f32.mxu0 %vm152_vm1, %v1875_v1  ;;  %v2624_v27 = vadd.f32 %v3964_v26, %v2622_v19 }
 0xe34   :  { %3739 = vmatprep.subr.bf16.mxu0 %v3738_v3  ;;  %v2623_v8 = vadd.f32 %v3963_v6, %v2621_v4 }
 0xe35   :  { %v2628_v29 = vsel %vm240_vm3, %v2624_v27, -inf }
 0xe36   :  { %v2625_v10 = vsel %vm240_vm3, %v2623_v8, -inf }
 0xe37   :  { %2626 = vmax.xlane.f32.xlu0 %v2625_v10 }
 0xe3a   :  { %3562 = vmatmul.mubr.msk.f32.vlgmr.msra.gmra.mrb[16].mxu0 %vm152_vm1, %v1876_v14 }
 0xe3b   :  { %3741 = vmatpush3.bf16.msra.mxu0 %v3738_v3  ;;  %2354 = vadd.xlane.f32.xlu0 %v2353_v20  ;;  %v3251_v20 = vld [vmem:[%s4500_s9 + $0x58] sm:$0xff] }
 0xe3c   :  { %3575 = vmatprep.mubr.msk.f32.mxu0 %vm240_vm3, %v3938_v23  ;;  %3578 = vmatprep.subr.mxu0 %v3205_v15  ;;  %v3764_v23 = vpack.c.bf16 %v3251_v20, %v3250_v18 }
 0xe3e   :  { %3576 = vmatmul.mubr.msk.f32.vlgmr.msra.gmra.mrb[18].mxu0 %vm240_vm3, %v3936_v11  ;;  %v3245_v11 = vld [vmem:[%s4499_s7 + $0x30] sm:$0xff] }
 0xe3f   :  { %3579 = vmatpush3.msra.mxu0 %v3205_v15  ;;  %2351 = vadd.xlane.f32.xlu0 %v2350_v25  ;;  %v3756_v14 = vpack.c.bf16 %v3246_v12, %v3245_v11  ;;  %v3248_v15 = vld [vmem:[%s4500_s9 + $0x40] sm:$0xff]  ;;  %v3253_v25 = vld [vmem:[%s4500_s9 + $0x68] sm:$0xff] }
 0xe40   :  { %3749 = vmatprep.subr.bf16.mxu0 %v3748_v24  ;;  %v3760_v19 = vpack.c.bf16 %v3249_v16, %v3248_v15 }
 0xe43   :  { %2629 = vmax.xlane.f32.xlu0 %v2628_v29 }
 0xec4   :  { %v2627_v30 = vpop.xlane.xlu0 %2626 }
 0xec5   :  { %v2631_v31 = vsub.f32 %v2623_v8, %v2627_v30  ;;  %v3244_v8 = vld [vmem:[%s4499_s7 + $0x28] sm:$0xff] }
 0xec7   :  { %v2633_v33 = vmul.f32 1.442695, %v2631_v31 }
 0xec8   :  { %v2355_v34 = vpop.xlane.xlu0 %2354 }
 0xec9   :  { %3939 = vpow2.f32 %v2633_v33 }
 0xecc   :  { %v2352_v36 = vpop.xlane.xlu0 %2351 }
 0xed0   :  { %v2630_v37 = vpop.xlane.xlu0 %2629 }
 0xed1   :  { %v2632_v38 = vsub.f32 %v2624_v27, %v2630_v37 }
 0xed3   :  { %v3940_v39 = vpop.eup %3939  ;;  %v2635_v40 = vmul.f32 1.442695, %v2632_v38 }
 0xed4   :  { %v2637_v13 = vsel %vm240_vm3, %v3940_v39, 0.0 }
 0xed5   :  { %3941 = vpow2.f32 %v2635_v40  ;;  %2638 = vadd.xlane.f32.xlu0 %v2637_v13 }
 0xed6   :  { %3943 = vrcp.f32 %v2355_v34 }
 0xed7   :  { %3945 = vrcp.f32 %v2352_v36 }
 0xedf   :  { %v3942_v17 = vpop.eup %3941 }
 0xee0   :  { %v2640_v41 = vsel %vm240_vm3, %v3942_v17, 0.0  ;;  %v3944_v35 = vpop.eup %3943 }
 0xee1   :  { %2641 = vadd.xlane.f32.xlu1 %v2640_v41  ;;  %v3946_v43 = vpop.eup %3945 }
 0xf11   :  { %v3577_v42 = vpop.f32.mrb[18].mxu0 }
 0xf12   :  { %v2446_v44 = vmul.f32 %v3944_v35, %v3577_v42  ;;  %v2434_v32 = vpop.f32.mrb[19].mxu0  ;;  %v3254_v42 = vld [vmem:[%s4500_s9 + $0x70] sm:$0xff] }
 0xf13   :  { %v2445_v45 = vmul.f32 %v3946_v43, %v2434_v32  ;;  %v3255_v43 = vld [vmem:[%s4500_s9 + $0x78] sm:$0xff]  ;;  %v3257_v32 = vld [vmem:[%s4501_s8 + $0x1] ss:$0 sm:$0xff] }
 0xf15   :  { %3580 = vmatprep.mubr.msk.f32.mxu0 %vm152_vm1, %v2445_v45 }
 0xf16   :  { %3581 = vmatmul.mubr.msk.f32.vlgmr.msra.gmra.mrb[16].mxu0 %vm152_vm1, %v2446_v44  ;;  %v3772_v44 = vpack.c.bf16 %v3255_v43, %v3254_v42 }
 0xf17   :  { %3751 = vmatpush3.bf16.msra.mxu0 %v3748_v24  ;;  %3594 = vmatprep.mubr.msk.f32.mxu0 %vm240_vm3, %v3940_v39  ;;  %v3252_v24 = vld [vmem:[%s4500_s9 + $0x60] sm:$0xff] }
 0xf18   :  { %3597 = vmatprep.subr.mxu0 %v3206_v46  ;;  %v3768_v26 = vpack.c.bf16 %v3253_v25, %v3252_v24 }
 0xf1a   :  { %3595 = vmatmul.mubr.msk.f32.vlgmr.msra.gmra.mrb[20].mxu0 %vm240_vm3, %v3942_v17 }
 0xf1b   :  { %3598 = vmatpush3.msra.mxu0 %v3206_v46 }
 0xf1c   :  { %3761 = vmatprep.subr.bf16.mxu0 %v3760_v19 }
 0xf62   :  { %v2639_v47 = vpop.xlane.xlu0 %2638 }
 0xf63   :  { %3947 = vrcp.f32 %v2639_v47 }
 0xf6d   :  { %v3948_v50 = vpop.eup %3947 }
 0xf6e   :  { %v2642_v48 = vpop.xlane.xlu1 %2641 }
 0xf6f   :  { %3949 = vrcp.f32 %v2642_v48 }
 0xf79   :  { %v3950_v51 = vpop.eup %3949 }
 0xfed   :  { %v3596_v49 = vpop.f32.mrb[20].mxu0 }
 0xfee   :  { %v2721_v28 = vpop.f32.mrb[21].mxu0  ;;  %v2733_v53 = vmul.f32 %v3950_v51, %v3596_v49 }
 0xfef   :  { %v2732_v52 = vmul.f32 %v3948_v50, %v2721_v28  ;;  %v3260_v28 = vld [vmem:[%s4502_s10 + $0x1] ss:$0 sm:$0xff] }
 0xff1   :  { %3599 = vmatprep.mubr.msk.f32.mxu0 %vm152_vm1, %v2732_v52 }
 0xff2   :  { %3600 = vmatmul.mubr.msk.f32.vlgmr.msra.gmra.mrb[16].mxu0 %vm152_vm1, %v2733_v53 }
 0xff3   :  { %3763 = vmatpush3.bf16.msra.mxu0 %v3760_v19 }
 0xff4   :  { %3765 = vmatprep.subr.bf16.mxu0 %v3764_v23 }
 0xff7   :  { %3767 = vmatpush3.bf16.msra.mxu0 %v3764_v23 }
 0xff8   :  { %3769 = vmatprep.subr.bf16.mxu0 %v3768_v26 }
 0xffb   :  { %3771 = vmatpush3.bf16.msra.mxu0 %v3768_v26 }
 0xffc   :  { %3773 = vmatprep.subr.bf16.mxu0 %v3772_v44 }
 0xfff   :  { %3775 = vmatpush3.bf16.msra.mxu0 %v3772_v44 }
0x10c5   :  { %v3601_v55 = vpop.f32.mrb[16].mxu0 }
0x10c6   :  { %v2806_v56 = vpop.f32.mrb[17].mxu0  ;;  %v2824_v57 = vadd.f32 %v3601_v55, %v3240_v54 }
0x10c7   :  { %v2823_v58 = vadd.f32 %v3240_v54, %v2806_v56 }
0x10c8   :  { %v2826_v61 = vadd.f32 %v2824_v57, %v4289_v22  ;;  %v3243_v22 = vld [vmem:[%s4499_s7 + $0x20] sm:$0xff] }
0x10c9   :  { %v2825_v59 = vadd.f32 %v2823_v58, %v4287_v21  ;;  %v3752_v10 = vpack.c.bf16 %v3244_v8, %v3243_v22 }
0x10ca   :  { %v2832_v62 = vsel %vm59_vm0, %v2826_v61, 0.0 }
0x10cb   :  { %v2829_v60 = vsel %vm59_vm0, %v2825_v59, 0.0  ;;  %3753 = vmatprep.subr.bf16.mxu1 %v3752_v10 }
0x10cc   :  { %2830 = vadd.xlane.f32.xlu0 %v2829_v60  ;;  %3755 = vmatpush3.bf16.msra.mxu1 %v3752_v10 }
0x10cd   :  { %3757 = vmatprep.subr.bf16.mxu1 %v3756_v14 }
0x10d0   :  { %2833 = vadd.xlane.f32.xlu0 %v2832_v62  ;;  %3759 = vmatpush3.bf16.msra.mxu1 %v3756_v14 }
0x1159   :  { %v2831_v5 = vpop.xlane.xlu0 %2830 }
0x115a   :  { %v2835_v7 = vmul.f32 0.03125, %v2831_v5 }
0x115c   :  { %v2837_v63 = vsub.f32 %v2825_v59, %v2835_v7 }
0x115d   :  { %v2834_v0 = vpop.xlane.xlu0 %2833 }
0x115e   :  { %v2836_v1 = vmul.f32 0.03125, %v2834_v0  ;;  %v2839_v2 = vmul.f32 %v2837_v63, %v2837_v63 }
0x1160   :  { %v2838_v3 = vsub.f32 %v2826_v61, %v2836_v1  ;;  %v2841_v4 = vsel %vm59_vm0, %v2839_v2, 0.0 }
0x1161   :  { %2842 = vadd.xlane.f32.xlu0 %v2841_v4 }
0x1162   :  { %v2840_v6 = vmul.f32 %v2838_v3, %v2838_v3 }
0x1164   :  { %v2844_v21 = vsel %vm59_vm0, %v2840_v6, 0.0 }
0x1165   :  { %2845 = vadd.xlane.f32.xlu0 %v2844_v21 }
0x117b   :  { %2863 = vrot.lane.b32.xlu0 %v3242_v9, %s3966_s0 }
0x11ee   :  { %v2843_v27 = vpop.xlane.xlu0 %2842 }
0x11ef   :  { %v2847_v29 = vmul.f32 0.03125, %v2843_v27 }
0x11f1   :  { %v2849_v30 = vadd.f32 1e-05, %v2847_v29 }
0x11f2   :  { %v2846_v31 = vpop.xlane.xlu0 %2845 }
0x11f3   :  { %3951 = vrsqrt.f32 %v2849_v30  ;;  %v2848_v33 = vmul.f32 0.03125, %v2846_v31 }
0x11f5   :  { %v2850_v34 = vadd.f32 1e-05, %v2848_v33 }
0x11f6   :  { %v2864_v38 = vpop.permute.xlu0 %2863 }
0x11f7   :  { %3953 = vrsqrt.f32 %v2850_v34 }
0x11fd   :  { %v3952_v36 = vpop.eup %3951 }
0x11fe   :  { %v2853_v37 = vmul.f32 %v3952_v36, %v2837_v63 }
0x1200   :  { %v2861_v39 = vmul.f32 %v3242_v9, %v2853_v37 }
0x1201   :  { %v3954_v40 = vpop.eup %3953 }
0x1202   :  { %v2854_v13 = vmul.f32 %v3954_v40, %v2838_v3  ;;  %v2866_v17 = vadd.f32 %v2864_v38, %v2861_v39  ;;  %v3264_v3 = vld [vmem:[%s4503_s11 + $0x1] ss:$0 sm:$0xff] }
0x1204   :  { %v2862_v41 = vmul.f32 %v3242_v9, %v2854_v13  ;;  %3610 = vmatprep.mubr.msk.f32.mxu1 %vm59_vm0, %v2866_v17 }
0x1206   :  { %v2867_v35 = vadd.f32 %v2864_v38, %v2862_v41  ;;  %v3265_v38 = vld [vmem:[%s4504_s12] ss:$0 sm:$0xff] }
0x1208   :  { %3611 = vmatmul.mubr.msk.f32.vlgmr.msra.gmra.mrb[22].mxu1 %vm59_vm0, %v2867_v35 }
0x12db   :  { %v3612_v45 = vpop.f32.mrb[22].mxu1 }
0x12dc   :  { %v2970_v46 = vadd.f32 %v3612_v45, %v3257_v32  ;;  %v2964_v47 = vpop.f32.mrb[23].mxu1 }
0x12dd   :  { %v2965_v48 = vadd.f32 %v3257_v32, %v2964_v47 }
0x12de   :  { %v2974_v50 = vmax.f32 %v2970_v46, 0.0 }
0x12df   :  { %v2973_v49 = vmax.f32 %v2965_v48, 0.0 }
0x12e1   :  { %3629 = vmatprep.mubr.msk.f32.mxu0 %vm1450_vm4, %v2973_v49 }
0x12e2   :  { %3630 = vmatmul.mubr.msk.f32.vlgmr.msra.gmra.mrb[22].mxu0 %vm1450_vm4, %v2974_v50 }
0x13b5   :  { %v3631_v51 = vpop.f32.mrb[22].mxu0 }
0x13b6   :  { %v3059_v52 = vadd.f32 %v3631_v51, %v3260_v28  ;;  %v3053_v53 = vpop.f32.mrb[23].mxu0 }
0x13b7   :  { %v3054_v54 = vadd.f32 %v3260_v28, %v3053_v53 }
0x13b8   :  { %v3063_v55 = vadd.f32 %v3059_v52, %v2867_v35 }
0x13b9   :  { %v3062_v56 = vadd.f32 %v3054_v54, %v2866_v17 }
0x13ba   :  { %v3069_v57 = vsel %vm59_vm0, %v3063_v55, 0.0 }
0x13bb   :  { %3070 = vadd.xlane.f32.xlu0 %v3069_v57  ;;  %v3066_v58 = vsel %vm59_vm0, %v3062_v56, 0.0 }
0x13bc   :  { %3067 = vadd.xlane.f32.xlu1 %v3066_v58 }
0x1448   :  { %v3071_v59 = vpop.xlane.xlu0 %3070 }
0x1449   :  { %v3073_v60 = vmul.f32 0.03125, %v3071_v59  ;;  %v3068_v61 = vpop.xlane.xlu1 %3067 }
0x144a   :  { %v3072_v62 = vmul.f32 0.03125, %v3068_v61 }
0x144b   :  { %v3075_v5 = vsub.f32 %v3063_v55, %v3073_v60 }
0x144c   :  { %v3074_v7 = vsub.f32 %v3062_v56, %v3072_v62 }
0x144d   :  { %v3077_v63 = vmul.f32 %v3075_v5, %v3075_v5 }
0x144e   :  { %v3076_v1 = vmul.f32 %v3074_v7, %v3074_v7 }
0x144f   :  { %v3081_v0 = vsel %vm59_vm0, %v3077_v63, 0.0 }
0x1450   :  { %3082 = vadd.xlane.f32.xlu1 %v3081_v0  ;;  %v3078_v2 = vsel %vm59_vm0, %v3076_v1, 0.0 }
0x1454   :  { %3079 = vadd.xlane.f32.xlu1 %v3078_v2 }
0x1465   :  { %3100 = vrot.lane.b32.xlu1 %v3264_v3, %s3966_s0 }
0x14dd   :  { %v3083_v4 = vpop.xlane.xlu1 %3082 }
0x14de   :  { %v3085_v6 = vmul.f32 0.03125, %v3083_v4 }
0x14e0   :  { %v3087_v21 = vadd.f32 1e-05, %v3085_v6 }
0x14e1   :  { %v3080_v22 = vpop.xlane.xlu1 %3079 }
0x14e2   :  { %3955 = vrsqrt.f32 %v3087_v21  ;;  %v3084_v8 = vmul.f32 0.03125, %v3080_v22 }
0x14e4   :  { %v3086_v9 = vadd.f32 1e-05, %v3084_v8 }
0x14e5   :  { %v3101_v12 = vpop.permute.xlu1 %3100 }
0x14e6   :  { %3957 = vrsqrt.f32 %v3086_v9 }
0x14ec   :  { %v3956_v10 = vpop.eup %3955 }
0x14ed   :  { %v3091_v11 = vmul.f32 %v3956_v10, %v3075_v5 }
0x14ef   :  { %v3099_v14 = vmul.f32 %v3264_v3, %v3091_v11 }
0x14f0   :  { %v3958_v15 = vpop.eup %3957 }
0x14f1   :  { %v3090_v16 = vmul.f32 %v3958_v15, %v3074_v7  ;;  %v3104_v18 = vadd.f32 %v3101_v12, %v3099_v14 }
0x14f3   :  { %v3098_v19 = vmul.f32 %v3264_v3, %v3090_v16  ;;  %v3109_v20 = vsel %vm59_vm0, %v3104_v18, 0.0 }
0x14f4   :  { %3110 = vadd.xlane.f32.xlu0 %v3109_v20 }
0x14f5   :  { %v3103_v23 = vadd.f32 %v3101_v12, %v3098_v19 }
0x14f7   :  { %v3106_v24 = vsel %vm59_vm0, %v3103_v23, 0.0 }
0x14f8   :  { %3107 = vadd.xlane.f32.xlu1 %v3106_v24 }
0x1581   :  { %v3111_v25 = vpop.xlane.xlu0 %3110 }
0x1582   :  { %v3113_v26 = vmul.f32 0.03125, %v3111_v25 }
0x1584   :  { %v3115_v30 = vsub.f32 %v3104_v18, %v3113_v26 }
0x1585   :  { %v3108_v27 = vpop.xlane.xlu1 %3107 }
0x1586   :  { %v3112_v29 = vmul.f32 0.03125, %v3108_v27  ;;  %v3117_v36 = vmul.f32 %v3115_v30, %v3115_v30 }
0x1588   :  { %v3114_v31 = vsub.f32 %v3103_v23, %v3112_v29  ;;  %v3121_v37 = vsel %vm59_vm0, %v3117_v36, 0.0 }
0x158a   :  { %v3116_v33 = vmul.f32 %v3114_v31, %v3114_v31 }
0x158c   :  { %v3118_v34 = vsel %vm59_vm0, %v3116_v33, 0.0 }
0x158d   :  { %3119 = vadd.xlane.f32.xlu0 %v3118_v34 }
0x1591   :  { %3122 = vadd.xlane.f32.xlu0 %v3121_v37 }
0x15a7   :  { %3140 = vrot.lane.b32.xlu0 %v3265_v38, %s3966_s0 }
0x161a   :  { %v3120_v39 = vpop.xlane.xlu0 %3119 }
0x161b   :  { %v3124_v40 = vmul.f32 0.03125, %v3120_v39 }
0x161d   :  { %v3126_v13 = vadd.f32 1e-05, %v3124_v40 }
0x161e   :  { %v3123_v17 = vpop.xlane.xlu0 %3122 }
0x161f   :  { %3959 = vrsqrt.f32 %v3126_v13  ;;  %v3125_v41 = vmul.f32 0.03125, %v3123_v17 }
0x1621   :  { %v3127_v35 = vadd.f32 1e-05, %v3125_v41 }
0x1622   :  { %v3141_v44 = vpop.permute.xlu0 %3140 }
0x1623   :  { %3961 = vrsqrt.f32 %v3127_v35 }
0x1629   :  { %v3960_v42 = vpop.eup %3959 }
0x162a   :  { %v3130_v43 = vmul.f32 %v3960_v42, %v3114_v31 }
0x162c   :  { %v3138_v32 = vmul.f32 %v3265_v38, %v3130_v43 }
0x162d   :  { %v3962_v45 = vpop.eup %3961 }
0x162e   :  { %v3131_v46 = vmul.f32 %v3962_v45, %v3115_v30  ;;  %v3143_v47 = vadd.f32 %v3141_v44, %v3138_v32 }
0x1630   :  { %v3139_v48 = vmul.f32 %v3265_v38, %v3131_v46  ;;  %3145 = vst.msk [vmem:[%s4505_s13] sm:$0xff] %vm59_vm0, %v3143_v47 }
0x1632   :  { %v3144_v49 = vadd.f32 %v3141_v44, %v3139_v48 }
0x1634   :  { %3146 = vst.msk [vmem:[%s4505_s13 + $0x8] sm:$0xff] %vm59_vm0, %v3144_v49 }

// kernel: forward.3
= control target key start
LH: loop header
LB: loop body
LE: loop exit
PB: predicated region body
PF: predicated region fallthrough
CT: control target
= control target key end

     0   :  { %s8013_s6 = smov 1   ;;  %s8014_s10 = smov 2   ;;  %s8840_s0 = inlined_call_operand.smem [shape: u32[32], index: -1, kind: input, shape index: {}] }
   0x1   :  { %s8064_s5 = sld [smem:[%s8840_s0]]   ;;  %s8015_s14 = smov 3  }
   0x2   :  { %s8069_s9 = sld [smem:[%s8840_s0 + %s8013_s6]]   ;;  %s8016_s18 = smov 4  }
   0x3   :  { %s8074_s13 = sld [smem:[%s8840_s0 + %s8014_s10]]   ;;  %s8017_s22 = smov 5  }
   0x4   :  { %s8079_s17 = sld [smem:[%s8840_s0 + %s8015_s14]]   ;;  %s8018_s26 = smov 6  }
   0x5   :  { %s8084_s21 = sld [smem:[%s8840_s0 + %s8016_s18]]   ;;  %s8019_s30 = smov 7  }
   0x6   :  { %s8089_s25 = sld [smem:[%s8840_s0 + %s8017_s22]]   ;;  %s8020_s4 = smov 8  }
   0x7   :  { %s8094_s29 = sld [smem:[%s8840_s0 + %s8018_s26]]   ;;  %s8021_s10 = smov 9  }
   0x8   :  { %s8099_s3 = sld [smem:[%s8840_s0 + %s8019_s30]]   ;;  %s8022_s15 = smov 10  }
   0x9   :  { %s8104_s8 = sld [smem:[%s8840_s0 + %s8020_s4]]   ;;  %s8023_s20 = smov 11  }
   0xa   :  { %s8109_s14 = sld [smem:[%s8840_s0 + %s8021_s10]]   ;;  %s8024_s26 = smov 12  }
   0xb   :  { %8857 = sst [smem:[#allocation5_spill]] %s8084_s21  ;;  %s8025_s1 = smov 13  }
   0xc   :  { %8858 = sst [smem:[#allocation6_spill]] %s8089_s25  ;;  %s8026_s7 = smov 14  }
   0xd   :  { %s8114_s19 = sld [smem:[%s8840_s0 + %s8022_s15]]   ;;  %s8027_s15 = smov 15  }
   0xe   :  { %s8119_s24 = sld [smem:[%s8840_s0 + %s8023_s20]]   ;;  %s8028_s22 = smov 16  }
   0xf   :  { %s8124_s30 = sld [smem:[%s8840_s0 + %s8024_s26]]   ;;  %s8029_s28 = smov 17  }
  0x10   :  { %s8129_s6 = sld [smem:[%s8840_s0 + %s8025_s1]]  }
  0x11   :  { %s8134_s12 = sld [smem:[%s8840_s0 + %s8026_s7]]   ;;  %s8030_s7 = smov 18  }
  0x12   :  { %s8139_s20 = sld [smem:[%s8840_s0 + %s8027_s15]]   ;;  %s8031_s15 = smov 19  }
  0x13   :  { %s8144_s27 = sld [smem:[%s8840_s0 + %s8028_s22]]   ;;  %s8032_s22 = smov 20  }
  0x14   :  { %s8149_s4 = sld [smem:[%s8840_s0 + %s8029_s28]]   ;;  %s8033_s28 = smov 21  }
  0x15   :  { %s8154_s25 = sld [smem:[%s8840_s0 + %s8030_s7]]   ;;  %s8034_s7 = smov 22  }
  0x16   :  { %s8159_s21 = sld [smem:[%s8840_s0 + %s8031_s15]]   ;;  %s8035_s15 = smov 23  }
  0x19   :  { %8859 = sst [smem:[#allocation7_spill]] %s8144_s27 }
  0x1a   :  { %8860 = sst [smem:[#allocation8_spill]] %s8149_s4 }
  0x1b   :  { %8861 = sst [smem:[#allocation9_spill]] %s8154_s25 }
  0x1c   :  { %8862 = sst [smem:[#allocation10_spill]] %s8159_s21 }
  0x1d   :  { %s8164_s27 = sld [smem:[%s8840_s0 + %s8032_s22]]   ;;  %s8036_s22 = smov 24  }
  0x1e   :  { %s8169_s4 = sld [smem:[%s8840_s0 + %s8033_s28]]   ;;  %s8037_s28 = smov 25  }
  0x1f   :  { %s8174_s25 = sld [smem:[%s8840_s0 + %s8034_s7]]   ;;  %s8038_s7 = smov 26  }
  0x20   :  { %s8179_s21 = sld [smem:[%s8840_s0 + %s8035_s15]]   ;;  %s8039_s15 = smov 27  }
  0x23   :  { %8863 = sst [smem:[#allocation11_spill]] %s8164_s27 }
  0x24   :  { %8864 = sst [smem:[#allocation12_spill]] %s8169_s4 }
  0x25   :  { %8865 = sst [smem:[#allocation13_spill]] %s8174_s25 }
  0x26   :  { %8866 = sst [smem:[#allocation14_spill]] %s8179_s21 }
  0x27   :  { %s8184_s27 = sld [smem:[%s8840_s0 + %s8036_s22]]   ;;  %s8040_s22 = smov 28  }
  0x28   :  { %s8189_s4 = sld [smem:[%s8840_s0 + %s8037_s28]]   ;;  %s8041_s28 = smov 29  }
  0x29   :  { %s8194_s25 = sld [smem:[%s8840_s0 + %s8038_s7]]   ;;  %s8042_s7 = smov 30  }
  0x2a   :  { %s8199_s21 = sld [smem:[%s8840_s0 + %s8039_s15]]   ;;  %s8043_s15 = smov 31  }
  0x2d   :  { %8867 = sst [smem:[#allocation15_spill]] %s8184_s27 }
  0x2e   :  { %8868 = sst [smem:[#allocation16_spill]] %s8189_s4 }
  0x2f   :  { %8869 = sst [smem:[#allocation17_spill]] %s8194_s25 }
  0x30   :  { %8870 = sst [smem:[#allocation18_spill]] %s8199_s21 }
  0x31   :  { %s8204_s27 = sld [smem:[%s8840_s0 + %s8040_s22]]  }
  0x32   :  { %s8209_s4 = sld [smem:[%s8840_s0 + %s8041_s28]]  }
  0x33   :  { %s8214_s25 = sld [smem:[%s8840_s0 + %s8042_s7]]  }
  0x34   :  { %s8219_s21 = sld [smem:[%s8840_s0 + %s8043_s15]]  }
  0x35   :  { %v139_v0 = vld [vmem:[%s8094_s29] sm:$0xff]  ;;  %v140_v1 = vld [vmem:[%s8094_s29 + $0x8] sm:$0xff]  ;;  %v141_v2 = vld [vmem:[%s8094_s29 + $0x10] sm:$0xff]  ;;  %vm150_vm0 = vcmask 261120  }
  0x36   :  { %v7330_v3 = vpack.c.bf16 %v140_v1, %v139_v0  ;;  %v142_v4 = vld [vmem:[%s8094_s29 + $0x18] sm:$0xff]  ;;  %v8226_v5 = vld [vmem:[%s8064_s5] sm:$0xff] }
  0x37   :  { %v7334_v6 = vpack.c.bf16 %v142_v4, %v141_v2  ;;  %6879 = vmatprep.mubr.msk.f32.mxu0 %vm150_vm0, %v8226_v5 }
  0x38   :  { %68 = vsyncpa [#allocation3], 0  ;;  %7331 = vmatprep.subr.bf16.mxu0 %v7330_v3  ;;  %v8231_v7 = vld [vmem:[%s8064_s5 + $0x8] sm:$0xff]  ;;  %v6390_v8 = vld [vmem:[%s8099_s3] ss:$0 sm:$0xff]  ;;  %vm243_vm1 = vcmask 64512  }
  0x39   :  { %7333 = vmatpush3.bf16.msra.mxu0 %v7330_v3  ;;  %s8044_s0 = smov 120   ;;  %s8045_s5 = smov 96   ;;  %vm8262_vm2 = vmpackc.low %vm243_vm1, %vm243_vm1  ;;  %v8285_v32 = vld [vmem:[%s8074_s13 + $0x8] sm:$0xff]  ;;  %v8288_v35 = vld [vmem:[%s8074_s13] sm:$0xff]  ;;  %vm331_vm3 = vcmask 130048   ;;  %vm2920_vm4 = vcmask 523264  }
  0x3a   :  { %7335 = vmatprep.subr.bf16.mxu0 %v7334_v6  ;;  %s8046_s22 = smov 88   ;;  %s8047_s23 = smov 112   ;;  %vm6319_vm5 = vcmask 97280   ;;  %vm6332_vm6 = vcmask 7168   ;;  %vm6343_vm7 = vcmask 0  }
  0x3b   :  { %s8048_s26 = smov 80   ;;  %s8854_s28 = smov 56  }
  0x3c   :  { %s8050_s1 = smov 72   ;;  %s8051_s2 = smov 64  }
  0x3d   :  { %7337 = vmatpush3.bf16.msra.mxu0 %v7334_v6  ;;  %s8855_s7 = smov 104   ;;  %s8853_s10 = smov 48  }
  0x3e   :  { %s8852_s11 = smov 40   ;;  %s8873_s15 = sld [smem:[#allocation7_spill]] }
  0x3f   :  { %s8874_s16 = sld [smem:[#allocation9_spill]]  ;;  %s8875_s18 = sld [smem:[#allocation8_spill]] }
  0x40   :  { %6880 = vmatmul.mubr.msk.f32.vlgmr.msra.gmra.mrb[0].mxu0 %vm150_vm0, %v8231_v7 }
 0x113   :  { %v6881_v9 = vpop.f32.mrb[0].mxu0 }
 0x114   :  { %v8236_v10 = vadd.f32 %v6881_v9, %v6390_v8  ;;  %v223_v11 = vpop.f32.mrb[1].mxu0 }
 0x115   :  { %v8238_v12 = vadd.f32 %v6390_v8, %v223_v11 }
 0x117   :  { %441 = vrot.lane.b32.xlu1 %v8238_v12, %s8044_s0  ;;  %6886 = vmatprep.mubr.msk.f32.mxu1 %vm243_vm1, %v8238_v12  ;;  %v8246_v13 = vpack.i.bf16 %v8236_v10, %v8238_v12 }
 0x119   :  { %7674 = vrot.lane.b32.xlu0 %v8246_v13, %s8045_s5 }
 0x11b   :  { %443 = vrot.lane.b32.xlu1 %v8236_v10, %s8044_s0 }
 0x11d   :  { %7679 = vrot.lane.b32.xlu0 %v8246_v13, %s8046_s22 }
 0x11f   :  { %807 = vrot.lane.b32.xlu1 %v8238_v12, %s8047_s23 }
 0x121   :  { %7684 = vrot.lane.b32.xlu0 %v8246_v13, %s8048_s26 }
 0x125   :  { %809 = vrot.lane.b32.xlu0 %v8236_v10, %s8047_s23 }
 0x189   :  { %v442_v24 = vpop.permute.xlu1 %441 }
 0x18b   :  { %v7675_v14 = vpop.permute.xlu0 %7674 }
 0x18c   :  { %v7677_v15 = vunpack.i.h.bf16 %v7675_v14  ;;  %v7676_v16 = vunpack.i.l.bf16 %v7675_v14 }
 0x18d   :  { %v444_v28 = vpop.permute.xlu1 %443 }
 0x18e   :  { %v7338_v18 = vpack.c.bf16 %v7677_v15, %v7676_v16 }
 0x18f   :  { %v7680_v19 = vpop.permute.xlu0 %7679 }
 0x190   :  { %v7682_v20 = vunpack.i.h.bf16 %v7680_v19  ;;  %v7681_v21 = vunpack.i.l.bf16 %v7680_v19  ;;  %7340 = vmatprep.subr.msk.bf16.mxu1 %vm8262_vm2, %v7338_v18 }
 0x191   :  { %7343 = vmatpush3.bf16.xpose.msk.msra.mxu1 %vm8262_vm2, %v7338_v18  ;;  %v808_v29 = vpop.permute.xlu1 %807 }
 0x192   :  { %v7348_v22 = vpack.c.bf16 %v7682_v20, %v7681_v21 }
 0x193   :  { %v7685_v23 = vpop.permute.xlu0 %7684 }
 0x194   :  { %v7687_v25 = vunpack.i.h.bf16 %v7685_v23  ;;  %v7686_v26 = vunpack.i.l.bf16 %v7685_v23  ;;  %7350 = vmatprep.subr.msk.bf16.mxu1 %vm8262_vm2, %v7348_v22 }
 0x196   :  { %v7358_v27 = vpack.c.bf16 %v7687_v25, %v7686_v26 }
 0x197   :  { %v810_v30 = vpop.permute.xlu0 %809 }
 0x198   :  { %6887 = vmatmul.mubr.msk.f32.vlgmr.msra.gmra.mrb[0].mxu1 %vm243_vm1, %v8236_v10 }
 0x199   :  { %7353 = vmatpush3.bf16.xpose.msk.msra.mxu1 %vm8262_vm2, %v7348_v22  ;;  %6900 = vmatprep.mubr.msk.f32.mxu1 %vm243_vm1, %v442_v24 }
 0x19a   :  { %7360 = vmatprep.subr.msk.bf16.mxu1 %vm8262_vm2, %v7358_v27 }
 0x1a0   :  { %6901 = vmatmul.mubr.msk.f32.vlgmr.msra.gmra.mrb[2].mxu1 %vm243_vm1, %v444_v28 }
 0x1a1   :  { %7363 = vmatpush3.bf16.xpose.msk.msra.mxu1 %vm8262_vm2, %v7358_v27  ;;  %6924 = vmatprep.mubr.msk.f32.mxu1 %vm243_vm1, %v808_v29 }
 0x1a8   :  { %6925 = vmatmul.mubr.msk.f32.vlgmr.msra.gmra.mrb[4].mxu1 %vm243_vm1, %v810_v30 }
 0x26b   :  { %v6888_v31 = vpop.f32.mrb[0].mxu1 }
 0x26c   :  { %v328_v33 = vmul.f32 0.35355338, %v6888_v31  ;;  %v318_v34 = vpop.f32.mrb[1].mxu1  ;;  %v233_v31 = vld [vmem:[%s8104_s8 + $0x8] sm:$0xff] }
 0x26d   :  { %v327_v36 = vmul.f32 0.35355338, %v318_v34 }
 0x26e   :  { %v330_v37 = vadd.f32 %v328_v33, %v8285_v32  ;;  %v232_v33 = vld [vmem:[%s8104_s8] sm:$0xff] }
 0x26f   :  { %v329_v38 = vadd.f32 %v327_v36, %v8288_v35 }
 0x270   :  { %v335_v39 = vsel %vm331_vm3, %v330_v37, -inf }
 0x271   :  { %336 = vmax.xlane.f32.xlu0 %v335_v39  ;;  %v332_v40 = vsel %vm331_vm3, %v329_v38, -inf }
 0x272   :  { %333 = vmax.xlane.f32.xlu1 %v332_v40 }
 0x273   :  { %v6902_v41 = vpop.f32.mrb[2].mxu1 }
 0x274   :  { %v533_v42 = vmul.f32 0.35355338, %v6902_v41  ;;  %v523_v43 = vpop.f32.mrb[3].mxu1 }
 0x275   :  { %v532_v44 = vmul.f32 0.35355338, %v523_v43 }
 0x276   :  { %v535_v45 = vadd.f32 %v533_v42, %v8285_v32 }
 0x277   :  { %v534_v46 = vadd.f32 %v532_v44, %v8288_v35 }
 0x278   :  { %v539_v47 = vsel %vm331_vm3, %v535_v45, -inf }
 0x279   :  { %540 = vmax.xlane.f32.xlu1 %v539_v47  ;;  %v536_v48 = vsel %vm331_vm3, %v534_v46, -inf }
 0x27a   :  { %537 = vmax.xlane.f32.xlu0 %v536_v48 }
 0x27b   :  { %v8298_v49 = vpop.f32.mrb[4].mxu1 }
 0x27c   :  { %v889_v50 = vpop.f32.mrb[5].mxu1  ;;  %v899_v26 = vmul.f32 0.35355338, %v8298_v49 }
 0x27d   :  { %v898_v16 = vmul.f32 0.35355338, %v889_v50 }
 0x27e   :  { %v901_v29 = vadd.f32 %v899_v26, %v8285_v32 }
 0x27f   :  { %v900_v22 = vadd.f32 %v898_v16, %v8288_v35 }
 0x280   :  { %v905_v30 = vsel %vm331_vm3, %v901_v29, -inf }
 0x281   :  { %v902_v25 = vsel %vm331_vm3, %v900_v22, -inf }
 0x28a   :  { %7694 = vrot.lane.b32.xlu1 %v8246_v13, %s8854_s28  ;;  %s8878_s28 = sld [smem:[#allocation12_spill]] }
 0x28e   :  { %7699 = vrot.lane.b32.xlu1 %v8246_v13, %s8050_s1 }
 0x290   :  { %7689 = vrot.lane.b32.xlu0 %v8246_v13, %s8051_s2 }
 0x292   :  { %1096 = vrot.lane.b32.xlu1 %v8236_v10, %s8855_s7 }
 0x294   :  { %1094 = vrot.lane.b32.xlu0 %v8238_v12, %s8855_s7 }
 0x2fe   :  { %v337_v51 = vpop.xlane.xlu0 %336 }
 0x2ff   :  { %v334_v52 = vpop.xlane.xlu1 %333  ;;  %v339_v54 = vsub.f32 %v330_v37, %v337_v51 }
 0x300   :  { %v338_v53 = vsub.f32 %v329_v38, %v334_v52 }
 0x301   :  { %v342_v56 = vmul.f32 1.442695, %v339_v54 }
 0x302   :  { %v340_v55 = vmul.f32 1.442695, %v338_v53 }
 0x304   :  { %7823 = vpow2.f32 %v340_v55 }
 0x305   :  { %7825 = vpow2.f32 %v342_v56 }
 0x306   :  { %v541_v57 = vpop.xlane.xlu1 %540 }
 0x307   :  { %v543_v58 = vsub.f32 %v535_v45, %v541_v57  ;;  %v538_v59 = vpop.xlane.xlu0 %537 }
 0x308   :  { %v542_v60 = vsub.f32 %v534_v46, %v538_v59 }
 0x309   :  { %v546_v61 = vmul.f32 1.442695, %v543_v58 }
 0x30a   :  { %v544_v62 = vmul.f32 1.442695, %v542_v60  ;;  %v7695_v63 = vpop.permute.xlu1 %7694 }
 0x30b   :  { %7827 = vpow2.f32 %v546_v61  ;;  %v7697_v0 = vunpack.i.h.bf16 %v7695_v63  ;;  %v7690_v1 = vpop.permute.xlu0 %7689  ;;  %v7696_v2 = vunpack.i.l.bf16 %v7695_v63 }
 0x30c   :  { %7829 = vpow2.f32 %v544_v62  ;;  %v7692_v3 = vunpack.i.h.bf16 %v7690_v1  ;;  %v7691_v4 = vunpack.i.l.bf16 %v7690_v1 }
 0x30d   :  { %v7354_v14 = vpack.c.bf16 %v7697_v0, %v7696_v2 }
 0x30e   :  { %v7824_v6 = vpop.eup %7823  ;;  %v7700_v8 = vpop.permute.xlu1 %7699  ;;  %v7344_v9 = vpack.c.bf16 %v7692_v3, %v7691_v4  ;;  %v234_v3 = vld [vmem:[%s8104_s8 + $0x10] sm:$0xff] }
 0x30f   :  { %v7702_v10 = vunpack.i.h.bf16 %v7700_v8  ;;  %v7701_v11 = vunpack.i.l.bf16 %v7700_v8  ;;  %v1095_v12 = vpop.permute.xlu0 %1094  ;;  %6893 = vmatprep.mubr.msk.f32.mxu0 %vm331_vm3, %v7824_v6  ;;  %v7826_v18 = vpop.eup %7825  ;;  %v344_v27 = vsel %vm331_vm3, %v7824_v6, 0.0 }
 0x310   :  { %7345 = vmatprep.subr.bf16.mxu0 %v7344_v9  ;;  %6943 = vmatprep.mubr.msk.f32.mxu1 %vm243_vm1, %v1095_v12  ;;  %v347_v28 = vsel %vm331_vm3, %v7826_v18, 0.0 }
 0x311   :  { %v7368_v15 = vpack.c.bf16 %v7702_v10, %v7701_v11  ;;  %7347 = vmatpush3.bf16.msra.mxu0 %v7344_v9 }
 0x312   :  { %7355 = vmatprep.subr.bf16.mxu0 %v7354_v14  ;;  %v1097_v24 = vpop.permute.xlu1 %1096 }
 0x313   :  { %7370 = vmatprep.subr.msk.bf16.mxu1 %vm8262_vm2, %v7368_v15 }
 0x314   :  { %6894 = vmatmul.mubr.msk.f32.vlgmr.msra.gmra.mrb[2].mxu0 %vm331_vm3, %v7826_v18  ;;  %7373 = vmatpush3.bf16.xpose.msk.msra.mxu1 %vm8262_vm2, %v7368_v15 }
 0x315   :  { %v7828_v19 = vpop.eup %7827  ;;  %7357 = vmatpush3.bf16.msra.mxu0 %v7354_v14 }
 0x316   :  { %v7830_v20 = vpop.eup %7829  ;;  %v551_v21 = vsel %vm331_vm3, %v7828_v19, 0.0  ;;  %6910 = vmatprep.subr.mxu0 %v233_v31 }
 0x317   :  { %6907 = vmatprep.mubr.msk.f32.mxu0 %vm331_vm3, %v7830_v20  ;;  %552 = vadd.xlane.f32.xlu1 %v551_v21  ;;  %v548_v23 = vsel %vm331_vm3, %v7830_v20, 0.0 }
 0x318   :  { %549 = vadd.xlane.f32.xlu0 %v548_v23  ;;  %6908 = vmatmul.mubr.msk.f32.vlgmr.msra.gmra.mrb[4].mxu0 %vm331_vm3, %v7828_v19 }
 0x319   :  { %6911 = vmatpush3.msra.mxu0 %v233_v31 }
 0x31a   :  { %6915 = vmatprep.subr.mxu0 %v232_v33 }
 0x31b   :  { %903 = vmax.xlane.f32.xlu1 %v902_v25  ;;  %6944 = vmatmul.mubr.msk.f32.vlgmr.msra.gmra.mrb[6].mxu1 %vm243_vm1, %v1097_v24 }
 0x31c   :  { %345 = vadd.xlane.f32.xlu0 %v344_v27 }
 0x320   :  { %348 = vadd.xlane.f32.xlu0 %v347_v28 }
 0x324   :  { %906 = vmax.xlane.f32.xlu0 %v905_v30 }
 0x32c   :  { %7704 = vrot.lane.b32.xlu1 %v8246_v13, %s8853_s10  ;;  %s8877_s10 = sld [smem:[#allocation10_spill]] }
 0x330   :  { %7709 = vrot.lane.b32.xlu1 %v8246_v13, %s8852_s11  ;;  %s8876_s11 = sld [smem:[#allocation11_spill]] }
 0x3a4   :  { %v553_v38 = vpop.xlane.xlu1 %552 }
 0x3a5   :  { %v550_v34 = vpop.xlane.xlu0 %549 }
 0x3a6   :  { %7831 = vrcp.f32 %v550_v34  ;;  %v235_v34 = vld [vmem:[%s8104_s8 + $0x18] sm:$0xff] }
 0x3a7   :  { %7833 = vrcp.f32 %v553_v38 }
 0x3a8   :  { %v904_v40 = vpop.xlane.xlu1 %903 }
 0x3a9   :  { %v346_v36 = vpop.xlane.xlu0 %345  ;;  %v908_v42 = vsub.f32 %v900_v22, %v904_v40 }
 0x3aa   :  { %7835 = vrcp.f32 %v346_v36 }
 0x3ab   :  { %v910_v46 = vmul.f32 1.442695, %v908_v42 }
 0x3ac   :  { %v7705_v13 = vpop.permute.xlu1 %7704 }
 0x3ad   :  { %v349_v37 = vpop.xlane.xlu0 %348  ;;  %v7707_v49 = vunpack.i.h.bf16 %v7705_v13  ;;  %v7706_v50 = vunpack.i.l.bf16 %v7705_v13 }
 0x3ae   :  { %7837 = vrcp.f32 %v349_v37 }
 0x3af   :  { %v7364_v60 = vpack.c.bf16 %v7707_v49, %v7706_v50 }
 0x3b0   :  { %v7832_v48 = vpop.eup %7831  ;;  %v7710_v1 = vpop.permute.xlu1 %7709 }
 0x3b1   :  { %v907_v39 = vpop.xlane.xlu0 %906  ;;  %v7834_v52 = vpop.eup %7833  ;;  %v7712_v4 = vunpack.i.h.bf16 %v7710_v1  ;;  %v7711_v6 = vunpack.i.l.bf16 %v7710_v1  ;;  %v133_v1 = vld [vmem:[%s8069_s9] sm:$0xff] }
 0x3b2   :  { %v909_v41 = vsub.f32 %v901_v29, %v907_v39 }
 0x3b3   :  { %v7374_v11 = vpack.c.bf16 %v7712_v4, %v7711_v6  ;;  %v1432_v4 = vld [vmem:[%s8119_s24] sm:$0xff]  ;;  %v1433_v6 = vld [vmem:[%s8119_s24 + $0x8] sm:$0xff] }
 0x3b4   :  { %v912_v43 = vmul.f32 1.442695, %v909_v41  ;;  %v7836_v54 = vpop.eup %7835 }
 0x3b6   :  { %7839 = vpow2.f32 %v912_v43 }
 0x3b7   :  { %7841 = vpow2.f32 %v910_v46 }
 0x3b8   :  { %v7838_v62 = vpop.eup %7837 }
 0x3c0   :  { %v7840_v0 = vpop.eup %7839 }
 0x3c1   :  { %v917_v9 = vsel %vm331_vm3, %v7840_v0, 0.0  ;;  %v7842_v10 = vpop.eup %7841 }
 0x3e7   :  { %v6895_v44 = vpop.f32.mrb[2].mxu0 }
 0x3e8   :  { %v428_v45 = vpop.f32.mrb[3].mxu0  ;;  %v440_v2 = vmul.f32 %v7838_v62, %v6895_v44  ;;  %v6425_v44 = vld [vmem:[%s8109_s14] ss:$0 sm:$0xff] }
 0x3e9   :  { %v439_v57 = vmul.f32 %v7836_v54, %v428_v45 }
 0x3eb   :  { %v6909_v47 = vpop.f32.mrb[4].mxu0 }
 0x3ec   :  { %v632_v51 = vpop.f32.mrb[5].mxu0  ;;  %v644_v55 = vmul.f32 %v7834_v52, %v6909_v47 }
 0x3ed   :  { %v643_v53 = vmul.f32 %v7832_v48, %v632_v51 }
 0x3ee   :  { %v6945_v56 = vpop.f32.mrb[6].mxu1 }
 0x3ef   :  { %6912 = vmatprep.mubr.msk.f32.mxu0 %vm243_vm1, %v643_v53  ;;  %v1176_v58 = vpop.f32.mrb[7].mxu1  ;;  %v1186_v8 = vmul.f32 0.35355338, %v6945_v56 }
 0x3f0   :  { %v1185_v59 = vmul.f32 0.35355338, %v1176_v58  ;;  %6913 = vmatmul.mubr.msk.f32.vlgmr.msra.gmra.mrb[6].mxu0 %vm243_vm1, %v644_v55 }
 0x3f1   :  { %6916 = vmatpush3.msra.mxu0 %v232_v33  ;;  %6917 = vmatprep.mubr.msk.f32.mxu0 %vm243_vm1, %v439_v57  ;;  %v1188_v12 = vadd.f32 %v1186_v8, %v8285_v32  ;;  %v7378_v8 = vpack.c.bf16 %v1433_v6, %v1432_v4 }
 0x3f2   :  { %7365 = vmatprep.subr.bf16.mxu0 %v7364_v60  ;;  %v1187_v61 = vadd.f32 %v1185_v59, %v8288_v35  ;;  %v914_v35 = vsel %vm331_vm3, %v7842_v10, 0.0 }
 0x3f3   :  { %v1192_v14 = vsel %vm331_vm3, %v1188_v12, -inf  ;;  %7379 = vmatprep.subr.bf16.mxu1 %v7378_v8 }
 0x3f4   :  { %v1189_v63 = vsel %vm331_vm3, %v1187_v61, -inf  ;;  %7381 = vmatpush3.bf16.msra.mxu1 %v7378_v8 }
 0x3f5   :  { %1190 = vmax.xlane.f32.xlu0 %v1189_v63  ;;  %v1526_v63 = vld [vmem:[%s8129_s6 + $0x10] sm:$0xff] }
 0x3f8   :  { %6918 = vmatmul.mubr.msk.f32.vlgmr.msra.gmra.mrb[6].mxu0 %vm243_vm1, %v440_v2  ;;  %v6426_v2 = vld [vmem:[%s8114_s19] ss:$0 sm:$0xff] }
 0x3f9   :  { %7367 = vmatpush3.bf16.msra.mxu0 %v7364_v60  ;;  %918 = vadd.xlane.f32.xlu0 %v917_v9  ;;  %v1524_v60 = vld [vmem:[%s8129_s6] sm:$0xff]  ;;  %v134_v9 = vld [vmem:[%s8069_s9 + $0x8] sm:$0xff] }
 0x3fa   :  { %6931 = vmatprep.mubr.msk.f32.mxu0 %vm331_vm3, %v7842_v10  ;;  %6934 = vmatprep.subr.mxu0 %v234_v3  ;;  %v1434_v10 = vld [vmem:[%s8119_s24 + $0x10] sm:$0xff] }
 0x3fc   :  { %6932 = vmatmul.mubr.msk.f32.vlgmr.msra.gmra.mrb[8].mxu0 %vm331_vm3, %v7840_v0  ;;  %v1527_v0 = vld [vmem:[%s8129_s6 + $0x18] sm:$0xff] }
 0x3fd   :  { %6935 = vmatpush3.msra.mxu0 %v234_v3  ;;  %915 = vadd.xlane.f32.xlu0 %v914_v35  ;;  %v7390_v3 = vpack.c.bf16 %v1527_v0, %v1526_v63  ;;  %v1435_v35 = vld [vmem:[%s8119_s24 + $0x18] sm:$0xff] }
 0x3fe   :  { %7375 = vmatprep.subr.bf16.mxu0 %v7374_v11 }
 0x401   :  { %1193 = vmax.xlane.f32.xlu0 %v1192_v14 }
 0x482   :  { %v1191_v15 = vpop.xlane.xlu0 %1190 }
 0x483   :  { %v1195_v16 = vsub.f32 %v1187_v61, %v1191_v15  ;;  %v1525_v61 = vld [vmem:[%s8129_s6 + $0x8] sm:$0xff] }
 0x484   :  { %v7386_v62 = vpack.c.bf16 %v1525_v61, %v1524_v60 }
 0x485   :  { %v1197_v18 = vmul.f32 1.442695, %v1195_v16 }
 0x486   :  { %v919_v19 = vpop.xlane.xlu0 %918 }
 0x487   :  { %7843 = vpow2.f32 %v1197_v18 }
 0x48a   :  { %v916_v20 = vpop.xlane.xlu0 %915 }
 0x48e   :  { %v1194_v21 = vpop.xlane.xlu0 %1193 }
 0x48f   :  { %v1196_v22 = vsub.f32 %v1188_v12, %v1194_v21 }
 0x491   :  { %v7844_v23 = vpop.eup %7843  ;;  %v1199_v24 = vmul.f32 1.442695, %v1196_v22 }
 0x492   :  { %v1201_v25 = vsel %vm331_vm3, %v7844_v23, 0.0 }
 0x493   :  { %7845 = vpow2.f32 %v1199_v24  ;;  %1202 = vadd.xlane.f32.xlu0 %v1201_v25 }
 0x494   :  { %7847 = vrcp.f32 %v916_v20 }
 0x495   :  { %7849 = vrcp.f32 %v919_v19 }
 0x49d   :  { %v7846_v32 = vpop.eup %7845 }
 0x49e   :  { %v1204_v26 = vsel %vm331_vm3, %v7846_v32, 0.0  ;;  %v7848_v28 = vpop.eup %7847 }
 0x49f   :  { %1205 = vadd.xlane.f32.xlu1 %v1204_v26  ;;  %v7850_v30 = vpop.eup %7849 }
 0x4cf   :  { %v6933_v27 = vpop.f32.mrb[8].mxu0 }
 0x4d0   :  { %v998_v29 = vpop.f32.mrb[9].mxu0  ;;  %v1010_v33 = vmul.f32 %v7850_v30, %v6933_v27 }
 0x4d1   :  { %v1009_v31 = vmul.f32 %v7848_v28, %v998_v29  ;;  %v6430_v28 = vld [vmem:[%s8134_s12] ss:$0 sm:$0xff] }
 0x4d3   :  { %6936 = vmatprep.mubr.msk.f32.mxu0 %vm243_vm1, %v1009_v31 }
 0x4d4   :  { %6937 = vmatmul.mubr.msk.f32.vlgmr.msra.gmra.mrb[6].mxu0 %vm243_vm1, %v1010_v33 }
 0x4d5   :  { %7377 = vmatpush3.bf16.msra.mxu0 %v7374_v11  ;;  %6950 = vmatprep.mubr.msk.f32.mxu0 %vm331_vm3, %v7844_v23  ;;  %v7382_v11 = vpack.c.bf16 %v1435_v35, %v1434_v10 }
 0x4d6   :  { %6953 = vmatprep.subr.mxu0 %v235_v34 }
 0x4d7   :  { %7383 = vmatprep.subr.bf16.mxu1 %v7382_v11 }
 0x4d8   :  { %6951 = vmatmul.mubr.msk.f32.vlgmr.msra.gmra.mrb[10].mxu0 %vm331_vm3, %v7846_v32  ;;  %7385 = vmatpush3.bf16.msra.mxu1 %v7382_v11 }
 0x4d9   :  { %6954 = vmatpush3.msra.mxu0 %v235_v34 }
 0x4da   :  { %7387 = vmatprep.subr.bf16.mxu0 %v7386_v62 }
 0x520   :  { %v1203_v36 = vpop.xlane.xlu0 %1202 }
 0x521   :  { %7851 = vrcp.f32 %v1203_v36 }
 0x52b   :  { %v7852_v39 = vpop.eup %7851 }
 0x52c   :  { %v1206_v37 = vpop.xlane.xlu1 %1205 }
 0x52d   :  { %7853 = vrcp.f32 %v1206_v37 }
 0x537   :  { %v7854_v41 = vpop.eup %7853 }
 0x5ab   :  { %v6952_v38 = vpop.f32.mrb[10].mxu0 }
 0x5ac   :  { %v1285_v40 = vpop.f32.mrb[11].mxu0  ;;  %v1297_v43 = vmul.f32 %v7854_v41, %v6952_v38  ;;  %v6427_v41 = vld [vmem:[%s8124_s30] ss:$0 sm:$0xff] }
 0x5ad   :  { %v1296_v42 = vmul.f32 %v7852_v39, %v1285_v40 }
 0x5af   :  { %6955 = vmatprep.mubr.msk.f32.mxu0 %vm243_vm1, %v1296_v42 }
 0x5b0   :  { %6956 = vmatmul.mubr.msk.f32.vlgmr.msra.gmra.mrb[6].mxu0 %vm243_vm1, %v1297_v43 }
 0x5b1   :  { %7389 = vmatpush3.bf16.msra.mxu0 %v7386_v62  ;;  %6977 = vmatprep.mubr.msk.f32.mxu0 %vm150_vm0, %v133_v1 }
 0x5b2   :  { %7391 = vmatprep.subr.bf16.mxu0 %v7390_v3 }
 0x5b5   :  { %7393 = vmatpush3.bf16.msra.mxu0 %v7390_v3 }
 0x5b8   :  { %6978 = vmatmul.mubr.msk.f32.vlgmr.msra.gmra.mrb[12].mxu0 %vm150_vm0, %v134_v9 }
 0x683   :  { %v6957_v45 = vpop.f32.mrb[6].mxu0 }
 0x684   :  { %v1370_v13 = vpop.f32.mrb[7].mxu0  ;;  %v1388_v46 = vadd.f32 %v6957_v45, %v6425_v44 }
 0x685   :  { %v1387_v47 = vadd.f32 %v6425_v44, %v1370_v13 }
 0x686   :  { %v1390_v50 = vadd.f32 %v1388_v46, %v8231_v7 }
 0x687   :  { %v1389_v48 = vadd.f32 %v1387_v47, %v8226_v5 }
 0x688   :  { %v1395_v51 = vsel %vm150_vm0, %v1390_v50, 0.0 }
 0x689   :  { %v1392_v49 = vsel %vm150_vm0, %v1389_v48, 0.0 }
 0x68a   :  { %1393 = vadd.xlane.f32.xlu0 %v1392_v49 }
 0x68b   :  { %v6979_v29 = vpop.f32.mrb[12].mxu0 }
 0x68c   :  { %v1613_v30 = vadd.f32 %v6979_v29, %v6430_v28  ;;  %v1607_v31 = vpop.f32.mrb[13].mxu0 }
 0x68d   :  { %v1608_v33 = vadd.f32 %v6430_v28, %v1607_v31 }
 0x68e   :  { %1396 = vadd.xlane.f32.xlu0 %v1395_v51 }
 0x68f   :  { %v8387_v34 = vpack.i.bf16 %v1613_v30, %v1608_v33  ;;  %v7394_v36 = vpack.c.bf16 %v1613_v30, %v1608_v33 }
 0x691   :  { %7714 = vrot.lane.b32.xlu1 %v8387_v34, %s8044_s0  ;;  %7396 = vmatprep.subr.msk.bf16.mxu1 %vm8262_vm2, %v7394_v36 }
 0x703   :  { %v7715_v37 = vpop.permute.xlu1 %7714 }
 0x704   :  { %v7717_v38 = vunpack.i.h.bf16 %v7715_v37  ;;  %v7716_v39 = vunpack.i.l.bf16 %v7715_v37 }
 0x706   :  { %v7404_v40 = vpack.c.bf16 %v7717_v38, %v7716_v39 }
 0x717   :  { %v1394_v52 = vpop.xlane.xlu0 %1393 }
 0x718   :  { %v1399_v53 = vmul.f32 0.03125, %v1394_v52 }
 0x71a   :  { %v1401_v54 = vsub.f32 %v1389_v48, %v1399_v53 }
 0x71b   :  { %v1397_v55 = vpop.xlane.xlu0 %1396 }
 0x71c   :  { %v1400_v56 = vmul.f32 0.03125, %v1397_v55  ;;  %v1403_v5 = vmul.f32 %v1401_v54, %v1401_v54 }
 0x71e   :  { %v1402_v57 = vsub.f32 %v1390_v50, %v1400_v56  ;;  %v1405_v58 = vsel %vm150_vm0, %v1403_v5, 0.0  ;;  %v8425_v5 = vld [vmem:[%s8079_s17] sm:$0xff] }
 0x71f   :  { %1406 = vadd.xlane.f32.xlu0 %v1405_v58 }
 0x720   :  { %v1404_v7 = vmul.f32 %v1402_v57, %v1402_v57 }
 0x722   :  { %v1408_v59 = vsel %vm150_vm0, %v1404_v7, 0.0 }
 0x723   :  { %1409 = vadd.xlane.f32.xlu0 %v1408_v59 }
 0x739   :  { %1427 = vrot.lane.b32.xlu0 %v6426_v2, %s8045_s5 }
 0x7ac   :  { %v1407_v12 = vpop.xlane.xlu0 %1406 }
 0x7ad   :  { %v1411_v14 = vmul.f32 0.03125, %v1407_v12 }
 0x7af   :  { %v1413_v15 = vadd.f32 1e-05, %v1411_v14 }
 0x7b0   :  { %v1410_v16 = vpop.xlane.xlu0 %1409 }
 0x7b1   :  { %7855 = vrsqrt.f32 %v1413_v15  ;;  %v1412_v18 = vmul.f32 0.03125, %v1410_v16 }
 0x7b3   :  { %v1414_v19 = vadd.f32 1e-05, %v1412_v18 }
 0x7b4   :  { %v1428_v22 = vpop.permute.xlu0 %1427 }
 0x7b5   :  { %7857 = vrsqrt.f32 %v1414_v19 }
 0x7bb   :  { %v7856_v20 = vpop.eup %7855 }
 0x7bc   :  { %v1417_v21 = vmul.f32 %v7856_v20, %v1401_v54  ;;  %v8422_v54 = vld [vmem:[%s8079_s17 + $0x8] sm:$0xff] }
 0x7be   :  { %v1425_v23 = vmul.f32 %v6426_v2, %v1417_v21 }
 0x7bf   :  { %v7858_v24 = vpop.eup %7857 }
 0x7c0   :  { %v1418_v25 = vmul.f32 %v7858_v24, %v1402_v57  ;;  %v8378_v32 = vadd.f32 %v1428_v22, %v1425_v23 }
 0x7c2   :  { %v1426_v26 = vmul.f32 %v6426_v2, %v1418_v25  ;;  %6966 = vmatprep.mubr.msk.f32.mxu1 %vm150_vm0, %v8378_v32 }
 0x7c4   :  { %v8382_v27 = vadd.f32 %v1428_v22, %v1426_v26 }
 0x7c6   :  { %6967 = vmatmul.mubr.msk.f32.vlgmr.msra.gmra.mrb[8].mxu1 %vm150_vm0, %v8382_v27 }
 0x7c7   :  { %7399 = vmatpush3.bf16.xpose.msk.msra.mxu1 %vm8262_vm2, %v7394_v36 }
 0x7c8   :  { %7406 = vmatprep.subr.msk.bf16.mxu1 %vm8262_vm2, %v7404_v40 }
 0x899   :  { %v6968_v42 = vpop.f32.mrb[8].mxu1 }
 0x89a   :  { %v8398_v43 = vadd.f32 %v6968_v42, %v6427_v41  ;;  %v1515_v44 = vpop.f32.mrb[9].mxu1 }
 0x89b   :  { %v1516_v45 = vadd.f32 %v6427_v41, %v1515_v44 }
 0x89c   :  { %2189 = vrot.lane.b32.xlu1 %v8398_v43, %s8047_s23 }
 0x89d   :  { %1821 = vrot.lane.b32.xlu0 %v1516_v45, %s8044_s0  ;;  %6984 = vmatprep.mubr.msk.f32.mxu1 %vm243_vm1, %v1516_v45 }
 0x89e   :  { %6985 = vmatmul.mubr.msk.f32.vlgmr.msra.gmra.mrb[10].mxu1 %vm243_vm1, %v8398_v43 }
 0x89f   :  { %7409 = vmatpush3.bf16.xpose.msk.msra.mxu1 %vm8262_vm2, %v7404_v40 }
 0x8a1   :  { %1823 = vrot.lane.b32.xlu0 %v8398_v43, %s8044_s0 }
 0x8a5   :  { %7719 = vrot.lane.b32.xlu0 %v8387_v34, %s8047_s23 }
 0x8a9   :  { %2187 = vrot.lane.b32.xlu0 %v1516_v45, %s8047_s23 }
 0x90e   :  { %v2190_v52 = vpop.permute.xlu1 %2189 }
 0x90f   :  { %v1822_v13 = vpop.permute.xlu0 %1821 }
 0x910   :  { %6998 = vmatprep.mubr.msk.f32.mxu1 %vm243_vm1, %v1822_v13 }
 0x913   :  { %v1824_v46 = vpop.permute.xlu0 %1823 }
 0x914   :  { %6999 = vmatmul.mubr.msk.f32.vlgmr.msra.gmra.mrb[12].mxu1 %vm243_vm1, %v1824_v46 }
 0x917   :  { %v7720_v47 = vpop.permute.xlu0 %7719 }
 0x918   :  { %v7722_v48 = vunpack.i.h.bf16 %v7720_v47  ;;  %v7721_v49 = vunpack.i.l.bf16 %v7720_v47 }
 0x91a   :  { %v7414_v50 = vpack.c.bf16 %v7722_v48, %v7721_v49 }
 0x91b   :  { %v2188_v51 = vpop.permute.xlu0 %2187 }
 0x91c   :  { %7416 = vmatprep.subr.msk.bf16.mxu1 %vm8262_vm2, %v7414_v50  ;;  %7022 = vmatprep.mubr.msk.f32.mxu1 %vm243_vm1, %v2188_v51 }
 0x91d   :  { %7419 = vmatpush3.bf16.xpose.msk.msra.mxu1 %vm8262_vm2, %v7414_v50 }
 0x924   :  { %7023 = vmatmul.mubr.msk.f32.vlgmr.msra.gmra.mrb[14].mxu1 %vm243_vm1, %v2190_v52 }
 0x971   :  { %v6986_v53 = vpop.f32.mrb[10].mxu1 }
 0x972   :  { %v1709_v55 = vmul.f32 0.35355338, %v6986_v53  ;;  %v1699_v56 = vpop.f32.mrb[11].mxu1  ;;  %v1617_v53 = vld [vmem:[%s8139_s20 + $0x8] sm:$0xff] }
 0x973   :  { %v1708_v57 = vmul.f32 0.35355338, %v1699_v56 }
 0x974   :  { %v1711_v58 = vadd.f32 %v1709_v55, %v8422_v54  ;;  %v1616_v55 = vld [vmem:[%s8139_s20] sm:$0xff] }
 0x975   :  { %v1710_v7 = vadd.f32 %v1708_v57, %v8425_v5 }
 0x976   :  { %v1715_v59 = vsel %vm331_vm3, %v1711_v58, -inf }
 0x977   :  { %1716 = vmax.xlane.f32.xlu1 %v1715_v59  ;;  %v1712_v60 = vsel %vm331_vm3, %v1710_v7, -inf }
 0x978   :  { %1713 = vmax.xlane.f32.xlu0 %v1712_v60 }
 0x988   :  { %7724 = vrot.lane.b32.xlu1 %v8387_v34, %s8045_s5 }
 0x98c   :  { %7734 = vrot.lane.b32.xlu1 %v8387_v34, %s8855_s7 }
 0x990   :  { %2474 = vrot.lane.b32.xlu1 %v1516_v45, %s8855_s7 }
 0x9e7   :  { %v7000_v61 = vpop.f32.mrb[12].mxu1 }
 0x9e8   :  { %v1913_v62 = vmul.f32 0.35355338, %v7000_v61  ;;  %v1903_v63 = vpop.f32.mrb[13].mxu1 }
 0x9e9   :  { %v1912_v0 = vmul.f32 0.35355338, %v1903_v63 }
 0x9ea   :  { %v1915_v1 = vadd.f32 %v1913_v62, %v8422_v54 }
 0x9eb   :  { %v1914_v3 = vadd.f32 %v1912_v0, %v8425_v5 }
 0x9ec   :  { %v1919_v2 = vsel %vm331_vm3, %v1915_v1, -inf }
 0x9ed   :  { %1920 = vmax.xlane.f32.xlu0 %v1919_v2  ;;  %v1916_v4 = vsel %vm331_vm3, %v1914_v3, -inf }
 0x9f1   :  { %1917 = vmax.xlane.f32.xlu0 %v1916_v4 }
 0x9f7   :  { %v7024_v6 = vpop.f32.mrb[14].mxu1 }
 0x9f8   :  { %v2269_v8 = vpop.f32.mrb[15].mxu1  ;;  %v2279_v13 = vmul.f32 0.35355338, %v7024_v6 }
 0x9fa   :  { %v2281_v51 = vadd.f32 %v2279_v13, %v8422_v54 }
 0x9fc   :  { %v2285_v52 = vsel %vm331_vm3, %v2281_v51, -inf }
 0xa04   :  { %v1717_v9 = vpop.xlane.xlu1 %1716 }
 0xa05   :  { %v1719_v10 = vsub.f32 %v1711_v58, %v1717_v9  ;;  %v1714_v35 = vpop.xlane.xlu0 %1713 }
 0xa06   :  { %v1718_v11 = vsub.f32 %v1710_v7, %v1714_v35 }
 0xa07   :  { %v1722_v12 = vmul.f32 1.442695, %v1719_v10  ;;  %7729 = vrot.lane.b32.xlu0 %v8387_v34, %s8046_s22 }
 0xa08   :  { %v1720_v14 = vmul.f32 1.442695, %v1718_v11  ;;  %v7725_v15 = vpop.permute.xlu1 %7724 }
 0xa09   :  { %v7727_v16 = vunpack.i.h.bf16 %v7725_v15  ;;  %v7726_v18 = vunpack.i.l.bf16 %v7725_v15 }
 0xa0a   :  { %7859 = vpow2.f32 %v1720_v14 }
 0xa0b   :  { %7861 = vpow2.f32 %v1722_v12  ;;  %2476 = vrot.lane.b32.xlu0 %v8398_v43, %s8855_s7  ;;  %v7400_v19 = vpack.c.bf16 %v7727_v16, %v7726_v18  ;;  %v2278_v43 = vmul.f32 0.35355338, %v2269_v8  ;;  %s8879_s7 = sld [smem:[#allocation13_spill]] }
 0xa0c   :  { %v7735_v20 = vpop.permute.xlu1 %7734 }
 0xa0d   :  { %v7737_v21 = vunpack.i.h.bf16 %v7735_v20  ;;  %v7736_v22 = vunpack.i.l.bf16 %v7735_v20  ;;  %7401 = vmatprep.subr.bf16.mxu0 %v7400_v19  ;;  %v2280_v48 = vadd.f32 %v2278_v43, %v8425_v5 }
 0xa0e   :  { %7403 = vmatpush3.bf16.msra.mxu0 %v7400_v19 }
 0xa0f   :  { %v7424_v23 = vpack.c.bf16 %v7737_v21, %v7736_v22  ;;  %v2282_v49 = vsel %vm331_vm3, %v2280_v48, -inf }
 0xa10   :  { %v2475_v24 = vpop.permute.xlu1 %2474 }
 0xa11   :  { %7426 = vmatprep.subr.msk.bf16.mxu1 %vm8262_vm2, %v7424_v23  ;;  %7041 = vmatprep.mubr.msk.f32.mxu1 %vm243_vm1, %v2475_v24 }
 0xa12   :  { %7429 = vmatpush3.bf16.xpose.msk.msra.mxu1 %vm8262_vm2, %v7424_v23 }
 0xa14   :  { %v7860_v25 = vpop.eup %7859 }
 0xa15   :  { %v7862_v26 = vpop.eup %7861  ;;  %6991 = vmatprep.mubr.msk.f32.mxu0 %vm331_vm3, %v7860_v25  ;;  %v1724_v46 = vsel %vm331_vm3, %v7860_v25, 0.0 }
 0xa16   :  { %6992 = vmatmul.mubr.msk.f32.vlgmr.msra.gmra.mrb[14].mxu0 %vm331_vm3, %v7862_v26  ;;  %v1727_v50 = vsel %vm331_vm3, %v7862_v26, 0.0 }
 0xa7a   :  { %v1921_v28 = vpop.xlane.xlu0 %1920 }
 0xa7b   :  { %v1923_v29 = vsub.f32 %v1915_v1, %v1921_v28 }
 0xa7d   :  { %v1926_v30 = vmul.f32 1.442695, %v1923_v29 }
 0xa7e   :  { %v1918_v31 = vpop.xlane.xlu0 %1917 }
 0xa7f   :  { %7863 = vpow2.f32 %v1926_v30  ;;  %v1922_v33 = vsub.f32 %v1914_v3, %v1918_v31  ;;  %v1618_v31 = vld [vmem:[%s8139_s20 + $0x10] sm:$0xff] }
 0xa81   :  { %v1924_v36 = vmul.f32 1.442695, %v1922_v33 }
 0xa82   :  { %v7730_v37 = vpop.permute.xlu0 %7729 }
 0xa83   :  { %7865 = vpow2.f32 %v1924_v36  ;;  %v7732_v38 = vunpack.i.h.bf16 %v7730_v37  ;;  %v7731_v39 = vunpack.i.l.bf16 %v7730_v37 }
 0xa85   :  { %v7410_v40 = vpack.c.bf16 %v7732_v38, %v7731_v39 }
 0xa86   :  { %v2477_v41 = vpop.permute.xlu0 %2476 }
 0xa87   :  { %7411 = vmatprep.subr.bf16.mxu0 %v7410_v40  ;;  %7042 = vmatmul.mubr.msk.f32.vlgmr.msra.gmra.mrb[16].mxu1 %vm243_vm1, %v2477_v41 }
 0xa88   :  { %7413 = vmatpush3.bf16.msra.mxu0 %v7410_v40 }
 0xa89   :  { %v7864_v42 = vpop.eup %7863  ;;  %7008 = vmatprep.subr.mxu0 %v1617_v53 }
 0xa8a   :  { %v1931_v44 = vsel %vm331_vm3, %v7864_v42, 0.0 }
 0xa8b   :  { %1932 = vadd.xlane.f32.xlu0 %v1931_v44 }
 0xa8d   :  { %v7866_v45 = vpop.eup %7865 }
 0xa8e   :  { %7005 = vmatprep.mubr.msk.f32.mxu0 %vm331_vm3, %v7866_v45  ;;  %v1928_v47 = vsel %vm331_vm3, %v7866_v45, 0.0 }
 0xa8f   :  { %1725 = vadd.xlane.f32.xlu0 %v1724_v46  ;;  %1929 = vadd.xlane.f32.xlu1 %v1928_v47 }
 0xa90   :  { %7006 = vmatmul.mubr.msk.f32.vlgmr.msra.gmra.mrb[16].mxu0 %vm331_vm3, %v7864_v42 }
 0xa91   :  { %7009 = vmatpush3.msra.mxu0 %v1617_v53 }
 0xa92   :  { %7013 = vmatprep.subr.mxu0 %v1616_v55 }
 0xa93   :  { %2283 = vmax.xlane.f32.xlu0 %v2282_v49  ;;  %1728 = vadd.xlane.f32.xlu1 %v1727_v50 }
 0xa97   :  { %2286 = vmax.xlane.f32.xlu1 %v2285_v52 }
 0xaa9   :  { %7739 = vrot.lane.b32.xlu0 %v8387_v34, %s8048_s26 }
 0xae9   :  { %v6993_v56 = vpop.f32.mrb[14].mxu0 }
 0xaea   :  { %v1808_v57 = vpop.f32.mrb[15].mxu0 }
 0xb18   :  { %v1933_v7 = vpop.xlane.xlu0 %1932 }
 0xb1c   :  { %v1930_v58 = vpop.xlane.xlu1 %1929  ;;  %v1726_v60 = vpop.xlane.xlu0 %1725 }
 0xb1d   :  { %7867 = vrcp.f32 %v1930_v58 }
 0xb1e   :  { %7869 = vrcp.f32 %v1726_v60 }
 0xb1f   :  { %7871 = vrcp.f32 %v1933_v7 }
 0xb20   :  { %v1729_v59 = vpop.xlane.xlu1 %1728  ;;  %v2284_v63 = vpop.xlane.xlu0 %2283 }
 0xb21   :  { %v2288_v0 = vsub.f32 %v2280_v48, %v2284_v63 }
 0xb23   :  { %v2290_v4 = vmul.f32 1.442695, %v2288_v0  ;;  %v6465_v0 = vld [vmem:[%s8873_s15] ss:$0 sm:$0xff] }
 0xb24   :  { %v2287_v61 = vpop.xlane.xlu1 %2286  ;;  %v7740_v11 = vpop.permute.xlu0 %7739 }
 0xb25   :  { %v2289_v62 = vsub.f32 %v2281_v51, %v2287_v61  ;;  %v7742_v16 = vunpack.i.h.bf16 %v7740_v11  ;;  %v7741_v18 = vunpack.i.l.bf16 %v7740_v11 }
 0xb27   :  { %v2292_v1 = vmul.f32 1.442695, %v2289_v62  ;;  %v7868_v12 = vpop.eup %7867 }
 0xb28   :  { %v7870_v15 = vpop.eup %7869 }
 0xb29   :  { %7873 = vpow2.f32 %v2292_v1  ;;  %v7872_v21 = vpop.eup %7871  ;;  %v1819_v24 = vmul.f32 %v7870_v15, %v1808_v57 }
 0xb2a   :  { %7875 = vpow2.f32 %v2290_v4 }
 0xb2b   :  { %7877 = vrcp.f32 %v1729_v59 }
 0xb5a   :  { %v7043_v2 = vpop.f32.mrb[16].mxu1 }
 0xb5b   :  { %v2556_v3 = vpop.f32.mrb[17].mxu1  ;;  %v2566_v6 = vmul.f32 0.35355338, %v7043_v2 }
 0xb5c   :  { %v2565_v8 = vmul.f32 0.35355338, %v2556_v3 }
 0xb5d   :  { %v2568_v35 = vadd.f32 %v2566_v6, %v8422_v54  ;;  %v7420_v54 = vpack.c.bf16 %v7742_v16, %v7741_v18 }
 0xb5e   :  { %v2567_v9 = vadd.f32 %v2565_v8, %v8425_v5  ;;  %v7874_v5 = vpop.eup %7873 }
 0xb5f   :  { %v2572_v20 = vsel %vm331_vm3, %v2568_v35, -inf  ;;  %v2297_v25 = vsel %vm331_vm3, %v7874_v5, 0.0  ;;  %v7876_v26 = vpop.eup %7875 }
 0xb60   :  { %v2569_v10 = vsel %vm331_vm3, %v2567_v9, -inf  ;;  %v7878_v28 = vpop.eup %7877  ;;  %v2294_v29 = vsel %vm331_vm3, %v7876_v26, 0.0 }
 0xb61   :  { %2570 = vmax.xlane.f32.xlu1 %v2569_v10  ;;  %v1820_v30 = vmul.f32 %v7878_v28, %v6993_v56  ;;  %v1619_v56 = vld [vmem:[%s8139_s20 + $0x18] sm:$0xff]  ;;  %v2818_v28 = vld [vmem:[%s8876_s11 + $0x10] sm:$0xff] }
 0xb63   :  { %v7007_v14 = vpop.f32.mrb[16].mxu0 }
 0xb64   :  { %v2012_v19 = vpop.f32.mrb[17].mxu0  ;;  %v2024_v23 = vmul.f32 %v7872_v21, %v7007_v14  ;;  %v2812_v21 = vld [vmem:[%s8874_s16 + $0x8] sm:$0xff] }
 0xb65   :  { %v2023_v22 = vmul.f32 %v7868_v12, %v2012_v19  ;;  %2573 = vmax.xlane.f32.xlu1 %v2572_v20  ;;  %v2811_v20 = vld [vmem:[%s8874_s16] sm:$0xff] }
 0xb67   :  { %7010 = vmatprep.mubr.msk.f32.mxu0 %vm243_vm1, %v2023_v22  ;;  %v6466_v22 = vld [vmem:[%s8875_s18] ss:$0 sm:$0xff] }
 0xb68   :  { %7011 = vmatmul.mubr.msk.f32.vlgmr.msra.gmra.mrb[18].mxu0 %vm243_vm1, %v2024_v23  ;;  %v2813_v23 = vld [vmem:[%s8874_s16 + $0x10] sm:$0xff] }
 0xb69   :  { %7014 = vmatpush3.msra.mxu0 %v1616_v55  ;;  %7015 = vmatprep.mubr.msk.f32.mxu0 %vm243_vm1, %v1819_v24  ;;  %v2814_v24 = vld [vmem:[%s8874_s16 + $0x18] sm:$0xff] }
 0xb6a   :  { %7421 = vmatprep.subr.bf16.mxu0 %v7420_v54  ;;  %2298 = vadd.xlane.f32.xlu1 %v2297_v25  ;;  %v2816_v25 = vld [vmem:[%s8876_s11] sm:$0xff] }
 0xb6e   :  { %2295 = vadd.xlane.f32.xlu1 %v2294_v29 }
 0xb70   :  { %7016 = vmatmul.mubr.msk.f32.vlgmr.msra.gmra.mrb[18].mxu0 %vm243_vm1, %v1820_v30  ;;  %v2819_v30 = vld [vmem:[%s8876_s11 + $0x18] sm:$0xff] }
 0xb71   :  { %7423 = vmatpush3.bf16.msra.mxu0 %v7420_v54  ;;  %7029 = vmatprep.mubr.msk.f32.mxu0 %vm331_vm3, %v7876_v26  ;;  %v7438_v54 = vpack.c.bf16 %v2814_v24, %v2813_v23  ;;  %v2817_v26 = vld [vmem:[%s8876_s11 + $0x8] sm:$0xff] }
 0xb72   :  { %7032 = vmatprep.subr.mxu0 %v1618_v31  ;;  %v7442_v29 = vpack.c.bf16 %v2817_v26, %v2816_v25 }
 0xb74   :  { %7030 = vmatmul.mubr.msk.f32.vlgmr.msra.gmra.mrb[20].mxu0 %vm331_vm3, %v7874_v5  ;;  %v7434_v5 = vpack.c.bf16 %v2812_v21, %v2811_v20  ;;  %v6476_v21 = vld [vmem:[%s8094_s29 + $0x30] sm:$0xff] }
 0xb75   :  { %7033 = vmatpush3.msra.mxu0 %v1618_v31  ;;  %v7446_v31 = vpack.c.bf16 %v2819_v30, %v2818_v28 }
 0xb76   :  { %7435 = vmatprep.subr.bf16.mxu1 %v7434_v5 }
 0xb77   :  { %7437 = vmatpush3.bf16.msra.mxu1 %v7434_v5 }
 0xb78   :  { %7439 = vmatprep.subr.bf16.mxu1 %v7438_v54 }
 0xb7b   :  { %7441 = vmatpush3.bf16.msra.mxu1 %v7438_v54 }
 0xb7f   :  { %7744 = vrot.lane.b32.xlu1 %v8387_v34, %s8050_s1 }
 0xbee   :  { %v2571_v33 = vpop.xlane.xlu1 %2570 }
 0xbef   :  { %v2575_v36 = vsub.f32 %v2567_v9, %v2571_v33  ;;  %v2820_v33 = vld [vmem:[%s8876_s11 + $0x20] sm:$0xff] }
 0xbf1   :  { %v2577_v37 = vmul.f32 1.442695, %v2575_v36  ;;  %v2821_v36 = vld [vmem:[%s8876_s11 + $0x28] sm:$0xff] }
 0xbf2   :  { %v2574_v38 = vpop.xlane.xlu1 %2573 }
 0xbf3   :  { %7879 = vpow2.f32 %v2577_v37  ;;  %v2576_v39 = vsub.f32 %v2568_v35, %v2574_v38  ;;  %v7450_v37 = vpack.c.bf16 %v2821_v36, %v2820_v33 }
 0xbf5   :  { %v2579_v40 = vmul.f32 1.442695, %v2576_v39 }
 0xbf7   :  { %7881 = vpow2.f32 %v2579_v40  ;;  %v2299_v41 = vpop.xlane.xlu1 %2298 }
 0xbfb   :  { %v2296_v42 = vpop.xlane.xlu1 %2295 }
 0xbfc   :  { %7883 = vrcp.f32 %v2296_v42 }
 0xbfd   :  { %v7880_v43 = vpop.eup %7879  ;;  %7885 = vrcp.f32 %v2299_v41 }
 0xbfe   :  { %v2581_v44 = vsel %vm331_vm3, %v7880_v43, 0.0 }
 0xbff   :  { %v7745_v45 = vpop.permute.xlu1 %7744  ;;  %2582 = vadd.xlane.f32.xlu0 %v2581_v44 }
 0xc00   :  { %v7747_v13 = vunpack.i.h.bf16 %v7745_v45  ;;  %v7746_v34 = vunpack.i.l.bf16 %v7745_v45 }
 0xc01   :  { %v7882_v46 = vpop.eup %7881 }
 0xc02   :  { %v2584_v47 = vsel %vm331_vm3, %v7882_v46, 0.0  ;;  %v7430_v48 = vpack.c.bf16 %v7747_v13, %v7746_v34 }
 0xc03   :  { %2585 = vadd.xlane.f32.xlu1 %v2584_v47 }
 0xc04   :  { %7431 = vmatprep.subr.bf16.mxu0 %v7430_v48 }
 0xc06   :  { %v7884_v50 = vpop.eup %7883 }
 0xc07   :  { %v7886_v52 = vpop.eup %7885 }
 0xc47   :  { %v7031_v49 = vpop.f32.mrb[20].mxu0 }
 0xc48   :  { %v2378_v51 = vpop.f32.mrb[21].mxu0  ;;  %v2390_v55 = vmul.f32 %v7886_v52, %v7031_v49  ;;  %v2823_v52 = vld [vmem:[%s8876_s11 + $0x38] sm:$0xff] }
 0xc49   :  { %v2389_v53 = vmul.f32 %v7884_v50, %v2378_v51  ;;  %v2822_v51 = vld [vmem:[%s8876_s11 + $0x30] sm:$0xff] }
 0xc4b   :  { %7034 = vmatprep.mubr.msk.f32.mxu0 %vm243_vm1, %v2389_v53  ;;  %v7454_v53 = vpack.c.bf16 %v2823_v52, %v2822_v51 }
 0xc4c   :  { %7035 = vmatmul.mubr.msk.f32.vlgmr.msra.gmra.mrb[18].mxu0 %vm243_vm1, %v2390_v55  ;;  %v6467_v55 = vld [vmem:[%s8877_s10] ss:$0 sm:$0xff] }
 0xc4d   :  { %7433 = vmatpush3.bf16.msra.mxu0 %v7430_v48  ;;  %7048 = vmatprep.mubr.msk.f32.mxu0 %vm331_vm3, %v7880_v43 }
 0xc4e   :  { %7051 = vmatprep.subr.mxu0 %v1619_v56 }
 0xc50   :  { %7049 = vmatmul.mubr.msk.f32.vlgmr.msra.gmra.mrb[22].mxu0 %vm331_vm3, %v7882_v46 }
 0xc51   :  { %7052 = vmatpush3.msra.mxu0 %v1619_v56 }
 0xc52   :  { %7443 = vmatprep.subr.bf16.mxu0 %v7442_v29 }
 0xc8c   :  { %v2583_v57 = vpop.xlane.xlu0 %2582 }
 0xc8d   :  { %7887 = vrcp.f32 %v2583_v57 }
 0xc90   :  { %v2586_v58 = vpop.xlane.xlu1 %2585 }
 0xc91   :  { %7889 = vrcp.f32 %v2586_v58 }
 0xc97   :  { %v7888_v59 = vpop.eup %7887 }
 0xc9b   :  { %v7890_v61 = vpop.eup %7889 }
 0xd23   :  { %v7050_v7 = vpop.f32.mrb[22].mxu0 }
 0xd24   :  { %v2665_v60 = vpop.f32.mrb[23].mxu0  ;;  %v2677_v63 = vmul.f32 %v7890_v61, %v7050_v7  ;;  %v6470_v61 = vld [vmem:[%s8878_s28] ss:$0 sm:$0xff] }
 0xd25   :  { %v2676_v62 = vmul.f32 %v7888_v59, %v2665_v60 }
 0xd27   :  { %7053 = vmatprep.mubr.msk.f32.mxu0 %vm243_vm1, %v2676_v62 }
 0xd28   :  { %7054 = vmatmul.mubr.msk.f32.vlgmr.msra.gmra.mrb[18].mxu0 %vm243_vm1, %v2677_v63 }
 0xd29   :  { %7445 = vmatpush3.bf16.msra.mxu0 %v7442_v29 }
 0xd2a   :  { %7447 = vmatprep.subr.bf16.mxu0 %v7446_v31 }
 0xd2d   :  { %7449 = vmatpush3.bf16.msra.mxu0 %v7446_v31 }
 0xd2e   :  { %7451 = vmatprep.subr.bf16.mxu0 %v7450_v37 }
 0xd31   :  { %7453 = vmatpush3.bf16.msra.mxu0 %v7450_v37 }
 0xd32   :  { %7455 = vmatprep.subr.bf16.mxu0 %v7454_v53 }
 0xd35   :  { %7457 = vmatpush3.bf16.msra.mxu0 %v7454_v53 }
 0xdfb   :  { %v7055_v1 = vpop.f32.mrb[18].mxu0 }
 0xdfc   :  { %v2750_v2 = vpop.f32.mrb[19].mxu0  ;;  %v2768_v3 = vadd.f32 %v7055_v1, %v6465_v0 }
 0xdfd   :  { %v2767_v4 = vadd.f32 %v6465_v0, %v2750_v2 }
 0xdfe   :  { %v2770_v9 = vadd.f32 %v2768_v3, %v8382_v27 }
 0xdff   :  { %v2769_v6 = vadd.f32 %v2767_v4, %v8378_v32 }
 0xe00   :  { %v2775_v10 = vsel %vm150_vm0, %v2770_v9, 0.0 }
 0xe01   :  { %v2772_v8 = vsel %vm150_vm0, %v2769_v6, 0.0 }
 0xe02   :  { %2773 = vadd.xlane.f32.xlu0 %v2772_v8 }
 0xe06   :  { %2776 = vadd.xlane.f32.xlu0 %v2775_v10 }
 0xe8f   :  { %v2774_v35 = vpop.xlane.xlu0 %2773 }
 0xe90   :  { %v2778_v11 = vmul.f32 0.03125, %v2774_v35 }
 0xe92   :  { %v2780_v12 = vsub.f32 %v2769_v6, %v2778_v11 }
 0xe93   :  { %v2777_v14 = vpop.xlane.xlu0 %2776 }
 0xe94   :  { %v2779_v15 = vmul.f32 0.03125, %v2777_v14  ;;  %v2782_v16 = vmul.f32 %v2780_v12, %v2780_v12 }
 0xe96   :  { %v2781_v32 = vsub.f32 %v2770_v9, %v2779_v15  ;;  %v2784_v18 = vsel %vm150_vm0, %v2782_v16, 0.0 }
 0xe97   :  { %2785 = vadd.xlane.f32.xlu0 %v2784_v18  ;;  %v6473_v18 = vld [vmem:[%s8879_s7] ss:$0 sm:$0xff] }
 0xe98   :  { %v2783_v27 = vmul.f32 %v2781_v32, %v2781_v32 }
 0xe9a   :  { %v2787_v19 = vsel %vm150_vm0, %v2783_v27, 0.0  ;;  %v6474_v27 = vld [vmem:[%s8094_s29 + $0x20] sm:$0xff] }
 0xe9b   :  { %2788 = vadd.xlane.f32.xlu0 %v2787_v19  ;;  %v6475_v19 = vld [vmem:[%s8094_s29 + $0x28] sm:$0xff] }
 0xe9c   :  { %v7458_v20 = vpack.c.bf16 %v6475_v19, %v6474_v27 }
 0xe9e   :  { %7459 = vmatprep.subr.bf16.mxu1 %v7458_v20 }
 0xeb1   :  { %2806 = vrot.lane.b32.xlu0 %v6466_v22, %s8045_s5 }
 0xf24   :  { %v2786_v38 = vpop.xlane.xlu0 %2785 }
 0xf25   :  { %v2790_v39 = vmul.f32 0.03125, %v2786_v38 }
 0xf27   :  { %v2792_v40 = vadd.f32 1e-05, %v2790_v39 }
 0xf28   :  { %v2789_v41 = vpop.xlane.xlu0 %2788 }
 0xf29   :  { %7891 = vrsqrt.f32 %v2792_v40  ;;  %v2791_v42 = vmul.f32 0.03125, %v2789_v41  ;;  %v6479_v41 = vld [vmem:[%s8099_s3 + $0x1] ss:$0 sm:$0xff]  ;;  %s8882_s3 = smov 48  }
 0xf2b   :  { %v2793_v43 = vadd.f32 1e-05, %v2791_v42 }
 0xf2c   :  { %v2807_v13 = vpop.permute.xlu0 %2806 }
 0xf2d   :  { %7893 = vrsqrt.f32 %v2793_v43 }
 0xf33   :  { %v7892_v44 = vpop.eup %7891 }
 0xf34   :  { %v2796_v45 = vmul.f32 %v7892_v44, %v2780_v12 }
 0xf36   :  { %v2804_v34 = vmul.f32 %v6466_v22, %v2796_v45 }
 0xf37   :  { %v7894_v46 = vpop.eup %7893 }
 0xf38   :  { %v2797_v47 = vmul.f32 %v7894_v46, %v2781_v32  ;;  %v2809_v48 = vadd.f32 %v2807_v13, %v2804_v34 }
 0xf3a   :  { %v2805_v49 = vmul.f32 %v6466_v22, %v2797_v47  ;;  %7064 = vmatprep.mubr.msk.f32.mxu1 %vm150_vm0, %v2809_v48  ;;  %v6477_v22 = vld [vmem:[%s8094_s29 + $0x38] sm:$0xff]  ;;  %s8881_s29 = smov 56  }
 0xf3b   :  { %v7462_v5 = vpack.c.bf16 %v6477_v22, %v6476_v21 }
 0xf3c   :  { %v2810_v50 = vadd.f32 %v2807_v13, %v2805_v49 }
 0xf3e   :  { %7065 = vmatmul.mubr.msk.f32.vlgmr.msra.gmra.mrb[18].mxu1 %vm150_vm0, %v2810_v50 }
 0xf3f   :  { %7461 = vmatpush3.bf16.msra.mxu1 %v7458_v20 }
 0xf40   :  { %7463 = vmatprep.subr.bf16.mxu1 %v7462_v5 }
 0xf43   :  { %7465 = vmatpush3.bf16.msra.mxu1 %v7462_v5 }
0x1011   :  { %v7066_v56 = vpop.f32.mrb[18].mxu1 }
0x1012   :  { %v2909_v57 = vadd.f32 %v7066_v56, %v6467_v55  ;;  %v2903_v58 = vpop.f32.mrb[19].mxu1 }
0x1013   :  { %v2904_v7 = vadd.f32 %v6467_v55, %v2903_v58 }
0x1014   :  { %v2913_v60 = vmax.f32 %v2909_v57, 0.0 }
0x1015   :  { %v2912_v59 = vmax.f32 %v2904_v7, 0.0 }
0x1017   :  { %7083 = vmatprep.mubr.msk.f32.mxu0 %vm2920_vm4, %v2912_v59 }
0x1018   :  { %7084 = vmatmul.mubr.msk.f32.vlgmr.msra.gmra.mrb[24].mxu0 %vm2920_vm4, %v2913_v60 }
0x10eb   :  { %v7085_v62 = vpop.f32.mrb[24].mxu0 }
0x10ec   :  { %v2993_v63 = vpop.f32.mrb[25].mxu0  ;;  %v2999_v0 = vadd.f32 %v7085_v62, %v6470_v61 }
0x10ed   :  { %v2994_v1 = vadd.f32 %v6470_v61, %v2993_v63 }
0x10ee   :  { %v3003_v4 = vadd.f32 %v2999_v0, %v2810_v50 }
0x10ef   :  { %v3002_v2 = vadd.f32 %v2994_v1, %v2809_v48  ;;  %v8573_v1 = vld [vmem:[%s8074_s13 + $0x8] sm:$0xff] }
0x10f0   :  { %v3008_v6 = vsel %vm150_vm0, %v3003_v4, 0.0 }
0x10f1   :  { %v3005_v3 = vsel %vm150_vm0, %v3002_v2, 0.0 }
0x10f2   :  { %3006 = vadd.xlane.f32.xlu1 %v3005_v3  ;;  %v8577_v3 = vld [vmem:[%s8074_s13] sm:$0xff]  ;;  %s8880_s13 = smov 104  }
0x10f6   :  { %3009 = vadd.xlane.f32.xlu1 %v3008_v6 }
0x117f   :  { %v3007_v8 = vpop.xlane.xlu1 %3006 }
0x1180   :  { %v3011_v9 = vmul.f32 0.03125, %v3007_v8 }
0x1182   :  { %v3013_v11 = vsub.f32 %v3002_v2, %v3011_v9 }
0x1183   :  { %v3010_v10 = vpop.xlane.xlu1 %3009 }
0x1184   :  { %v3012_v35 = vmul.f32 0.03125, %v3010_v10  ;;  %v3015_v16 = vmul.f32 %v3013_v11, %v3013_v11 }
0x1186   :  { %v3014_v12 = vsub.f32 %v3003_v4, %v3012_v35  ;;  %v3017_v32 = vsel %vm150_vm0, %v3015_v16, 0.0 }
0x1188   :  { %v3016_v14 = vmul.f32 %v3014_v12, %v3014_v12 }
0x118a   :  { %v3020_v15 = vsel %vm150_vm0, %v3016_v14, 0.0 }
0x118b   :  { %3021 = vadd.xlane.f32.xlu1 %v3020_v15 }
0x118f   :  { %3018 = vadd.xlane.f32.xlu1 %v3017_v32 }
0x11a0   :  { %3039 = vrot.lane.b32.xlu1 %v6473_v18, %s8045_s5 }
0x1218   :  { %v3022_v23 = vpop.xlane.xlu1 %3021 }
0x1219   :  { %v3024_v24 = vmul.f32 0.03125, %v3022_v23 }
0x121b   :  { %v3026_v54 = vadd.f32 1e-05, %v3024_v24 }
0x121c   :  { %v3019_v25 = vpop.xlane.xlu1 %3018 }
0x121d   :  { %7895 = vrsqrt.f32 %v3026_v54  ;;  %v3023_v26 = vmul.f32 0.03125, %v3019_v25 }
0x121f   :  { %v3025_v28 = vadd.f32 1e-05, %v3023_v26 }
0x1220   :  { %v3040_v38 = vpop.permute.xlu1 %3039 }
0x1221   :  { %7897 = vrsqrt.f32 %v3025_v28 }
0x1227   :  { %v7896_v29 = vpop.eup %7895 }
0x1228   :  { %v3030_v30 = vmul.f32 %v7896_v29, %v3014_v12 }
0x122a   :  { %v3038_v36 = vmul.f32 %v6473_v18, %v3030_v30 }
0x122b   :  { %v7898_v31 = vpop.eup %7897 }
0x122c   :  { %v3029_v33 = vmul.f32 %v7898_v31, %v3013_v11  ;;  %v8529_v40 = vadd.f32 %v3040_v38, %v3038_v36 }
0x122e   :  { %v3037_v37 = vmul.f32 %v6473_v18, %v3029_v33 }
0x1230   :  { %v8527_v39 = vadd.f32 %v3040_v38, %v3037_v37 }
0x1232   :  { %7094 = vmatprep.mubr.msk.f32.mxu1 %vm150_vm0, %v8527_v39 }
0x1233   :  { %7095 = vmatmul.mubr.msk.f32.vlgmr.msra.gmra.mrb[20].mxu1 %vm150_vm0, %v8529_v40 }
0x1306   :  { %v7096_v42 = vpop.f32.mrb[20].mxu1 }
0x1307   :  { %v8536_v43 = vadd.f32 %v7096_v42, %v6479_v41  ;;  %v3129_v44 = vpop.f32.mrb[21].mxu1 }
0x1308   :  { %v3130_v45 = vadd.f32 %v6479_v41, %v3129_v44 }
0x130a   :  { %7101 = vmatprep.mubr.msk.f32.mxu1 %vm243_vm1, %v3130_v45  ;;  %v8540_v13 = vpack.i.bf16 %v8536_v43, %v3130_v45 }
0x130c   :  { %7759 = vrot.lane.b32.xlu1 %v8540_v13, %s8048_s26  ;;  %7749 = vrot.lane.b32.xlu0 %v8540_v13, %s8045_s5 }
0x1310   :  { %3715 = vrot.lane.b32.xlu1 %v8536_v43, %s8047_s23  ;;  %7754 = vrot.lane.b32.xlu0 %v8540_v13, %s8046_s22 }
0x1314   :  { %3347 = vrot.lane.b32.xlu0 %v3130_v45, %s8044_s0 }
0x1318   :  { %3349 = vrot.lane.b32.xlu0 %v8536_v43, %s8044_s0 }
0x131c   :  { %3713 = vrot.lane.b32.xlu0 %v3130_v45, %s8047_s23 }
0x137e   :  { %v7750_v34 = vpop.permute.xlu0 %7749  ;;  %v7760_v52 = vpop.permute.xlu1 %7759 }
0x137f   :  { %v7752_v46 = vunpack.i.h.bf16 %v7750_v34  ;;  %v7751_v47 = vunpack.i.l.bf16 %v7750_v34  ;;  %v7762_v55 = vunpack.i.h.bf16 %v7760_v52  ;;  %v7761_v56 = vunpack.i.l.bf16 %v7760_v52 }
0x1381   :  { %v7466_v48 = vpack.c.bf16 %v7752_v46, %v7751_v47  ;;  %v7486_v58 = vpack.c.bf16 %v7762_v55, %v7761_v56 }
0x1382   :  { %v7755_v49 = vpop.permute.xlu0 %7754  ;;  %v3716_v60 = vpop.permute.xlu1 %3715 }
0x1383   :  { %v7757_v50 = vunpack.i.h.bf16 %v7755_v49  ;;  %v7756_v51 = vunpack.i.l.bf16 %v7755_v49  ;;  %7468 = vmatprep.subr.msk.bf16.mxu1 %vm8262_vm2, %v7466_v48 }
0x1384   :  { %7471 = vmatpush3.bf16.xpose.msk.msra.mxu1 %vm8262_vm2, %v7466_v48 }
0x1385   :  { %v7476_v53 = vpack.c.bf16 %v7757_v50, %v7756_v51 }
0x1386   :  { %v3348_v57 = vpop.permute.xlu0 %3347 }
0x1387   :  { %7478 = vmatprep.subr.msk.bf16.mxu1 %vm8262_vm2, %v7476_v53 }
0x138a   :  { %v3350_v7 = vpop.permute.xlu0 %3349 }
0x138b   :  { %7102 = vmatmul.mubr.msk.f32.vlgmr.msra.gmra.mrb[22].mxu1 %vm243_vm1, %v8536_v43 }
0x138c   :  { %7481 = vmatpush3.bf16.xpose.msk.msra.mxu1 %vm8262_vm2, %v7476_v53  ;;  %7115 = vmatprep.mubr.msk.f32.mxu1 %vm243_vm1, %v3348_v57 }
0x138d   :  { %7488 = vmatprep.subr.msk.bf16.mxu1 %vm8262_vm2, %v7486_v58 }
0x138e   :  { %v3714_v59 = vpop.permute.xlu0 %3713 }
0x1393   :  { %7116 = vmatmul.mubr.msk.f32.vlgmr.msra.gmra.mrb[24].mxu1 %vm243_vm1, %v3350_v7 }
0x1394   :  { %7491 = vmatpush3.bf16.xpose.msk.msra.mxu1 %vm8262_vm2, %v7486_v58  ;;  %7139 = vmatprep.mubr.msk.f32.mxu1 %vm243_vm1, %v3714_v59 }
0x139b   :  { %7140 = vmatmul.mubr.msk.f32.vlgmr.msra.gmra.mrb[26].mxu1 %vm243_vm1, %v3716_v60 }
0x145e   :  { %v7103_v61 = vpop.f32.mrb[22].mxu1 }
0x145f   :  { %v3235_v62 = vmul.f32 0.35355338, %v7103_v61  ;;  %v3225_v63 = vpop.f32.mrb[23].mxu1  ;;  %v6483_v61 = vld [vmem:[%s8104_s8 + $0x28] sm:$0xff] }
0x1460   :  { %v3234_v0 = vmul.f32 0.35355338, %v3225_v63 }
0x1461   :  { %v3237_v2 = vadd.f32 %v8573_v1, %v3235_v62  ;;  %v6482_v62 = vld [vmem:[%s8104_s8 + $0x20] sm:$0xff] }
0x1462   :  { %v3236_v4 = vadd.f32 %v8577_v3, %v3234_v0 }
0x1463   :  { %v3241_v6 = vsel %vm331_vm3, %v3237_v2, -inf }
0x1464   :  { %3242 = vmax.xlane.f32.xlu1 %v3241_v6  ;;  %v3238_v8 = vsel %vm331_vm3, %v3236_v4, -inf }
0x1465   :  { %3239 = vmax.xlane.f32.xlu0 %v3238_v8 }
0x1466   :  { %v7117_v9 = vpop.f32.mrb[24].mxu1 }
0x1467   :  { %v3439_v10 = vmul.f32 0.35355338, %v7117_v9  ;;  %v3429_v35 = vpop.f32.mrb[25].mxu1 }
0x1468   :  { %v3438_v11 = vmul.f32 0.35355338, %v3429_v35 }
0x1469   :  { %v3441_v12 = vadd.f32 %v8573_v1, %v3439_v10 }
0x146a   :  { %v3440_v15 = vadd.f32 %v8577_v3, %v3438_v11 }
0x146b   :  { %v3445_v14 = vsel %vm331_vm3, %v3441_v12, -inf }
0x146c   :  { %3446 = vmax.xlane.f32.xlu0 %v3445_v14  ;;  %v3442_v18 = vsel %vm331_vm3, %v3440_v15, -inf }
0x146e   :  { %v7141_v16 = vpop.f32.mrb[26].mxu1 }
0x146f   :  { %v3795_v32 = vpop.f32.mrb[27].mxu1  ;;  %v3805_v53 = vmul.f32 0.35355338, %v7141_v16 }
0x1470   :  { %3443 = vmax.xlane.f32.xlu0 %v3442_v18  ;;  %v3804_v50 = vmul.f32 0.35355338, %v3795_v32 }
0x1471   :  { %v3807_v59 = vadd.f32 %v8573_v1, %v3805_v53 }
0x1472   :  { %v3806_v55 = vadd.f32 %v8577_v3, %v3804_v50 }
0x1473   :  { %v3811_v60 = vsel %vm331_vm3, %v3807_v59, -inf }
0x1474   :  { %v3808_v58 = vsel %vm331_vm3, %v3806_v55, -inf }
0x1475   :  { %7764 = vrot.lane.b32.xlu1 %v8540_v13, %s8051_s2  ;;  %s8883_s2 = smov 40  }
0x1479   :  { %7774 = vrot.lane.b32.xlu1 %v8540_v13, %s8050_s1 }
0x147d   :  { %4000 = vrot.lane.b32.xlu1 %v3130_v45, %s8880_s13 }
0x1486   :  { %7769 = vrot.lane.b32.xlu0 %v8540_v13, %s8881_s29 }
0x148a   :  { %4002 = vrot.lane.b32.xlu0 %v8536_v43, %s8880_s13 }
0x14f1   :  { %v3243_v27 = vpop.xlane.xlu1 %3242 }
0x14f2   :  { %v3245_v19 = vsub.f32 %v3237_v2, %v3243_v27  ;;  %v3240_v20 = vpop.xlane.xlu0 %3239 }
0x14f3   :  { %v3244_v21 = vsub.f32 %v3236_v4, %v3240_v20 }
0x14f4   :  { %v3248_v22 = vmul.f32 1.442695, %v3245_v19 }
0x14f5   :  { %v3246_v5 = vmul.f32 1.442695, %v3244_v21  ;;  %v7765_v23 = vpop.permute.xlu1 %7764 }
0x14f6   :  { %v7767_v24 = vunpack.i.h.bf16 %v7765_v23  ;;  %v7766_v54 = vunpack.i.l.bf16 %v7765_v23 }
0x14f7   :  { %7899 = vpow2.f32 %v3246_v5 }
0x14f8   :  { %7901 = vpow2.f32 %v3248_v22  ;;  %v7472_v25 = vpack.c.bf16 %v7767_v24, %v7766_v54 }
0x14f9   :  { %v7775_v26 = vpop.permute.xlu1 %7774  ;;  %v3447_v28 = vpop.xlane.xlu0 %3446 }
0x14fa   :  { %v7777_v29 = vunpack.i.h.bf16 %v7775_v26  ;;  %v7776_v30 = vunpack.i.l.bf16 %v7775_v26  ;;  %v3449_v31 = vsub.f32 %v3441_v12, %v3447_v28  ;;  %7473 = vmatprep.subr.bf16.mxu0 %v7472_v25 }
0x14fb   :  { %7475 = vmatpush3.bf16.msra.mxu0 %v7472_v25 }
0x14fc   :  { %v7496_v33 = vpack.c.bf16 %v7777_v29, %v7776_v30  ;;  %v3452_v36 = vmul.f32 1.442695, %v3449_v31 }
0x14fd   :  { %v4001_v37 = vpop.permute.xlu1 %4000  ;;  %v3444_v38 = vpop.xlane.xlu0 %3443 }
0x14fe   :  { %7903 = vpow2.f32 %v3452_v36  ;;  %v3448_v41 = vsub.f32 %v3440_v15, %v3444_v38  ;;  %7498 = vmatprep.subr.msk.bf16.mxu1 %vm8262_vm2, %v7496_v33  ;;  %7158 = vmatprep.mubr.msk.f32.mxu1 %vm243_vm1, %v4001_v37 }
0x14ff   :  { %7501 = vmatpush3.bf16.xpose.msk.msra.mxu1 %vm8262_vm2, %v7496_v33 }
0x1500   :  { %v3450_v42 = vmul.f32 1.442695, %v3448_v41 }
0x1501   :  { %v7900_v43 = vpop.eup %7899  ;;  %v7770_v44 = vpop.permute.xlu0 %7769 }
0x1502   :  { %v7902_v45 = vpop.eup %7901  ;;  %7905 = vpow2.f32 %v3450_v42  ;;  %v7772_v34 = vunpack.i.h.bf16 %v7770_v44  ;;  %v7771_v46 = vunpack.i.l.bf16 %v7770_v44  ;;  %7108 = vmatprep.mubr.msk.f32.mxu0 %vm331_vm3, %v7900_v43  ;;  %v3250_v56 = vsel %vm331_vm3, %v7900_v43, 0.0  ;;  %v6484_v42 = vld [vmem:[%s8104_s8 + $0x30] sm:$0xff] }
0x1503   :  { %7109 = vmatmul.mubr.msk.f32.vlgmr.msra.gmra.mrb[26].mxu0 %vm331_vm3, %v7902_v45  ;;  %v3253_v7 = vsel %vm331_vm3, %v7902_v45, 0.0 }
0x1504   :  { %v7482_v47 = vpack.c.bf16 %v7772_v34, %v7771_v46 }
0x1505   :  { %v4003_v48 = vpop.permute.xlu0 %4002 }
0x1506   :  { %7483 = vmatprep.subr.bf16.mxu0 %v7482_v47  ;;  %7159 = vmatmul.mubr.msk.f32.vlgmr.msra.gmra.mrb[28].mxu1 %vm243_vm1, %v4003_v48 }
0x1507   :  { %7485 = vmatpush3.bf16.msra.mxu0 %v7482_v47 }
0x1508   :  { %v7904_v49 = vpop.eup %7903  ;;  %7125 = vmatprep.subr.mxu0 %v6483_v61 }
0x1509   :  { %v3457_v51 = vsel %vm331_vm3, %v7904_v49, 0.0 }
0x150a   :  { %3458 = vadd.xlane.f32.xlu0 %v3457_v51 }
0x150c   :  { %v7906_v52 = vpop.eup %7905 }
0x150d   :  { %7122 = vmatprep.mubr.msk.f32.mxu0 %vm331_vm3, %v7906_v52  ;;  %v3454_v57 = vsel %vm331_vm3, %v7906_v52, 0.0 }
0x150e   :  { %3251 = vadd.xlane.f32.xlu0 %v3250_v56  ;;  %3455 = vadd.xlane.f32.xlu1 %v3454_v57 }
0x150f   :  { %7123 = vmatmul.mubr.msk.f32.vlgmr.msra.gmra.mrb[28].mxu0 %vm331_vm3, %v7904_v49 }
0x1510   :  { %7126 = vmatpush3.msra.mxu0 %v6483_v61 }
0x1511   :  { %7130 = vmatprep.subr.mxu0 %v6482_v62 }
0x1512   :  { %3809 = vmax.xlane.f32.xlu0 %v3808_v58  ;;  %3254 = vadd.xlane.f32.xlu1 %v3253_v7 }
0x1516   :  { %3812 = vmax.xlane.f32.xlu1 %v3811_v60 }
0x1528   :  { %7779 = vrot.lane.b32.xlu0 %v8540_v13, %s8882_s3 }
0x1597   :  { %v3459_v0 = vpop.xlane.xlu0 %3458 }
0x1598   :  { %7907 = vrcp.f32 %v3459_v0 }
0x159b   :  { %v3456_v63 = vpop.xlane.xlu1 %3455  ;;  %v3252_v4 = vpop.xlane.xlu0 %3251 }
0x159c   :  { %7909 = vrcp.f32 %v3456_v63  ;;  %v6485_v63 = vld [vmem:[%s8104_s8 + $0x38] sm:$0xff]  ;;  %s8886_s8 = sld [smem:[#allocation16_spill]] }
0x159d   :  { %7911 = vrcp.f32 %v3252_v4 }
0x159f   :  { %v3255_v2 = vpop.xlane.xlu1 %3254  ;;  %v3810_v9 = vpop.xlane.xlu0 %3809 }
0x15a0   :  { %v3814_v35 = vsub.f32 %v3806_v55, %v3810_v9 }
0x15a2   :  { %v3816_v16 = vmul.f32 1.442695, %v3814_v35  ;;  %v7908_v22 = vpop.eup %7907 }
0x15a3   :  { %v3813_v6 = vpop.xlane.xlu1 %3812  ;;  %v7780_v21 = vpop.permute.xlu0 %7779 }
0x15a4   :  { %v3815_v8 = vsub.f32 %v3807_v59, %v3813_v6  ;;  %v7782_v24 = vunpack.i.h.bf16 %v7780_v21  ;;  %v7781_v54 = vunpack.i.l.bf16 %v7780_v21 }
0x15a6   :  { %v3818_v11 = vmul.f32 1.442695, %v3815_v8  ;;  %v7910_v23 = vpop.eup %7909 }
0x15a7   :  { %v7912_v28 = vpop.eup %7911 }
0x15a8   :  { %7913 = vpow2.f32 %v3818_v11  ;;  %v7985_v11 = vld [vmem:[%s8069_s9] sm:$0xff] }
0x15a9   :  { %7915 = vpow2.f32 %v3816_v16 }
0x15aa   :  { %7917 = vrcp.f32 %v3255_v2 }
0x15d6   :  { %v7110_v10 = vpop.f32.mrb[26].mxu0 }
0x15d7   :  { %v3334_v12 = vpop.f32.mrb[27].mxu0 }
0x15d8   :  { %v3345_v31 = vmul.f32 %v7912_v28, %v3334_v12  ;;  %v6519_v12 = vld [vmem:[%s8109_s14 + $0x1] ss:$0 sm:$0xff]  ;;  %s8887_s14 = sld [smem:[#allocation18_spill]] }
0x15d9   :  { %v7160_v14 = vpop.f32.mrb[28].mxu1  ;;  %v6530_v28 = vld [vmem:[%s8129_s6 + $0x20] sm:$0xff] }
0x15da   :  { %v4082_v15 = vpop.f32.mrb[29].mxu1  ;;  %v4092_v32 = vmul.f32 0.35355338, %v7160_v14 }
0x15db   :  { %v4091_v18 = vmul.f32 0.35355338, %v4082_v15 }
0x15dc   :  { %v4094_v20 = vadd.f32 %v8573_v1, %v4092_v32  ;;  %v7492_v1 = vpack.c.bf16 %v7782_v24, %v7781_v54 }
0x15dd   :  { %v4093_v27 = vadd.f32 %v8577_v3, %v4091_v18  ;;  %v7914_v3 = vpop.eup %7913 }
0x15de   :  { %v4098_v26 = vsel %vm331_vm3, %v4094_v20, -inf  ;;  %v3823_v33 = vsel %vm331_vm3, %v7914_v3, 0.0  ;;  %v7916_v36 = vpop.eup %7915 }
0x15df   :  { %v4095_v19 = vsel %vm331_vm3, %v4093_v27, -inf  ;;  %v7918_v37 = vpop.eup %7917  ;;  %v3820_v38 = vsel %vm331_vm3, %v7916_v36, 0.0 }
0x15e0   :  { %4096 = vmax.xlane.f32.xlu1 %v4095_v19  ;;  %v3346_v41 = vmul.f32 %v7918_v37, %v7110_v10  ;;  %v6521_v37 = vld [vmem:[%s8114_s19 + $0x1] ss:$0 sm:$0xff]  ;;  %s8888_s19 = sld [smem:[#allocation17_spill]] }
0x15e2   :  { %v7124_v5 = vpop.f32.mrb[28].mxu0 }
0x15e3   :  { %v3538_v25 = vpop.f32.mrb[29].mxu0  ;;  %v3550_v30 = vmul.f32 %v7908_v22, %v7124_v5 }
0x15e4   :  { %v3549_v29 = vmul.f32 %v7910_v23, %v3538_v25  ;;  %4099 = vmax.xlane.f32.xlu1 %v4098_v26 }
0x15e6   :  { %7127 = vmatprep.mubr.msk.f32.mxu0 %vm243_vm1, %v3549_v29  ;;  %v6531_v29 = vld [vmem:[%s8129_s6 + $0x28] sm:$0xff] }
0x15e7   :  { %7128 = vmatmul.mubr.msk.f32.vlgmr.msra.gmra.mrb[30].mxu0 %vm243_vm1, %v3550_v30  ;;  %v6532_v30 = vld [vmem:[%s8129_s6 + $0x30] sm:$0xff] }
0x15e8   :  { %7131 = vmatpush3.msra.mxu0 %v6482_v62  ;;  %7132 = vmatprep.mubr.msk.f32.mxu0 %vm243_vm1, %v3345_v31  ;;  %v6533_v31 = vld [vmem:[%s8129_s6 + $0x38] sm:$0xff] }
0x15e9   :  { %7493 = vmatprep.subr.bf16.mxu0 %v7492_v1  ;;  %3824 = vadd.xlane.f32.xlu1 %v3823_v33  ;;  %v6522_v33 = vld [vmem:[%s8119_s24 + $0x20] sm:$0xff] }
0x15ed   :  { %3821 = vadd.xlane.f32.xlu1 %v3820_v38 }
0x15ef   :  { %7133 = vmatmul.mubr.msk.f32.vlgmr.msra.gmra.mrb[30].mxu0 %vm243_vm1, %v3346_v41  ;;  %v7986_v41 = vld [vmem:[%s8069_s9 + $0x8] sm:$0xff]  ;;  %s8884_s9 = sld [smem:[#allocation14_spill]] }
0x15f0   :  { %7495 = vmatpush3.bf16.msra.mxu0 %v7492_v1  ;;  %7146 = vmatprep.mubr.msk.f32.mxu0 %vm331_vm3, %v7916_v36  ;;  %v7518_v1 = vpack.c.bf16 %v6533_v31, %v6532_v30  ;;  %v6523_v36 = vld [vmem:[%s8119_s24 + $0x28] sm:$0xff] }
0x15f1   :  { %7149 = vmatprep.subr.mxu0 %v6484_v42  ;;  %v7506_v38 = vpack.c.bf16 %v6523_v36, %v6522_v33 }
0x15f3   :  { %7147 = vmatmul.mubr.msk.f32.vlgmr.msra.gmra.mrb[32].mxu0 %vm331_vm3, %v7914_v3  ;;  %v7514_v3 = vpack.c.bf16 %v6531_v29, %v6530_v28  ;;  %7507 = vmatprep.subr.bf16.mxu1 %v7506_v38 }
0x15f4   :  { %7150 = vmatpush3.msra.mxu0 %v6484_v42  ;;  %7509 = vmatpush3.bf16.msra.mxu1 %v7506_v38  ;;  %v6524_v42 = vld [vmem:[%s8119_s24 + $0x30] sm:$0xff] }
0x15fe   :  { %7784 = vrot.lane.b32.xlu1 %v8540_v13, %s8883_s2 }
0x166d   :  { %v4097_v43 = vpop.xlane.xlu1 %4096 }
0x166e   :  { %v4101_v44 = vsub.f32 %v4093_v27, %v4097_v43  ;;  %v6525_v43 = vld [vmem:[%s8119_s24 + $0x38] sm:$0xff]  ;;  %s8889_s24 = sld [smem:[#allocation5_spill]] }
0x1670   :  { %v4103_v45 = vmul.f32 1.442695, %v4101_v44  ;;  %v7510_v44 = vpack.c.bf16 %v6525_v43, %v6524_v42 }
0x1671   :  { %v4100_v34 = vpop.xlane.xlu1 %4099 }
0x1672   :  { %7919 = vpow2.f32 %v4103_v45  ;;  %v4102_v46 = vsub.f32 %v4094_v20, %v4100_v34  ;;  %7511 = vmatprep.subr.bf16.mxu1 %v7510_v44 }
0x1673   :  { %7513 = vmatpush3.bf16.msra.mxu1 %v7510_v44 }
0x1674   :  { %v4105_v47 = vmul.f32 1.442695, %v4102_v46 }
0x1676   :  { %7921 = vpow2.f32 %v4105_v47  ;;  %v3825_v48 = vpop.xlane.xlu1 %3824 }
0x1677   :  { %7923 = vrcp.f32 %v3825_v48 }
0x167a   :  { %v3822_v49 = vpop.xlane.xlu1 %3821 }
0x167b   :  { %7925 = vrcp.f32 %v3822_v49 }
0x167c   :  { %v7920_v50 = vpop.eup %7919 }
0x167d   :  { %v4107_v51 = vsel %vm331_vm3, %v7920_v50, 0.0 }
0x167e   :  { %v7785_v52 = vpop.permute.xlu1 %7784  ;;  %4108 = vadd.xlane.f32.xlu0 %v4107_v51 }
0x167f   :  { %v7787_v53 = vunpack.i.h.bf16 %v7785_v52  ;;  %v7786_v13 = vunpack.i.l.bf16 %v7785_v52 }
0x1680   :  { %v7922_v55 = vpop.eup %7921 }
0x1681   :  { %v7502_v56 = vpack.c.bf16 %v7787_v53, %v7786_v13  ;;  %v4110_v57 = vsel %vm331_vm3, %v7922_v55, 0.0  ;;  %v7924_v58 = vpop.eup %7923 }
0x1682   :  { %4111 = vadd.xlane.f32.xlu1 %v4110_v57 }
0x1683   :  { %7503 = vmatprep.subr.bf16.mxu0 %v7502_v56 }
0x1685   :  { %v7926_v59 = vpop.eup %7925 }
0x16c6   :  { %v7148_v7 = vpop.f32.mrb[32].mxu0 }
0x16c7   :  { %v3916_v60 = vmul.f32 %v7924_v58, %v7148_v7  ;;  %v3904_v61 = vpop.f32.mrb[33].mxu0  ;;  %v6535_v7 = vld [vmem:[%s8134_s12 + $0x1] ss:$0 sm:$0xff] }
0x16c8   :  { %v3915_v62 = vmul.f32 %v7926_v59, %v3904_v61 }
0x16ca   :  { %7151 = vmatprep.mubr.msk.f32.mxu0 %vm243_vm1, %v3915_v62 }
0x16cb   :  { %7152 = vmatmul.mubr.msk.f32.vlgmr.msra.gmra.mrb[30].mxu0 %vm243_vm1, %v3916_v60 }
0x16cc   :  { %7505 = vmatpush3.bf16.msra.mxu0 %v7502_v56  ;;  %7165 = vmatprep.mubr.msk.f32.mxu0 %vm331_vm3, %v7920_v50 }
0x16cd   :  { %7168 = vmatprep.subr.mxu0 %v6485_v63 }
0x16cf   :  { %7166 = vmatmul.mubr.msk.f32.vlgmr.msra.gmra.mrb[34].mxu0 %vm331_vm3, %v7922_v55 }
0x16d0   :  { %7169 = vmatpush3.msra.mxu0 %v6485_v63 }
0x16d1   :  { %7515 = vmatprep.subr.bf16.mxu0 %v7514_v3 }
0x170b   :  { %v4109_v0 = vpop.xlane.xlu0 %4108 }
0x170c   :  { %7927 = vrcp.f32 %v4109_v0 }
0x170f   :  { %v4112_v2 = vpop.xlane.xlu1 %4111 }
0x1710   :  { %7929 = vrcp.f32 %v4112_v2 }
0x1716   :  { %v7928_v6 = vpop.eup %7927 }
0x171a   :  { %v7930_v9 = vpop.eup %7929 }
0x17a2   :  { %v7167_v4 = vpop.f32.mrb[34].mxu0 }
0x17a3   :  { %v4191_v8 = vpop.f32.mrb[35].mxu0  ;;  %v4203_v35 = vmul.f32 %v7930_v9, %v7167_v4  ;;  %v6527_v9 = vld [vmem:[%s8124_s30 + $0x1] ss:$0 sm:$0xff]  ;;  %s8890_s30 = sld [smem:[#allocation6_spill]] }
0x17a4   :  { %v4202_v10 = vmul.f32 %v7928_v6, %v4191_v8 }
0x17a6   :  { %7170 = vmatprep.mubr.msk.f32.mxu0 %vm243_vm1, %v4202_v10 }
0x17a7   :  { %7171 = vmatmul.mubr.msk.f32.vlgmr.msra.gmra.mrb[30].mxu0 %vm243_vm1, %v4203_v35 }
0x17a8   :  { %7192 = vmatprep.mubr.msk.f32.mxu0 %vm150_vm0, %v7985_v11  ;;  %7517 = vmatpush3.bf16.msra.mxu0 %v7514_v3 }
0x17a9   :  { %7519 = vmatprep.subr.bf16.mxu0 %v7518_v1 }
0x17ac   :  { %7521 = vmatpush3.bf16.msra.mxu0 %v7518_v1 }
0x17af   :  { %7193 = vmatmul.mubr.msk.f32.vlgmr.msra.gmra.mrb[36].mxu0 %vm150_vm0, %v7986_v41 }
0x187a   :  { %v7172_v14 = vpop.f32.mrb[30].mxu0 }
0x187b   :  { %v4276_v15 = vpop.f32.mrb[31].mxu0  ;;  %v4294_v16 = vadd.f32 %v7172_v14, %v6519_v12 }
0x187c   :  { %v4293_v32 = vadd.f32 %v6519_v12, %v4276_v15 }
0x187d   :  { %v4296_v27 = vadd.f32 %v4294_v16, %v8529_v40 }
0x187e   :  { %v4295_v18 = vadd.f32 %v4293_v32, %v8527_v39 }
0x187f   :  { %v4302_v20 = vsel %vm150_vm0, %v4296_v27, 0.0 }
0x1880   :  { %v4299_v19 = vsel %vm150_vm0, %v4295_v18, 0.0 }
0x1881   :  { %4300 = vadd.xlane.f32.xlu0 %v4299_v19 }
0x1882   :  { %v7194_v59 = vpop.f32.mrb[36].mxu0 }
0x1883   :  { %v4517_v60 = vadd.f32 %v7194_v59, %v6535_v7  ;;  %v4511_v61 = vpop.f32.mrb[37].mxu0 }
0x1884   :  { %v4512_v62 = vadd.f32 %v6535_v7, %v4511_v61 }
0x1885   :  { %4303 = vadd.xlane.f32.xlu0 %v4302_v20 }
0x1886   :  { %v8671_v63 = vpack.i.bf16 %v4517_v60, %v4512_v62  ;;  %v7522_v0 = vpack.c.bf16 %v4517_v60, %v4512_v62 }
0x1888   :  { %7789 = vrot.lane.b32.xlu1 %v8671_v63, %s8044_s0  ;;  %7524 = vmatprep.subr.msk.bf16.mxu1 %vm8262_vm2, %v7522_v0 }
0x18fa   :  { %v7790_v2 = vpop.permute.xlu1 %7789 }
0x18fb   :  { %v7792_v4 = vunpack.i.h.bf16 %v7790_v2  ;;  %v7791_v6 = vunpack.i.l.bf16 %v7790_v2 }
0x18fd   :  { %v7532_v8 = vpack.c.bf16 %v7792_v4, %v7791_v6 }
0x190e   :  { %v4301_v21 = vpop.xlane.xlu0 %4300 }
0x190f   :  { %v4305_v22 = vmul.f32 0.03125, %v4301_v21 }
0x1911   :  { %v4307_v5 = vsub.f32 %v4295_v18, %v4305_v22 }
0x1912   :  { %v4304_v23 = vpop.xlane.xlu0 %4303 }
0x1913   :  { %v4306_v24 = vmul.f32 0.03125, %v4304_v23  ;;  %v4309_v54 = vmul.f32 %v4307_v5, %v4307_v5 }
0x1915   :  { %v4308_v25 = vsub.f32 %v4296_v27, %v4306_v24  ;;  %v4311_v39 = vsel %vm150_vm0, %v4309_v54, 0.0  ;;  %v8701_v24 = vld [vmem:[%s8079_s17 + $0x8] sm:$0xff] }
0x1916   :  { %4312 = vadd.xlane.f32.xlu0 %v4311_v39 }
0x1917   :  { %v4310_v40 = vmul.f32 %v4308_v25, %v4308_v25 }
0x1919   :  { %v4314_v26 = vsel %vm150_vm0, %v4310_v40, 0.0 }
0x191a   :  { %4315 = vadd.xlane.f32.xlu0 %v4314_v26 }
0x1930   :  { %4333 = vrot.lane.b32.xlu0 %v6521_v37, %s8045_s5 }
0x19a3   :  { %v4313_v45 = vpop.xlane.xlu0 %4312 }
0x19a4   :  { %v4317_v34 = vmul.f32 0.03125, %v4313_v45 }
0x19a6   :  { %v4319_v46 = vadd.f32 1e-05, %v4317_v34 }
0x19a7   :  { %v4316_v47 = vpop.xlane.xlu0 %4315 }
0x19a8   :  { %7931 = vrsqrt.f32 %v4319_v46  ;;  %v4318_v48 = vmul.f32 0.03125, %v4316_v47 }
0x19aa   :  { %v4320_v49 = vadd.f32 1e-05, %v4318_v48 }
0x19ab   :  { %v4334_v52 = vpop.permute.xlu0 %4333 }
0x19ac   :  { %7933 = vrsqrt.f32 %v4320_v49 }
0x19b2   :  { %v7932_v50 = vpop.eup %7931 }
0x19b3   :  { %v4323_v51 = vmul.f32 %v7932_v50, %v4307_v5 }
0x19b5   :  { %v4331_v53 = vmul.f32 %v6521_v37, %v4323_v51 }
0x19b6   :  { %v7934_v13 = vpop.eup %7933 }
0x19b7   :  { %v4324_v55 = vmul.f32 %v7934_v13, %v4308_v25  ;;  %v8662_v56 = vadd.f32 %v4334_v52, %v4331_v53  ;;  %v8705_v25 = vld [vmem:[%s8079_s17] sm:$0xff]  ;;  %s8885_s17 = sld [smem:[#allocation15_spill]] }
0x19b9   :  { %v4332_v57 = vmul.f32 %v6521_v37, %v4324_v55  ;;  %7181 = vmatprep.mubr.msk.f32.mxu1 %vm150_vm0, %v8662_v56 }
0x19bb   :  { %v8666_v58 = vadd.f32 %v4334_v52, %v4332_v57 }
0x19bd   :  { %7182 = vmatmul.mubr.msk.f32.vlgmr.msra.gmra.mrb[30].mxu1 %vm150_vm0, %v8666_v58 }
0x19be   :  { %7527 = vmatpush3.bf16.xpose.msk.msra.mxu1 %vm8262_vm2, %v7522_v0 }
0x19bf   :  { %7534 = vmatprep.subr.msk.bf16.mxu1 %vm8262_vm2, %v7532_v8 }
0x1a90   :  { %v7183_v10 = vpop.f32.mrb[30].mxu1 }
0x1a91   :  { %v4429_v35 = vadd.f32 %v7183_v10, %v6527_v9  ;;  %v4423_v11 = vpop.f32.mrb[31].mxu1 }
0x1a92   :  { %v4424_v12 = vadd.f32 %v6527_v9, %v4423_v11 }
0x1a93   :  { %4729 = vrot.lane.b32.xlu0 %v4429_v35, %s8044_s0 }
0x1a94   :  { %4727 = vrot.lane.b32.xlu1 %v4424_v12, %s8044_s0  ;;  %7199 = vmatprep.mubr.msk.f32.mxu1 %vm243_vm1, %v4424_v12 }
0x1a95   :  { %7200 = vmatmul.mubr.msk.f32.vlgmr.msra.gmra.mrb[32].mxu1 %vm243_vm1, %v4429_v35 }
0x1a96   :  { %7537 = vmatpush3.bf16.xpose.msk.msra.mxu1 %vm8262_vm2, %v7532_v8 }
0x1a97   :  { %5093 = vrot.lane.b32.xlu0 %v4424_v12, %s8047_s23 }
0x1a98   :  { %7794 = vrot.lane.b32.xlu1 %v8671_v63, %s8047_s23 }
0x1a9c   :  { %5095 = vrot.lane.b32.xlu1 %v4429_v35, %s8047_s23 }
0x1b05   :  { %v4730_v14 = vpop.permute.xlu0 %4729 }
0x1b06   :  { %v4728_v15 = vpop.permute.xlu1 %4727 }
0x1b07   :  { %7213 = vmatprep.mubr.msk.f32.mxu1 %vm243_vm1, %v4728_v15 }
0x1b08   :  { %7214 = vmatmul.mubr.msk.f32.vlgmr.msra.gmra.mrb[34].mxu1 %vm243_vm1, %v4730_v14 }
0x1b09   :  { %v5094_v16 = vpop.permute.xlu0 %5093 }
0x1b0a   :  { %v7795_v32 = vpop.permute.xlu1 %7794  ;;  %7237 = vmatprep.mubr.msk.f32.mxu1 %vm243_vm1, %v5094_v16 }
0x1b0b   :  { %v7797_v18 = vunpack.i.h.bf16 %v7795_v32  ;;  %v7796_v27 = vunpack.i.l.bf16 %v7795_v32 }
0x1b0d   :  { %v7542_v19 = vpack.c.bf16 %v7797_v18, %v7796_v27 }
0x1b0e   :  { %v5096_v20 = vpop.permute.xlu1 %5095 }
0x1b0f   :  { %7544 = vmatprep.subr.msk.bf16.mxu1 %vm8262_vm2, %v7542_v19 }
0x1b10   :  { %7547 = vmatpush3.bf16.xpose.msk.msra.mxu1 %vm8262_vm2, %v7542_v19 }
0x1b17   :  { %7238 = vmatmul.mubr.msk.f32.vlgmr.msra.gmra.mrb[36].mxu1 %vm243_vm1, %v5096_v20  ;;  %v6539_v20 = vld [vmem:[%s8139_s20 + $0x28] sm:$0xff] }
0x1b68   :  { %v7201_v21 = vpop.f32.mrb[32].mxu1 }
0x1b69   :  { %v4615_v22 = vmul.f32 0.35355338, %v7201_v21  ;;  %v4605_v5 = vpop.f32.mrb[33].mxu1  ;;  %v6538_v21 = vld [vmem:[%s8139_s20 + $0x20] sm:$0xff] }
0x1b6a   :  { %v4614_v23 = vmul.f32 0.35355338, %v4605_v5 }
0x1b6b   :  { %v4617_v54 = vadd.f32 %v8701_v24, %v4615_v22 }
0x1b6c   :  { %v4616_v39 = vadd.f32 %v8705_v25, %v4614_v23 }
0x1b6d   :  { %v4621_v40 = vsel %vm331_vm3, %v4617_v54, -inf }
0x1b6e   :  { %4622 = vmax.xlane.f32.xlu1 %v4621_v40  ;;  %v4618_v26 = vsel %vm331_vm3, %v4616_v39, -inf }
0x1b6f   :  { %4619 = vmax.xlane.f32.xlu0 %v4618_v26 }
0x1b7f   :  { %7799 = vrot.lane.b32.xlu1 %v8671_v63, %s8045_s5 }
0x1b83   :  { %7809 = vrot.lane.b32.xlu1 %v8671_v63, %s8880_s13 }
0x1b87   :  { %5380 = vrot.lane.b32.xlu1 %v4424_v12, %s8880_s13 }
0x1bdb   :  { %v7215_v28 = vpop.f32.mrb[34].mxu1 }
0x1bdc   :  { %v4819_v29 = vmul.f32 0.35355338, %v7215_v28  ;;  %v4809_v3 = vpop.f32.mrb[35].mxu1 }
0x1bdd   :  { %v4818_v30 = vmul.f32 0.35355338, %v4809_v3 }
0x1bde   :  { %v4821_v31 = vadd.f32 %v8701_v24, %v4819_v29 }
0x1bdf   :  { %v4820_v1 = vadd.f32 %v8705_v25, %v4818_v30 }
0x1be0   :  { %v4825_v33 = vsel %vm331_vm3, %v4821_v31, -inf }
0x1be1   :  { %4826 = vmax.xlane.f32.xlu0 %v4825_v33  ;;  %v4822_v36 = vsel %vm331_vm3, %v4820_v1, -inf }
0x1be5   :  { %4823 = vmax.xlane.f32.xlu0 %v4822_v36 }
0x1bea   :  { %v7239_v37 = vpop.f32.mrb[36].mxu1 }
0x1beb   :  { %v5175_v38 = vpop.f32.mrb[37].mxu1  ;;  %v5185_v12 = vmul.f32 0.35355338, %v7239_v37 }
0x1bec   :  { %v5184_v10 = vmul.f32 0.35355338, %v5175_v38 }
0x1bed   :  { %v5187_v32 = vadd.f32 %v8701_v24, %v5185_v12 }
0x1bee   :  { %v5186_v14 = vadd.f32 %v8705_v25, %v5184_v10 }
0x1bef   :  { %v5191_v19 = vsel %vm331_vm3, %v5187_v32, -inf }
0x1bf0   :  { %v5188_v18 = vsel %vm331_vm3, %v5186_v14, -inf }
0x1bfb   :  { %v4623_v41 = vpop.xlane.xlu1 %4622  ;;  %7804 = vrot.lane.b32.xlu0 %v8671_v63, %s8046_s22 }
0x1bfc   :  { %v4625_v42 = vsub.f32 %v4617_v54, %v4623_v41  ;;  %v4620_v43 = vpop.xlane.xlu0 %4619 }
0x1bfd   :  { %v4624_v44 = vsub.f32 %v4616_v39, %v4620_v43 }
0x1bfe   :  { %v4628_v45 = vmul.f32 1.442695, %v4625_v42 }
0x1bff   :  { %v4626_v34 = vmul.f32 1.442695, %v4624_v44  ;;  %v7800_v46 = vpop.permute.xlu1 %7799  ;;  %5382 = vrot.lane.b32.xlu0 %v4429_v35, %s8880_s13 }
0x1c00   :  { %v7802_v47 = vunpack.i.h.bf16 %v7800_v46  ;;  %v7801_v48 = vunpack.i.l.bf16 %v7800_v46 }
0x1c01   :  { %7935 = vpow2.f32 %v4626_v34 }
0x1c02   :  { %7937 = vpow2.f32 %v4628_v45  ;;  %v7528_v49 = vpack.c.bf16 %v7802_v47, %v7801_v48 }
0x1c03   :  { %v7810_v50 = vpop.permute.xlu1 %7809 }
0x1c04   :  { %v7812_v51 = vunpack.i.h.bf16 %v7810_v50  ;;  %v7811_v52 = vunpack.i.l.bf16 %v7810_v50  ;;  %7529 = vmatprep.subr.bf16.mxu0 %v7528_v49 }
0x1c05   :  { %7531 = vmatpush3.bf16.msra.mxu0 %v7528_v49 }
0x1c06   :  { %v7552_v53 = vpack.c.bf16 %v7812_v51, %v7811_v52 }
0x1c07   :  { %v5381_v13 = vpop.permute.xlu1 %5380 }
0x1c08   :  { %7554 = vmatprep.subr.msk.bf16.mxu1 %vm8262_vm2, %v7552_v53  ;;  %7256 = vmatprep.mubr.msk.f32.mxu1 %vm243_vm1, %v5381_v13 }
0x1c09   :  { %7557 = vmatpush3.bf16.xpose.msk.msra.mxu1 %vm8262_vm2, %v7552_v53 }
0x1c0b   :  { %v7936_v55 = vpop.eup %7935 }
0x1c0c   :  { %v7938_v57 = vpop.eup %7937  ;;  %7206 = vmatprep.mubr.msk.f32.mxu0 %vm331_vm3, %v7936_v55  ;;  %v4630_v15 = vsel %vm331_vm3, %v7936_v55, 0.0 }
0x1c0d   :  { %7207 = vmatmul.mubr.msk.f32.vlgmr.msra.gmra.mrb[38].mxu0 %vm331_vm3, %v7938_v57  ;;  %v4633_v27 = vsel %vm331_vm3, %v7938_v57, 0.0 }
0x1c6e   :  { %v4827_v7 = vpop.xlane.xlu0 %4826 }
0x1c6f   :  { %v4829_v59 = vsub.f32 %v4821_v31, %v4827_v7 }
0x1c71   :  { %v4832_v60 = vmul.f32 1.442695, %v4829_v59 }
0x1c72   :  { %v4824_v61 = vpop.xlane.xlu0 %4823 }
0x1c73   :  { %7939 = vpow2.f32 %v4832_v60  ;;  %v4828_v62 = vsub.f32 %v4820_v1, %v4824_v61  ;;  %v6540_v60 = vld [vmem:[%s8139_s20 + $0x30] sm:$0xff] }
0x1c75   :  { %v4830_v0 = vmul.f32 1.442695, %v4828_v62 }
0x1c76   :  { %v7805_v2 = vpop.permute.xlu0 %7804 }
0x1c77   :  { %7941 = vpow2.f32 %v4830_v0  ;;  %v7807_v4 = vunpack.i.h.bf16 %v7805_v2  ;;  %v7806_v6 = vunpack.i.l.bf16 %v7805_v2 }
0x1c79   :  { %v7538_v8 = vpack.c.bf16 %v7807_v4, %v7806_v6 }
0x1c7a   :  { %v5383_v17 = vpop.permute.xlu0 %5382 }
0x1c7b   :  { %7539 = vmatprep.subr.bf16.mxu0 %v7538_v8  ;;  %7257 = vmatmul.mubr.msk.f32.vlgmr.msra.gmra.mrb[38].mxu1 %vm243_vm1, %v5383_v17 }
0x1c7c   :  { %7541 = vmatpush3.bf16.msra.mxu0 %v7538_v8 }
0x1c7d   :  { %v7940_v9 = vpop.eup %7939  ;;  %7223 = vmatprep.subr.mxu0 %v6539_v20 }
0x1c7e   :  { %v4837_v35 = vsel %vm331_vm3, %v7940_v9, 0.0 }
0x1c7f   :  { %4838 = vadd.xlane.f32.xlu0 %v4837_v35 }
0x1c81   :  { %v7942_v11 = vpop.eup %7941 }
0x1c82   :  { %7220 = vmatprep.mubr.msk.f32.mxu0 %vm331_vm3, %v7942_v11  ;;  %v4834_v16 = vsel %vm331_vm3, %v7942_v11, 0.0 }
0x1c83   :  { %4631 = vadd.xlane.f32.xlu0 %v4630_v15  ;;  %4835 = vadd.xlane.f32.xlu1 %v4834_v16 }
0x1c84   :  { %7221 = vmatmul.mubr.msk.f32.vlgmr.msra.gmra.mrb[40].mxu0 %vm331_vm3, %v7940_v9 }
0x1c85   :  { %7224 = vmatpush3.msra.mxu0 %v6539_v20 }
0x1c86   :  { %7228 = vmatprep.subr.mxu0 %v6538_v21 }
0x1c87   :  { %5189 = vmax.xlane.f32.xlu0 %v5188_v18  ;;  %4634 = vadd.xlane.f32.xlu1 %v4633_v27 }
0x1c8b   :  { %5192 = vmax.xlane.f32.xlu1 %v5191_v19 }
0x1c9d   :  { %7814 = vrot.lane.b32.xlu0 %v8671_v63, %s8048_s26 }
0x1ce0   :  { %v7208_v22 = vpop.f32.mrb[38].mxu0 }
0x1ce1   :  { %v4714_v5 = vpop.f32.mrb[39].mxu0 }
0x1d0c   :  { %v4839_v54 = vpop.xlane.xlu0 %4838 }
0x1d10   :  { %v4836_v23 = vpop.xlane.xlu1 %4835  ;;  %v4632_v40 = vpop.xlane.xlu0 %4631 }
0x1d11   :  { %7943 = vrcp.f32 %v4836_v23 }
0x1d12   :  { %7945 = vrcp.f32 %v4632_v40 }
0x1d13   :  { %7947 = vrcp.f32 %v4839_v54 }
0x1d14   :  { %v4635_v39 = vpop.xlane.xlu1 %4634  ;;  %v5190_v29 = vpop.xlane.xlu0 %5189 }
0x1d15   :  { %v5194_v3 = vsub.f32 %v5186_v14, %v5190_v29  ;;  %v6575_v29 = vld [vmem:[%s8873_s15 + $0x1] ss:$0 sm:$0xff] }
0x1d17   :  { %v5196_v33 = vmul.f32 1.442695, %v5194_v3 }
0x1d18   :  { %v5193_v26 = vpop.xlane.xlu1 %5192  ;;  %v7815_v43 = vpop.permute.xlu0 %7814 }
0x1d19   :  { %v5195_v28 = vsub.f32 %v5187_v32, %v5193_v26  ;;  %v7817_v46 = vunpack.i.h.bf16 %v7815_v43  ;;  %v7816_v47 = vunpack.i.l.bf16 %v7815_v43 }
0x1d1b   :  { %v5198_v30 = vmul.f32 1.442695, %v5195_v28  ;;  %v7944_v44 = vpop.eup %7943  ;;  %v7548_v53 = vpack.c.bf16 %v7817_v46, %v7816_v47 }
0x1d1c   :  { %v7946_v34 = vpop.eup %7945 }
0x1d1d   :  { %7949 = vpow2.f32 %v5198_v30  ;;  %v7948_v50 = vpop.eup %7947 }
0x1d1e   :  { %7951 = vpow2.f32 %v5196_v33 }
0x1d1f   :  { %7953 = vrcp.f32 %v4635_v39 }
0x1d4e   :  { %v7258_v31 = vpop.f32.mrb[38].mxu1 }
0x1d4f   :  { %v5462_v1 = vpop.f32.mrb[39].mxu1  ;;  %v5472_v36 = vmul.f32 0.35355338, %v7258_v31 }
0x1d50   :  { %v5471_v37 = vmul.f32 0.35355338, %v5462_v1 }
0x1d51   :  { %v5474_v41 = vadd.f32 %v8701_v24, %v5472_v36  ;;  %v4725_v24 = vmul.f32 %v7946_v34, %v4714_v5 }
0x1d52   :  { %v5473_v38 = vadd.f32 %v8705_v25, %v5471_v37  ;;  %v7950_v25 = vpop.eup %7949 }
0x1d53   :  { %v5478_v49 = vsel %vm331_vm3, %v5474_v41, -inf  ;;  %v5203_v13 = vsel %vm331_vm3, %v7950_v25, 0.0  ;;  %v7952_v55 = vpop.eup %7951 }
0x1d54   :  { %v5475_v42 = vsel %vm331_vm3, %v5473_v38, -inf  ;;  %v7954_v57 = vpop.eup %7953  ;;  %v5200_v7 = vsel %vm331_vm3, %v7952_v55, 0.0 }
0x1d55   :  { %5476 = vmax.xlane.f32.xlu1 %v5475_v42  ;;  %v4726_v59 = vmul.f32 %v7954_v57, %v7208_v22 }
0x1d57   :  { %v7222_v45 = vpop.f32.mrb[40].mxu0 }
0x1d58   :  { %v4918_v48 = vpop.f32.mrb[41].mxu0  ;;  %v4930_v52 = vmul.f32 %v7948_v50, %v7222_v45  ;;  %v6577_v50 = vld [vmem:[%s8875_s18 + $0x1] ss:$0 sm:$0xff] }
0x1d59   :  { %v4929_v51 = vmul.f32 %v7944_v44, %v4918_v48  ;;  %5479 = vmax.xlane.f32.xlu1 %v5478_v49  ;;  %v6578_v48 = vld [vmem:[%s8874_s16 + $0x20] sm:$0xff]  ;;  %v6579_v49 = vld [vmem:[%s8874_s16 + $0x28] sm:$0xff] }
0x1d5b   :  { %7225 = vmatprep.mubr.msk.f32.mxu0 %vm243_vm1, %v4929_v51  ;;  %v7562_v51 = vpack.c.bf16 %v6579_v49, %v6578_v48 }
0x1d5c   :  { %7226 = vmatmul.mubr.msk.f32.vlgmr.msra.gmra.mrb[42].mxu0 %vm243_vm1, %v4930_v52  ;;  %v6581_v52 = vld [vmem:[%s8874_s16 + $0x38] sm:$0xff] }
0x1d5d   :  { %7229 = vmatpush3.msra.mxu0 %v6538_v21  ;;  %7230 = vmatprep.mubr.msk.f32.mxu0 %vm243_vm1, %v4725_v24  ;;  %v6541_v21 = vld [vmem:[%s8139_s20 + $0x38] sm:$0xff] }
0x1d5e   :  { %7549 = vmatprep.subr.bf16.mxu0 %v7548_v53  ;;  %5204 = vadd.xlane.f32.xlu1 %v5203_v13  ;;  %v6584_v13 = vld [vmem:[%s8876_s11 + $0x48] sm:$0xff] }
0x1d5f   :  { %7563 = vmatprep.subr.bf16.mxu1 %v7562_v51 }
0x1d60   :  { %7565 = vmatpush3.bf16.msra.mxu1 %v7562_v51 }
0x1d62   :  { %5201 = vadd.xlane.f32.xlu1 %v5200_v7  ;;  %v6586_v7 = vld [vmem:[%s8876_s11 + $0x58] sm:$0xff] }
0x1d64   :  { %7231 = vmatmul.mubr.msk.f32.vlgmr.msra.gmra.mrb[42].mxu0 %vm243_vm1, %v4726_v59 }
0x1d65   :  { %7551 = vmatpush3.bf16.msra.mxu0 %v7548_v53  ;;  %7244 = vmatprep.mubr.msk.f32.mxu0 %vm331_vm3, %v7952_v55  ;;  %v6583_v53 = vld [vmem:[%s8876_s11 + $0x40] sm:$0xff]  ;;  %v6585_v55 = vld [vmem:[%s8876_s11 + $0x50] sm:$0xff] }
0x1d66   :  { %7247 = vmatprep.subr.mxu0 %v6540_v60  ;;  %v7570_v57 = vpack.c.bf16 %v6584_v13, %v6583_v53  ;;  %v7574_v59 = vpack.c.bf16 %v6586_v7, %v6585_v55 }
0x1d68   :  { %7245 = vmatmul.mubr.msk.f32.vlgmr.msra.gmra.mrb[44].mxu0 %vm331_vm3, %v7950_v25  ;;  %v6580_v25 = vld [vmem:[%s8874_s16 + $0x30] sm:$0xff] }
0x1d69   :  { %7248 = vmatpush3.msra.mxu0 %v6540_v60  ;;  %v7566_v24 = vpack.c.bf16 %v6581_v52, %v6580_v25  ;;  %v6587_v60 = vld [vmem:[%s8876_s11 + $0x60] sm:$0xff] }
0x1d6b   :  { %7567 = vmatprep.subr.bf16.mxu1 %v7566_v24 }
0x1d6c   :  { %7569 = vmatpush3.bf16.msra.mxu1 %v7566_v24 }
0x1d73   :  { %7819 = vrot.lane.b32.xlu1 %v8671_v63, %s8050_s1 }
0x1de2   :  { %v5477_v61 = vpop.xlane.xlu1 %5476 }
0x1de3   :  { %v5481_v62 = vsub.f32 %v5473_v38, %v5477_v61  ;;  %v6588_v61 = vld [vmem:[%s8876_s11 + $0x68] sm:$0xff] }
0x1de5   :  { %v5483_v0 = vmul.f32 1.442695, %v5481_v62  ;;  %v7578_v62 = vpack.c.bf16 %v6588_v61, %v6587_v60 }
0x1de6   :  { %v5480_v2 = vpop.xlane.xlu1 %5479 }
0x1de7   :  { %7955 = vpow2.f32 %v5483_v0  ;;  %v5482_v4 = vsub.f32 %v5474_v41, %v5480_v2 }
0x1de9   :  { %v5485_v6 = vmul.f32 1.442695, %v5482_v4 }
0x1deb   :  { %7957 = vpow2.f32 %v5485_v6  ;;  %v5205_v8 = vpop.xlane.xlu1 %5204 }
0x1dec   :  { %7959 = vrcp.f32 %v5205_v8 }
0x1def   :  { %v5202_v17 = vpop.xlane.xlu1 %5201 }
0x1df0   :  { %7961 = vrcp.f32 %v5202_v17 }
0x1df1   :  { %v7956_v9 = vpop.eup %7955 }
0x1df2   :  { %v5487_v10 = vsel %vm331_vm3, %v7956_v9, 0.0 }
0x1df3   :  { %v7820_v35 = vpop.permute.xlu1 %7819  ;;  %5488 = vadd.xlane.f32.xlu0 %v5487_v10 }
0x1df4   :  { %v7822_v11 = vunpack.i.h.bf16 %v7820_v35  ;;  %v7821_v63 = vunpack.i.l.bf16 %v7820_v35 }
0x1df5   :  { %v7958_v12 = vpop.eup %7957 }
0x1df6   :  { %v7558_v14 = vpack.c.bf16 %v7822_v11, %v7821_v63  ;;  %v5490_v15 = vsel %vm331_vm3, %v7958_v12, 0.0  ;;  %v7960_v16 = vpop.eup %7959 }
0x1df7   :  { %5491 = vadd.xlane.f32.xlu1 %v5490_v15 }
0x1df8   :  { %7559 = vmatprep.subr.bf16.mxu0 %v7558_v14 }
0x1dfa   :  { %v7962_v18 = vpop.eup %7961 }
0x1e3b   :  { %v7246_v32 = vpop.f32.mrb[44].mxu0 }
0x1e3c   :  { %v5296_v27 = vmul.f32 %v7960_v16, %v7246_v32  ;;  %v5284_v19 = vpop.f32.mrb[45].mxu0  ;;  %v6589_v32 = vld [vmem:[%s8876_s11 + $0x70] sm:$0xff] }
0x1e3d   :  { %v5295_v20 = vmul.f32 %v7962_v18, %v5284_v19  ;;  %v6590_v18 = vld [vmem:[%s8876_s11 + $0x78] sm:$0xff]  ;;  %v6592_v19 = vld [vmem:[%s8877_s10 + $0x1] ss:$0 sm:$0xff] }
0x1e3f   :  { %7249 = vmatprep.mubr.msk.f32.mxu0 %vm243_vm1, %v5295_v20 }
0x1e40   :  { %7250 = vmatmul.mubr.msk.f32.vlgmr.msra.gmra.mrb[42].mxu0 %vm243_vm1, %v5296_v27  ;;  %v7582_v27 = vpack.c.bf16 %v6590_v18, %v6589_v32 }
0x1e41   :  { %7561 = vmatpush3.bf16.msra.mxu0 %v7558_v14  ;;  %7263 = vmatprep.mubr.msk.f32.mxu0 %vm331_vm3, %v7956_v9 }
0x1e42   :  { %7266 = vmatprep.subr.mxu0 %v6541_v21 }
0x1e44   :  { %7264 = vmatmul.mubr.msk.f32.vlgmr.msra.gmra.mrb[46].mxu0 %vm331_vm3, %v7958_v12 }
0x1e45   :  { %7267 = vmatpush3.msra.mxu0 %v6541_v21 }
0x1e46   :  { %7571 = vmatprep.subr.bf16.mxu0 %v7570_v57 }
0x1e80   :  { %v5489_v22 = vpop.xlane.xlu0 %5488 }
0x1e81   :  { %7963 = vrcp.f32 %v5489_v22 }
0x1e84   :  { %v5492_v5 = vpop.xlane.xlu1 %5491 }
0x1e85   :  { %7965 = vrcp.f32 %v5492_v5 }
0x1e8b   :  { %v7964_v54 = vpop.eup %7963 }
0x1e8f   :  { %v7966_v40 = vpop.eup %7965 }
0x1f17   :  { %v7265_v23 = vpop.f32.mrb[46].mxu0 }
0x1f18   :  { %v5571_v39 = vpop.f32.mrb[47].mxu0  ;;  %v5583_v28 = vmul.f32 %v7966_v40, %v7265_v23 }
0x1f19   :  { %v5582_v26 = vmul.f32 %v7964_v54, %v5571_v39  ;;  %v6595_v39 = vld [vmem:[%s8878_s28 + $0x1] ss:$0 sm:$0xff] }
0x1f1b   :  { %7268 = vmatprep.mubr.msk.f32.mxu0 %vm243_vm1, %v5582_v26 }
0x1f1c   :  { %7269 = vmatmul.mubr.msk.f32.vlgmr.msra.gmra.mrb[42].mxu0 %vm243_vm1, %v5583_v28 }
0x1f1d   :  { %7573 = vmatpush3.bf16.msra.mxu0 %v7570_v57 }
0x1f1e   :  { %7575 = vmatprep.subr.bf16.mxu0 %v7574_v59 }
0x1f21   :  { %7577 = vmatpush3.bf16.msra.mxu0 %v7574_v59 }
0x1f22   :  { %7579 = vmatprep.subr.bf16.mxu0 %v7578_v62 }
0x1f25   :  { %7581 = vmatpush3.bf16.msra.mxu0 %v7578_v62 }
0x1f26   :  { %7583 = vmatprep.subr.bf16.mxu0 %v7582_v27 }
0x1f29   :  { %7585 = vmatpush3.bf16.msra.mxu0 %v7582_v27 }
0x1fef   :  { %v7270_v3 = vpop.f32.mrb[42].mxu0 }
0x1ff0   :  { %v5656_v30 = vpop.f32.mrb[43].mxu0  ;;  %v5674_v31 = vadd.f32 %v7270_v3, %v6575_v29 }
0x1ff1   :  { %v5673_v1 = vadd.f32 %v6575_v29, %v5656_v30 }
0x1ff2   :  { %v5676_v36 = vadd.f32 %v5674_v31, %v8666_v58 }
0x1ff3   :  { %v5675_v33 = vadd.f32 %v5673_v1, %v8662_v56 }
0x1ff4   :  { %v5682_v38 = vsel %vm150_vm0, %v5676_v36, 0.0 }
0x1ff5   :  { %v5679_v37 = vsel %vm150_vm0, %v5675_v33, 0.0 }
0x1ff6   :  { %5680 = vadd.xlane.f32.xlu0 %v5679_v37 }
0x1ffa   :  { %5683 = vadd.xlane.f32.xlu0 %v5682_v38 }
0x2083   :  { %v5681_v41 = vpop.xlane.xlu0 %5680 }
0x2084   :  { %v5685_v42 = vmul.f32 0.03125, %v5681_v41 }
0x2086   :  { %v5687_v43 = vsub.f32 %v5675_v33, %v5685_v42 }
0x2087   :  { %v5684_v44 = vpop.xlane.xlu0 %5683 }
0x2088   :  { %v5686_v45 = vmul.f32 0.03125, %v5684_v44  ;;  %v5689_v34 = vmul.f32 %v5687_v43, %v5687_v43 }
0x208a   :  { %v5688_v56 = vsub.f32 %v5676_v36, %v5686_v45  ;;  %v5691_v58 = vsel %vm150_vm0, %v5689_v34, 0.0 }
0x208b   :  { %5692 = vadd.xlane.f32.xlu0 %v5691_v58 }
0x208c   :  { %v5690_v46 = vmul.f32 %v5688_v56, %v5688_v56 }
0x208e   :  { %v5694_v47 = vsel %vm150_vm0, %v5690_v46, 0.0 }
0x208f   :  { %5695 = vadd.xlane.f32.xlu0 %v5694_v47 }
0x20a5   :  { %5713 = vrot.lane.b32.xlu0 %v6577_v50, %s8045_s5 }
0x2118   :  { %v5693_v0 = vpop.xlane.xlu0 %5692 }
0x2119   :  { %v5697_v2 = vmul.f32 0.03125, %v5693_v0 }
0x211b   :  { %v5699_v4 = vadd.f32 1e-05, %v5697_v2 }
0x211c   :  { %v5696_v6 = vpop.xlane.xlu0 %5695 }
0x211d   :  { %7967 = vrsqrt.f32 %v5699_v4  ;;  %v5698_v8 = vmul.f32 0.03125, %v5696_v6 }
0x211f   :  { %v5700_v17 = vadd.f32 1e-05, %v5698_v8 }
0x2120   :  { %v5714_v35 = vpop.permute.xlu0 %5713 }
0x2121   :  { %7969 = vrsqrt.f32 %v5700_v17 }
0x2127   :  { %v7968_v9 = vpop.eup %7967 }
0x2128   :  { %v5703_v10 = vmul.f32 %v7968_v9, %v5687_v43 }
0x212a   :  { %v5711_v11 = vmul.f32 %v6577_v50, %v5703_v10 }
0x212b   :  { %v7970_v63 = vpop.eup %7969 }
0x212c   :  { %v5704_v12 = vmul.f32 %v7970_v63, %v5688_v56  ;;  %v5716_v14 = vadd.f32 %v5714_v35, %v5711_v11  ;;  %v6599_v56 = vld [vmem:[%s8879_s7 + $0x1] ss:$0 sm:$0xff] }
0x212e   :  { %v5712_v15 = vmul.f32 %v6577_v50, %v5704_v12  ;;  %7279 = vmatprep.mubr.msk.f32.mxu1 %vm150_vm0, %v5716_v14 }
0x2130   :  { %v5717_v16 = vadd.f32 %v5714_v35, %v5712_v15  ;;  %v6600_v35 = vld [vmem:[%s8884_s9] ss:$0 sm:$0xff] }
0x2132   :  { %7280 = vmatmul.mubr.msk.f32.vlgmr.msra.gmra.mrb[40].mxu1 %vm150_vm0, %v5717_v16 }
0x2205   :  { %v7281_v20 = vpop.f32.mrb[40].mxu1 }
0x2206   :  { %v5820_v21 = vadd.f32 %v7281_v20, %v6592_v19  ;;  %v5814_v22 = vpop.f32.mrb[41].mxu1 }
0x2207   :  { %v5815_v5 = vadd.f32 %v6592_v19, %v5814_v22 }
0x2208   :  { %v5824_v54 = vmax.f32 %v5820_v21, 0.0 }
0x2209   :  { %v5823_v23 = vmax.f32 %v5815_v5, 0.0 }
0x220b   :  { %7298 = vmatprep.mubr.msk.f32.mxu0 %vm2920_vm4, %v5823_v23 }
0x220c   :  { %7299 = vmatmul.mubr.msk.f32.vlgmr.msra.gmra.mrb[48].mxu0 %vm2920_vm4, %v5824_v54 }
0x22df   :  { %v7300_v40 = vpop.f32.mrb[48].mxu0 }
0x22e0   :  { %v5903_v26 = vpop.f32.mrb[49].mxu0  ;;  %v5909_v28 = vadd.f32 %v7300_v40, %v6595_v39 }
0x22e1   :  { %v5904_v29 = vadd.f32 %v6595_v39, %v5903_v26 }
0x22e2   :  { %v5913_v30 = vadd.f32 %v5909_v28, %v5717_v16 }
0x22e3   :  { %v5912_v3 = vadd.f32 %v5904_v29, %v5716_v14 }
0x22e4   :  { %v5919_v1 = vsel %vm150_vm0, %v5913_v30, 0.0 }
0x22e5   :  { %v5916_v31 = vsel %vm150_vm0, %v5912_v3, 0.0 }
0x22e6   :  { %5917 = vadd.xlane.f32.xlu1 %v5916_v31 }
0x22ea   :  { %5920 = vadd.xlane.f32.xlu1 %v5919_v1 }
0x2373   :  { %v5918_v33 = vpop.xlane.xlu1 %5917 }
0x2374   :  { %v5922_v36 = vmul.f32 0.03125, %v5918_v33 }
0x2376   :  { %v5924_v41 = vsub.f32 %v5912_v3, %v5922_v36 }
0x2377   :  { %v5921_v37 = vpop.xlane.xlu1 %5920 }
0x2378   :  { %v5923_v38 = vmul.f32 0.03125, %v5921_v37  ;;  %v5926_v45 = vmul.f32 %v5924_v41, %v5924_v41 }
0x237a   :  { %v5925_v42 = vsub.f32 %v5913_v30, %v5923_v38  ;;  %v5928_v34 = vsel %vm150_vm0, %v5926_v45, 0.0  ;;  %v6039_v45 = vld [vmem:[%s8886_s8 + $0x10] sm:$0xff] }
0x237c   :  { %v5927_v43 = vmul.f32 %v5925_v42, %v5925_v42 }
0x237e   :  { %v5931_v44 = vsel %vm150_vm0, %v5927_v43, 0.0  ;;  %v6038_v43 = vld [vmem:[%s8886_s8 + $0x8] sm:$0xff] }
0x237f   :  { %5932 = vadd.xlane.f32.xlu1 %v5931_v44 }
0x2383   :  { %5929 = vadd.xlane.f32.xlu1 %v5928_v34  ;;  %v6040_v34 = vld [vmem:[%s8886_s8 + $0x18] sm:$0xff] }
0x2394   :  { %5950 = vrot.lane.b32.xlu1 %v6599_v56, %s8045_s5 }
0x240c   :  { %v5933_v58 = vpop.xlane.xlu1 %5932 }
0x240d   :  { %v5935_v46 = vmul.f32 0.03125, %v5933_v58 }
0x240f   :  { %v5937_v47 = vadd.f32 1e-05, %v5935_v46 }
0x2410   :  { %v5930_v48 = vpop.xlane.xlu1 %5929 }
0x2411   :  { %7971 = vrsqrt.f32 %v5937_v47  ;;  %v5934_v49 = vmul.f32 0.03125, %v5930_v48 }
0x2413   :  { %v5936_v50 = vadd.f32 1e-05, %v5934_v49 }
0x2414   :  { %v5951_v52 = vpop.permute.xlu1 %5950 }
0x2415   :  { %7973 = vrsqrt.f32 %v5936_v50 }
0x241b   :  { %v7972_v51 = vpop.eup %7971 }
0x241c   :  { %v5941_v25 = vmul.f32 %v7972_v51, %v5925_v42  ;;  %v6037_v42 = vld [vmem:[%s8886_s8] sm:$0xff] }
0x241d   :  { %v7586_v44 = vpack.c.bf16 %v6038_v43, %v6037_v42 }
0x241e   :  { %v5949_v24 = vmul.f32 %v6599_v56, %v5941_v25 }
0x241f   :  { %v7974_v53 = vpop.eup %7973  ;;  %7587 = vmatprep.subr.bf16.mxu1 %v7586_v44 }
0x2420   :  { %v5940_v13 = vmul.f32 %v7974_v53, %v5924_v41  ;;  %v5954_v55 = vadd.f32 %v5951_v52, %v5949_v24  ;;  %v6601_v41 = vld [vmem:[%s8885_s17] ss:$0 sm:$0xff]  ;;  %7589 = vmatpush3.bf16.msra.mxu1 %v7586_v44 }
0x2422   :  { %v5948_v57 = vmul.f32 %v6599_v56, %v5940_v13  ;;  %v5959_v7 = vsel %vm150_vm0, %v5954_v55, 0.0  ;;  %v7590_v56 = vpack.c.bf16 %v6040_v34, %v6039_v45 }
0x2423   :  { %5960 = vadd.xlane.f32.xlu1 %v5959_v7 }
0x2424   :  { %v5953_v59 = vadd.f32 %v5951_v52, %v5948_v57  ;;  %7591 = vmatprep.subr.bf16.mxu1 %v7590_v56 }
0x2425   :  { %7593 = vmatpush3.bf16.msra.mxu1 %v7590_v56 }
0x2426   :  { %v5956_v60 = vsel %vm150_vm0, %v5953_v59, 0.0 }
0x2427   :  { %5957 = vadd.xlane.f32.xlu0 %v5956_v60  ;;  %v6130_v60 = vld [vmem:[%s8887_s14 + $0x8] sm:$0xff] }
0x24b0   :  { %v5961_v61 = vpop.xlane.xlu1 %5960 }
0x24b1   :  { %v5963_v62 = vmul.f32 0.03125, %v5961_v61 }
0x24b3   :  { %v5965_v4 = vsub.f32 %v5954_v55, %v5963_v62  ;;  %v6221_v62 = vld [vmem:[%s8209_s4] sm:$0xff] }
0x24b4   :  { %v5958_v0 = vpop.xlane.xlu0 %5957 }
0x24b5   :  { %v5962_v2 = vmul.f32 0.03125, %v5958_v0  ;;  %v5967_v9 = vmul.f32 %v5965_v4, %v5965_v4  ;;  %v6222_v0 = vld [vmem:[%s8209_s4 + $0x8] sm:$0xff] }
0x24b7   :  { %v5964_v6 = vsub.f32 %v5953_v59, %v5962_v2  ;;  %v5971_v10 = vsel %vm150_vm0, %v5967_v9, 0.0  ;;  %v6129_v59 = vld [vmem:[%s8887_s14] sm:$0xff]  ;;  %v7598_v2 = vpack.c.bf16 %v6222_v0, %v6221_v62 }
0x24b8   :  { %v7594_v61 = vpack.c.bf16 %v6130_v60, %v6129_v59 }
0x24b9   :  { %v5966_v8 = vmul.f32 %v5964_v6, %v5964_v6 }
0x24ba   :  { %7595 = vmatprep.subr.bf16.mxu1 %v7594_v61 }
0x24bb   :  { %v5968_v17 = vsel %vm150_vm0, %v5966_v8, 0.0 }
0x24bc   :  { %5969 = vadd.xlane.f32.xlu0 %v5968_v17 }
0x24c0   :  { %5972 = vadd.xlane.f32.xlu0 %v5971_v10  ;;  %v6223_v10 = vld [vmem:[%s8209_s4 + $0x10] sm:$0xff] }
0x24d6   :  { %5990 = vrot.lane.b32.xlu0 %v6600_v35, %s8045_s5 }
0x2549   :  { %v5970_v11 = vpop.xlane.xlu0 %5969 }
0x254a   :  { %v5974_v63 = vmul.f32 0.03125, %v5970_v11 }
0x254c   :  { %v5976_v12 = vadd.f32 1e-05, %v5974_v63  ;;  %v6605_v63 = vld [vmem:[%s8204_s27] ss:$0 sm:$0xff] }
0x254d   :  { %v5973_v14 = vpop.xlane.xlu0 %5972 }
0x254e   :  { %7975 = vrsqrt.f32 %v5976_v12  ;;  %v5975_v15 = vmul.f32 0.03125, %v5973_v14 }
0x2550   :  { %v5977_v16 = vadd.f32 1e-05, %v5975_v15 }
0x2551   :  { %v5991_v27 = vpop.permute.xlu0 %5990 }
0x2552   :  { %7977 = vrsqrt.f32 %v5977_v16 }
0x2558   :  { %v7976_v32 = vpop.eup %7975 }
0x2559   :  { %v5980_v18 = vmul.f32 %v7976_v32, %v5964_v6 }
0x255b   :  { %v5988_v19 = vmul.f32 %v6600_v35, %v5980_v18 }
0x255c   :  { %v7978_v20 = vpop.eup %7977 }
0x255d   :  { %v5981_v21 = vmul.f32 %v7978_v20, %v5965_v4  ;;  %v5993_v22 = vadd.f32 %v5991_v27, %v5988_v19  ;;  %v6602_v4 = vld [vmem:[%s8888_s19] ss:$0 sm:$0xff]  ;;  %v6314_v20 = vld [vmem:[%s8889_s24 + $0x8] sm:$0xff] }
0x255f   :  { %v5989_v5 = vmul.f32 %v6600_v35, %v5981_v21  ;;  %v5995_v23 = vmax.f32 %v5993_v22, 0.0  ;;  %v6224_v35 = vld [vmem:[%s8209_s4 + $0x18] sm:$0xff] }
0x2560   :  { %v7602_v11 = vpack.c.bf16 %v6224_v35, %v6223_v10 }
0x2561   :  { %v5994_v54 = vadd.f32 %v5991_v27, %v5989_v5  ;;  %v5998_v39 = vsel %vm150_vm0, %v5995_v23, 0.0  ;;  %v6608_v27 = vld [vmem:[%s8214_s25] ss:$0 sm:$0xff]  ;;  %s8055_s25 = smov [#allocation2]  }
0x2562   :  { %5999 = vadd.xlane.f32.xlu1 %v5998_v39  ;;  %v6313_v5 = vld [vmem:[%s8889_s24] sm:$0xff]  ;;  %s6351_s6 = sshll.u32 %s8055_s25, 4  ;;  %s6352_s6 = int_to_ptr.vmem [resolvable:$true] %s6351_s6 }
0x2563   :  { %v5996_v40 = vmax.f32 %v5994_v54, 0.0  ;;  %s7989_s12 = scalar_lea.vmem %s6352_s6, 16  ;;  %s7993_s20 = scalar_lea.vmem %s6352_s6, 32 }
0x2564   :  { %p7990_p0 = scmp.ne.s32.totalorder %s6352_s6, %s7989_s12  ;;  %p7994_p1 = scmp.lt.s32.totalorder %s6352_s6, %s6352_s6 }
0x2565   :  { %v6001_v26 = vsel %vm150_vm0, %v5996_v40, 0.0  ;;  %p7995_p2 = scmp.lt.s32.totalorder %s7993_s20, %s7989_s12 }
0x2566   :  { %6002 = vadd.xlane.f32.xlu1 %v6001_v26 }
0x2567   :  { %p7996_p3 = por %p7995_p2, %p7994_p1 }
0x2569   :  { %p7997_p4 = pnand %p7996_p3, %p7990_p0 }
0x25ef   :  { %v6000_v28 = vpop.xlane.xlu1 %5999 }
0x25f0   :  { %v6004_v29 = vmul.f32 0.03125, %v6000_v28 }
0x25f2   :  { %v6006_v3 = vsub.f32 %v5995_v23, %v6004_v29 }
0x25f3   :  { %v6003_v30 = vpop.xlane.xlu1 %6002 }
0x25f4   :  { %v6005_v31 = vmul.f32 0.03125, %v6003_v30  ;;  %v6008_v1 = vmul.f32 %v6006_v3, %v6006_v3  ;;  %v6326_v30 = vld [vmem:[%s8890_s30] sm:$0xff] }
0x25f6   :  { %v6007_v33 = vsub.f32 %v5996_v40, %v6005_v31  ;;  %v6010_v36 = vsel %vm150_vm0, %v6008_v1, 0.0  ;;  %v6328_v1 = vsub.f32 1.0, %v6326_v30 }
0x25f7   :  { %6011 = vadd.xlane.f32.xlu1 %v6010_v36 }
0x25f8   :  { %v6009_v37 = vmul.f32 %v6007_v33, %v6007_v33 }
0x25fa   :  { %v6013_v38 = vsel %vm150_vm0, %v6009_v37, 0.0 }
0x25fb   :  { %6014 = vadd.xlane.f32.xlu0 %v6013_v38 }
0x2608   :  { %6032 = vrot.lane.b32.xlu1 %v6601_v41, %s8045_s5 }
0x2684   :  { %v6012_v58 = vpop.xlane.xlu1 %6011 }
0x2685   :  { %v6016_v46 = vmul.f32 0.03125, %v6012_v58 }
0x2687   :  { %v6018_v47 = vadd.f32 1e-05, %v6016_v46 }
0x2688   :  { %v6015_v48 = vpop.xlane.xlu0 %6014  ;;  %v6033_v52 = vpop.permute.xlu1 %6032 }
0x2689   :  { %7979 = vrsqrt.f32 %v6018_v47  ;;  %v6017_v49 = vmul.f32 0.03125, %v6015_v48 }
0x268b   :  { %v6019_v50 = vadd.f32 1e-05, %v6017_v49 }
0x268d   :  { %7981 = vrsqrt.f32 %v6019_v50 }
0x2693   :  { %v7980_v51 = vpop.eup %7979 }
0x2694   :  { %v6022_v25 = vmul.f32 %v7980_v51, %v6006_v3  ;;  %v6327_v3 = vld [vmem:[%s8890_s30 + $0x8] sm:$0xff] }
0x2695   :  { %v6329_v31 = vsub.f32 1.0, %v6327_v3 }
0x2696   :  { %v6030_v24 = vmul.f32 %v6601_v41, %v6022_v25 }
0x2697   :  { %v7982_v53 = vpop.eup %7981 }
0x2698   :  { %v6023_v13 = vmul.f32 %v7982_v53, %v6007_v33  ;;  %v6035_v55 = vadd.f32 %v6033_v52, %v6030_v24 }
0x269a   :  { %v6031_v57 = vmul.f32 %v6601_v41, %v6023_v13  ;;  %7309 = vmatprep.mubr.msk.f32.mxu1 %vm150_vm0, %v6035_v55 }
0x269c   :  { %v6036_v7 = vadd.f32 %v6033_v52, %v6031_v57 }
0x269e   :  { %7310 = vmatmul.mubr.msk.f32.vlgmr.msra.gmra.mrb[42].mxu1 %vm150_vm0, %v6036_v7 }
0x269f   :  { %7597 = vmatpush3.bf16.msra.mxu1 %v7594_v61 }
0x26a0   :  { %7599 = vmatprep.subr.bf16.mxu1 %v7598_v2 }
0x2771   :  { %v7311_v6 = vpop.f32.mrb[42].mxu1 }
0x2772   :  { %v6120_v8 = vpop.f32.mrb[43].mxu1  ;;  %v6126_v9 = vadd.f32 %v7311_v6, %v6602_v4 }
0x2773   :  { %v6121_v17 = vadd.f32 %v6602_v4, %v6120_v8 }
0x2775   :  { %7316 = vmatprep.mubr.msk.f32.mxu1 %vm331_vm3, %v6121_v17 }
0x2776   :  { %7317 = vmatmul.mubr.msk.f32.vlgmr.msra.gmra.mrb[44].mxu1 %vm331_vm3, %v6126_v9 }
0x2777   :  { %7601 = vmatpush3.bf16.msra.mxu1 %v7598_v2 }
0x2778   :  { %7603 = vmatprep.subr.bf16.mxu1 %v7602_v11 }
0x277b   :  { %7605 = vmatpush3.bf16.msra.mxu1 %v7602_v11 }
0x2849   :  { %v7318_v12 = vpop.f32.mrb[44].mxu1 }
0x284a   :  { %v6216_v14 = vadd.f32 %v7318_v12, %v6605_v63  ;;  %v6210_v15 = vpop.f32.mrb[45].mxu1 }
0x284b   :  { %v6211_v16 = vadd.f32 %v6605_v63, %v6210_v15 }
0x284c   :  { %v6220_v18 = vmax.f32 %v6216_v14, 0.0 }
0x284d   :  { %v6219_v32 = vmax.f32 %v6211_v16, 0.0 }
0x284f   :  { %7327 = vmatprep.mubr.msk.f32.mxu1 %vm150_vm0, %v6219_v32 }
0x2850   :  { %7328 = vmatmul.mubr.msk.f32.vlgmr.msra.gmra.mrb[46].mxu1 %vm150_vm0, %v6220_v18 }
0x2923   :  { %v7329_v19 = vpop.f32.mrb[46].mxu1 }
0x2924   :  { %v6310_v21 = vadd.f32 %v7329_v19, %v6608_v27  ;;  %v6304_v22 = vpop.f32.mrb[47].mxu1 }
0x2925   :  { %v6305_v23 = vadd.f32 %v6608_v27, %v6304_v22 }
0x2926   :  { %v6316_v54 = vsub.f32 %v6310_v21, %v6314_v20 }
0x2927   :  { %v6315_v39 = vsub.f32 %v6305_v23, %v6313_v5 }
0x2928   :  { %v6318_v40 = vmul.f32 %v6316_v54, %v6316_v54 }
0x2929   :  { %v6317_v26 = vmul.f32 %v6315_v39, %v6315_v39 }
0x292a   :  { %v6323_v28 = vsel %vm6319_vm5, %v6318_v40, 0.0 }
0x292b   :  { %6324 = vadd.xlane.f32.xlu0 %v6323_v28  ;;  %v6320_v29 = vsel %vm6319_vm5, %v6317_v26, 0.0 }
0x292c   :  { %6321 = vadd.xlane.f32.xlu1 %v6320_v29 }
0x29b8   :  { %v6325_v33 = vpop.xlane.xlu0 %6324 }
0x29b9   :  { %v6331_v36 = vmul.f32 %v6329_v31, %v6325_v33  ;;  %v6322_v37 = vpop.xlane.xlu1 %6321 }
0x29ba   :  { %v6330_v38 = vmul.f32 %v6328_v1, %v6322_v37 }
0x29bb   :  { %v6334_v41 = vsel %vm6332_vm6, %v6331_v36, 0.0 }
0x29bc   :  { %v6333_v42 = vsel %vm6332_vm6, %v6330_v38, 0.0 }
0x29bd   :  { %v6335_v43 = vadd.f32 %v6334_v41, %v6333_v42 }
0x29bf   :  { %v6336_v44 = vrot.slane %v6335_v43, 4 }
0x29c1   :  { %v6337_v45 = vadd.f32 %v6336_v44, %v6335_v43 }
0x29c3   :  { %v6338_v34 = vrot.slane %v6337_v45, 2 }
0x29c5   :  { %v6339_v56 = vadd.f32 %v6338_v34, %v6337_v45 }
0x29c7   :  { %v6340_v58 = vrot.slane %v6339_v56, 1 }
0x29c9   :  { %v6341_v46 = vadd.f32 %v6340_v58, %v6339_v56 }
0x29cb   :  { %v6342_v47 = vmul.f32 0.0625, %v6341_v46 }
0x29cd   :  { %6344 = vst.msk [vmem:[#allocation2] sm:$0x1] %vm6343_vm7, %v6342_v47 }
0x29ce   :  { %8000 = shalt.err (!%p7997_p4)
}
0x29cf   :  { %s8001_s27 = scalar_lea.hbm %s8219_s21, 16 }
0x29d0   :  { %p8002_p5 = scmp.ne.s32.totalorder %s8219_s21, %s8001_s27  ;;  %p8005_p6 = scmp.lt.u32.totalorder %s8001_s27, %s8219_s21 }
0x29d2   :  { %p8007_p7 = pnand %p8005_p6, %p8002_p5 }
0x29d4   :  { %8010 = shalt.err (!%p8007_p7)
}
0x29d5   :  { %6354 = dma.vmem_to_hbm [thread:$0]  %s6352_s6, 16, %s8219_s21, [#allocation3]  }
0x29d6   :  { %8011 = dma.done.wait [#allocation3], 16  }
0x29d7   :  { %8012 = vsyncadd [#allocation3], 4294967280 }
0x29d8   :  { %6358 = vsyncpa [#allocation3], 1 }

</bundles_post_ra>
